<compile_context>
chip_gen: v6e
topology: v6e:2x2x1
jax: 0.10.0
libtpu: 0.0.40
codegen_flags: <defaults>
</compile_context>

<pallas_src>
import jax
import jax.numpy as jnp
from jax.experimental import pallas as pl
from jax.experimental.pallas import tpu as pltpu

EPS = 1e-5  # BatchNorm2d default eps


def double_conv_kernel(patches1_ref, w1_ref, b1_ref, g1_ref, bt1_ref, m1_ref,
                       w2_ref, b2_ref, g2_ref, bt2_ref, m2_ref,
                       out_ref, midpad_ref):
    N, HP, WP, Cmid = midpad_ref.shape
    H, W = HP - 2, WP - 2
    M = N * H * W
    Cout = w2_ref.shape[1]

    def bn_relu(x, gamma, beta):
        # Training-mode BatchNorm2d: biased batch stats over the N*H*W rows,
        # computed in a single pass (sum and sum-of-squares together).
        s1 = jnp.sum(x, axis=0, keepdims=True)
        s2 = jnp.sum(x * x, axis=0, keepdims=True)
        mean = s1 * (1.0 / M)
        var = s2 * (1.0 / M) - mean * mean
        scale = gamma * jax.lax.rsqrt(var + EPS)
        shift = beta - mean * scale
        return jnp.maximum(x * scale + shift, 0.0)

    # ---- block 1: fused-im2col conv (single K=9*Cin matmul) -> dropout -> BN -> ReLU
    h = jnp.dot(patches1_ref[...], w1_ref[...],
                preferred_element_type=jnp.float32)
    # conv bias, then dropout mask (mask is pre-scaled by 1/(1-p) in the wrapper)
    h = (h + b1_ref[...]) * m1_ref[...]
    h = bn_relu(h, g1_ref[...], bt1_ref[...])

    # ---- re-pad the intermediate activation: zero ONLY the 1-px border,
    #      the interior is fully overwritten every call.
    zrow = jnp.zeros((N, 1, WP, Cmid), jnp.float32)
    zcol = jnp.zeros((N, HP, 1, Cmid), jnp.float32)
    midpad_ref[:, 0:1, :, :] = zrow
    midpad_ref[:, HP - 1:HP, :, :] = zrow
    midpad_ref[:, :, 0:1, :] = zcol
    midpad_ref[:, :, WP - 1:WP, :] = zcol
    midpad_ref[:, 1:1 + H, 1:1 + W, :] = h.reshape(N, H, W, Cmid)

    # ---- block 2: build the (M, 9*Cmid) patch matrix once -> single K=9*Cmid matmul
    taps = [midpad_ref[:, dy:dy + H, dx:dx + W, :].reshape(M, Cmid)
            for dy in range(3) for dx in range(3)]
    patches2 = jnp.concatenate(taps, axis=-1)
    h2 = jnp.dot(patches2, w2_ref[...], preferred_element_type=jnp.float32)
    h2 = (h2 + b2_ref[...]) * m2_ref[...]
    h2 = bn_relu(h2, g2_ref[...], bt2_ref[...])

    out_ref[...] = h2.reshape(N, H, W, Cout)


def double_conv(x_nchw, params, *, p=0.1, seed=0):
    """Apply the DoubleConv block.

    x_nchw: (N, Cin, H, W) float32 (NCHW, matching the PyTorch API).
    params: (w1, b1, g1, bt1, w2, b2, g2, bt2), conv weights in HWIO layout.
    """
    w1, b1, g1, bt1, w2, b2, g2, bt2 = params
    N, Cin, H, W = x_nchw.shape
    Cmid = w1.shape[3]
    Cout = w2.shape[3]
    M = N * H * W

    # NCHW -> NHWC, pad by 1, and build the conv1 im2col patch matrix (M, 9*Cin)
    # in plain JAX (XLA fuses transpose+pad+gather into one cheap pass).
    x = jnp.transpose(x_nchw, (0, 2, 3, 1)).astype(jnp.float32)
    xpad = jnp.pad(x, ((0, 0), (1, 1), (1, 1), (0, 0)))
    patches1 = jnp.concatenate(
        [xpad[:, dy:dy + H, dx:dx + W, :] for dy in range(3) for dx in range(3)],
        axis=-1).reshape(M, 9 * Cin)

    # Monte-Carlo dropout keep-masks (always active), pre-scaled by 1/(1-p).
    key = jax.random.PRNGKey(seed)
    k1, k2 = jax.random.split(key)
    inv_keep = jnp.float32(1.0 / (1.0 - p))
    m1 = jax.random.bernoulli(k1, 1.0 - p, (M, Cmid)).astype(jnp.float32) * inv_keep
    m2 = jax.random.bernoulli(k2, 1.0 - p, (M, Cout)).astype(jnp.float32) * inv_keep

    # (3, 3, Cin, Cout) HWIO -> (9*Cin, Cout), matching the patch column order.
    w1f = w1.reshape(9 * Cin, Cmid).astype(jnp.float32)
    w2f = w2.reshape(9 * Cmid, Cout).astype(jnp.float32)

    vmem = pl.BlockSpec(memory_space=pltpu.MemorySpace.VMEM)
    out_nhwc = pl.pallas_call(
        double_conv_kernel,
        out_shape=jax.ShapeDtypeStruct((N, H, W, Cout), jnp.float32),
        in_specs=[vmem] * 11,
        out_specs=vmem,
        scratch_shapes=[pltpu.VMEM((N, H + 2, W + 2, Cmid), jnp.float32)],
        compiler_params=pltpu.CompilerParams(
            vmem_limit_bytes=32 * 1024 * 1024),
    )(patches1, w1f,
      b1.reshape(1, -1).astype(jnp.float32),
      g1.reshape(1, -1).astype(jnp.float32),
      bt1.reshape(1, -1).astype(jnp.float32),
      m1,
      w2f,
      b2.reshape(1, -1).astype(jnp.float32),
      g2.reshape(1, -1).astype(jnp.float32),
      bt2.reshape(1, -1).astype(jnp.float32),
      m2)

    # NHWC -> NCHW to match the PyTorch output layout.
    return jnp.transpose(out_nhwc, (0, 3, 1, 2))


if __name__ == "__main__":
    N, Cin, Cmid, Cout, H, W = 2, 4, 8, 8, 16, 16
    key = jax.random.PRNGKey(0)
    kx, kw1, kb1, kw2, kb2 = jax.random.split(key, 5)

    x = jax.random.normal(kx, (N, Cin, H, W), jnp.float32)

    # Deterministic synthetic parameters (Conv2d weights in HWIO; a PyTorch
    # OIHW weight would be fed as w.transpose(2, 3, 1, 0)).
    w1 = jax.random.normal(kw1, (3, 3, Cin, Cmid), jnp.float32) * 0.1
    b1 = jax.random.normal(kb1, (Cmid,), jnp.float32) * 0.1
    w2 = jax.random.normal(kw2, (3, 3, Cmid, Cout), jnp.float32) * 0.1
    b2 = jax.random.normal(kb2, (Cout,), jnp.float32) * 0.1
    g1, bt1 = jnp.ones((Cmid,), jnp.float32), jnp.zeros((Cmid,), jnp.float32)
    g2, bt2 = jnp.ones((Cout,), jnp.float32), jnp.zeros((Cout,), jnp.float32)

    out = double_conv(x, (w1, b1, g1, bt1, w2, b2, g2, bt2), p=0.1, seed=0)
    out = jax.block_until_ready(out)
    assert out.shape == (N, Cout, H, W)
    assert bool(jnp.all(jnp.isfinite(out)))
    assert bool(jnp.all(out >= 0.0))  # final ReLU
    print("KERNEL_OK")
</pallas_src>

<mosaic_0001>
module attributes {stable_mosaic.version = 11 : i64} {
  func.func @double_conv_kernel(%arg0: memref<512x36xf32, #tpu.memory_space<vmem>>, %arg1: memref<36x8xf32, #tpu.memory_space<vmem>>, %arg2: memref<1x8xf32, #tpu.memory_space<vmem>>, %arg3: memref<1x8xf32, #tpu.memory_space<vmem>>, %arg4: memref<1x8xf32, #tpu.memory_space<vmem>>, %arg5: memref<512x8xf32, #tpu.memory_space<vmem>>, %arg6: memref<72x8xf32, #tpu.memory_space<vmem>>, %arg7: memref<1x8xf32, #tpu.memory_space<vmem>>, %arg8: memref<1x8xf32, #tpu.memory_space<vmem>>, %arg9: memref<1x8xf32, #tpu.memory_space<vmem>>, %arg10: memref<512x8xf32, #tpu.memory_space<vmem>>, %arg11: memref<2x16x16x8xf32, #tpu.memory_space<vmem>>, %arg12: memref<2x18x18x8xf32, #tpu.memory_space<vmem>>) attributes {dimension_semantics = [], scalar_prefetch = 0 : i64, scratch_operands = 1 : i64, tpu.core_type = #tpu.core_type<tc>} {
    %c0 = arith.constant 0 : index
    %c0_0 = arith.constant 0 : index
    %0 = vector.load %arg0[%c0, %c0_0] : memref<512x36xf32, #tpu.memory_space<vmem>>, vector<512x36xf32>
    %c0_1 = arith.constant 0 : index
    %c0_2 = arith.constant 0 : index
    %1 = vector.load %arg1[%c0_1, %c0_2] : memref<36x8xf32, #tpu.memory_space<vmem>>, vector<36x8xf32>
    %cst = arith.constant dense<0.000000e+00> : vector<512x8xf32>
    %2 = tpu.matmul %0, %1, %cst {dimension_numbers = #tpu.dot_dimension_numbers<[1], [0], [0], [1], [0, 0, 1, 1], [], []>} : vector<512x36xf32>, vector<36x8xf32>, vector<512x8xf32> -> vector<512x8xf32>
    %c0_3 = arith.constant 0 : index
    %c0_4 = arith.constant 0 : index
    %3 = vector.load %arg2[%c0_3, %c0_4] : memref<1x8xf32, #tpu.memory_space<vmem>>, vector<1x8xf32>
    %4 = vector.broadcast %3 : vector<1x8xf32> to vector<512x8xf32>
    %5 = arith.addf %2, %4 : vector<512x8xf32>
    %c0_5 = arith.constant 0 : index
    %c0_6 = arith.constant 0 : index
    %6 = vector.load %arg5[%c0_5, %c0_6] : memref<512x8xf32, #tpu.memory_space<vmem>>, vector<512x8xf32>
    %7 = arith.mulf %5, %6 : vector<512x8xf32>
    %c0_7 = arith.constant 0 : index
    %c0_8 = arith.constant 0 : index
    %8 = vector.load %arg3[%c0_7, %c0_8] : memref<1x8xf32, #tpu.memory_space<vmem>>, vector<1x8xf32>
    %c0_9 = arith.constant 0 : index
    %c0_10 = arith.constant 0 : index
    %9 = vector.load %arg4[%c0_9, %c0_10] : memref<1x8xf32, #tpu.memory_space<vmem>>, vector<1x8xf32>
    %cst_11 = arith.constant dense<0.000000e+00> : vector<8xf32>
    %10 = vector.multi_reduction <add>, %7, %cst_11 [0] : vector<512x8xf32> to vector<8xf32>
    %11 = vector.shape_cast %10 : vector<8xf32> to vector<1x8xf32>
    %12 = arith.mulf %7, %7 : vector<512x8xf32>
    %cst_12 = arith.constant dense<0.000000e+00> : vector<8xf32>
    %13 = vector.multi_reduction <add>, %12, %cst_12 [0] : vector<512x8xf32> to vector<8xf32>
    %14 = vector.shape_cast %13 : vector<8xf32> to vector<1x8xf32>
    %cst_13 = arith.constant 0.001953125 : f32
    %15 = vector.broadcast %cst_13 : f32 to vector<1x8xf32>
    %16 = arith.mulf %11, %15 : vector<1x8xf32>
    %cst_14 = arith.constant 0.001953125 : f32
    %17 = vector.broadcast %cst_14 : f32 to vector<1x8xf32>
    %18 = arith.mulf %14, %17 : vector<1x8xf32>
    %19 = arith.mulf %16, %16 : vector<1x8xf32>
    %20 = arith.subf %18, %19 : vector<1x8xf32>
    %cst_15 = arith.constant 9.99999974E-6 : f32
    %21 = vector.broadcast %cst_15 : f32 to vector<1x8xf32>
    %22 = arith.addf %20, %21 : vector<1x8xf32>
    %23 = math.rsqrt %22 : vector<1x8xf32>
    %24 = arith.mulf %8, %23 : vector<1x8xf32>
    %25 = arith.mulf %16, %24 : vector<1x8xf32>
    %26 = arith.subf %9, %25 : vector<1x8xf32>
    %27 = vector.broadcast %24 : vector<1x8xf32> to vector<512x8xf32>
    %28 = arith.mulf %7, %27 : vector<512x8xf32>
    %29 = vector.broadcast %26 : vector<1x8xf32> to vector<512x8xf32>
    %30 = arith.addf %28, %29 : vector<512x8xf32>
    %cst_16 = arith.constant 0.000000e+00 : f32
    %31 = vector.broadcast %cst_16 : f32 to vector<512x8xf32>
    %32 = arith.maximumf %30, %31 : vector<512x8xf32>
    %cst_17 = arith.constant 0.000000e+00 : f32
    %33 = vector.broadcast %cst_17 : f32 to vector<2x1x18x8xf32>
    %cst_18 = arith.constant 0.000000e+00 : f32
    %34 = vector.broadcast %cst_18 : f32 to vector<2x18x1x8xf32>
    %c0_19 = arith.constant 0 : index
    %c0_20 = arith.constant 0 : index
    %c0_21 = arith.constant 0 : index
    %c0_22 = arith.constant 0 : index
    %35 = vector.load %arg12[%c0_19, %c0_20, %c0_21, %c0_22] : memref<2x18x18x8xf32, #tpu.memory_space<vmem>>, vector<2x1x18x8xf32>
    tpu.vector_store %arg12[%c0_19, %c0_20, %c0_21, %c0_22], %33 {strides = array<i32>} : memref<2x18x18x8xf32, #tpu.memory_space<vmem>>, vector<2x1x18x8xf32>,
    %c0_23 = arith.constant 0 : index
    %c17 = arith.constant 17 : index
    %c0_24 = arith.constant 0 : index
    %c0_25 = arith.constant 0 : index
    %36 = vector.load %arg12[%c0_23, %c17, %c0_24, %c0_25] : memref<2x18x18x8xf32, #tpu.memory_space<vmem>>, vector<2x1x18x8xf32>
    tpu.vector_store %arg12[%c0_23, %c17, %c0_24, %c0_25], %33 {strides = array<i32>} : memref<2x18x18x8xf32, #tpu.memory_space<vmem>>, vector<2x1x18x8xf32>,
    %c0_26 = arith.constant 0 : index
    %c0_27 = arith.constant 0 : index
    %c0_28 = arith.constant 0 : index
    %c0_29 = arith.constant 0 : index
    %37 = vector.load %arg12[%c0_26, %c0_27, %c0_28, %c0_29] : memref<2x18x18x8xf32, #tpu.memory_space<vmem>>, vector<2x18x1x8xf32>
    tpu.vector_store %arg12[%c0_26, %c0_27, %c0_28, %c0_29], %34 {strides = array<i32>} : memref<2x18x18x8xf32, #tpu.memory_space<vmem>>, vector<2x18x1x8xf32>,
    %c0_30 = arith.constant 0 : index
    %c0_31 = arith.constant 0 : index
    %c17_32 = arith.constant 17 : index
    %c0_33 = arith.constant 0 : index
    %38 = vector.load %arg12[%c0_30, %c0_31, %c17_32, %c0_33] : memref<2x18x18x8xf32, #tpu.memory_space<vmem>>, vector<2x18x1x8xf32>
    tpu.vector_store %arg12[%c0_30, %c0_31, %c17_32, %c0_33], %34 {strides = array<i32>} : memref<2x18x18x8xf32, #tpu.memory_space<vmem>>, vector<2x18x1x8xf32>,
    %39 = vector.shape_cast %32 : vector<512x8xf32> to vector<2x16x16x8xf32>
    %c0_34 = arith.constant 0 : index
    %c1 = arith.constant 1 : index
    %c1_35 = arith.constant 1 : index
    %c0_36 = arith.constant 0 : index
    %40 = vector.load %arg12[%c0_34, %c1, %c1_35, %c0_36] : memref<2x18x18x8xf32, #tpu.memory_space<vmem>>, vector<2x16x16x8xf32>
    tpu.vector_store %arg12[%c0_34, %c1, %c1_35, %c0_36], %39 {strides = array<i32>} : memref<2x18x18x8xf32, #tpu.memory_space<vmem>>, vector<2x16x16x8xf32>,
    %c0_37 = arith.constant 0 : index
    %c0_38 = arith.constant 0 : index
    %c0_39 = arith.constant 0 : index
    %c0_40 = arith.constant 0 : index
    %41 = vector.load %arg12[%c0_37, %c0_38, %c0_39, %c0_40] : memref<2x18x18x8xf32, #tpu.memory_space<vmem>>, vector<2x16x16x8xf32>
    %42 = vector.shape_cast %41 : vector<2x16x16x8xf32> to vector<512x8xf32>
    %c0_41 = arith.constant 0 : index
    %c0_42 = arith.constant 0 : index
    %c1_43 = arith.constant 1 : index
    %c0_44 = arith.constant 0 : index
    %43 = vector.load %arg12[%c0_41, %c0_42, %c1_43, %c0_44] : memref<2x18x18x8xf32, #tpu.memory_space<vmem>>, vector<2x16x16x8xf32>
    %44 = vector.shape_cast %43 : vector<2x16x16x8xf32> to vector<512x8xf32>
    %c0_45 = arith.constant 0 : index
    %c0_46 = arith.constant 0 : index
    %c2 = arith.constant 2 : index
    %c0_47 = arith.constant 0 : index
    %45 = vector.load %arg12[%c0_45, %c0_46, %c2, %c0_47] : memref<2x18x18x8xf32, #tpu.memory_space<vmem>>, vector<2x16x16x8xf32>
    %46 = vector.shape_cast %45 : vector<2x16x16x8xf32> to vector<512x8xf32>
    %c0_48 = arith.constant 0 : index
    %c1_49 = arith.constant 1 : index
    %c0_50 = arith.constant 0 : index
    %c0_51 = arith.constant 0 : index
    %47 = vector.load %arg12[%c0_48, %c1_49, %c0_50, %c0_51] : memref<2x18x18x8xf32, #tpu.memory_space<vmem>>, vector<2x16x16x8xf32>
    %48 = vector.shape_cast %47 : vector<2x16x16x8xf32> to vector<512x8xf32>
    %c0_52 = arith.constant 0 : index
    %c1_53 = arith.constant 1 : index
    %c1_54 = arith.constant 1 : index
    %c0_55 = arith.constant 0 : index
    %49 = vector.load %arg12[%c0_52, %c1_53, %c1_54, %c0_55] : memref<2x18x18x8xf32, #tpu.memory_space<vmem>>, vector<2x16x16x8xf32>
    %50 = vector.shape_cast %49 : vector<2x16x16x8xf32> to vector<512x8xf32>
    %c0_56 = arith.constant 0 : index
    %c1_57 = arith.constant 1 : index
    %c2_58 = arith.constant 2 : index
    %c0_59 = arith.constant 0 : index
    %51 = vector.load %arg12[%c0_56, %c1_57, %c2_58, %c0_59] : memref<2x18x18x8xf32, #tpu.memory_space<vmem>>, vector<2x16x16x8xf32>
    %52 = vector.shape_cast %51 : vector<2x16x16x8xf32> to vector<512x8xf32>
    %c0_60 = arith.constant 0 : index
    %c2_61 = arith.constant 2 : index
    %c0_62 = arith.constant 0 : index
    %c0_63 = arith.constant 0 : index
    %53 = vector.load %arg12[%c0_60, %c2_61, %c0_62, %c0_63] : memref<2x18x18x8xf32, #tpu.memory_space<vmem>>, vector<2x16x16x8xf32>
    %54 = vector.shape_cast %53 : vector<2x16x16x8xf32> to vector<512x8xf32>
    %c0_64 = arith.constant 0 : index
    %c2_65 = arith.constant 2 : index
    %c1_66 = arith.constant 1 : index
    %c0_67 = arith.constant 0 : index
    %55 = vector.load %arg12[%c0_64, %c2_65, %c1_66, %c0_67] : memref<2x18x18x8xf32, #tpu.memory_space<vmem>>, vector<2x16x16x8xf32>
    %56 = vector.shape_cast %55 : vector<2x16x16x8xf32> to vector<512x8xf32>
    %c0_68 = arith.constant 0 : index
    %c2_69 = arith.constant 2 : index
    %c2_70 = arith.constant 2 : index
    %c0_71 = arith.constant 0 : index
    %57 = vector.load %arg12[%c0_68, %c2_69, %c2_70, %c0_71] : memref<2x18x18x8xf32, #tpu.memory_space<vmem>>, vector<2x16x16x8xf32>
    %58 = vector.shape_cast %57 : vector<2x16x16x8xf32> to vector<512x8xf32>
    %59 = tpu.concatenate %42, %44, %46, %48, %50, %52, %54, %56, %58 in 1 : vector<512x8xf32>, vector<512x8xf32>, vector<512x8xf32>, vector<512x8xf32>, vector<512x8xf32>, vector<512x8xf32>, vector<512x8xf32>, vector<512x8xf32>, vector<512x8xf32> -> vector<512x72xf32>
    %c0_72 = arith.constant 0 : index
    %c0_73 = arith.constant 0 : index
    %60 = vector.load %arg6[%c0_72, %c0_73] : memref<72x8xf32, #tpu.memory_space<vmem>>, vector<72x8xf32>
    %cst_74 = arith.constant dense<0.000000e+00> : vector<512x8xf32>
    %61 = tpu.matmul %59, %60, %cst_74 {dimension_numbers = #tpu.dot_dimension_numbers<[1], [0], [0], [1], [0, 0, 1, 1], [], []>} : vector<512x72xf32>, vector<72x8xf32>, vector<512x8xf32> -> vector<512x8xf32>
    %c0_75 = arith.constant 0 : index
    %c0_76 = arith.constant 0 : index
    %62 = vector.load %arg7[%c0_75, %c0_76] : memref<1x8xf32, #tpu.memory_space<vmem>>, vector<1x8xf32>
    %63 = vector.broadcast %62 : vector<1x8xf32> to vector<512x8xf32>
    %64 = arith.addf %61, %63 : vector<512x8xf32>
    %c0_77 = arith.constant 0 : index
    %c0_78 = arith.constant 0 : index
    %65 = vector.load %arg10[%c0_77, %c0_78] : memref<512x8xf32, #tpu.memory_space<vmem>>, vector<512x8xf32>
    %66 = arith.mulf %64, %65 : vector<512x8xf32>
    %c0_79 = arith.constant 0 : index
    %c0_80 = arith.constant 0 : index
    %67 = vector.load %arg8[%c0_79, %c0_80] : memref<1x8xf32, #tpu.memory_space<vmem>>, vector<1x8xf32>
    %c0_81 = arith.constant 0 : index
    %c0_82 = arith.constant 0 : index
    %68 = vector.load %arg9[%c0_81, %c0_82] : memref<1x8xf32, #tpu.memory_space<vmem>>, vector<1x8xf32>
    %cst_83 = arith.constant dense<0.000000e+00> : vector<8xf32>
    %69 = vector.multi_reduction <add>, %66, %cst_83 [0] : vector<512x8xf32> to vector<8xf32>
    %70 = vector.shape_cast %69 : vector<8xf32> to vector<1x8xf32>
    %71 = arith.mulf %66, %66 : vector<512x8xf32>
    %cst_84 = arith.constant dense<0.000000e+00> : vector<8xf32>
    %72 = vector.multi_reduction <add>, %71, %cst_84 [0] : vector<512x8xf32> to vector<8xf32>
    %73 = vector.shape_cast %72 : vector<8xf32> to vector<1x8xf32>
    %cst_85 = arith.constant 0.001953125 : f32
    %74 = vector.broadcast %cst_85 : f32 to vector<1x8xf32>
    %75 = arith.mulf %70, %74 : vector<1x8xf32>
    %cst_86 = arith.constant 0.001953125 : f32
    %76 = vector.broadcast %cst_86 : f32 to vector<1x8xf32>
    %77 = arith.mulf %73, %76 : vector<1x8xf32>
    %78 = arith.mulf %75, %75 : vector<1x8xf32>
    %79 = arith.subf %77, %78 : vector<1x8xf32>
    %cst_87 = arith.constant 9.99999974E-6 : f32
    %80 = vector.broadcast %cst_87 : f32 to vector<1x8xf32>
    %81 = arith.addf %79, %80 : vector<1x8xf32>
    %82 = math.rsqrt %81 : vector<1x8xf32>
    %83 = arith.mulf %67, %82 : vector<1x8xf32>
    %84 = arith.mulf %75, %83 : vector<1x8xf32>
    %85 = arith.subf %68, %84 : vector<1x8xf32>
    %86 = vector.broadcast %83 : vector<1x8xf32> to vector<512x8xf32>
    %87 = arith.mulf %66, %86 : vector<512x8xf32>
    %88 = vector.broadcast %85 : vector<1x8xf32> to vector<512x8xf32>
    %89 = arith.addf %87, %88 : vector<512x8xf32>
    %cst_88 = arith.constant 0.000000e+00 : f32
    %90 = vector.broadcast %cst_88 : f32 to vector<512x8xf32>
    %91 = arith.maximumf %89, %90 : vector<512x8xf32>
    %92 = vector.shape_cast %91 : vector<512x8xf32> to vector<2x16x16x8xf32>
    %c0_89 = arith.constant 0 : index
    %c0_90 = arith.constant 0 : index
    %c0_91 = arith.constant 0 : index
    %c0_92 = arith.constant 0 : index
    %93 = vector.load %arg11[%c0_89, %c0_90, %c0_91, %c0_92] : memref<2x16x16x8xf32, #tpu.memory_space<vmem>>, vector<2x16x16x8xf32>
    tpu.vector_store %arg11[%c0_89, %c0_90, %c0_91, %c0_92], %92 {strides = array<i32>} : memref<2x16x16x8xf32, #tpu.memory_space<vmem>>, vector<2x16x16x8xf32>,
    return
  }
}

</mosaic_0001>

<bundles_post_ra>
// kernel: tpu_custom_call.1
= control target key start
LH: loop header
LB: loop body
LE: loop exit
PB: predicated region body
PF: predicated region fallthrough
CT: control target
= control target key end

     0   :  { %vm307_vm0 = vcmask 1043456   ;;  %vm114_vm1 = vcmask 293888   ;;  %vm826_vm2 = vcmask 64512   ;;  %s6588_s30 = smov 8   ;;  %vm1372_vm3 = vcmask 58368   ;;  %s6589_s26 = smov 16   ;;  %s12209_s1 = inlined_call_operand.vmem [shape: f32[36,8], index: 1, kind: input, shape index: {}]   ;;  %s12210_s0 = inlined_call_operand.vmem [shape: f32[512,36], index: 0, kind: input, shape index: {}]   ;;  %s12211_s2 = inlined_call_operand.vmem [shape: f32[1,8], index: 2, kind: input, shape index: {}]   ;;  %s12212_s5 = inlined_call_operand.vmem [shape: f32[512,8], index: 5, kind: input, shape index: {}]   ;;  %s12213_s3 = inlined_call_operand.vmem [shape: f32[1,8], index: 3, kind: input, shape index: {}]   ;;  %s12214_s4 = inlined_call_operand.vmem [shape: f32[1,8], index: 4, kind: input, shape index: {}]   ;;  %s12215_s6 = inlined_call_operand.vmem [shape: f32[72,8], index: 6, kind: input, shape index: {}]   ;;  %s12216_s7 = inlined_call_operand.vmem [shape: f32[1,8], index: 7, kind: input, shape index: {}]   ;;  %s12217_s10 = inlined_call_operand.vmem [shape: f32[512,8], index: 10, kind: input, shape index: {}]   ;;  %s12218_s8 = inlined_call_operand.vmem [shape: f32[1,8], index: 8, kind: input, shape index: {}]   ;;  %s12219_s9 = inlined_call_operand.vmem [shape: f32[1,8], index: 9, kind: input, shape index: {}]   ;;  %s12220_s11 = inlined_call_operand.vmem [shape: f32[2,16,16,8], index: 11, kind: output, shape index: {}]  }
   0x1   :  { %v106_v0 = vld [vmem:[%s12209_s1 + $0x20] sm:$0xf]  ;;  %v105_v1 = vld [vmem:[%s12209_s1 + $0x18] sm:$0xff]  ;;  %v104_v3 = vld [vmem:[%s12209_s1 + $0x10] sm:$0xff]  ;;  %vm1384_vm4 = vcmask 57344   ;;  %s6593_s19 = smov 48  }
   0x2   :  { %6274 = vmatprep.subr.msk.mxu0 %vm307_vm0, %v106_v0  ;;  %v38_v2 = vld [vmem:[%s12210_s0] sm:$0xff]  ;;  %v103_v4 = vld [vmem:[%s12209_s1 + $0x8] sm:$0xff]  ;;  %v40_v7 = vld [vmem:[%s12210_s0 + $0x10] sm:$0xff]  ;;  %s6594_s24 = smov 56   ;;  %s6595_s25 = smov 64   ;;  %vm4211_vm5 = vcmask 130048  }
   0x3   :  { %6275 = vmatpush3.msk.msra.mxu0 %vm307_vm0, %v106_v0  ;;  %6284 = vmatprep.mubr.msk.f32.mxu0 %vm114_vm1, %v38_v2  ;;  %v102_v5 = vld [vmem:[%s12209_s1] sm:$0xff]  ;;  %v39_v6 = vld [vmem:[%s12210_s0 + $0x8] sm:$0xff]  ;;  %v41_v8 = vld [vmem:[%s12210_s0 + $0x18] sm:$0xff]  ;;  %vm4276_vm6 = vcmask 195584   ;;  %vm4341_vm7 = vcmask 261120   ;;  %vm4406_vm8 = vcmask 326656  }
   0x4   :  { %6276 = vmatprep.subr.mxu0 %v105_v1  ;;  %v42_v9 = vld [vmem:[%s12210_s0 + $0x20] sm:$0xff]  ;;  %v43_v10 = vld [vmem:[%s12210_s0 + $0x28] sm:$0xff]  ;;  %v44_v11 = vld [vmem:[%s12210_s0 + $0x30] sm:$0xff]  ;;  %vm4536_vm9 = vcmask 457728   ;;  %vm4471_vm10 = vcmask 392192   ;;  %vm4601_vm11 = vcmask 523264  }
   0x5   :  { %6277 = vmatpush3.msra.mxu0 %v105_v1  ;;  %v45_v12 = vld [vmem:[%s12210_s0 + $0x38] sm:$0xff]  ;;  %v46_v13 = vld [vmem:[%s12210_s0 + $0x40] sm:$0xff]  ;;  %v47_v14 = vld [vmem:[%s12210_s0 + $0x48] sm:$0xff]  ;;  %vm4682_vm12 = vcmask 588800  }
   0x6   :  { %6278 = vmatprep.subr.mxu0 %v104_v3  ;;  %v48_v15 = vld [vmem:[%s12210_s0 + $0x50] sm:$0xff]  ;;  %v49_v16 = vld [vmem:[%s12210_s0 + $0x58] sm:$0xff]  ;;  %v50_v17 = vld [vmem:[%s12210_s0 + $0x60] sm:$0xff] }
   0x7   :  { %6279 = vmatpush3.msra.mxu0 %v104_v3  ;;  %v51_v18 = vld [vmem:[%s12210_s0 + $0x68] sm:$0xff]  ;;  %v52_v19 = vld [vmem:[%s12210_s0 + $0x70] sm:$0xff]  ;;  %v53_v20 = vld [vmem:[%s12210_s0 + $0x78] sm:$0xff] }
   0x8   :  { %6280 = vmatprep.subr.mxu0 %v103_v4  ;;  %v54_v21 = vld [vmem:[%s12210_s0 + $0x80] sm:$0xff]  ;;  %v55_v22 = vld [vmem:[%s12210_s0 + $0x88] sm:$0xff]  ;;  %v56_v23 = vld [vmem:[%s12210_s0 + $0x90] sm:$0xff] }
   0x9   :  { %6281 = vmatpush3.msra.mxu0 %v103_v4  ;;  %v57_v24 = vld [vmem:[%s12210_s0 + $0x98] sm:$0xff]  ;;  %v58_v25 = vld [vmem:[%s12210_s0 + $0xa0] sm:$0xff]  ;;  %v59_v26 = vld [vmem:[%s12210_s0 + $0xa8] sm:$0xff] }
   0xa   :  { %6282 = vmatprep.subr.mxu0 %v102_v5  ;;  %v60_v27 = vld [vmem:[%s12210_s0 + $0xb0] sm:$0xff]  ;;  %v61_v28 = vld [vmem:[%s12210_s0 + $0xb8] sm:$0xff]  ;;  %v62_v29 = vld [vmem:[%s12210_s0 + $0xc0] sm:$0xff] }
   0xb   :  { %6283 = vmatpush3.msra.mxu0 %v102_v5  ;;  %v63_v30 = vld [vmem:[%s12210_s0 + $0xc8] sm:$0xff]  ;;  %v64_v31 = vld [vmem:[%s12210_s0 + $0xd0] sm:$0xff]  ;;  %v65_v32 = vld [vmem:[%s12210_s0 + $0xd8] sm:$0xff] }
   0xc   :  { %6285 = vmatmul.mubr.msk.f32.vlgmr.msra.gmra.mxu0 %vm114_vm1, %v39_v6  ;;  %v66_v33 = vld [vmem:[%s12210_s0 + $0xe0] sm:$0xff]  ;;  %v67_v34 = vld [vmem:[%s12210_s0 + $0xe8] sm:$0xff]  ;;  %v68_v35 = vld [vmem:[%s12210_s0 + $0xf0] sm:$0xff] }
   0xd   :  { %6287 = vmatprep.mubr.msk.f32.mxu0 %vm114_vm1, %v40_v7  ;;  %v69_v36 = vld [vmem:[%s12210_s0 + $0xf8] sm:$0xff]  ;;  %v70_v37 = vld [vmem:[%s12210_s0 + $0x100] sm:$0xff]  ;;  %v71_v38 = vld [vmem:[%s12210_s0 + $0x108] sm:$0xff] }
   0xe   :  { %v72_v39 = vld [vmem:[%s12210_s0 + $0x110] sm:$0xff]  ;;  %v73_v40 = vld [vmem:[%s12210_s0 + $0x118] sm:$0xff]  ;;  %v74_v41 = vld [vmem:[%s12210_s0 + $0x120] sm:$0xff] }
   0xf   :  { %v75_v42 = vld [vmem:[%s12210_s0 + $0x128] sm:$0xff]  ;;  %v76_v43 = vld [vmem:[%s12210_s0 + $0x130] sm:$0xff]  ;;  %v77_v44 = vld [vmem:[%s12210_s0 + $0x138] sm:$0xff] }
  0x10   :  { %6288 = vmatmul.mubr.msk.f32.gmra.mxu0 %vm114_vm1, %v41_v8  ;;  %v78_v45 = vld [vmem:[%s12210_s0 + $0x140] sm:$0xff]  ;;  %v79_v46 = vld [vmem:[%s12210_s0 + $0x148] sm:$0xff]  ;;  %v80_v47 = vld [vmem:[%s12210_s0 + $0x150] sm:$0xff] }
  0x11   :  { %6290 = vmatprep.mubr.msk.f32.mxu0 %vm114_vm1, %v42_v9  ;;  %v81_v48 = vld [vmem:[%s12210_s0 + $0x158] sm:$0xff]  ;;  %v82_v49 = vld [vmem:[%s12210_s0 + $0x160] sm:$0xff]  ;;  %v83_v50 = vld [vmem:[%s12210_s0 + $0x168] sm:$0xff] }
  0x12   :  { %v84_v51 = vld [vmem:[%s12210_s0 + $0x170] sm:$0xff]  ;;  %v85_v52 = vld [vmem:[%s12210_s0 + $0x178] sm:$0xff]  ;;  %v86_v53 = vld [vmem:[%s12210_s0 + $0x180] sm:$0xff] }
  0x13   :  { %v87_v54 = vld [vmem:[%s12210_s0 + $0x188] sm:$0xff]  ;;  %v88_v55 = vld [vmem:[%s12210_s0 + $0x190] sm:$0xff]  ;;  %v89_v56 = vld [vmem:[%s12210_s0 + $0x198] sm:$0xff] }
  0x14   :  { %6291 = vmatmul.mubr.msk.f32.gmra.mxu0 %vm114_vm1, %v43_v10  ;;  %v90_v57 = vld [vmem:[%s12210_s0 + $0x1a0] sm:$0xff]  ;;  %v91_v58 = vld [vmem:[%s12210_s0 + $0x1a8] sm:$0xff]  ;;  %v92_v59 = vld [vmem:[%s12210_s0 + $0x1b0] sm:$0xff] }
  0x15   :  { %6293 = vmatprep.mubr.msk.f32.mxu0 %vm114_vm1, %v44_v11  ;;  %v93_v60 = vld [vmem:[%s12210_s0 + $0x1b8] sm:$0xff]  ;;  %v94_v61 = vld [vmem:[%s12210_s0 + $0x1c0] sm:$0xff]  ;;  %v95_v62 = vld [vmem:[%s12210_s0 + $0x1c8] sm:$0xff] }
  0x16   :  { %v96_v63 = vld [vmem:[%s12210_s0 + $0x1d0] sm:$0xff]  ;;  %v97_v0 = vld [vmem:[%s12210_s0 + $0x1d8] sm:$0xff]  ;;  %v98_v1 = vld [vmem:[%s12210_s0 + $0x1e0] sm:$0xff] }
  0x17   :  { %v99_v2 = vld [vmem:[%s12210_s0 + $0x1e8] sm:$0xff]  ;;  %v100_v3 = vld [vmem:[%s12210_s0 + $0x1f0] sm:$0xff]  ;;  %v101_v4 = vld [vmem:[%s12210_s0 + $0x1f8] sm:$0xff] }
  0x18   :  { %6294 = vmatmul.mubr.msk.f32.gmra.mxu0 %vm114_vm1, %v45_v12  ;;  %v6930_v5 = vld [vmem:[%s12211_s2] ss:$0 sm:$0xff]  ;;  %v697_v8 = vld [vmem:[%s12212_s5 + $0x8] sm:$0xff] }
  0x19   :  { %6296 = vmatprep.mubr.msk.f32.mxu0 %vm114_vm1, %v46_v13  ;;  %v696_v10 = vld [vmem:[%s12212_s5] sm:$0xff] }
  0x1c   :  { %6297 = vmatmul.mubr.msk.f32.gmra.mxu0 %vm114_vm1, %v47_v14  ;;  %v699_v14 = vld [vmem:[%s12212_s5 + $0x18] sm:$0xff] }
  0x1d   :  { %6299 = vmatprep.mubr.msk.f32.mxu0 %vm114_vm1, %v48_v15 }
  0x20   :  { %6300 = vmatmul.mubr.msk.f32.gmra.mxu0 %vm114_vm1, %v49_v16 }
  0x21   :  { %6302 = vmatprep.mubr.msk.f32.mxu0 %vm114_vm1, %v50_v17 }
  0x24   :  { %6303 = vmatmul.mubr.msk.f32.gmra.mxu0 %vm114_vm1, %v51_v18 }
  0x25   :  { %6305 = vmatprep.mubr.msk.f32.mxu0 %vm114_vm1, %v52_v19 }
  0x28   :  { %6306 = vmatmul.mubr.msk.f32.gmra.mxu0 %vm114_vm1, %v53_v20  ;;  %v698_v20 = vld [vmem:[%s12212_s5 + $0x10] sm:$0xff] }
  0x29   :  { %6308 = vmatprep.mubr.msk.f32.mxu0 %vm114_vm1, %v54_v21 }
  0x2c   :  { %6309 = vmatmul.mubr.msk.f32.gmra.mxu0 %vm114_vm1, %v55_v22 }
  0x2d   :  { %6311 = vmatprep.mubr.msk.f32.mxu0 %vm114_vm1, %v56_v23 }
  0x30   :  { %6312 = vmatmul.mubr.msk.f32.gmra.mxu0 %vm114_vm1, %v57_v24 }
  0x31   :  { %6314 = vmatprep.mubr.msk.f32.mxu0 %vm114_vm1, %v58_v25 }
  0x34   :  { %6315 = vmatmul.mubr.msk.f32.gmra.mxu0 %vm114_vm1, %v59_v26  ;;  %v701_v26 = vld [vmem:[%s12212_s5 + $0x28] sm:$0xff] }
  0x35   :  { %6317 = vmatprep.mubr.msk.f32.mxu0 %vm114_vm1, %v60_v27 }
  0x38   :  { %6318 = vmatmul.mubr.msk.f32.gmra.mxu0 %vm114_vm1, %v61_v28 }
  0x39   :  { %6320 = vmatprep.mubr.msk.f32.mxu0 %vm114_vm1, %v62_v29 }
  0x3c   :  { %6321 = vmatmul.mubr.msk.f32.gmra.mxu0 %vm114_vm1, %v63_v30 }
  0x3d   :  { %6323 = vmatprep.mubr.msk.f32.mxu0 %vm114_vm1, %v64_v31  ;;  %v700_v31 = vld [vmem:[%s12212_s5 + $0x20] sm:$0xff] }
  0x40   :  { %6324 = vmatmul.mubr.msk.f32.gmra.mxu0 %vm114_vm1, %v65_v32 }
  0x41   :  { %6326 = vmatprep.mubr.msk.f32.mxu0 %vm114_vm1, %v66_v33 }
  0x44   :  { %6327 = vmatmul.mubr.msk.f32.gmra.mxu0 %vm114_vm1, %v67_v34 }
  0x45   :  { %6329 = vmatprep.mubr.msk.f32.mxu0 %vm114_vm1, %v68_v35 }
  0x48   :  { %6330 = vmatmul.mubr.msk.f32.gmra.mxu0 %vm114_vm1, %v69_v36 }
  0x49   :  { %6332 = vmatprep.mubr.msk.f32.mxu0 %vm114_vm1, %v70_v37 }
  0x4c   :  { %6333 = vmatmul.mubr.msk.f32.gmra.mxu0 %vm114_vm1, %v71_v38 }
  0x4d   :  { %6335 = vmatprep.mubr.msk.f32.mxu0 %vm114_vm1, %v72_v39 }
  0x50   :  { %6336 = vmatmul.mubr.msk.f32.gmra.mxu0 %vm114_vm1, %v73_v40 }
  0x51   :  { %6338 = vmatprep.mubr.msk.f32.mxu0 %vm114_vm1, %v74_v41 }
  0x54   :  { %6339 = vmatmul.mubr.msk.f32.gmra.mxu0 %vm114_vm1, %v75_v42 }
  0x55   :  { %6341 = vmatprep.mubr.msk.f32.mxu0 %vm114_vm1, %v76_v43  ;;  %v703_v43 = vld [vmem:[%s12212_s5 + $0x38] sm:$0xff] }
  0x58   :  { %6342 = vmatmul.mubr.msk.f32.gmra.mxu0 %vm114_vm1, %v77_v44 }
  0x59   :  { %6344 = vmatprep.mubr.msk.f32.mxu0 %vm114_vm1, %v78_v45 }
  0x5c   :  { %6345 = vmatmul.mubr.msk.f32.gmra.mxu0 %vm114_vm1, %v79_v46 }
  0x5d   :  { %6347 = vmatprep.mubr.msk.f32.mxu0 %vm114_vm1, %v80_v47 }
  0x60   :  { %6348 = vmatmul.mubr.msk.f32.gmra.mxu0 %vm114_vm1, %v81_v48 }
  0x61   :  { %6350 = vmatprep.mubr.msk.f32.mxu0 %vm114_vm1, %v82_v49 }
  0x64   :  { %6351 = vmatmul.mubr.msk.f32.gmra.mxu0 %vm114_vm1, %v83_v50 }
  0x65   :  { %6353 = vmatprep.mubr.msk.f32.mxu0 %vm114_vm1, %v84_v51 }
  0x68   :  { %6354 = vmatmul.mubr.msk.f32.gmra.mxu0 %vm114_vm1, %v85_v52  ;;  %v702_v52 = vld [vmem:[%s12212_s5 + $0x30] sm:$0xff] }
  0x69   :  { %6356 = vmatprep.mubr.msk.f32.mxu0 %vm114_vm1, %v86_v53 }
  0x6c   :  { %6357 = vmatmul.mubr.msk.f32.gmra.mxu0 %vm114_vm1, %v87_v54 }
  0x6d   :  { %6359 = vmatprep.mubr.msk.f32.mxu0 %vm114_vm1, %v88_v55 }
  0x70   :  { %6360 = vmatmul.mubr.msk.f32.gmra.mxu0 %vm114_vm1, %v89_v56 }
  0x71   :  { %6362 = vmatprep.mubr.msk.f32.mxu0 %vm114_vm1, %v90_v57 }
  0x74   :  { %6363 = vmatmul.mubr.msk.f32.gmra.mxu0 %vm114_vm1, %v91_v58 }
  0x75   :  { %6365 = vmatprep.mubr.msk.f32.mxu0 %vm114_vm1, %v92_v59 }
  0x78   :  { %6366 = vmatmul.mubr.msk.f32.gmra.mxu0 %vm114_vm1, %v93_v60 }
  0x79   :  { %6368 = vmatprep.mubr.msk.f32.mxu0 %vm114_vm1, %v94_v61  ;;  %v705_v61 = vld [vmem:[%s12212_s5 + $0x48] sm:$0xff] }
  0x7c   :  { %6369 = vmatmul.mubr.msk.f32.gmra.mxu0 %vm114_vm1, %v95_v62 }
  0x7d   :  { %6371 = vmatprep.mubr.msk.f32.mxu0 %vm114_vm1, %v96_v63 }
  0x80   :  { %6372 = vmatmul.mubr.msk.f32.gmra.mxu0 %vm114_vm1, %v97_v0 }
  0x81   :  { %6374 = vmatprep.mubr.msk.f32.mxu0 %vm114_vm1, %v98_v1 }
  0x84   :  { %6375 = vmatmul.mubr.msk.f32.gmra.mxu0 %vm114_vm1, %v99_v2 }
  0x85   :  { %6377 = vmatprep.mubr.msk.f32.mxu0 %vm114_vm1, %v100_v3 }
  0x88   :  { %6378 = vmatmul.mubr.msk.f32.gmra.mxu0 %vm114_vm1, %v101_v4 }
  0xcc   :  { %v6286_v6 = vpop.f32.mrf.mxu0 }
  0xcd   :  { %v383_v7 = vadd.f32 %v6286_v6, %v6930_v5 }
  0xce   :  { %v377_v9 = vpop.f32.mrf.mxu0 }
  0xcf   :  { %v378_v11 = vadd.f32 %v6930_v5, %v377_v9  ;;  %v6940_v12 = vmul.f32 %v697_v8, %v383_v7  ;;  %v704_v7 = vld [vmem:[%s12212_s5 + $0x40] sm:$0xff] }
  0xd0   :  { %v6289_v13 = vpop.f32.mrf.mxu0 }
  0xd1   :  { %v6945_v15 = vmul.f32 %v696_v10, %v378_v11  ;;  %v393_v16 = vadd.f32 %v6289_v13, %v6930_v5  ;;  %v961_v21 = vmul.f32 %v6940_v12, %v6940_v12  ;;  %v828_v27 = vsel %vm826_vm2, %v6940_v12, 0.0 }
  0xd2   :  { %v387_v17 = vpop.f32.mrf.mxu0 }
  0xd3   :  { %v960_v18 = vmul.f32 %v6945_v15, %v6945_v15  ;;  %v6950_v19 = vmul.f32 %v699_v14, %v393_v16  ;;  %v827_v22 = vsel %vm826_vm2, %v6945_v15, 0.0  ;;  %v388_v23 = vadd.f32 %v6930_v5, %v387_v17  ;;  %v707_v17 = vld [vmem:[%s12212_s5 + $0x58] sm:$0xff] }
  0xd4   :  { %v6292_v24 = vpop.f32.mrf.mxu0  ;;  %v829_v32 = vadd.f32 %v828_v27, %v827_v22  ;;  %v1025_v35 = vsel %vm826_vm2, %v961_v21, 0.0 }
  0xd5   :  { %v403_v25 = vadd.f32 %v6292_v24, %v6930_v5  ;;  %v1024_v28 = vsel %vm826_vm2, %v960_v18, 0.0  ;;  %v6967_v29 = vmul.f32 %v698_v20, %v388_v23  ;;  %v963_v33 = vmul.f32 %v6950_v19, %v6950_v19  ;;  %v706_v24 = vld [vmem:[%s12212_s5 + $0x50] sm:$0xff] }
  0xd6   :  { %v397_v30 = vpop.f32.mrf.mxu0  ;;  %v1026_v40 = vadd.f32 %v1025_v35, %v1024_v28  ;;  %v832_v44 = vsel %vm826_vm2, %v6950_v19, 0.0 }
  0xd7   :  { %v398_v34 = vadd.f32 %v6930_v5, %v397_v30  ;;  %v830_v36 = vsel %vm826_vm2, %v6967_v29, 0.0  ;;  %v962_v37 = vmul.f32 %v6967_v29, %v6967_v29  ;;  %v6980_v38 = vmul.f32 %v701_v26, %v403_v25 }
  0xd8   :  { %v6295_v39 = vpop.f32.mrf.mxu0  ;;  %v831_v41 = vadd.f32 %v830_v36, %v829_v32  ;;  %v1029_v48 = vsel %vm826_vm2, %v963_v33, 0.0 }
  0xd9   :  { %v6982_v42 = vmul.f32 %v700_v31, %v398_v34  ;;  %v1027_v45 = vsel %vm826_vm2, %v962_v37, 0.0  ;;  %v413_v46 = vadd.f32 %v6295_v39, %v6930_v5  ;;  %v965_v53 = vmul.f32 %v6980_v38, %v6980_v38 }
  0xda   :  { %v407_v47 = vpop.f32.mrf.mxu0  ;;  %v833_v49 = vadd.f32 %v832_v44, %v831_v41  ;;  %v1028_v50 = vadd.f32 %v1027_v45, %v1026_v40  ;;  %v836_v62 = vsel %vm826_vm2, %v6980_v38, 0.0  ;;  %v709_v40 = vld [vmem:[%s12212_s5 + $0x68] sm:$0xff] }
  0xdb   :  { %v834_v51 = vsel %vm826_vm2, %v6982_v42, 0.0  ;;  %v964_v54 = vmul.f32 %v6982_v42, %v6982_v42  ;;  %v7001_v55 = vmul.f32 %v703_v43, %v413_v46  ;;  %v408_v56 = vadd.f32 %v6930_v5, %v407_v47 }
  0xdc   :  { %v6298_v57 = vpop.f32.mrf.mxu0  ;;  %v1030_v58 = vadd.f32 %v1029_v48, %v1028_v50  ;;  %v835_v59 = vadd.f32 %v834_v51, %v833_v49  ;;  %v1033_v8 = vsel %vm826_vm2, %v965_v53, 0.0  ;;  %v708_v49 = vld [vmem:[%s12212_s5 + $0x60] sm:$0xff] }
  0xdd   :  { %v423_v60 = vadd.f32 %v6298_v57, %v6930_v5  ;;  %v1031_v63 = vsel %vm826_vm2, %v964_v54, 0.0  ;;  %v7011_v0 = vmul.f32 %v702_v52, %v408_v56  ;;  %v967_v3 = vmul.f32 %v7001_v55, %v7001_v55 }
  0xde   :  { %v417_v1 = vpop.f32.mrf.mxu0  ;;  %v1032_v2 = vadd.f32 %v1031_v63, %v1030_v58  ;;  %v837_v4 = vadd.f32 %v836_v62, %v835_v59  ;;  %v840_v18 = vsel %vm826_vm2, %v7001_v55, 0.0 }
  0xdf   :  { %v418_v6 = vadd.f32 %v6930_v5, %v417_v1  ;;  %v838_v9 = vsel %vm826_vm2, %v7011_v0, 0.0  ;;  %v966_v10 = vmul.f32 %v7011_v0, %v7011_v0  ;;  %v7024_v11 = vmul.f32 %v705_v61, %v423_v60  ;;  %v711_v60 = vld [vmem:[%s12212_s5 + $0x78] sm:$0xff] }
  0xe0   :  { %v6301_v13 = vpop.f32.mrf.mxu0  ;;  %v839_v14 = vadd.f32 %v838_v9, %v837_v4  ;;  %v1034_v16 = vadd.f32 %v1033_v8, %v1032_v2  ;;  %v1037_v25 = vsel %vm826_vm2, %v967_v3, 0.0 }
  0xe1   :  { %v1035_v20 = vsel %vm826_vm2, %v966_v10, 0.0  ;;  %v7032_v21 = vmul.f32 %v704_v7, %v418_v6  ;;  %v433_v22 = vadd.f32 %v6301_v13, %v6930_v5  ;;  %v969_v30 = vmul.f32 %v7024_v11, %v7024_v11  ;;  %v710_v6 = vld [vmem:[%s12212_s5 + $0x70] sm:$0xff] }
  0xe2   :  { %v427_v23 = vpop.f32.mrf.mxu0  ;;  %v1036_v26 = vadd.f32 %v1035_v20, %v1034_v16  ;;  %v841_v27 = vadd.f32 %v840_v18, %v839_v14  ;;  %v844_v41 = vsel %vm826_vm2, %v7024_v11, 0.0 }
  0xe3   :  { %v428_v28 = vadd.f32 %v6930_v5, %v427_v23  ;;  %v842_v31 = vsel %vm826_vm2, %v7032_v21, 0.0  ;;  %v968_v32 = vmul.f32 %v7032_v21, %v7032_v21  ;;  %v7046_v33 = vmul.f32 %v707_v17, %v433_v22  ;;  %v713_v17 = vld [vmem:[%s12212_s5 + $0x88] sm:$0xff] }
  0xe4   :  { %v6304_v34 = vpop.f32.mrf.mxu0  ;;  %v843_v35 = vadd.f32 %v842_v31, %v841_v27  ;;  %v1038_v36 = vadd.f32 %v1037_v25, %v1036_v26  ;;  %v1041_v50 = vsel %vm826_vm2, %v969_v30, 0.0  ;;  %v712_v25 = vld [vmem:[%s12212_s5 + $0x80] sm:$0xff] }
  0xe5   :  { %v7048_v37 = vmul.f32 %v706_v24, %v428_v28  ;;  %v443_v39 = vadd.f32 %v6304_v34, %v6930_v5  ;;  %v1039_v43 = vsel %vm826_vm2, %v968_v32, 0.0  ;;  %v971_v51 = vmul.f32 %v7046_v33, %v7046_v33 }
  0xe6   :  { %v437_v44 = vpop.f32.mrf.mxu0  ;;  %v1040_v45 = vadd.f32 %v1039_v43, %v1038_v36  ;;  %v845_v46 = vadd.f32 %v844_v41, %v843_v35  ;;  %v848_v61 = vsel %vm826_vm2, %v7046_v33, 0.0 }
  0xe7   :  { %v846_v47 = vsel %vm826_vm2, %v7048_v37, 0.0  ;;  %v970_v48 = vmul.f32 %v7048_v37, %v7048_v37  ;;  %v7067_v52 = vmul.f32 %v709_v40, %v443_v39  ;;  %v438_v53 = vadd.f32 %v6930_v5, %v437_v44  ;;  %v715_v44 = vld [vmem:[%s12212_s5 + $0x98] sm:$0xff] }
  0xe8   :  { %v6307_v54 = vpop.f32.mrf.mxu0  ;;  %v847_v56 = vadd.f32 %v846_v47, %v845_v46  ;;  %v1042_v57 = vadd.f32 %v1041_v50, %v1040_v45  ;;  %v1045_v7 = vsel %vm826_vm2, %v971_v51, 0.0 }
  0xe9   :  { %v1043_v58 = vsel %vm826_vm2, %v970_v48, 0.0  ;;  %v453_v59 = vadd.f32 %v6307_v54, %v6930_v5  ;;  %v7077_v62 = vmul.f32 %v708_v49, %v438_v53  ;;  %v973_v2 = vmul.f32 %v7067_v52, %v7067_v52  ;;  %v714_v53 = vld [vmem:[%s12212_s5 + $0x90] sm:$0xff] }
  0xea   :  { %v447_v63 = vpop.f32.mrf.mxu0  ;;  %v1044_v1 = vadd.f32 %v1043_v58, %v1042_v57  ;;  %v849_v3 = vadd.f32 %v848_v61, %v847_v56  ;;  %v852_v18 = vsel %vm826_vm2, %v7067_v52, 0.0 }
  0xeb   :  { %v448_v4 = vadd.f32 %v6930_v5, %v447_v63  ;;  %v850_v8 = vsel %vm826_vm2, %v7077_v62, 0.0  ;;  %v972_v9 = vmul.f32 %v7077_v62, %v7077_v62  ;;  %v7090_v10 = vmul.f32 %v711_v60, %v453_v59 }
  0xec   :  { %v6310_v13 = vpop.f32.mrf.mxu0  ;;  %v851_v14 = vadd.f32 %v850_v8, %v849_v3  ;;  %v1046_v16 = vadd.f32 %v1045_v7, %v1044_v1  ;;  %v1049_v26 = vsel %vm826_vm2, %v973_v2, 0.0  ;;  %v717_v2 = vld [vmem:[%s12212_s5 + $0xa8] sm:$0xff] }
  0xed   :  { %v1047_v20 = vsel %vm826_vm2, %v972_v9, 0.0  ;;  %v7098_v22 = vmul.f32 %v710_v6, %v448_v4  ;;  %v463_v23 = vadd.f32 %v6310_v13, %v6930_v5  ;;  %v975_v31 = vmul.f32 %v7090_v10, %v7090_v10 }
  0xee   :  { %v457_v24 = vpop.f32.mrf.mxu0  ;;  %v1048_v27 = vadd.f32 %v1047_v20, %v1046_v16  ;;  %v853_v28 = vadd.f32 %v852_v18, %v851_v14  ;;  %v856_v45 = vsel %vm826_vm2, %v7090_v10, 0.0  ;;  %v716_v14 = vld [vmem:[%s12212_s5 + $0xa0] sm:$0xff] }
  0xef   :  { %v458_v30 = vadd.f32 %v6930_v5, %v457_v24  ;;  %v854_v32 = vsel %vm826_vm2, %v7098_v22, 0.0  ;;  %v974_v34 = vmul.f32 %v7098_v22, %v7098_v22  ;;  %v7112_v35 = vmul.f32 %v713_v17, %v463_v23 }
  0xf0   :  { %v6313_v36 = vpop.f32.mrf.mxu0  ;;  %v855_v39 = vadd.f32 %v854_v32, %v853_v28  ;;  %v1050_v40 = vadd.f32 %v1049_v26, %v1048_v27  ;;  %v1053_v54 = vsel %vm826_vm2, %v975_v31, 0.0  ;;  %v719_v27 = vld [vmem:[%s12212_s5 + $0xb8] sm:$0xff] }
  0xf1   :  { %v7114_v41 = vmul.f32 %v712_v25, %v458_v30  ;;  %v473_v43 = vadd.f32 %v6313_v36, %v6930_v5  ;;  %v1051_v46 = vsel %vm826_vm2, %v974_v34, 0.0  ;;  %v977_v56 = vmul.f32 %v7112_v35, %v7112_v35  ;;  %v718_v34 = vld [vmem:[%s12212_s5 + $0xb0] sm:$0xff] }
  0xf2   :  { %v467_v47 = vpop.f32.mrf.mxu0  ;;  %v1052_v48 = vadd.f32 %v1051_v46, %v1050_v40  ;;  %v857_v49 = vadd.f32 %v856_v45, %v855_v39  ;;  %v860_v3 = vsel %vm826_vm2, %v7112_v35, 0.0 }
  0xf3   :  { %v858_v50 = vsel %vm826_vm2, %v7114_v41, 0.0  ;;  %v976_v51 = vmul.f32 %v7114_v41, %v7114_v41  ;;  %v7133_v57 = vmul.f32 %v715_v44, %v473_v43  ;;  %v468_v58 = vadd.f32 %v6930_v5, %v467_v47 }
  0xf4   :  { %v6316_v59 = vpop.f32.mrf.mxu0  ;;  %v859_v60 = vadd.f32 %v858_v50, %v857_v49  ;;  %v1054_v61 = vadd.f32 %v1053_v54, %v1052_v48  ;;  %v1057_v16 = vsel %vm826_vm2, %v977_v56, 0.0  ;;  %v6587_v44 = vmov 0.0   ;;  %v721_v56 = vld [vmem:[%s12212_s5 + $0xc8] sm:$0xff] }
  0xf5   :  { %v1055_v63 = vsel %vm826_vm2, %v976_v51, 0.0  ;;  %v483_v1 = vadd.f32 %v6316_v59, %v6930_v5  ;;  %v7143_v4 = vmul.f32 %v714_v53, %v468_v58  ;;  %v979_v8 = vmul.f32 %v7133_v57, %v7133_v57  ;;  %1370 = vst.msk [vmem:[#allocation2] sm:$0xff] %vm826_vm2, %v6587_v44  ;;  %1371 = vst.msk [vmem:[#allocation2 + $0x8] sm:$0xff] %vm826_vm2, %v6587_v44 }
  0xf6   :  { %v477_v6 = vpop.f32.mrf.mxu0  ;;  %v1056_v7 = vadd.f32 %v1055_v63, %v1054_v61  ;;  %v861_v9 = vadd.f32 %v860_v3, %v859_v60  ;;  %v864_v24 = vsel %vm826_vm2, %v7133_v57, 0.0  ;;  %1374 = vst.msk [vmem:[#allocation2 + $0x1b0] sm:$0xff] %vm826_vm2, %v6587_v44  ;;  %1375 = vst.msk [vmem:[#allocation2 + $0x1b8] sm:$0xff] %vm826_vm2, %v6587_v44  ;;  %v720_v3 = vld [vmem:[%s12212_s5 + $0xc0] sm:$0xff] }
  0xf7   :  { %v478_v13 = vadd.f32 %v6930_v5, %v477_v6  ;;  %v862_v17 = vsel %vm826_vm2, %v7143_v4, 0.0  ;;  %v978_v18 = vmul.f32 %v7143_v4, %v7143_v4  ;;  %v7156_v20 = vmul.f32 %v717_v2, %v483_v1  ;;  %1378 = vst.msk [vmem:[#allocation2 + $0x198] sm:$0xff] %vm826_vm2, %v6587_v44  ;;  %1379 = vst.msk [vmem:[#allocation2 + $0x1a0] sm:$0xff] %vm826_vm2, %v6587_v44 }
  0xf8   :  { %v6319_v23 = vpop.f32.mrf.mxu0  ;;  %v863_v25 = vadd.f32 %v862_v17, %v861_v9  ;;  %v1058_v26 = vadd.f32 %v1057_v16, %v1056_v7  ;;  %v1061_v36 = vsel %vm826_vm2, %v979_v8, 0.0  ;;  %1381 = vst.msk [vmem:[#allocation2 + $0x348] sm:$0xff] %vm826_vm2, %v6587_v44  ;;  %1382 = vst.msk [vmem:[#allocation2 + $0x350] sm:$0xff] %vm826_vm2, %v6587_v44 }
  0xf9   :  { %v1059_v28 = vsel %vm826_vm2, %v978_v18, 0.0  ;;  %v7164_v30 = vmul.f32 %v716_v14, %v478_v13  ;;  %v493_v31 = vadd.f32 %v6319_v23, %v6930_v5  ;;  %v981_v45 = vmul.f32 %v7156_v20, %v7156_v20  ;;  %v723_v23 = vld [vmem:[%s12212_s5 + $0xd8] sm:$0xff]  ;;  %1373 = vst.msk [vmem:[#allocation2 + $0x10] sm:$0x3] %vm1372_vm3, %v6587_v44  ;;  %1376 = vst.msk [vmem:[#allocation2 + $0x1c0] sm:$0x3] %vm1372_vm3, %v6587_v44 }
  0xfa   :  { %v487_v32 = vpop.f32.mrf.mxu0  ;;  %v1060_v39 = vadd.f32 %v1059_v28, %v1058_v26  ;;  %v865_v40 = vadd.f32 %v864_v24, %v863_v25  ;;  %v868_v58 = vsel %vm826_vm2, %v7156_v20, 0.0  ;;  %1380 = vst.msk [vmem:[#allocation2 + $0x1a8] sm:$0x3] %vm1372_vm3, %v6587_v44  ;;  %1383 = vst.msk [vmem:[#allocation2 + $0x358] sm:$0x3] %vm1372_vm3, %v6587_v44 }
  0xfb   :  { %v488_v43 = vadd.f32 %v6930_v5, %v487_v32  ;;  %v866_v46 = vsel %vm826_vm2, %v7164_v30, 0.0  ;;  %v980_v47 = vmul.f32 %v7164_v30, %v7164_v30  ;;  %v7194_v48 = vmul.f32 %v719_v27, %v493_v31  ;;  %1421 = vst.msk [vmem:[#allocation2 + $0x11] sm:$0x1] %vm1384_vm4, %v6587_v44  ;;  %1385 = vst.msk [vmem:[#allocation2] sm:$0x1] %vm1384_vm4, %v6587_v44 }
  0xfc   :  { %v6322_v49 = vpop.f32.mrf.mxu0  ;;  %v867_v50 = vadd.f32 %v866_v46, %v865_v40  ;;  %v1062_v51 = vadd.f32 %v1061_v36, %v1060_v39  ;;  %v1065_v6 = vsel %vm826_vm2, %v981_v45, 0.0  ;;  %v1586_v27 = vld [vmem:[#allocation2 + $0x1] sm:$0xff]  ;;  %v722_v36 = vld [vmem:[%s12212_s5 + $0xd0] sm:$0xff]  ;;  %1386 = vst.msk [vmem:[#allocation2 + $0x18] sm:$0x1] %vm1384_vm4, %v6587_v44 }
  0xfd   :  { %v7196_v53 = vmul.f32 %v718_v34, %v488_v43  ;;  %v503_v54 = vadd.f32 %v6322_v49, %v6930_v5  ;;  %v1063_v59 = vsel %vm826_vm2, %v980_v47, 0.0  ;;  %v983_v7 = vmul.f32 %v7194_v48, %v7194_v48  ;;  %2163 = vrot.lane.b32.xlu0 %v1586_v27, %s6588_s30  ;;  %1387 = vst.msk [vmem:[#allocation2 + $0x30] sm:$0x1] %vm1384_vm4, %v6587_v44 }
  0xfe   :  { %v497_v60 = vpop.f32.mrf.mxu0  ;;  %v1064_v61 = vadd.f32 %v1063_v59, %v1062_v51  ;;  %v869_v63 = vadd.f32 %v868_v58, %v867_v50  ;;  %v872_v24 = vsel %vm826_vm2, %v7194_v48, 0.0  ;;  %v725_v50 = vld [vmem:[%s12212_s5 + $0xe8] sm:$0xff]  ;;  %1388 = vst.msk [vmem:[#allocation2 + $0x48] sm:$0x1] %vm1384_vm4, %v6587_v44  ;;  %1389 = vst.msk [vmem:[#allocation2 + $0x60] sm:$0x1] %vm1384_vm4, %v6587_v44 }
  0xff   :  { %v870_v1 = vsel %vm826_vm2, %v7196_v53, 0.0  ;;  %v982_v2 = vmul.f32 %v7196_v53, %v7196_v53  ;;  %v7215_v8 = vmul.f32 %v721_v56, %v503_v54  ;;  %v498_v9 = vadd.f32 %v6930_v5, %v497_v60  ;;  %v724_v60 = vld [vmem:[%s12212_s5 + $0xe0] sm:$0xff]  ;;  %1390 = vst.msk [vmem:[#allocation2 + $0x78] sm:$0x1] %vm1384_vm4, %v6587_v44  ;;  %1391 = vst.msk [vmem:[#allocation2 + $0x90] sm:$0x1] %vm1384_vm4, %v6587_v44 }
 0x100   :  { %v6325_v13 = vpop.f32.mrf.mxu0  ;;  %v871_v14 = vadd.f32 %v870_v1, %v869_v63  ;;  %v1066_v16 = vadd.f32 %v1065_v6, %v1064_v61  ;;  %v1069_v39 = vsel %vm826_vm2, %v983_v7, 0.0  ;;  %1392 = vst.msk [vmem:[#allocation2 + $0xa8] sm:$0x1] %vm1384_vm4, %v6587_v44  ;;  %1393 = vst.msk [vmem:[#allocation2 + $0xc0] sm:$0x1] %vm1384_vm4, %v6587_v44 }
 0x101   :  { %v1067_v17 = vsel %vm826_vm2, %v982_v2, 0.0  ;;  %v513_v18 = vadd.f32 %v6325_v13, %v6930_v5  ;;  %v7225_v25 = vmul.f32 %v720_v3, %v498_v9  ;;  %v985_v31 = vmul.f32 %v7215_v8, %v7215_v8  ;;  %1394 = vst.msk [vmem:[#allocation2 + $0xd8] sm:$0x1] %vm1384_vm4, %v6587_v44  ;;  %1395 = vst.msk [vmem:[#allocation2 + $0xf0] sm:$0x1] %vm1384_vm4, %v6587_v44 }
 0x102   :  { %v507_v26 = vpop.f32.mrf.mxu0  ;;  %v1068_v28 = vadd.f32 %v1067_v17, %v1066_v16  ;;  %v873_v32 = vadd.f32 %v872_v24, %v871_v14  ;;  %v876_v51 = vsel %vm826_vm2, %v7215_v8, 0.0  ;;  %1396 = vst.msk [vmem:[#allocation2 + $0x108] sm:$0x1] %vm1384_vm4, %v6587_v44  ;;  %1397 = vst.msk [vmem:[#allocation2 + $0x120] sm:$0x1] %vm1384_vm4, %v6587_v44 }
 0x103   :  { %v508_v34 = vadd.f32 %v6930_v5, %v507_v26  ;;  %v874_v40 = vsel %vm826_vm2, %v7225_v25, 0.0  ;;  %v984_v43 = vmul.f32 %v7225_v25, %v7225_v25  ;;  %v7239_v45 = vmul.f32 %v723_v23, %v513_v18  ;;  %v727_v23 = vld [vmem:[%s12212_s5 + $0xf8] sm:$0xff]  ;;  %1398 = vst.msk [vmem:[#allocation2 + $0x138] sm:$0x1] %vm1384_vm4, %v6587_v44  ;;  %1399 = vst.msk [vmem:[#allocation2 + $0x150] sm:$0x1] %vm1384_vm4, %v6587_v44 }
 0x104   :  { %v6328_v46 = vpop.f32.mrf.mxu0  ;;  %v875_v47 = vadd.f32 %v874_v40, %v873_v32  ;;  %v1070_v49 = vadd.f32 %v1069_v39, %v1068_v28  ;;  %v1073_v61 = vsel %vm826_vm2, %v985_v31, 0.0  ;;  %1400 = vst.msk [vmem:[#allocation2 + $0x168] sm:$0x1] %vm1384_vm4, %v6587_v44  ;;  %1401 = vst.msk [vmem:[#allocation2 + $0x180] sm:$0x1] %vm1384_vm4, %v6587_v44 }
 0x105   :  { %v1071_v54 = vsel %vm826_vm2, %v984_v43, 0.0  ;;  %v7247_v56 = vmul.f32 %v722_v36, %v508_v34  ;;  %v523_v58 = vadd.f32 %v6328_v46, %v6930_v5  ;;  %v987_v3 = vmul.f32 %v7239_v45, %v7239_v45  ;;  %v726_v36 = vld [vmem:[%s12212_s5 + $0xf0] sm:$0xff]  ;;  %1402 = vst.msk [vmem:[#allocation2 + $0x198] sm:$0x1] %vm1384_vm4, %v6587_v44  ;;  %1403 = vst.msk [vmem:[#allocation2 + $0x1b0] sm:$0x1] %vm1384_vm4, %v6587_v44 }
 0x106   :  { %v517_v59 = vpop.f32.mrf.mxu0  ;;  %v1072_v63 = vadd.f32 %v1071_v54, %v1070_v49  ;;  %v877_v1 = vadd.f32 %v876_v51, %v875_v47  ;;  %v880_v24 = vsel %vm826_vm2, %v7239_v45, 0.0  ;;  %1404 = vst.msk [vmem:[#allocation2 + $0x1c8] sm:$0x1] %vm1384_vm4, %v6587_v44  ;;  %1405 = vst.msk [vmem:[#allocation2 + $0x1e0] sm:$0x1] %vm1384_vm4, %v6587_v44 }
 0x107   :  { %v518_v2 = vadd.f32 %v6930_v5, %v517_v59  ;;  %v878_v6 = vsel %vm826_vm2, %v7247_v56, 0.0  ;;  %v986_v7 = vmul.f32 %v7247_v56, %v7247_v56  ;;  %v7261_v9 = vmul.f32 %v725_v50, %v523_v58  ;;  %v729_v58 = vld [vmem:[%s12212_s5 + $0x108] sm:$0xff]  ;;  %1406 = vst.msk [vmem:[#allocation2 + $0x1f8] sm:$0x1] %vm1384_vm4, %v6587_v44  ;;  %1407 = vst.msk [vmem:[#allocation2 + $0x210] sm:$0x1] %vm1384_vm4, %v6587_v44 }
 0x108   :  { %v6331_v13 = vpop.f32.mrf.mxu0  ;;  %v879_v14 = vadd.f32 %v878_v6, %v877_v1  ;;  %v1074_v16 = vadd.f32 %v1073_v61, %v1072_v63  ;;  %v1077_v39 = vsel %vm826_vm2, %v987_v3, 0.0  ;;  %v728_v6 = vld [vmem:[%s12212_s5 + $0x100] sm:$0xff]  ;;  %1408 = vst.msk [vmem:[#allocation2 + $0x228] sm:$0x1] %vm1384_vm4, %v6587_v44  ;;  %1409 = vst.msk [vmem:[#allocation2 + $0x240] sm:$0x1] %vm1384_vm4, %v6587_v44 }
 0x109   :  { %v7263_v17 = vmul.f32 %v724_v60, %v518_v2  ;;  %v533_v18 = vadd.f32 %v6331_v13, %v6930_v5  ;;  %v1075_v26 = vsel %vm826_vm2, %v986_v7, 0.0  ;;  %v989_v40 = vmul.f32 %v7261_v9, %v7261_v9  ;;  %1410 = vst.msk [vmem:[#allocation2 + $0x258] sm:$0x1] %vm1384_vm4, %v6587_v44  ;;  %1411 = vst.msk [vmem:[#allocation2 + $0x270] sm:$0x1] %vm1384_vm4, %v6587_v44 }
 0x10a   :  { %v527_v27 = vpop.f32.mrf.mxu0  ;;  %v1076_v28 = vadd.f32 %v1075_v26, %v1074_v16  ;;  %v881_v31 = vadd.f32 %v880_v24, %v879_v14  ;;  %v884_v59 = vsel %vm826_vm2, %v7261_v9, 0.0  ;;  %v731_v26 = vld [vmem:[%s12212_s5 + $0x118] sm:$0xff]  ;;  %1412 = vst.msk [vmem:[#allocation2 + $0x288] sm:$0x1] %vm1384_vm4, %v6587_v44  ;;  %1413 = vst.msk [vmem:[#allocation2 + $0x2a0] sm:$0x1] %vm1384_vm4, %v6587_v44 }
 0x10b   :  { %v882_v32 = vsel %vm826_vm2, %v7263_v17, 0.0  ;;  %v988_v34 = vmul.f32 %v7263_v17, %v7263_v17  ;;  %v7286_v43 = vmul.f32 %v727_v23, %v533_v18  ;;  %v528_v46 = vadd.f32 %v6930_v5, %v527_v27  ;;  %1414 = vst.msk [vmem:[#allocation2 + $0x2b8] sm:$0x1] %vm1384_vm4, %v6587_v44  ;;  %1415 = vst.msk [vmem:[#allocation2 + $0x2d0] sm:$0x1] %vm1384_vm4, %v6587_v44 }
 0x10c   :  { %v6334_v47 = vpop.f32.mrf.mxu0  ;;  %v883_v49 = vadd.f32 %v882_v32, %v881_v31  ;;  %v1078_v50 = vadd.f32 %v1077_v39, %v1076_v28  ;;  %v1081_v7 = vsel %vm826_vm2, %v989_v40, 0.0  ;;  %v1587_v39 = vld [vmem:[#allocation2 + $0x9] sm:$0xff]  ;;  %1416 = vst.msk [vmem:[#allocation2 + $0x2e8] sm:$0x1] %vm1384_vm4, %v6587_v44  ;;  %1417 = vst.msk [vmem:[#allocation2 + $0x300] sm:$0x1] %vm1384_vm4, %v6587_v44 }
 0x10d   :  { %v1079_v51 = vsel %vm826_vm2, %v988_v34, 0.0  ;;  %v543_v54 = vadd.f32 %v6334_v47, %v6930_v5  ;;  %v7296_v60 = vmul.f32 %v726_v36, %v528_v46  ;;  %v991_v1 = vmul.f32 %v7286_v43, %v7286_v43  ;;  %v730_v36 = vld [vmem:[%s12212_s5 + $0x110] sm:$0xff]  ;;  %2165 = vrot.lane.b32.xlu0 %v1587_v39, %s6588_s30  ;;  %1418 = vst.msk [vmem:[#allocation2 + $0x318] sm:$0x1] %vm1384_vm4, %v6587_v44 }
 0x10e   :  { %v537_v61 = vpop.f32.mrf.mxu0  ;;  %v1080_v63 = vadd.f32 %v1079_v51, %v1078_v50  ;;  %v885_v2 = vadd.f32 %v884_v59, %v883_v49  ;;  %v888_v27 = vsel %vm826_vm2, %v7286_v43, 0.0  ;;  %1419 = vst.msk [vmem:[#allocation2 + $0x330] sm:$0x1] %vm1384_vm4, %v6587_v44  ;;  %1420 = vst.msk [vmem:[#allocation2 + $0x348] sm:$0x1] %vm1384_vm4, %v6587_v44 }
 0x10f   :  { %v538_v3 = vadd.f32 %v6930_v5, %v537_v61  ;;  %v886_v13 = vsel %vm826_vm2, %v7296_v60, 0.0  ;;  %v990_v14 = vmul.f32 %v7296_v60, %v7296_v60  ;;  %v7309_v16 = vmul.f32 %v729_v58, %v543_v54  ;;  %1422 = vst.msk [vmem:[#allocation2 + $0x29] sm:$0x1] %vm1384_vm4, %v6587_v44  ;;  %1423 = vst.msk [vmem:[#allocation2 + $0x41] sm:$0x1] %vm1384_vm4, %v6587_v44 }
 0x110   :  { %v6337_v18 = vpop.f32.mrf.mxu0  ;;  %v887_v23 = vadd.f32 %v886_v13, %v885_v2  ;;  %v1082_v24 = vadd.f32 %v1081_v7, %v1080_v63  ;;  %v1085_v40 = vsel %vm826_vm2, %v991_v1, 0.0  ;;  %1424 = vst.msk [vmem:[#allocation2 + $0x59] sm:$0x1] %vm1384_vm4, %v6587_v44  ;;  %1425 = vst.msk [vmem:[#allocation2 + $0x71] sm:$0x1] %vm1384_vm4, %v6587_v44 }
 0x111   :  { %v1083_v28 = vsel %vm826_vm2, %v990_v14, 0.0  ;;  %v7317_v31 = vmul.f32 %v728_v6, %v538_v3  ;;  %v553_v32 = vadd.f32 %v6337_v18, %v6930_v5  ;;  %v993_v50 = vmul.f32 %v7309_v16, %v7309_v16  ;;  %v733_v3 = vld [vmem:[%s12212_s5 + $0x128] sm:$0xff]  ;;  %1426 = vst.msk [vmem:[#allocation2 + $0x89] sm:$0x1] %vm1384_vm4, %v6587_v44  ;;  %1427 = vst.msk [vmem:[#allocation2 + $0xa1] sm:$0x1] %vm1384_vm4, %v6587_v44 }
 0x112   :  { %v547_v34 = vpop.f32.mrf.mxu0  ;;  %v1084_v46 = vadd.f32 %v1083_v28, %v1082_v24  ;;  %v889_v47 = vadd.f32 %v888_v27, %v887_v23  ;;  %v892_v6 = vsel %vm826_vm2, %v7309_v16, 0.0  ;;  %1428 = vst.msk [vmem:[#allocation2 + $0xb9] sm:$0x1] %vm1384_vm4, %v6587_v44  ;;  %1429 = vst.msk [vmem:[#allocation2 + $0xd1] sm:$0x1] %vm1384_vm4, %v6587_v44 }
 0x113   :  { %v548_v49 = vadd.f32 %v6930_v5, %v547_v34  ;;  %v890_v51 = vsel %vm826_vm2, %v7317_v31, 0.0  ;;  %v992_v54 = vmul.f32 %v7317_v31, %v7317_v31  ;;  %v7332_v58 = vmul.f32 %v731_v26, %v553_v32  ;;  %v732_v26 = vld [vmem:[%s12212_s5 + $0x120] sm:$0xff]  ;;  %1430 = vst.msk [vmem:[#allocation2 + $0xe9] sm:$0x1] %vm1384_vm4, %v6587_v44  ;;  %1431 = vst.msk [vmem:[#allocation2 + $0x101] sm:$0x1] %vm1384_vm4, %v6587_v44 }
 0x114   :  { %v6340_v59 = vpop.f32.mrf.mxu0  ;;  %v891_v61 = vadd.f32 %v890_v51, %v889_v47  ;;  %v1086_v63 = vadd.f32 %v1085_v40, %v1084_v46  ;;  %v1089_v27 = vsel %vm826_vm2, %v993_v50, 0.0  ;;  %1432 = vst.msk [vmem:[#allocation2 + $0x119] sm:$0x1] %vm1384_vm4, %v6587_v44  ;;  %1433 = vst.msk [vmem:[#allocation2 + $0x131] sm:$0x1] %vm1384_vm4, %v6587_v44 }
 0x115   :  { %v7334_v1 = vmul.f32 %v730_v36, %v548_v49  ;;  %v563_v2 = vadd.f32 %v6340_v59, %v6930_v5  ;;  %v1087_v7 = vsel %vm826_vm2, %v992_v54, 0.0  ;;  %v995_v28 = vmul.f32 %v7332_v58, %v7332_v58  ;;  %v735_v49 = vld [vmem:[%s12212_s5 + $0x138] sm:$0xff]  ;;  %1434 = vst.msk [vmem:[#allocation2 + $0x149] sm:$0x1] %vm1384_vm4, %v6587_v44  ;;  %1435 = vst.msk [vmem:[#allocation2 + $0x161] sm:$0x1] %vm1384_vm4, %v6587_v44 }
 0x116   :  { %v557_v13 = vpop.f32.mrf.mxu0  ;;  %v1088_v14 = vadd.f32 %v1087_v7, %v1086_v63  ;;  %v893_v18 = vadd.f32 %v892_v6, %v891_v61  ;;  %v896_v50 = vsel %vm826_vm2, %v7332_v58, 0.0  ;;  %1436 = vst.msk [vmem:[#allocation2 + $0x179] sm:$0x1] %vm1384_vm4, %v6587_v44  ;;  %1437 = vst.msk [vmem:[#allocation2 + $0x191] sm:$0x1] %vm1384_vm4, %v6587_v44 }
 0x117   :  { %v894_v23 = vsel %vm826_vm2, %v7334_v1, 0.0  ;;  %v994_v24 = vmul.f32 %v7334_v1, %v7334_v1  ;;  %v7353_v32 = vmul.f32 %v733_v3, %v563_v2  ;;  %v558_v34 = vadd.f32 %v6930_v5, %v557_v13  ;;  %v734_v3 = vld [vmem:[%s12212_s5 + $0x130] sm:$0xff]  ;;  %1438 = vst.msk [vmem:[#allocation2 + $0x1a9] sm:$0x1] %vm1384_vm4, %v6587_v44  ;;  %1439 = vst.msk [vmem:[#allocation2 + $0x1c1] sm:$0x1] %vm1384_vm4, %v6587_v44 }
 0x118   :  { %v6343_v36 = vpop.f32.mrf.mxu0  ;;  %v895_v39 = vadd.f32 %v894_v23, %v893_v18  ;;  %v1090_v40 = vadd.f32 %v1089_v27, %v1088_v14  ;;  %v1093_v6 = vsel %vm826_vm2, %v995_v28, 0.0  ;;  %v7383_v27 = vld [vmem:[%s12212_s5 + $0x148] sm:$0xff]  ;;  %1440 = vst.msk [vmem:[#allocation2 + $0x1d9] sm:$0x1] %vm1384_vm4, %v6587_v44  ;;  %1441 = vst.msk [vmem:[#allocation2 + $0x1f1] sm:$0x1] %vm1384_vm4, %v6587_v44 }
 0x119   :  { %v1091_v46 = vsel %vm826_vm2, %v994_v24, 0.0  ;;  %v573_v47 = vadd.f32 %v6343_v36, %v6930_v5  ;;  %v7363_v51 = vmul.f32 %v732_v26, %v558_v34  ;;  %v997_v61 = vmul.f32 %v7353_v32, %v7353_v32  ;;  %1442 = vst.msk [vmem:[#allocation2 + $0x209] sm:$0x1] %vm1384_vm4, %v6587_v44  ;;  %1443 = vst.msk [vmem:[#allocation2 + $0x221] sm:$0x1] %vm1384_vm4, %v6587_v44 }
 0x11a   :  { %v567_v54 = vpop.f32.mrf.mxu0  ;;  %v1092_v59 = vadd.f32 %v1091_v46, %v1090_v40  ;;  %v897_v63 = vadd.f32 %v896_v50, %v895_v39  ;;  %v900_v23 = vsel %vm826_vm2, %v7353_v32, 0.0  ;;  %v7394_v40 = vld [vmem:[%s12212_s5 + $0x140] sm:$0xff]  ;;  %1444 = vst.msk [vmem:[#allocation2 + $0x239] sm:$0x1] %vm1384_vm4, %v6587_v44  ;;  %1445 = vst.msk [vmem:[#allocation2 + $0x251] sm:$0x1] %vm1384_vm4, %v6587_v44 }
 0x11b   :  { %v568_v2 = vadd.f32 %v6930_v5, %v567_v54  ;;  %v898_v7 = vsel %vm826_vm2, %v7363_v51, 0.0  ;;  %v996_v13 = vmul.f32 %v7363_v51, %v7363_v51  ;;  %v7376_v14 = vmul.f32 %v735_v49, %v573_v47  ;;  %1446 = vst.msk [vmem:[#allocation2 + $0x269] sm:$0x1] %vm1384_vm4, %v6587_v44  ;;  %1447 = vst.msk [vmem:[#allocation2 + $0x281] sm:$0x1] %vm1384_vm4, %v6587_v44 }
 0x11c   :  { %v6346_v18 = vpop.f32.mrf.mxu0  ;;  %v899_v24 = vadd.f32 %v898_v7, %v897_v63  ;;  %v1094_v26 = vadd.f32 %v1093_v6, %v1092_v59  ;;  %v7397_v46 = vsel %vm826_vm2, %v997_v61, 0.0  ;;  %1448 = vst.msk [vmem:[#allocation2 + $0x299] sm:$0x1] %vm1384_vm4, %v6587_v44  ;;  %1449 = vst.msk [vmem:[#allocation2 + $0x2b1] sm:$0x1] %vm1384_vm4, %v6587_v44 }
 0x11d   :  { %12280 = vst [vmem:[#allocation3_spill] sm:$0xff] %v7376_v14  ;;  %v1095_v28 = vsel %vm826_vm2, %v996_v13, 0.0  ;;  %v7386_v34 = vmul.f32 %v734_v3, %v568_v2  ;;  %v7389_v36 = vadd.f32 %v6346_v18, %v6930_v5  ;;  %1450 = vst.msk [vmem:[#allocation2 + $0x2c9] sm:$0x1] %vm1384_vm4, %v6587_v44  ;;  %v999_v54 = vmul.f32 %v7376_v14, %v7376_v14  ;;  %v739_v13 = vld [vmem:[%s12212_s5 + $0x158] sm:$0xff] }
 0x11e   :  { %v577_v39 = vpop.f32.mrf.mxu0  ;;  %v7399_v47 = vadd.f32 %v1095_v28, %v1094_v26  ;;  %v7401_v49 = vadd.f32 %v900_v23, %v899_v24  ;;  %1451 = vst.msk [vmem:[#allocation2 + $0x2e1] sm:$0x1] %vm1384_vm4, %v6587_v44  ;;  %1452 = vst.msk [vmem:[#allocation2 + $0x2f9] sm:$0x1] %vm1384_vm4, %v6587_v44  ;;  %v1619_v18 = vld [vmem:[#allocation2 + $0x1b9] sm:$0xff]  ;;  %v904_v23 = vsel %vm826_vm2, %v7376_v14, 0.0 }
 0x11f   :  { %v7404_v50 = vadd.f32 %v6930_v5, %v577_v39  ;;  %1453 = vst.msk [vmem:[#allocation2 + $0x311] sm:$0x1] %vm1384_vm4, %v6587_v44  ;;  %1454 = vst.msk [vmem:[#allocation2 + $0x329] sm:$0x1] %vm1384_vm4, %v6587_v44  ;;  %v902_v59 = vsel %vm826_vm2, %v7386_v34, 0.0  ;;  %v998_v61 = vmul.f32 %v7386_v34, %v7386_v34  ;;  %v7558_v63 = vmul.f32 %v7383_v27, %v7389_v36 }
 0x120   :  { %1455 = vst.msk [vmem:[#allocation2 + $0x341] sm:$0x1] %vm1384_vm4, %v6587_v44  ;;  %1456 = vst.msk [vmem:[#allocation2 + $0x359] sm:$0x1] %vm1384_vm4, %v6587_v44  ;;  %v6349_v2 = vpop.f32.mrf.mxu0  ;;  %v903_v3 = vadd.f32 %v902_v59, %v7401_v49  ;;  %v1098_v6 = vadd.f32 %v7397_v46, %v7399_v47  ;;  %2229 = vrot.lane.b32.xlu1 %v1619_v18, %s6588_s30  ;;  %v1101_v46 = vsel %vm826_vm2, %v999_v54, 0.0 }
 0x121   :  { %12281 = vst [vmem:[#allocation4_spill] sm:$0xff] %v7558_v63  ;;  %v7565_v44 = vmul.f32 %v7394_v40, %v7404_v50  ;;  %v593_v7 = vadd.f32 %v6349_v2, %v6930_v5  ;;  %v1099_v24 = vsel %vm826_vm2, %v998_v61, 0.0  ;;  %v738_v40 = vld [vmem:[%s12212_s5 + $0x150] sm:$0xff]  ;;  %v1001_v47 = vmul.f32 %v7558_v63, %v7558_v63 }
 0x122   :  { %v587_v26 = vpop.f32.mrf.mxu0  ;;  %v1100_v27 = vadd.f32 %v1099_v24, %v1098_v6  ;;  %v905_v28 = vadd.f32 %v904_v23, %v903_v3  ;;  %v1618_v61 = vld [vmem:[#allocation2 + $0x1b1] sm:$0xff]  ;;  %v741_v23 = vld [vmem:[%s12212_s5 + $0x168] sm:$0xff]  ;;  %v908_v54 = vsel %vm826_vm2, %v7558_v63, 0.0 }
 0x123   :  { %12282 = vst [vmem:[#allocation5_spill] sm:$0xff] %v7565_v44  ;;  %v906_v36 = vsel %vm826_vm2, %v7565_v44, 0.0  ;;  %v1000_v39 = vmul.f32 %v7565_v44, %v7565_v44  ;;  %v7585_v49 = vmul.f32 %v739_v13, %v593_v7  ;;  %v588_v50 = vadd.f32 %v6930_v5, %v587_v26  ;;  %2227 = vrot.lane.b32.xlu0 %v1618_v61, %s6588_s30  ;;  %v1651_v24 = vld [vmem:[#allocation2 + $0xa] sm:$0xff] }
 0x124   :  { %v6352_v59 = vpop.f32.mrf.mxu0  ;;  %v907_v2 = vadd.f32 %v906_v36, %v905_v28  ;;  %v1102_v3 = vadd.f32 %v1101_v46, %v1100_v27  ;;  %2421 = vrot.lane.b32.xlu1 %v1651_v24, %s6589_s26  ;;  %v1105_v46 = vsel %vm826_vm2, %v1001_v47, 0.0 }
 0x125   :  { %12283 = vst [vmem:[#allocation6_spill] sm:$0xff] %v7585_v49  ;;  %v1103_v6 = vsel %vm826_vm2, %v1000_v39, 0.0  ;;  %v603_v18 = vadd.f32 %v6352_v59, %v6930_v5  ;;  %v7596_v7 = vmul.f32 %v738_v40, %v588_v50  ;;  %v1003_v27 = vmul.f32 %v7585_v49, %v7585_v49  ;;  %v740_v39 = vld [vmem:[%s12212_s5 + $0x160] sm:$0xff] }
 0x126   :  { %v597_v13 = vpop.f32.mrf.mxu0  ;;  %v1104_v26 = vadd.f32 %v1103_v6, %v1102_v3  ;;  %v909_v28 = vadd.f32 %v908_v54, %v907_v2  ;;  %v1650_v2 = vld [vmem:[#allocation2 + $0x2] sm:$0xff]  ;;  %v743_v54 = vld [vmem:[%s12212_s5 + $0x178] sm:$0xff]  ;;  %v912_v47 = vsel %vm826_vm2, %v7585_v49, 0.0 }
 0x127   :  { %12284 = vst [vmem:[#allocation7_spill] sm:$0xff] %v7596_v7  ;;  %v598_v36 = vadd.f32 %v6930_v5, %v597_v13  ;;  %v910_v40 = vsel %vm826_vm2, %v7596_v7, 0.0  ;;  %v1002_v50 = vmul.f32 %v7596_v7, %v7596_v7  ;;  %v7610_v59 = vmul.f32 %v741_v23, %v603_v18  ;;  %2419 = vrot.lane.b32.xlu0 %v1650_v2, %s6589_s26  ;;  %v1683_v13 = vld [vmem:[#allocation2 + $0x1ba] sm:$0xff] }
 0x128   :  { %v6355_v61 = vpop.f32.mrf.mxu0  ;;  %v911_v3 = vadd.f32 %v910_v40, %v909_v28  ;;  %v1106_v6 = vadd.f32 %v1105_v46, %v1104_v26  ;;  %v742_v26 = vld [vmem:[%s12212_s5 + $0x170] sm:$0xff]  ;;  %v1109_v28 = vsel %vm826_vm2, %v1003_v27, 0.0  ;;  %2485 = vrot.lane.b32.xlu1 %v1683_v13, %s6589_s26  ;;  %v745_v13 = vld [vmem:[%s12212_s5 + $0x188] sm:$0xff] }
 0x129   :  { %12285 = vst [vmem:[#allocation8_spill] sm:$0xff] %v7610_v59  ;;  %v1107_v24 = vsel %vm826_vm2, %v1002_v50, 0.0  ;;  %v7619_v63 = vmul.f32 %v740_v39, %v598_v36  ;;  %v613_v18 = vadd.f32 %v6355_v61, %v6930_v5  ;;  %v1005_v50 = vmul.f32 %v7610_v59, %v7610_v59 }
 0x12a   :  { %v607_v23 = vpop.f32.mrf.mxu0  ;;  %v1108_v46 = vadd.f32 %v1107_v24, %v1106_v6  ;;  %v913_v40 = vadd.f32 %v912_v47, %v911_v3  ;;  %v1682_v47 = vld [vmem:[#allocation2 + $0x1b2] sm:$0xff] }
 0x12b   :  { %12286 = vst [vmem:[#allocation9_spill] sm:$0xff] %v7619_v63  ;;  %v608_v2 = vadd.f32 %v6930_v5, %v607_v23  ;;  %v914_v36 = vsel %vm826_vm2, %v7619_v63, 0.0  ;;  %v1004_v39 = vmul.f32 %v7619_v63, %v7619_v63  ;;  %v7634_v61 = vmul.f32 %v743_v54, %v613_v18  ;;  %v7641_v5 = vld [vmem:[%s12211_s2] ss:$0 sm:$0xff]  ;;  %2483 = vrot.lane.b32.xlu0 %v1682_v47, %s6589_s26 }
 0x12c   :  { %v6358_v49 = vpop.f32.mrf.mxu0  ;;  %v915_v7 = vadd.f32 %v914_v36, %v913_v40  ;;  %v1110_v27 = vadd.f32 %v1109_v28, %v1108_v46  ;;  %v916_v54 = vsel %vm826_vm2, %v7610_v59, 0.0  ;;  %v744_v46 = vld [vmem:[%s12212_s5 + $0x180] sm:$0xff]  ;;  %v1113_v40 = vsel %vm826_vm2, %v1005_v50, 0.0 }
 0x12d   :  { %12287 = vst [vmem:[#allocation10_spill] sm:$0xff] %v7634_v61  ;;  %v7636_v6 = vmul.f32 %v742_v26, %v608_v2  ;;  %v623_v3 = vadd.f32 %v7641_v5, %v6358_v49  ;;  %v1111_v24 = vsel %vm826_vm2, %v1004_v39, 0.0  ;;  %v1007_v2 = vmul.f32 %v7634_v61, %v7634_v61 }
 0x12e   :  { %v617_v18 = vpop.f32.mrf.mxu0  ;;  %v1112_v23 = vadd.f32 %v1111_v24, %v1110_v27  ;;  %v917_v26 = vadd.f32 %v916_v54, %v915_v7  ;;  %v920_v50 = vsel %vm826_vm2, %v7634_v61, 0.0 }
 0x12f   :  { %12288 = vst [vmem:[#allocation11_spill] sm:$0xff] %v7636_v6  ;;  %v918_v28 = vsel %vm826_vm2, %v7636_v6, 0.0  ;;  %v1006_v49 = vmul.f32 %v7636_v6, %v7636_v6  ;;  %v7661_v36 = vmul.f32 %v745_v13, %v623_v3  ;;  %v618_v39 = vadd.f32 %v7641_v5, %v617_v18  ;;  %v747_v6 = vld [vmem:[%s12212_s5 + $0x198] sm:$0xff] }
 0x130   :  { %v6361_v7 = vpop.f32.mrf.mxu0  ;;  %v919_v27 = vadd.f32 %v918_v28, %v917_v26  ;;  %v1114_v47 = vadd.f32 %v1113_v40, %v1112_v23  ;;  %v746_v28 = vld [vmem:[%s12212_s5 + $0x190] sm:$0xff] }
 0x131   :  { %12289 = vst [vmem:[#allocation12_spill] sm:$0xff] %v7661_v36  ;;  %v1115_v54 = vsel %vm826_vm2, %v1006_v49, 0.0  ;;  %v633_v24 = vadd.f32 %v7641_v5, %v6361_v7  ;;  %v7671_v59 = vmul.f32 %v744_v46, %v618_v39  ;;  %v1009_v18 = vmul.f32 %v7661_v36, %v7661_v36 }
 0x132   :  { %v627_v3 = vpop.f32.mrf.mxu0  ;;  %v1116_v13 = vadd.f32 %v1115_v54, %v1114_v47  ;;  %v921_v26 = vadd.f32 %v920_v50, %v919_v27  ;;  %v1117_v49 = vsel %vm826_vm2, %v1007_v2, 0.0  ;;  %v749_v27 = vld [vmem:[%s12212_s5 + $0x1a8] sm:$0xff]  ;;  %v924_v50 = vsel %vm826_vm2, %v7661_v36, 0.0 }
 0x133   :  { %12290 = vst [vmem:[#allocation13_spill] sm:$0xff] %v7671_v59  ;;  %v628_v23 = vadd.f32 %v7641_v5, %v627_v3  ;;  %v922_v40 = vsel %vm826_vm2, %v7671_v59, 0.0  ;;  %v1008_v46 = vmul.f32 %v7671_v59, %v7671_v59  ;;  %v7684_v39 = vmul.f32 %v747_v6, %v633_v24  ;;  %v748_v6 = vld [vmem:[%s12212_s5 + $0x1a0] sm:$0xff] }
 0x134   :  { %v6364_v7 = vpop.f32.mrf.mxu0  ;;  %v923_v47 = vadd.f32 %v922_v40, %v921_v26  ;;  %v1118_v54 = vadd.f32 %v1117_v49, %v1116_v13  ;;  %v1121_v24 = vsel %vm826_vm2, %v1009_v18, 0.0 }
 0x135   :  { %12291 = vst [vmem:[#allocation14_spill] sm:$0xff] %v7684_v39  ;;  %v1119_v2 = vsel %vm826_vm2, %v1008_v46, 0.0  ;;  %v7692_v3 = vmul.f32 %v746_v28, %v628_v23  ;;  %v643_v61 = vadd.f32 %v7641_v5, %v6364_v7  ;;  %v1011_v40 = vmul.f32 %v7684_v39, %v7684_v39 }
 0x136   :  { %v637_v63 = vpop.f32.mrf.mxu0  ;;  %v1120_v13 = vadd.f32 %v1119_v2, %v1118_v54  ;;  %v925_v26 = vadd.f32 %v924_v50, %v923_v47  ;;  %v928_v47 = vsel %vm826_vm2, %v7684_v39, 0.0 }
 0x137   :  { %12292 = vst [vmem:[#allocation15_spill] sm:$0xff] %v7692_v3  ;;  %v638_v49 = vadd.f32 %v7641_v5, %v637_v63  ;;  %v926_v23 = vsel %vm826_vm2, %v7692_v3, 0.0  ;;  %v1010_v28 = vmul.f32 %v7692_v3, %v7692_v3  ;;  %v7706_v46 = vmul.f32 %v749_v27, %v643_v61  ;;  %v751_v63 = vld [vmem:[%s12212_s5 + $0x1b8] sm:$0xff] }
 0x138   :  { %v6367_v7 = vpop.f32.mrf.mxu0  ;;  %v927_v36 = vadd.f32 %v926_v23, %v925_v26  ;;  %v1122_v59 = vadd.f32 %v1121_v24, %v1120_v13  ;;  %v750_v24 = vld [vmem:[%s12212_s5 + $0x1b0] sm:$0xff]  ;;  %v1125_v13 = vsel %vm826_vm2, %v1011_v40, 0.0 }
 0x139   :  { %12293 = vst [vmem:[#allocation16_spill] sm:$0xff] %v7706_v46  ;;  %v7708_v44 = vmul.f32 %v748_v6, %v638_v49  ;;  %v653_v18 = vadd.f32 %v7641_v5, %v6367_v7  ;;  %v1123_v54 = vsel %vm826_vm2, %v1010_v28, 0.0  ;;  %v1013_v26 = vmul.f32 %v7706_v46, %v7706_v46 }
 0x13a   :  { %v647_v50 = vpop.f32.mrf.mxu0  ;;  %v1124_v2 = vadd.f32 %v1123_v54, %v1122_v59  ;;  %v929_v61 = vadd.f32 %v928_v47, %v927_v36  ;;  %v753_v54 = vld [vmem:[%s12212_s5 + $0x1c8] sm:$0xff]  ;;  %v932_v40 = vsel %vm826_vm2, %v7706_v46, 0.0 }
 0x13b   :  { %12294 = vst [vmem:[#allocation17_spill] sm:$0xff] %v7708_v44  ;;  %v930_v27 = vsel %vm826_vm2, %v7708_v44, 0.0  ;;  %v1012_v6 = vmul.f32 %v7708_v44, %v7708_v44  ;;  %v7727_v49 = vmul.f32 %v751_v63, %v653_v18  ;;  %v648_v59 = vadd.f32 %v7641_v5, %v647_v50 }
 0x13c   :  { %v6370_v36 = vpop.f32.mrf.mxu0  ;;  %v931_v23 = vadd.f32 %v930_v27, %v929_v61  ;;  %v1126_v28 = vadd.f32 %v1125_v13, %v1124_v2  ;;  %v752_v27 = vld [vmem:[%s12212_s5 + $0x1c0] sm:$0xff] }
 0x13d   :  { %12295 = vst [vmem:[#allocation18_spill] sm:$0xff] %v7727_v49  ;;  %v1127_v7 = vsel %vm826_vm2, %v1012_v6, 0.0  ;;  %v663_v47 = vadd.f32 %v7641_v5, %v6370_v36  ;;  %v7737_v44 = vmul.f32 %v750_v24, %v648_v59  ;;  %v1015_v50 = vmul.f32 %v7727_v49, %v7727_v49 }
 0x13e   :  { %v657_v18 = vpop.f32.mrf.mxu0  ;;  %v1128_v63 = vadd.f32 %v1127_v7, %v1126_v28  ;;  %v933_v61 = vadd.f32 %v932_v40, %v931_v23  ;;  %v1129_v6 = vsel %vm826_vm2, %v1013_v26, 0.0  ;;  %v755_v23 = vld [vmem:[%s12212_s5 + $0x1d8] sm:$0xff]  ;;  %v936_v40 = vsel %vm826_vm2, %v7727_v49, 0.0 }
 0x13f   :  { %12296 = vst [vmem:[#allocation19_spill] sm:$0xff] %v7737_v44  ;;  %v658_v2 = vadd.f32 %v7641_v5, %v657_v18  ;;  %v934_v13 = vsel %vm826_vm2, %v7737_v44, 0.0  ;;  %v1014_v24 = vmul.f32 %v7737_v44, %v7737_v44  ;;  %v7750_v59 = vmul.f32 %v753_v54, %v663_v47  ;;  %v754_v47 = vld [vmem:[%s12212_s5 + $0x1d0] sm:$0xff] }
 0x140   :  { %v6373_v36 = vpop.f32.mrf.mxu0  ;;  %v935_v28 = vadd.f32 %v934_v13, %v933_v61  ;;  %v1130_v7 = vadd.f32 %v1129_v6, %v1128_v63  ;;  %v1133_v54 = vsel %vm826_vm2, %v1015_v50, 0.0 }
 0x141   :  { %12297 = vst [vmem:[#allocation20_spill] sm:$0xff] %v7750_v59  ;;  %v1131_v26 = vsel %vm826_vm2, %v1014_v24, 0.0  ;;  %v7758_v18 = vmul.f32 %v752_v27, %v658_v2  ;;  %v673_v46 = vadd.f32 %v7641_v5, %v6373_v36  ;;  %v1017_v13 = vmul.f32 %v7750_v59, %v7750_v59 }
 0x142   :  { %v667_v39 = vpop.f32.mrf.mxu0  ;;  %v1132_v63 = vadd.f32 %v1131_v26, %v1130_v7  ;;  %v937_v61 = vadd.f32 %v936_v40, %v935_v28  ;;  %v940_v28 = vsel %vm826_vm2, %v7750_v59, 0.0 }
 0x143   :  { %12298 = vst [vmem:[#allocation21_spill] sm:$0xff] %v7758_v18  ;;  %v668_v6 = vadd.f32 %v7641_v5, %v667_v39  ;;  %v938_v2 = vsel %vm826_vm2, %v7758_v18, 0.0  ;;  %v1016_v27 = vmul.f32 %v7758_v18, %v7758_v18  ;;  %v7772_v24 = vmul.f32 %v755_v23, %v673_v46  ;;  %v757_v39 = vld [vmem:[%s12212_s5 + $0x1e8] sm:$0xff] }
 0x144   :  { %v6376_v36 = vpop.f32.mrf.mxu0  ;;  %v939_v49 = vadd.f32 %v938_v2, %v937_v61  ;;  %v1134_v44 = vadd.f32 %v1133_v54, %v1132_v63  ;;  %v756_v63 = vld [vmem:[%s12212_s5 + $0x1e0] sm:$0xff]  ;;  %v1137_v61 = vsel %vm826_vm2, %v1017_v13, 0.0 }
 0x145   :  { %12299 = vst [vmem:[#allocation22_spill] sm:$0xff] %v7772_v24  ;;  %v7774_v3 = vmul.f32 %v754_v47, %v668_v6  ;;  %v683_v50 = vadd.f32 %v7641_v5, %v6376_v36  ;;  %v1135_v7 = vsel %vm826_vm2, %v1016_v27, 0.0  ;;  %v1019_v46 = vmul.f32 %v7772_v24, %v7772_v24 }
 0x146   :  { %v677_v23 = vpop.f32.mrf.mxu0  ;;  %v1136_v40 = vadd.f32 %v1135_v7, %v1134_v44  ;;  %v941_v26 = vadd.f32 %v940_v28, %v939_v49  ;;  %v759_v7 = vld [vmem:[%s12212_s5 + $0x1f8] sm:$0xff] }
 0x147   :  { %12300 = vst [vmem:[#allocation23_spill] sm:$0xff] %v7774_v3  ;;  %v942_v47 = vsel %vm826_vm2, %v7774_v3, 0.0  ;;  %v1018_v54 = vmul.f32 %v7774_v3, %v7774_v3  ;;  %v7793_v6 = vmul.f32 %v757_v39, %v683_v50  ;;  %v678_v2 = vadd.f32 %v7641_v5, %v677_v23 }
 0x148   :  { %v6379_v27 = vpop.f32.mrf.mxu0  ;;  %v943_v36 = vadd.f32 %v942_v47, %v941_v26  ;;  %v1138_v44 = vadd.f32 %v1137_v61, %v1136_v40  ;;  %v944_v3 = vsel %vm826_vm2, %v7772_v24, 0.0  ;;  %v1141_v50 = vsel %vm826_vm2, %v1019_v46, 0.0  ;;  %v758_v26 = vld [vmem:[%s12212_s5 + $0x1f0] sm:$0xff] }
 0x149   :  { %12301 = vst [vmem:[#allocation24_spill] sm:$0xff] %v7793_v6  ;;  %v1139_v49 = vsel %vm826_vm2, %v1018_v54, 0.0  ;;  %v693_v28 = vadd.f32 %v7641_v5, %v6379_v27  ;;  %v7803_v59 = vmul.f32 %v756_v63, %v678_v2  ;;  %v1021_v47 = vmul.f32 %v7793_v6, %v7793_v6 }
 0x14a   :  { %v687_v13 = vpop.f32.mrf.mxu0  ;;  %v1140_v39 = vadd.f32 %v1139_v49, %v1138_v44  ;;  %v945_v23 = vadd.f32 %v944_v3, %v943_v36 }
 0x14b   :  { %12302 = vst [vmem:[#allocation25_spill] sm:$0xff] %v7803_v59  ;;  %v688_v40 = vadd.f32 %v7641_v5, %v687_v13  ;;  %v946_v54 = vsel %vm826_vm2, %v7803_v59, 0.0  ;;  %v1020_v63 = vmul.f32 %v7803_v59, %v7803_v59  ;;  %v7816_v61 = vmul.f32 %v759_v7, %v693_v28 }
 0x14c   :  { %v947_v46 = vadd.f32 %v946_v54, %v945_v23  ;;  %v1142_v2 = vadd.f32 %v1141_v50, %v1140_v39  ;;  %v948_v5 = vsel %vm826_vm2, %v7793_v6, 0.0  ;;  %v1145_v49 = vsel %vm826_vm2, %v1021_v47, 0.0 }
 0x14d   :  { %12303 = vst [vmem:[#allocation26_spill] sm:$0xff] %v7816_v61  ;;  %v1143_v3 = vsel %vm826_vm2, %v1020_v63, 0.0  ;;  %v822_v27 = vmul.f32 %v758_v26, %v688_v40  ;;  %v1023_v13 = vmul.f32 %v7816_v61, %v7816_v61  ;;  %v952_v50 = vsel %vm826_vm2, %v7816_v61, 0.0 }
 0x14e   :  { %v1144_v36 = vadd.f32 %v1143_v3, %v1142_v2  ;;  %v949_v44 = vadd.f32 %v948_v5, %v947_v46 }
 0x14f   :  { %v950_v24 = vsel %vm826_vm2, %v822_v27, 0.0  ;;  %v1022_v59 = vmul.f32 %v822_v27, %v822_v27  ;;  %v1149_v40 = vsel %vm826_vm2, %v1023_v13, 0.0  ;;  %v1167_v13 = vlaneseq }
 0x150   :  { %v951_v28 = vadd.f32 %v950_v24, %v949_v44  ;;  %v1146_v7 = vadd.f32 %v1145_v49, %v1144_v36 }
 0x151   :  { %v1147_v39 = vsel %vm826_vm2, %v1022_v59, 0.0 }
 0x152   :  { %v953_v23 = vadd.f32 %v952_v50, %v951_v28  ;;  %v1148_v54 = vadd.f32 %v1147_v39, %v1146_v7  ;;  %v1168_v50 = vshrl.u32 %v1167_v13, 7  ;;  %v824_v39 = vld [vmem:[%s12213_s3] sm:$0x1]  ;;  %s6590_s3 = smov 24  }
 0x154   :  { %v954_v26 = vrot.slane %v953_v23, 4  ;;  %v1150_v63 = vadd.f32 %v1149_v40, %v1148_v54 }
 0x156   :  { %v955_v47 = vadd.f32 %v954_v26, %v953_v23  ;;  %v1151_v46 = vrot.slane %v1150_v63, 4  ;;  %v7832_v23 = vsub.s32 0, %v1168_v50  ;;  %v12311_v50 = vld [vmem:[#allocation8_spill] sm:$0xff] }
 0x158   :  { %v956_v2 = vrot.slane %v955_v47, 2  ;;  %v1152_v5 = vadd.f32 %v1151_v46, %v1150_v63  ;;  %12304 = vst [vmem:[#allocation27_spill] sm:$0xff] %v7832_v23 }
 0x15a   :  { %v957_v3 = vadd.f32 %v956_v2, %v955_v47  ;;  %v1153_v6 = vrot.slane %v1152_v5, 2 }
 0x15c   :  { %v958_v18 = vrot.slane %v957_v3, 1  ;;  %v1154_v24 = vadd.f32 %v1153_v6, %v1152_v5 }
 0x15e   :  { %v959_v36 = vadd.f32 %v958_v18, %v957_v3  ;;  %v1155_v44 = vrot.slane %v1154_v24, 1  ;;  %v825_v18 = vld [vmem:[%s12214_s4] sm:$0x1]  ;;  %s6591_s4 = smov 32  }
 0x160   :  { %v1156_v49 = vadd.f32 %v1155_v44, %v1154_v24  ;;  %v1157_v61 = vmul.f32 0.001953125, %v959_v36  ;;  %v12305_v36 = vld [vmem:[#allocation3_spill] sm:$0xff]  ;;  %v12306_v44 = vld [vmem:[#allocation5_spill] sm:$0xff] }
 0x162   :  { %v1158_v14 = vmul.f32 0.001953125, %v1156_v49  ;;  %v1159_v59 = vmul.f32 %v1157_v61, %v1157_v61  ;;  %v12307_v49 = vld [vmem:[#allocation4_spill] sm:$0xff] }
 0x164   :  { %v1160_v28 = vsub.f32 %v1158_v14, %v1159_v59  ;;  %v12308_v59 = vld [vmem:[#allocation7_spill] sm:$0xff] }
 0x166   :  { %v1161_v7 = vadd.f32 1e-05, %v1160_v28  ;;  %v12309_v28 = vld [vmem:[#allocation6_spill] sm:$0xff] }
 0x168   :  { %6521 = vrsqrt.f32 %v1161_v7  ;;  %v12310_v7 = vld [vmem:[#allocation9_spill] sm:$0xff] }
 0x175   :  { %v6522_v54 = vpop.eup %6521 }
 0x176   :  { %v1163_v40 = vmul.f32 %v6522_v54, %v824_v39  ;;  %v12312_v54 = vld [vmem:[#allocation11_spill] sm:$0xff] }
 0x178   :  { %v1164_v6 = vmul.f32 %v1163_v40, %v1157_v61  ;;  %v7838_v26 = vrot.slane %v1163_v40, %v7832_v23 }
 0x17a   :  { %v1165_v14 = vsub.f32 %v825_v18, %v1164_v6  ;;  %v1234_v63 = vmul.f32 %v7838_v26, %v822_v27  ;;  %v7843_v47 = vmul.f32 %v7838_v26, %v6945_v15  ;;  %v7847_v46 = vmul.f32 %v7838_v26, %v6940_v12  ;;  %v12313_v18 = vld [vmem:[#allocation10_spill] sm:$0xff] }
 0x17b   :  { %v7851_v2 = vmul.f32 %v7838_v26, %v6967_v29  ;;  %v7855_v61 = vmul.f32 %v7838_v26, %v6950_v19  ;;  %v7859_v5 = vmul.f32 %v7838_v26, %v6982_v42  ;;  %v7863_v15 = vmul.f32 %v7838_v26, %v6980_v38 }
 0x17c   :  { %v7866_v27 = vrot.slane %v1165_v14, %v7832_v23  ;;  %v7870_v12 = vmul.f32 %v7838_v26, %v7011_v0  ;;  %v7874_v29 = vmul.f32 %v7838_v26, %v7001_v55  ;;  %v7878_v19 = vmul.f32 %v7838_v26, %v7032_v21  ;;  %v12314_v14 = vld [vmem:[#allocation13_spill] sm:$0xff] }
 0x17d   :  { %v7882_v42 = vmul.f32 %v7838_v26, %v7024_v11  ;;  %v7886_v38 = vmul.f32 %v7838_v26, %v7048_v37  ;;  %v7890_v0 = vmul.f32 %v7838_v26, %v7046_v33  ;;  %v7894_v55 = vmul.f32 %v7838_v26, %v7077_v62  ;;  %v12327_v23 = vld [vmem:[#allocation21_spill] sm:$0xff] }
 0x17e   :  { %v1304_v3 = vadd.f32 %v7866_v27, %v1234_v63  ;;  %v7899_v21 = vmul.f32 %v7838_v26, %v7067_v52  ;;  %v7903_v11 = vmul.f32 %v7838_v26, %v7098_v22  ;;  %v7907_v37 = vmul.f32 %v7838_v26, %v7090_v10 }
 0x17f   :  { %v7911_v33 = vmul.f32 %v7838_v26, %v7114_v41  ;;  %v7915_v62 = vmul.f32 %v7838_v26, %v7112_v35  ;;  %v7919_v52 = vmul.f32 %v7838_v26, %v7143_v4  ;;  %v7923_v22 = vmul.f32 %v7838_v26, %v7133_v57 }
 0x180   :  { %v1368_v24 = vmax.f32 %v1304_v3, 0.0  ;;  %v7927_v10 = vmul.f32 %v7838_v26, %v7164_v30  ;;  %v7931_v41 = vmul.f32 %v7838_v26, %v7156_v20  ;;  %v7935_v35 = vmul.f32 %v7838_v26, %v7196_v53  ;;  %v12315_v3 = vld [vmem:[#allocation12_spill] sm:$0xff] }
 0x181   :  { %v7939_v4 = vmul.f32 %v7838_v26, %v7194_v48  ;;  %v7943_v57 = vmul.f32 %v7838_v26, %v7225_v25  ;;  %v7947_v30 = vmul.f32 %v7838_v26, %v7215_v8  ;;  %v7951_v20 = vmul.f32 %v7838_v26, %v7247_v56 }
 0x182   :  { %1520 = vst.msk [vmem:[#allocation2 + $0x331] sm:$0xff] %vm826_vm2, %v1368_v24  ;;  %v7956_v53 = vmul.f32 %v7838_v26, %v7239_v45  ;;  %v7960_v48 = vmul.f32 %v7838_v26, %v7263_v17  ;;  %v7964_v25 = vmul.f32 %v7838_v26, %v7261_v9  ;;  %v7968_v8 = vmul.f32 %v7838_v26, %v7296_v60 }
 0x183   :  { %v7972_v56 = vmul.f32 %v7838_v26, %v7286_v43  ;;  %v7976_v45 = vmul.f32 %v7838_v26, %v7317_v31  ;;  %v7980_v17 = vmul.f32 %v7838_v26, %v7309_v16  ;;  %v7984_v9 = vmul.f32 %v7838_v26, %v7334_v1 }
 0x184   :  { %v7988_v60 = vmul.f32 %v7838_v26, %v7332_v58  ;;  %v7992_v43 = vmul.f32 %v7838_v26, %v7363_v51  ;;  %v7996_v31 = vmul.f32 %v7838_v26, %v7353_v32  ;;  %v8000_v16 = vmul.f32 %v7838_v26, %v7386_v34 }
 0x185   :  { %v8004_v1 = vmul.f32 %v7838_v26, %v12305_v36  ;;  %v8008_v58 = vmul.f32 %v7838_v26, %v12306_v44  ;;  %v8012_v51 = vmul.f32 %v7838_v26, %v12307_v49  ;;  %v8016_v32 = vmul.f32 %v7838_v26, %v12308_v59  ;;  %v12316_v36 = vld [vmem:[#allocation15_spill] sm:$0xff]  ;;  %v12317_v49 = vld [vmem:[#allocation14_spill] sm:$0xff] }
 0x186   :  { %v8020_v34 = vmul.f32 %v7838_v26, %v12309_v28  ;;  %v8024_v13 = vmul.f32 %v7838_v26, %v12310_v7  ;;  %v8028_v39 = vmul.f32 %v7838_v26, %v12311_v50  ;;  %v8032_v40 = vmul.f32 %v7838_v26, %v12312_v54  ;;  %v12319_v28 = vld [vmem:[#allocation17_spill] sm:$0xff]  ;;  %v12321_v50 = vld [vmem:[#allocation16_spill] sm:$0xff] }
 0x187   :  { %v8036_v6 = vmul.f32 %v7838_v26, %v12313_v18  ;;  %v8040_v63 = vmul.f32 %v7838_v26, %v12314_v14  ;;  %v8044_v24 = vmul.f32 %v7838_v26, %v12315_v3  ;;  %v8048_v44 = vmul.f32 %v7838_v26, %v12316_v36  ;;  %v12323_v18 = vld [vmem:[#allocation19_spill] sm:$0xff]  ;;  %v12325_v3 = vld [vmem:[#allocation18_spill] sm:$0xff] }
 0x188   :  { %v8052_v59 = vmul.f32 %v7838_v26, %v12317_v49  ;;  %v8056_v7 = vmul.f32 %v7838_v26, %v12319_v28  ;;  %v8060_v54 = vmul.f32 %v7838_v26, %v12321_v50  ;;  %v8064_v14 = vmul.f32 %v7838_v26, %v12323_v18 }
 0x189   :  { %v8068_v36 = vmul.f32 %v7838_v26, %v12325_v3  ;;  %v8072_v49 = vmul.f32 %v7838_v26, %v12327_v23 }
 0x18a   :  { %12318 = vst [vmem:[#allocation3_spill] sm:$0xff] %v8052_v59  ;;  %12320 = vst [vmem:[#allocation5_spill] sm:$0xff] %v8056_v7  ;;  %v12329_v59 = vld [vmem:[#allocation20_spill] sm:$0xff]  ;;  %v12330_v7 = vld [vmem:[#allocation23_spill] sm:$0xff] }
 0x18b   :  { %12322 = vst [vmem:[#allocation4_spill] sm:$0xff] %v8060_v54  ;;  %12324 = vst [vmem:[#allocation7_spill] sm:$0xff] %v8064_v14  ;;  %v8076_v28 = vmul.f32 %v7838_v26, %v12329_v59  ;;  %v8080_v50 = vmul.f32 %v7838_v26, %v12330_v7  ;;  %v12331_v54 = vld [vmem:[#allocation22_spill] sm:$0xff]  ;;  %v12332_v14 = vld [vmem:[#allocation25_spill] sm:$0xff]  ;;  %v8100_v7 = vadd.f32 %v7866_v27, %v7843_v47 }
 0x18c   :  { %12326 = vst [vmem:[#allocation6_spill] sm:$0xff] %v8068_v36  ;;  %12328 = vst [vmem:[#allocation9_spill] sm:$0xff] %v8072_v49  ;;  %v8084_v18 = vmul.f32 %v7838_v26, %v12331_v54  ;;  %v8088_v3 = vmul.f32 %v7838_v26, %v12332_v14  ;;  %v12333_v36 = vld [vmem:[#allocation24_spill] sm:$0xff]  ;;  %v12334_v49 = vld [vmem:[#allocation26_spill] sm:$0xff]  ;;  %v8104_v54 = vadd.f32 %v7866_v27, %v7847_v46 }
 0x18d   :  { %v8092_v23 = vmul.f32 %v7838_v26, %v12333_v36  ;;  %v8096_v59 = vmul.f32 %v7838_v26, %v12334_v49  ;;  %v8108_v14 = vadd.f32 %v7866_v27, %v7851_v2  ;;  %v8112_v36 = vadd.f32 %v7866_v27, %v7855_v61 }
 0x18e   :  { %v8116_v26 = vadd.f32 %v7866_v27, %v7859_v5  ;;  %v8120_v47 = vadd.f32 %v7866_v27, %v7863_v15  ;;  %v8124_v46 = vadd.f32 %v7866_v27, %v7870_v12  ;;  %v8128_v2 = vadd.f32 %v7866_v27, %v7874_v29 }
 0x18f   :  { %v8132_v61 = vadd.f32 %v7866_v27, %v7878_v19  ;;  %v8136_v5 = vadd.f32 %v7866_v27, %v7882_v42  ;;  %v8140_v15 = vadd.f32 %v7866_v27, %v7886_v38  ;;  %v8144_v12 = vadd.f32 %v7866_v27, %v7890_v0 }
 0x190   :  { %v8148_v29 = vadd.f32 %v7866_v27, %v7894_v55  ;;  %v8152_v19 = vadd.f32 %v7866_v27, %v7899_v21  ;;  %v8156_v42 = vadd.f32 %v7866_v27, %v7903_v11  ;;  %v8160_v38 = vadd.f32 %v7866_v27, %v7907_v37 }
 0x191   :  { %v8164_v0 = vadd.f32 %v7866_v27, %v7911_v33  ;;  %v8168_v55 = vadd.f32 %v7866_v27, %v7915_v62  ;;  %v8172_v21 = vadd.f32 %v7866_v27, %v7919_v52  ;;  %v8176_v11 = vadd.f32 %v7866_v27, %v7923_v22  ;;  %v12340_v49 = vld [vmem:[#allocation3_spill] sm:$0xff] }
 0x192   :  { %v8180_v37 = vadd.f32 %v7866_v27, %v7927_v10  ;;  %v8184_v33 = vadd.f32 %v7866_v27, %v7931_v41  ;;  %v8188_v62 = vadd.f32 %v7866_v27, %v7935_v35  ;;  %v8192_v52 = vadd.f32 %v7866_v27, %v7939_v4 }
 0x193   :  { %v8196_v22 = vadd.f32 %v7866_v27, %v7943_v57  ;;  %v8200_v10 = vadd.f32 %v7866_v27, %v7947_v30  ;;  %v8204_v41 = vadd.f32 %v7866_v27, %v7951_v20  ;;  %v8208_v35 = vadd.f32 %v7866_v27, %v7956_v53 }
 0x194   :  { %v8212_v4 = vadd.f32 %v7866_v27, %v7960_v48  ;;  %v8216_v57 = vadd.f32 %v7866_v27, %v7964_v25  ;;  %v8220_v30 = vadd.f32 %v7866_v27, %v7968_v8  ;;  %v8224_v20 = vadd.f32 %v7866_v27, %v7972_v56 }
 0x195   :  { %v8228_v53 = vadd.f32 %v7866_v27, %v7976_v45  ;;  %v8232_v48 = vadd.f32 %v7866_v27, %v7980_v17  ;;  %v8236_v25 = vadd.f32 %v7866_v27, %v7984_v9  ;;  %v8240_v8 = vadd.f32 %v7866_v27, %v7988_v60 }
 0x196   :  { %v8244_v56 = vadd.f32 %v7866_v27, %v7992_v43  ;;  %v8248_v45 = vadd.f32 %v7866_v27, %v7996_v31  ;;  %v8252_v17 = vadd.f32 %v7866_v27, %v8000_v16  ;;  %v8256_v9 = vadd.f32 %v7866_v27, %v8004_v1 }
 0x197   :  { %v8260_v60 = vadd.f32 %v7866_v27, %v8008_v58  ;;  %v8264_v43 = vadd.f32 %v7866_v27, %v8012_v51  ;;  %v8268_v31 = vadd.f32 %v7866_v27, %v8016_v32  ;;  %v8272_v16 = vadd.f32 %v7866_v27, %v8020_v34 }
 0x198   :  { %v8276_v1 = vadd.f32 %v7866_v27, %v8024_v13  ;;  %v8280_v58 = vadd.f32 %v7866_v27, %v8028_v39  ;;  %v8284_v51 = vadd.f32 %v7866_v27, %v8032_v40  ;;  %v8288_v32 = vadd.f32 %v7866_v27, %v8036_v6 }
 0x199   :  { %v8292_v34 = vadd.f32 %v7866_v27, %v8040_v63  ;;  %v8296_v13 = vadd.f32 %v7866_v27, %v8044_v24  ;;  %v8300_v39 = vadd.f32 %v7866_v27, %v8048_v44  ;;  %v8304_v40 = vadd.f32 %v7866_v27, %v12340_v49 }
 0x19a   :  { %12335 = vst [vmem:[#allocation8_spill] sm:$0xff] %v8284_v51  ;;  %12336 = vst [vmem:[#allocation11_spill] sm:$0xff] %v8288_v32  ;;  %v12341_v51 = vld [vmem:[#allocation5_spill] sm:$0xff]  ;;  %v12342_v32 = vld [vmem:[#allocation4_spill] sm:$0xff] }
 0x19b   :  { %12337 = vst [vmem:[#allocation10_spill] sm:$0xff] %v8292_v34  ;;  %12338 = vst [vmem:[#allocation13_spill] sm:$0xff] %v8296_v13  ;;  %v8308_v6 = vadd.f32 %v7866_v27, %v12341_v51  ;;  %v8312_v63 = vadd.f32 %v7866_v27, %v12342_v32  ;;  %v12343_v34 = vld [vmem:[#allocation7_spill] sm:$0xff]  ;;  %v12344_v13 = vld [vmem:[#allocation6_spill] sm:$0xff]  ;;  %v8328_v51 = vadd.f32 %v7866_v27, %v8076_v28 }
 0x19c   :  { %12339 = vst [vmem:[#allocation12_spill] sm:$0xff] %v8300_v39  ;;  %v8316_v24 = vadd.f32 %v7866_v27, %v12343_v34  ;;  %v8320_v44 = vadd.f32 %v7866_v27, %v12344_v13  ;;  %v12345_v39 = vld [vmem:[#allocation9_spill] sm:$0xff]  ;;  %v8332_v32 = vadd.f32 %v7866_v27, %v8080_v50  ;;  %v8336_v34 = vadd.f32 %v7866_v27, %v8084_v18 }
 0x19d   :  { %v8324_v49 = vadd.f32 %v7866_v27, %v12345_v39  ;;  %12346 = vst [vmem:[#allocation15_spill] sm:$0xff] %v8328_v51  ;;  %v8340_v13 = vadd.f32 %v7866_v27, %v8088_v3  ;;  %v8344_v39 = vadd.f32 %v7866_v27, %v8092_v23  ;;  %v8348_v28 = vadd.f32 %v7866_v27, %v8096_v59 }
 0x19e   :  { %12347 = vst [vmem:[#allocation14_spill] sm:$0xff] %v8332_v32  ;;  %12348 = vst [vmem:[#allocation17_spill] sm:$0xff] %v8336_v34  ;;  %v1306_v51 = vmax.f32 %v8100_v7, 0.0  ;;  %v1307_v50 = vmax.f32 %v8104_v54, 0.0  ;;  %v1308_v32 = vmax.f32 %v8108_v14, 0.0  ;;  %v1309_v18 = vmax.f32 %v8112_v36, 0.0 }
 0x19f   :  { %12349 = vst [vmem:[#allocation16_spill] sm:$0xff] %v8340_v13  ;;  %12350 = vst [vmem:[#allocation19_spill] sm:$0xff] %v8344_v39  ;;  %v1310_v34 = vmax.f32 %v8116_v26, 0.0  ;;  %v1311_v3 = vmax.f32 %v8120_v47, 0.0  ;;  %v1312_v13 = vmax.f32 %v8124_v46, 0.0  ;;  %v1313_v23 = vmax.f32 %v8128_v2, 0.0 }
 0x1a0   :  { %v1314_v39 = vmax.f32 %v8132_v61, 0.0  ;;  %1458 = vst.msk [vmem:[#allocation2 + $0x19] sm:$0xff] %vm826_vm2, %v1306_v51  ;;  %v1315_v27 = vmax.f32 %v8136_v5, 0.0  ;;  %v1316_v59 = vmax.f32 %v8140_v15, 0.0  ;;  %v1317_v7 = vmax.f32 %v8144_v12, 0.0  ;;  %1459 = vst.msk [vmem:[#allocation2 + $0x21] sm:$0xff] %vm826_vm2, %v1307_v50 }
 0x1a1   :  { %v1318_v54 = vmax.f32 %v8148_v29, 0.0  ;;  %1460 = vst.msk [vmem:[#allocation2 + $0x31] sm:$0xff] %vm826_vm2, %v1308_v32  ;;  %1461 = vst.msk [vmem:[#allocation2 + $0x39] sm:$0xff] %vm826_vm2, %v1309_v18  ;;  %v1319_v14 = vmax.f32 %v8152_v19, 0.0  ;;  %v1320_v36 = vmax.f32 %v8156_v42, 0.0  ;;  %v1321_v26 = vmax.f32 %v8160_v38, 0.0 }
 0x1a2   :  { %1462 = vst.msk [vmem:[#allocation2 + $0x49] sm:$0xff] %vm826_vm2, %v1310_v34  ;;  %v1322_v47 = vmax.f32 %v8164_v0, 0.0  ;;  %1463 = vst.msk [vmem:[#allocation2 + $0x51] sm:$0xff] %vm826_vm2, %v1311_v3  ;;  %v1323_v46 = vmax.f32 %v8168_v55, 0.0  ;;  %v1324_v2 = vmax.f32 %v8172_v21, 0.0  ;;  %v1325_v61 = vmax.f32 %v8176_v11, 0.0 }
 0x1a3   :  { %1464 = vst.msk [vmem:[#allocation2 + $0x61] sm:$0xff] %vm826_vm2, %v1312_v13  ;;  %1465 = vst.msk [vmem:[#allocation2 + $0x69] sm:$0xff] %vm826_vm2, %v1313_v23  ;;  %v1326_v5 = vmax.f32 %v8180_v37, 0.0  ;;  %v1327_v15 = vmax.f32 %v8184_v33, 0.0  ;;  %v1328_v12 = vmax.f32 %v8188_v62, 0.0  ;;  %v1329_v29 = vmax.f32 %v8192_v52, 0.0 }
 0x1a4   :  { %1466 = vst.msk [vmem:[#allocation2 + $0x79] sm:$0xff] %vm826_vm2, %v1314_v39  ;;  %1467 = vst.msk [vmem:[#allocation2 + $0x81] sm:$0xff] %vm826_vm2, %v1315_v27  ;;  %v1330_v19 = vmax.f32 %v8196_v22, 0.0  ;;  %v1331_v42 = vmax.f32 %v8200_v10, 0.0  ;;  %v1332_v38 = vmax.f32 %v8204_v41, 0.0  ;;  %v1333_v0 = vmax.f32 %v8208_v35, 0.0 }
 0x1a5   :  { %1468 = vst.msk [vmem:[#allocation2 + $0x91] sm:$0xff] %vm826_vm2, %v1316_v59  ;;  %1469 = vst.msk [vmem:[#allocation2 + $0x99] sm:$0xff] %vm826_vm2, %v1317_v7  ;;  %v1334_v55 = vmax.f32 %v8212_v4, 0.0  ;;  %v1335_v21 = vmax.f32 %v8216_v57, 0.0  ;;  %v1336_v11 = vmax.f32 %v8220_v30, 0.0  ;;  %v1337_v37 = vmax.f32 %v8224_v20, 0.0 }
 0x1a6   :  { %1470 = vst.msk [vmem:[#allocation2 + $0xa9] sm:$0xff] %vm826_vm2, %v1318_v54  ;;  %1471 = vst.msk [vmem:[#allocation2 + $0xb1] sm:$0xff] %vm826_vm2, %v1319_v14  ;;  %v1338_v33 = vmax.f32 %v8228_v53, 0.0  ;;  %v1339_v62 = vmax.f32 %v8232_v48, 0.0  ;;  %v1340_v52 = vmax.f32 %v8236_v25, 0.0  ;;  %v1341_v22 = vmax.f32 %v8240_v8, 0.0 }
 0x1a7   :  { %1472 = vst.msk [vmem:[#allocation2 + $0xc1] sm:$0xff] %vm826_vm2, %v1320_v36  ;;  %1473 = vst.msk [vmem:[#allocation2 + $0xc9] sm:$0xff] %vm826_vm2, %v1321_v26  ;;  %v1342_v10 = vmax.f32 %v8244_v56, 0.0  ;;  %v1588_v41 = vld [vmem:[#allocation2 + $0x19] sm:$0xff]  ;;  %v1343_v35 = vmax.f32 %v8248_v45, 0.0  ;;  %v1344_v4 = vmax.f32 %v8252_v17, 0.0 }
 0x1a8   :  { %1474 = vst.msk [vmem:[#allocation2 + $0xd9] sm:$0xff] %vm826_vm2, %v1322_v47  ;;  %1475 = vst.msk [vmem:[#allocation2 + $0xe1] sm:$0xff] %vm826_vm2, %v1323_v46  ;;  %v1345_v57 = vmax.f32 %v8256_v9, 0.0  ;;  %v1346_v30 = vmax.f32 %v8260_v60, 0.0  ;;  %v1590_v20 = vld [vmem:[#allocation2 + $0x31] sm:$0xff]  ;;  %2167 = vrot.lane.b32.xlu1 %v1588_v41, %s6588_s30  ;;  %v1347_v53 = vmax.f32 %v8264_v43, 0.0 }
 0x1a9   :  { %1476 = vst.msk [vmem:[#allocation2 + $0xf1] sm:$0xff] %vm826_vm2, %v1324_v2  ;;  %1477 = vst.msk [vmem:[#allocation2 + $0xf9] sm:$0xff] %vm826_vm2, %v1325_v61  ;;  %v1348_v48 = vmax.f32 %v8268_v31, 0.0  ;;  %v1349_v25 = vmax.f32 %v8272_v16, 0.0  ;;  %v1350_v8 = vmax.f32 %v8276_v1, 0.0  ;;  %2171 = vrot.lane.b32.xlu0 %v1590_v20, %s6588_s30  ;;  %v1351_v56 = vmax.f32 %v8280_v58, 0.0 }
 0x1aa   :  { %1478 = vst.msk [vmem:[#allocation2 + $0x109] sm:$0xff] %vm826_vm2, %v1326_v5  ;;  %1479 = vst.msk [vmem:[#allocation2 + $0x111] sm:$0xff] %vm826_vm2, %v1327_v15  ;;  %v12351_v45 = vld [vmem:[#allocation8_spill] sm:$0xff]  ;;  %v12352_v9 = vld [vmem:[#allocation11_spill] sm:$0xff]  ;;  %v1357_v58 = vmax.f32 %v8304_v40, 0.0  ;;  %v1358_v34 = vmax.f32 %v8308_v6, 0.0 }
 0x1ab   :  { %1480 = vst.msk [vmem:[#allocation2 + $0x121] sm:$0xff] %vm826_vm2, %v1328_v12  ;;  %1481 = vst.msk [vmem:[#allocation2 + $0x129] sm:$0xff] %vm826_vm2, %v1329_v29  ;;  %v1352_v17 = vmax.f32 %v12351_v45, 0.0  ;;  %v1353_v60 = vmax.f32 %v12352_v9, 0.0  ;;  %v12353_v43 = vld [vmem:[#allocation10_spill] sm:$0xff]  ;;  %v12354_v16 = vld [vmem:[#allocation13_spill] sm:$0xff] }
 0x1ac   :  { %1482 = vst.msk [vmem:[#allocation2 + $0x139] sm:$0xff] %vm826_vm2, %v1330_v19  ;;  %1483 = vst.msk [vmem:[#allocation2 + $0x141] sm:$0xff] %vm826_vm2, %v1331_v42  ;;  %v1354_v31 = vmax.f32 %v12353_v43, 0.0  ;;  %v1355_v1 = vmax.f32 %v12354_v16, 0.0  ;;  %v12355_v51 = vld [vmem:[#allocation12_spill] sm:$0xff]  ;;  %v1359_v39 = vmax.f32 %v8312_v63, 0.0  ;;  %v8520_v16 = vpop.permute.xlu0 %2163 }
 0x1ad   :  { %1484 = vst.msk [vmem:[#allocation2 + $0x151] sm:$0xff] %vm826_vm2, %v1332_v38  ;;  %1485 = vst.msk [vmem:[#allocation2 + $0x159] sm:$0xff] %vm826_vm2, %v1333_v0  ;;  %v1356_v32 = vmax.f32 %v12355_v51, 0.0  ;;  %v1589_v13 = vld [vmem:[#allocation2 + $0x21] sm:$0xff]  ;;  %v1360_v50 = vmax.f32 %v8316_v24, 0.0  ;;  %v1361_v18 = vmax.f32 %v8320_v44, 0.0 }
 0x1ae   :  { %1486 = vst.msk [vmem:[#allocation2 + $0x169] sm:$0xff] %vm826_vm2, %v1334_v55  ;;  %1487 = vst.msk [vmem:[#allocation2 + $0x171] sm:$0xff] %vm826_vm2, %v1335_v21  ;;  %v1362_v3 = vmax.f32 %v8324_v49, 0.0  ;;  %v1592_v40 = vld [vmem:[#allocation2 + $0x49] sm:$0xff]  ;;  %2169 = vrot.lane.b32.xlu1 %v1589_v13, %s6588_s30  ;;  %v12356_v6 = vld [vmem:[#allocation15_spill] sm:$0xff]  ;;  %v1369_v14 = vmax.f32 %v8348_v28, 0.0 }
 0x1af   :  { %1488 = vst.msk [vmem:[#allocation2 + $0x181] sm:$0xff] %vm826_vm2, %v1336_v11  ;;  %1489 = vst.msk [vmem:[#allocation2 + $0x189] sm:$0xff] %vm826_vm2, %v1337_v37  ;;  %v1363_v23 = vmax.f32 %v12356_v6, 0.0  ;;  %v12357_v63 = vld [vmem:[#allocation14_spill] sm:$0xff]  ;;  %v12358_v24 = vld [vmem:[#allocation17_spill] sm:$0xff]  ;;  %2175 = vrot.lane.b32.xlu0 %v1592_v40, %s6588_s30 }
 0x1b0   :  { %1490 = vst.msk [vmem:[#allocation2 + $0x1c9] sm:$0xff] %vm826_vm2, %v1338_v33  ;;  %1491 = vst.msk [vmem:[#allocation2 + $0x1d1] sm:$0xff] %vm826_vm2, %v1339_v62  ;;  %v1364_v27 = vmax.f32 %v12357_v63, 0.0  ;;  %v1365_v59 = vmax.f32 %v12358_v24, 0.0  ;;  %v12359_v44 = vld [vmem:[#allocation16_spill] sm:$0xff]  ;;  %v12360_v49 = vld [vmem:[#allocation19_spill] sm:$0xff] }
 0x1b1   :  { %1492 = vst.msk [vmem:[#allocation2 + $0x1e1] sm:$0xff] %vm826_vm2, %v1340_v52  ;;  %1493 = vst.msk [vmem:[#allocation2 + $0x1e9] sm:$0xff] %vm826_vm2, %v1341_v22  ;;  %v1366_v7 = vmax.f32 %v12359_v44, 0.0  ;;  %v1367_v54 = vmax.f32 %v12360_v49, 0.0  ;;  %v1591_v36 = vld [vmem:[#allocation2 + $0x39] sm:$0xff]  ;;  %v1594_v28 = vld [vmem:[#allocation2 + $0x61] sm:$0xff] }
 0x1b2   :  { %1494 = vst.msk [vmem:[#allocation2 + $0x1f9] sm:$0xff] %vm826_vm2, %v1342_v10  ;;  %1495 = vst.msk [vmem:[#allocation2 + $0x201] sm:$0xff] %vm826_vm2, %v1343_v35  ;;  %2173 = vrot.lane.b32.xlu1 %v1591_v36, %s6588_s30  ;;  %v1593_v26 = vld [vmem:[#allocation2 + $0x51] sm:$0xff]  ;;  %v1596_v47 = vld [vmem:[#allocation2 + $0x79] sm:$0xff] }
 0x1b3   :  { %1496 = vst.msk [vmem:[#allocation2 + $0x211] sm:$0xff] %vm826_vm2, %v1344_v4  ;;  %1497 = vst.msk [vmem:[#allocation2 + $0x219] sm:$0xff] %vm826_vm2, %v1345_v57  ;;  %2179 = vrot.lane.b32.xlu0 %v1594_v28, %s6588_s30  ;;  %v1595_v46 = vld [vmem:[#allocation2 + $0x69] sm:$0xff]  ;;  %v1598_v2 = vld [vmem:[#allocation2 + $0x91] sm:$0xff] }
 0x1b4   :  { %1498 = vst.msk [vmem:[#allocation2 + $0x229] sm:$0xff] %vm826_vm2, %v1346_v30  ;;  %1499 = vst.msk [vmem:[#allocation2 + $0x231] sm:$0xff] %vm826_vm2, %v1347_v53  ;;  %v1597_v61 = vld [vmem:[#allocation2 + $0x81] sm:$0xff]  ;;  %v1600_v5 = vld [vmem:[#allocation2 + $0xa9] sm:$0xff] }
 0x1b5   :  { %1500 = vst.msk [vmem:[#allocation2 + $0x241] sm:$0xff] %vm826_vm2, %v1348_v48  ;;  %1501 = vst.msk [vmem:[#allocation2 + $0x249] sm:$0xff] %vm826_vm2, %v1349_v25  ;;  %v1599_v15 = vld [vmem:[#allocation2 + $0x99] sm:$0xff]  ;;  %v1602_v12 = vld [vmem:[#allocation2 + $0xc1] sm:$0xff] }
 0x1b6   :  { %1502 = vst.msk [vmem:[#allocation2 + $0x259] sm:$0xff] %vm826_vm2, %v1350_v8  ;;  %1503 = vst.msk [vmem:[#allocation2 + $0x261] sm:$0xff] %vm826_vm2, %v1351_v56  ;;  %2177 = vrot.lane.b32.xlu1 %v1593_v26, %s6588_s30  ;;  %v1601_v29 = vld [vmem:[#allocation2 + $0xb1] sm:$0xff]  ;;  %v1604_v19 = vld [vmem:[#allocation2 + $0xd9] sm:$0xff] }
 0x1b7   :  { %1504 = vst.msk [vmem:[#allocation2 + $0x271] sm:$0xff] %vm826_vm2, %v1352_v17  ;;  %1505 = vst.msk [vmem:[#allocation2 + $0x279] sm:$0xff] %vm826_vm2, %v1353_v60  ;;  %2183 = vrot.lane.b32.xlu0 %v1596_v47, %s6588_s30  ;;  %v1603_v42 = vld [vmem:[#allocation2 + $0xc9] sm:$0xff]  ;;  %v1606_v38 = vld [vmem:[#allocation2 + $0xf1] sm:$0xff] }
 0x1b8   :  { %1506 = vst.msk [vmem:[#allocation2 + $0x289] sm:$0xff] %vm826_vm2, %v1354_v31  ;;  %1507 = vst.msk [vmem:[#allocation2 + $0x291] sm:$0xff] %vm826_vm2, %v1355_v1  ;;  %v1605_v0 = vld [vmem:[#allocation2 + $0xe1] sm:$0xff]  ;;  %v1608_v55 = vld [vmem:[#allocation2 + $0x109] sm:$0xff] }
 0x1b9   :  { %1508 = vst.msk [vmem:[#allocation2 + $0x2a1] sm:$0xff] %vm826_vm2, %v1356_v32  ;;  %1509 = vst.msk [vmem:[#allocation2 + $0x2a9] sm:$0xff] %vm826_vm2, %v1357_v58  ;;  %v1607_v21 = vld [vmem:[#allocation2 + $0xf9] sm:$0xff]  ;;  %v1610_v11 = vld [vmem:[#allocation2 + $0x121] sm:$0xff]  ;;  %v8526_v58 = vpop.permute.xlu0 %2165 }
 0x1ba   :  { %1510 = vst.msk [vmem:[#allocation2 + $0x2b9] sm:$0xff] %vm826_vm2, %v1358_v34  ;;  %1511 = vst.msk [vmem:[#allocation2 + $0x2c1] sm:$0xff] %vm826_vm2, %v1359_v39  ;;  %2181 = vrot.lane.b32.xlu1 %v1595_v46, %s6588_s30  ;;  %v1609_v37 = vld [vmem:[#allocation2 + $0x111] sm:$0xff]  ;;  %v1612_v33 = vld [vmem:[#allocation2 + $0x139] sm:$0xff]  ;;  %v8530_v39 = vpop.permute.xlu1 %2229 }
 0x1bb   :  { %1512 = vst.msk [vmem:[#allocation2 + $0x2d1] sm:$0xff] %vm826_vm2, %v1360_v50  ;;  %1513 = vst.msk [vmem:[#allocation2 + $0x2d9] sm:$0xff] %vm826_vm2, %v1361_v18  ;;  %2187 = vrot.lane.b32.xlu0 %v1598_v2, %s6588_s30  ;;  %v1611_v62 = vld [vmem:[#allocation2 + $0x129] sm:$0xff]  ;;  %v1614_v52 = vld [vmem:[#allocation2 + $0x151] sm:$0xff] }
 0x1bc   :  { %1514 = vst.msk [vmem:[#allocation2 + $0x2e9] sm:$0xff] %vm826_vm2, %v1362_v3  ;;  %1515 = vst.msk [vmem:[#allocation2 + $0x2f1] sm:$0xff] %vm826_vm2, %v1363_v23  ;;  %v1613_v22 = vld [vmem:[#allocation2 + $0x141] sm:$0xff]  ;;  %v1616_v10 = vld [vmem:[#allocation2 + $0x169] sm:$0xff] }
 0x1bd   :  { %1516 = vst.msk [vmem:[#allocation2 + $0x301] sm:$0xff] %vm826_vm2, %v1364_v27  ;;  %1517 = vst.msk [vmem:[#allocation2 + $0x309] sm:$0xff] %vm826_vm2, %v1365_v59  ;;  %v1615_v41 = vld [vmem:[#allocation2 + $0x159] sm:$0xff]  ;;  %v1620_v35 = vld [vmem:[#allocation2 + $0x1c9] sm:$0xff]  ;;  %v8532_v50 = vpop.permute.xlu0 %2227 }
 0x1be   :  { %1518 = vst.msk [vmem:[#allocation2 + $0x319] sm:$0xff] %vm826_vm2, %v1366_v7  ;;  %1519 = vst.msk [vmem:[#allocation2 + $0x321] sm:$0xff] %vm826_vm2, %v1367_v54  ;;  %2185 = vrot.lane.b32.xlu1 %v1597_v61, %s6588_s30  ;;  %v1617_v4 = vld [vmem:[#allocation2 + $0x171] sm:$0xff]  ;;  %v1622_v57 = vld [vmem:[#allocation2 + $0x1e1] sm:$0xff]  ;;  %v8536_v6 = vpop.permute.xlu1 %2421 }
 0x1bf   :  { %1521 = vst.msk [vmem:[#allocation2 + $0x339] sm:$0xff] %vm826_vm2, %v1369_v14  ;;  %2191 = vrot.lane.b32.xlu0 %v1600_v5, %s6588_s30  ;;  %v1621_v30 = vld [vmem:[#allocation2 + $0x1d1] sm:$0xff]  ;;  %v1624_v20 = vld [vmem:[#allocation2 + $0x1f9] sm:$0xff]  ;;  %v1623_v53 = vld [vmem:[#allocation2 + $0x1e9] sm:$0xff] }
 0x1c0   :  { %v1626_v48 = vld [vmem:[#allocation2 + $0x211] sm:$0xff]  ;;  %v1625_v25 = vld [vmem:[#allocation2 + $0x201] sm:$0xff]  ;;  %v1628_v8 = vld [vmem:[#allocation2 + $0x229] sm:$0xff]  ;;  %12361 = vst [vmem:[#allocation18_spill] sm:$0xff] %v8530_v39 }
 0x1c1   :  { %v1627_v56 = vld [vmem:[#allocation2 + $0x219] sm:$0xff]  ;;  %v1630_v45 = vld [vmem:[#allocation2 + $0x241] sm:$0xff]  ;;  %v1629_v17 = vld [vmem:[#allocation2 + $0x231] sm:$0xff]  ;;  %12362 = vst [vmem:[#allocation21_spill] sm:$0xff] %v8532_v50  ;;  %v8539_v63 = vpop.permute.xlu0 %2419 }
 0x1c2   :  { %2189 = vrot.lane.b32.xlu1 %v1599_v15, %s6588_s30  ;;  %v1632_v9 = vld [vmem:[#allocation2 + $0x259] sm:$0xff]  ;;  %v1631_v60 = vld [vmem:[#allocation2 + $0x249] sm:$0xff]  ;;  %v1634_v43 = vld [vmem:[#allocation2 + $0x271] sm:$0xff]  ;;  %v8546_v44 = vpop.permute.xlu1 %2485 }
 0x1c3   :  { %2195 = vrot.lane.b32.xlu0 %v1602_v12, %s6588_s30  ;;  %v1633_v31 = vld [vmem:[#allocation2 + $0x261] sm:$0xff]  ;;  %v1636_v1 = vld [vmem:[#allocation2 + $0x289] sm:$0xff]  ;;  %v1635_v51 = vld [vmem:[#allocation2 + $0x279] sm:$0xff]  ;;  %12364 = vst [vmem:[#allocation23_spill] sm:$0xff] %v8546_v44 }
 0x1c4   :  { %v1638_v32 = vld [vmem:[#allocation2 + $0x2a1] sm:$0xff]  ;;  %v1637_v34 = vld [vmem:[#allocation2 + $0x291] sm:$0xff]  ;;  %v1640_v13 = vld [vmem:[#allocation2 + $0x2b9] sm:$0xff] }
 0x1c5   :  { %v1639_v18 = vld [vmem:[#allocation2 + $0x2a9] sm:$0xff]  ;;  %v1642_v3 = vld [vmem:[#allocation2 + $0x2d1] sm:$0xff]  ;;  %v1641_v40 = vld [vmem:[#allocation2 + $0x2c1] sm:$0xff]  ;;  %v8544_v59 = vpop.permute.xlu0 %2483 }
 0x1c6   :  { %2193 = vrot.lane.b32.xlu1 %v1601_v29, %s6588_s30  ;;  %v1644_v23 = vld [vmem:[#allocation2 + $0x2e9] sm:$0xff]  ;;  %v1643_v27 = vld [vmem:[#allocation2 + $0x2d9] sm:$0xff]  ;;  %v1646_v24 = vld [vmem:[#allocation2 + $0x301] sm:$0xff]  ;;  %12363 = vst [vmem:[#allocation20_spill] sm:$0xff] %v8544_v59 }
 0x1c7   :  { %2199 = vrot.lane.b32.xlu0 %v1604_v19, %s6588_s30  ;;  %v1645_v7 = vld [vmem:[#allocation2 + $0x2f1] sm:$0xff]  ;;  %v1648_v49 = vld [vmem:[#allocation2 + $0x319] sm:$0xff]  ;;  %v1647_v36 = vld [vmem:[#allocation2 + $0x309] sm:$0xff] }
 0x1c8   :  { %v1652_v28 = vld [vmem:[#allocation2 + $0x1a] sm:$0xff]  ;;  %v1654_v2 = vld [vmem:[#allocation2 + $0x32] sm:$0xff]  ;;  %v1653_v15 = vld [vmem:[#allocation2 + $0x22] sm:$0xff] }
 0x1c9   :  { %v1649_v46 = vld [vmem:[#allocation2 + $0x321] sm:$0xff]  ;;  %v1656_v12 = vld [vmem:[#allocation2 + $0x4a] sm:$0xff] }
 0x1ca   :  { %2197 = vrot.lane.b32.xlu1 %v1603_v42, %s6588_s30  ;;  %v1655_v42 = vld [vmem:[#allocation2 + $0x3a] sm:$0xff]  ;;  %v1544_v59 = vld [vmem:[#allocation2 + $0x108] sm:$0xff] }
 0x1cb   :  { %2203 = vrot.lane.b32.xlu0 %v1606_v38, %s6588_s30  ;;  %v1658_v38 = vld [vmem:[#allocation2 + $0x62] sm:$0xff] }
 0x1cc   :  { %v1546_v50 = vld [vmem:[#allocation2 + $0x120] sm:$0xff] }
 0x1ce   :  { %2201 = vrot.lane.b32.xlu1 %v1605_v0, %s6588_s30 }
 0x1cf   :  { %2207 = vrot.lane.b32.xlu0 %v1608_v55, %s6588_s30 }
 0x1d2   :  { %2205 = vrot.lane.b32.xlu1 %v1607_v21, %s6588_s30  ;;  %v1657_v21 = vld [vmem:[#allocation2 + $0x52] sm:$0xff] }
 0x1d3   :  { %2211 = vrot.lane.b32.xlu0 %v1610_v11, %s6588_s30  ;;  %v1660_v11 = vld [vmem:[#allocation2 + $0x7a] sm:$0xff] }
 0x1d6   :  { %2209 = vrot.lane.b32.xlu1 %v1609_v37, %s6588_s30 }
 0x1d7   :  { %2215 = vrot.lane.b32.xlu0 %v1612_v33, %s6588_s30 }
 0x1da   :  { %2213 = vrot.lane.b32.xlu1 %v1611_v62, %s6588_s30  ;;  %v1659_v62 = vld [vmem:[#allocation2 + $0x6a] sm:$0xff] }
 0x1db   :  { %2219 = vrot.lane.b32.xlu0 %v1614_v52, %s6588_s30  ;;  %v1662_v52 = vld [vmem:[#allocation2 + $0x92] sm:$0xff] }
 0x1de   :  { %2217 = vrot.lane.b32.xlu1 %v1613_v22, %s6588_s30 }
 0x1df   :  { %2223 = vrot.lane.b32.xlu0 %v1616_v10, %s6588_s30 }
 0x1e2   :  { %2221 = vrot.lane.b32.xlu1 %v1615_v41, %s6588_s30  ;;  %v1661_v41 = vld [vmem:[#allocation2 + $0x82] sm:$0xff] }
 0x1e3   :  { %2231 = vrot.lane.b32.xlu0 %v1620_v35, %s6588_s30  ;;  %v1664_v35 = vld [vmem:[#allocation2 + $0xaa] sm:$0xff] }
 0x1e6   :  { %2225 = vrot.lane.b32.xlu1 %v1617_v4, %s6588_s30 }
 0x1e7   :  { %2235 = vrot.lane.b32.xlu0 %v1622_v57, %s6588_s30 }
 0x1ea   :  { %2233 = vrot.lane.b32.xlu1 %v1621_v30, %s6588_s30  ;;  %v1663_v30 = vld [vmem:[#allocation2 + $0x9a] sm:$0xff] }
 0x1eb   :  { %2239 = vrot.lane.b32.xlu0 %v1624_v20, %s6588_s30  ;;  %v1666_v20 = vld [vmem:[#allocation2 + $0xc2] sm:$0xff] }
 0x1ee   :  { %2237 = vrot.lane.b32.xlu1 %v1623_v53, %s6588_s30 }
 0x1ef   :  { %2243 = vrot.lane.b32.xlu0 %v1626_v48, %s6588_s30 }
 0x1f2   :  { %2241 = vrot.lane.b32.xlu1 %v1625_v25, %s6588_s30  ;;  %v1665_v25 = vld [vmem:[#allocation2 + $0xb2] sm:$0xff] }
 0x1f3   :  { %2247 = vrot.lane.b32.xlu0 %v1628_v8, %s6588_s30  ;;  %v1668_v8 = vld [vmem:[#allocation2 + $0xda] sm:$0xff] }
 0x1f6   :  { %2245 = vrot.lane.b32.xlu1 %v1627_v56, %s6588_s30 }
 0x1f7   :  { %2251 = vrot.lane.b32.xlu0 %v1630_v45, %s6588_s30 }
 0x1fa   :  { %2249 = vrot.lane.b32.xlu1 %v1629_v17, %s6588_s30  ;;  %v1667_v17 = vld [vmem:[#allocation2 + $0xca] sm:$0xff] }
 0x1fb   :  { %2255 = vrot.lane.b32.xlu0 %v1632_v9, %s6588_s30  ;;  %v1670_v9 = vld [vmem:[#allocation2 + $0xf2] sm:$0xff] }
 0x1fe   :  { %2253 = vrot.lane.b32.xlu1 %v1631_v60, %s6588_s30 }
 0x1ff   :  { %2259 = vrot.lane.b32.xlu0 %v1634_v43, %s6588_s30 }
 0x202   :  { %2257 = vrot.lane.b32.xlu1 %v1633_v31, %s6588_s30  ;;  %v1669_v31 = vld [vmem:[#allocation2 + $0xe2] sm:$0xff] }
 0x203   :  { %2263 = vrot.lane.b32.xlu0 %v1636_v1, %s6588_s30  ;;  %v1672_v1 = vld [vmem:[#allocation2 + $0x10a] sm:$0xff] }
 0x206   :  { %2261 = vrot.lane.b32.xlu1 %v1635_v51, %s6588_s30 }
 0x207   :  { %2267 = vrot.lane.b32.xlu0 %v1638_v32, %s6588_s30 }
 0x20a   :  { %2265 = vrot.lane.b32.xlu1 %v1637_v34, %s6588_s30  ;;  %v1671_v34 = vld [vmem:[#allocation2 + $0xfa] sm:$0xff] }
 0x20b   :  { %2271 = vrot.lane.b32.xlu0 %v1640_v13, %s6588_s30  ;;  %v1674_v13 = vld [vmem:[#allocation2 + $0x122] sm:$0xff] }
 0x20e   :  { %2269 = vrot.lane.b32.xlu1 %v1639_v18, %s6588_s30 }
 0x20f   :  { %2275 = vrot.lane.b32.xlu0 %v1642_v3, %s6588_s30 }
 0x212   :  { %2273 = vrot.lane.b32.xlu1 %v1641_v40, %s6588_s30  ;;  %v1673_v40 = vld [vmem:[#allocation2 + $0x112] sm:$0xff] }
 0x213   :  { %2279 = vrot.lane.b32.xlu0 %v1644_v23, %s6588_s30  ;;  %v1676_v23 = vld [vmem:[#allocation2 + $0x13a] sm:$0xff] }
 0x216   :  { %2277 = vrot.lane.b32.xlu1 %v1643_v27, %s6588_s30 }
 0x217   :  { %2283 = vrot.lane.b32.xlu0 %v1646_v24, %s6588_s30 }
 0x21a   :  { %2281 = vrot.lane.b32.xlu1 %v1645_v7, %s6588_s30  ;;  %v8550_v54 = vpop.permute.xlu1 %2167  ;;  %v1675_v7 = vld [vmem:[#allocation2 + $0x12a] sm:$0xff] }
 0x21b   :  { %2287 = vrot.lane.b32.xlu0 %v1648_v49, %s6588_s30  ;;  %v8552_v14 = vpop.permute.xlu0 %2171  ;;  %v1678_v49 = vld [vmem:[#allocation2 + $0x152] sm:$0xff] }
 0x21e   :  { %2285 = vrot.lane.b32.xlu1 %v1647_v36, %s6588_s30 }
 0x21f   :  { %2423 = vrot.lane.b32.xlu0 %v1652_v28, %s6589_s26 }
 0x220   :  { %v8556_v26 = vpop.permute.xlu1 %2169 }
 0x221   :  { %v8558_v47 = vpop.permute.xlu0 %2175 }
 0x222   :  { %12365 = vst [vmem:[#allocation22_spill] sm:$0xff] %v8558_v47  ;;  %2289 = vrot.lane.b32.xlu1 %v1649_v46, %s6588_s30  ;;  %v1677_v46 = vld [vmem:[#allocation2 + $0x142] sm:$0xff]  ;;  %s6592_s30 = smov 40   ;;  %v9301_v47 = vld [vmem:[#allocation2 + $0x12a] sm:$0xff] }
 0x223   :  { %2427 = vrot.lane.b32.xlu0 %v1654_v2, %s6589_s26  ;;  %v1680_v2 = vld [vmem:[#allocation2 + $0x16a] sm:$0xff] }
 0x224   :  { %v8562_v61 = vpop.permute.xlu1 %2173 }
 0x225   :  { %12366 = vst [vmem:[#allocation25_spill] sm:$0xff] %v8562_v61  ;;  %v8564_v5 = vpop.permute.xlu0 %2179  ;;  %v1908_v61 = vld [vmem:[#allocation2 + $0x38] sm:$0xff] }
 0x226   :  { %12367 = vst [vmem:[#allocation24_spill] sm:$0xff] %v8564_v5  ;;  %2425 = vrot.lane.b32.xlu1 %v1653_v15, %s6589_s26  ;;  %v9253_v5 = vld [vmem:[#allocation2 + $0xca] sm:$0xff] }
 0x227   :  { %2431 = vrot.lane.b32.xlu0 %v1656_v12, %s6589_s26 }
 0x228   :  { %v8568_v29 = vpop.permute.xlu1 %2177 }
 0x229   :  { %12368 = vst [vmem:[#allocation26_spill] sm:$0xff] %v8568_v29  ;;  %v8570_v19 = vpop.permute.xlu0 %2183  ;;  %v9291_v29 = vld [vmem:[#allocation2 + $0x13a] sm:$0xff] }
 0x22a   :  { %12369 = vst [vmem:[#allocation3_spill] sm:$0xff] %v8570_v19  ;;  %2429 = vrot.lane.b32.xlu1 %v1655_v42, %s6589_s26  ;;  %v1679_v42 = vld [vmem:[#allocation2 + $0x15a] sm:$0xff]  ;;  %v9205_v19 = vld [vmem:[#allocation2 + $0x6a] sm:$0xff] }
 0x22b   :  { %2435 = vrot.lane.b32.xlu0 %v1658_v38, %s6589_s26  ;;  %v1684_v38 = vld [vmem:[#allocation2 + $0x1ca] sm:$0xff] }
 0x22c   :  { %v8574_v0 = vpop.permute.xlu1 %2181 }
 0x22d   :  { %12370 = vst [vmem:[#allocation5_spill] sm:$0xff] %v8574_v0  ;;  %v8576_v55 = vpop.permute.xlu0 %2187  ;;  %v9243_v0 = vld [vmem:[#allocation2 + $0xda] sm:$0xff] }
 0x22e   :  { %12371 = vst [vmem:[#allocation4_spill] sm:$0xff] %v8576_v55  ;;  %2433 = vrot.lane.b32.xlu1 %v1657_v21, %s6589_s26  ;;  %v9172_v55 = vld [vmem:[#allocation2 + $0x4a] sm:$0xff] }
 0x22f   :  { %2439 = vrot.lane.b32.xlu0 %v1660_v11, %s6589_s26 }
 0x230   :  { %v8580_v37 = vpop.permute.xlu1 %2185 }
 0x231   :  { %12372 = vst [vmem:[#allocation7_spill] sm:$0xff] %v8580_v37  ;;  %v8582_v33 = vpop.permute.xlu0 %2191 }
 0x232   :  { %12373 = vst [vmem:[#allocation6_spill] sm:$0xff] %v8582_v33  ;;  %2437 = vrot.lane.b32.xlu1 %v1659_v62, %s6589_s26  ;;  %v1681_v62 = vld [vmem:[#allocation2 + $0x172] sm:$0xff]  ;;  %v1800_v33 = vld [vmem:[#allocation2 + $0x121] sm:$0xff] }
 0x233   :  { %2443 = vrot.lane.b32.xlu0 %v1662_v52, %s6589_s26  ;;  %v1686_v52 = vld [vmem:[#allocation2 + $0x1e2] sm:$0xff] }
 0x234   :  { %v8586_v22 = vpop.permute.xlu1 %2189 }
 0x235   :  { %12374 = vst [vmem:[#allocation9_spill] sm:$0xff] %v8586_v22  ;;  %v8588_v10 = vpop.permute.xlu0 %2195  ;;  %v9163_v22 = vld [vmem:[#allocation2 + $0x32] sm:$0xff] }
 0x236   :  { %12375 = vst [vmem:[#allocation8_spill] sm:$0xff] %v8588_v10  ;;  %2441 = vrot.lane.b32.xlu1 %v1661_v41, %s6589_s26 }
 0x237   :  { %2447 = vrot.lane.b32.xlu0 %v1664_v35, %s6589_s26 }
 0x238   :  { %v8592_v4 = vpop.permute.xlu1 %2193 }
 0x239   :  { %12376 = vst [vmem:[#allocation11_spill] sm:$0xff] %v8592_v4  ;;  %v8594_v57 = vpop.permute.xlu0 %2199  ;;  %v1798_v4 = vld [vmem:[#allocation2 + $0x109] sm:$0xff] }
 0x23a   :  { %12377 = vst [vmem:[#allocation10_spill] sm:$0xff] %v8594_v57  ;;  %2445 = vrot.lane.b32.xlu1 %v1663_v30, %s6589_s26  ;;  %v1685_v30 = vld [vmem:[#allocation2 + $0x1d2] sm:$0xff]  ;;  %v8988_v57 = vld [vmem:[#allocation2 + $0xa9] sm:$0xff] }
 0x23b   :  { %2451 = vrot.lane.b32.xlu0 %v1666_v20, %s6589_s26  ;;  %v1688_v20 = vld [vmem:[#allocation2 + $0x1fa] sm:$0xff] }
 0x23c   :  { %v8598_v53 = vpop.permute.xlu1 %2197 }
 0x23d   :  { %12378 = vst [vmem:[#allocation13_spill] sm:$0xff] %v8598_v53  ;;  %v8600_v48 = vpop.permute.xlu0 %2203  ;;  %v1792_v53 = vld [vmem:[#allocation2 + $0xc1] sm:$0xff] }
 0x23e   :  { %12379 = vst [vmem:[#allocation12_spill] sm:$0xff] %v8600_v48  ;;  %2449 = vrot.lane.b32.xlu1 %v1665_v25, %s6589_s26  ;;  %v8976_v48 = vld [vmem:[#allocation2 + $0x91] sm:$0xff] }
 0x23f   :  { %2455 = vrot.lane.b32.xlu0 %v1668_v8, %s6589_s26 }
 0x240   :  { %v8604_v56 = vpop.permute.xlu1 %2201 }
 0x241   :  { %12380 = vst [vmem:[#allocation15_spill] sm:$0xff] %v8604_v56  ;;  %v8606_v45 = vpop.permute.xlu0 %2207  ;;  %v8986_v56 = vld [vmem:[#allocation2 + $0x81] sm:$0xff] }
 0x242   :  { %12381 = vst [vmem:[#allocation14_spill] sm:$0xff] %v8606_v45  ;;  %2453 = vrot.lane.b32.xlu1 %v1667_v17, %s6589_s26  ;;  %v1687_v17 = vld [vmem:[#allocation2 + $0x1ea] sm:$0xff]  ;;  %v8964_v45 = vld [vmem:[#allocation2 + $0x79] sm:$0xff] }
 0x243   :  { %2459 = vrot.lane.b32.xlu0 %v1670_v9, %s6589_s26  ;;  %v1690_v9 = vld [vmem:[#allocation2 + $0x212] sm:$0xff] }
 0x244   :  { %v8610_v60 = vpop.permute.xlu1 %2205 }
 0x245   :  { %12382 = vst [vmem:[#allocation17_spill] sm:$0xff] %v8610_v60  ;;  %v8612_v43 = vpop.permute.xlu0 %2211  ;;  %v8974_v60 = vld [vmem:[#allocation2 + $0x69] sm:$0xff] }
 0x246   :  { %12383 = vst [vmem:[#allocation16_spill] sm:$0xff] %v8612_v43  ;;  %2457 = vrot.lane.b32.xlu1 %v1669_v31, %s6589_s26 }
 0x247   :  { %2463 = vrot.lane.b32.xlu0 %v1672_v1, %s6589_s26 }
 0x248   :  { %v8616_v51 = vpop.permute.xlu1 %2209 }
 0x249   :  { %12384 = vst [vmem:[#allocation19_spill] sm:$0xff] %v8616_v51  ;;  %v8618_v32 = vpop.permute.xlu0 %2215  ;;  %v8962_v51 = vld [vmem:[#allocation2 + $0x51] sm:$0xff] }
 0x24a   :  { %12385 = vst [vmem:[#allocation28_spill] sm:$0xff] %v8618_v32  ;;  %2461 = vrot.lane.b32.xlu1 %v1671_v34, %s6589_s26  ;;  %v1689_v34 = vld [vmem:[#allocation2 + $0x202] sm:$0xff]  ;;  %v1778_v32 = vld [vmem:[#allocation2 + $0x19] sm:$0xff] }
 0x24b   :  { %2467 = vrot.lane.b32.xlu0 %v1674_v13, %s6589_s26  ;;  %v1692_v13 = vld [vmem:[#allocation2 + $0x22a] sm:$0xff] }
 0x24c   :  { %v8622_v18 = vpop.permute.xlu1 %2213 }
 0x24d   :  { %12386 = vst [vmem:[#allocation29_spill] sm:$0xff] %v8622_v18  ;;  %v8624_v3 = vpop.permute.xlu0 %2219  ;;  %v8941_v18 = vld [vmem:[#allocation2 + $0x49] sm:$0xff] }
 0x24e   :  { %12387 = vst [vmem:[#allocation30_spill] sm:$0xff] %v8624_v3  ;;  %2465 = vrot.lane.b32.xlu1 %v1673_v40, %s6589_s26  ;;  %v1550_v3 = vld [vmem:[#allocation2 + $0x150] sm:$0xff] }
 0x24f   :  { %2471 = vrot.lane.b32.xlu0 %v1676_v23, %s6589_s26 }
 0x250   :  { %v8628_v27 = vpop.permute.xlu1 %2217 }
 0x251   :  { %12388 = vst [vmem:[#allocation31_spill] sm:$0xff] %v8628_v27  ;;  %v8630_v24 = vpop.permute.xlu0 %2223  ;;  %v1776_v27 = vld [vmem:[#allocation2 + $0x330] sm:$0xff] }
 0x252   :  { %12389 = vst [vmem:[#allocation32_spill] sm:$0xff] %v8630_v24  ;;  %2469 = vrot.lane.b32.xlu1 %v1675_v7, %s6589_s26  ;;  %v1691_v7 = vld [vmem:[#allocation2 + $0x21a] sm:$0xff] }
 0x253   :  { %2475 = vrot.lane.b32.xlu0 %v1678_v49, %s6589_s26  ;;  %v1694_v49 = vld [vmem:[#allocation2 + $0x242] sm:$0xff]  ;;  %v1548_v24 = vld [vmem:[#allocation2 + $0x138] sm:$0xff] }
 0x254   :  { %v8634_v36 = vpop.permute.xlu1 %2221 }
 0x255   :  { %12390 = vst [vmem:[#allocation33_spill] sm:$0xff] %v8634_v36  ;;  %v8636_v28 = vpop.permute.xlu0 %2231 }
 0x256   :  { %12391 = vst [vmem:[#allocation34_spill] sm:$0xff] %v8636_v28  ;;  %2473 = vrot.lane.b32.xlu1 %v1677_v46, %s6589_s26  ;;  %v1542_v28 = vld [vmem:[#allocation2 + $0xf0] sm:$0xff] }
 0x257   :  { %2479 = vrot.lane.b32.xlu0 %v1680_v2, %s6589_s26 }
 0x258   :  { %v8640_v15 = vpop.permute.xlu1 %2225 }
 0x259   :  { %12392 = vst [vmem:[#allocation35_spill] sm:$0xff] %v8640_v15  ;;  %v8642_v12 = vpop.permute.xlu0 %2235 }
 0x25a   :  { %12393 = vst [vmem:[#allocation36_spill] sm:$0xff] %v8642_v12  ;;  %2477 = vrot.lane.b32.xlu1 %v1679_v42, %s6589_s26  ;;  %v1693_v42 = vld [vmem:[#allocation2 + $0x232] sm:$0xff] }
 0x25b   :  { %2487 = vrot.lane.b32.xlu0 %v1684_v38, %s6589_s26  ;;  %v1696_v38 = vld [vmem:[#allocation2 + $0x25a] sm:$0xff] }
 0x25c   :  { %v8646_v21 = vpop.permute.xlu1 %2233  ;;  %v1540_v12 = vld [vmem:[#allocation2 + $0xd8] sm:$0xff] }
 0x25d   :  { %12394 = vst [vmem:[#allocation37_spill] sm:$0xff] %v8646_v21  ;;  %v8648_v11 = vpop.permute.xlu0 %2239 }
 0x25e   :  { %12395 = vst [vmem:[#allocation38_spill] sm:$0xff] %v8648_v11  ;;  %2481 = vrot.lane.b32.xlu1 %v1681_v62, %s6589_s26  ;;  %v1538_v11 = vld [vmem:[#allocation2 + $0xc0] sm:$0xff] }
 0x25f   :  { %2491 = vrot.lane.b32.xlu0 %v1686_v52, %s6589_s26 }
 0x260   :  { %v8652_v41 = vpop.permute.xlu1 %2237 }
 0x261   :  { %12396 = vst [vmem:[#allocation39_spill] sm:$0xff] %v8652_v41  ;;  %v8654_v35 = vpop.permute.xlu0 %2243 }
 0x262   :  { %12397 = vst [vmem:[#allocation40_spill] sm:$0xff] %v8654_v35  ;;  %2489 = vrot.lane.b32.xlu1 %v1685_v30, %s6589_s26  ;;  %v1695_v30 = vld [vmem:[#allocation2 + $0x24a] sm:$0xff] }
 0x263   :  { %2495 = vrot.lane.b32.xlu0 %v1688_v20, %s6589_s26  ;;  %v1698_v20 = vld [vmem:[#allocation2 + $0x272] sm:$0xff]  ;;  %v1536_v35 = vld [vmem:[#allocation2 + $0xa8] sm:$0xff] }
 0x264   :  { %v8658_v25 = vpop.permute.xlu1 %2241 }
 0x265   :  { %12398 = vst [vmem:[#allocation41_spill] sm:$0xff] %v8658_v25  ;;  %v8660_v8 = vpop.permute.xlu0 %2247 }
 0x266   :  { %12399 = vst [vmem:[#allocation42_spill] sm:$0xff] %v8660_v8  ;;  %2493 = vrot.lane.b32.xlu1 %v1687_v17, %s6589_s26  ;;  %v1534_v8 = vld [vmem:[#allocation2 + $0x90] sm:$0xff] }
 0x267   :  { %2499 = vrot.lane.b32.xlu0 %v1690_v9, %s6589_s26 }
 0x268   :  { %v8664_v31 = vpop.permute.xlu1 %2245 }
 0x269   :  { %12400 = vst [vmem:[#allocation43_spill] sm:$0xff] %v8664_v31  ;;  %v8666_v1 = vpop.permute.xlu0 %2251 }
 0x26a   :  { %12401 = vst [vmem:[#allocation44_spill] sm:$0xff] %v8666_v1  ;;  %2497 = vrot.lane.b32.xlu1 %v1689_v34, %s6589_s26  ;;  %v1697_v34 = vld [vmem:[#allocation2 + $0x262] sm:$0xff]  ;;  %v1532_v1 = vld [vmem:[#allocation2 + $0x78] sm:$0xff] }
 0x26b   :  { %2503 = vrot.lane.b32.xlu0 %v1692_v13, %s6589_s26  ;;  %v1700_v13 = vld [vmem:[#allocation2 + $0x28a] sm:$0xff] }
 0x26c   :  { %v8670_v40 = vpop.permute.xlu1 %2249 }
 0x26d   :  { %12402 = vst [vmem:[#allocation45_spill] sm:$0xff] %v8670_v40  ;;  %v8672_v23 = vpop.permute.xlu0 %2255 }
 0x26e   :  { %12403 = vst [vmem:[#allocation46_spill] sm:$0xff] %v8672_v23  ;;  %2501 = vrot.lane.b32.xlu1 %v1691_v7, %s6589_s26  ;;  %v1530_v23 = vld [vmem:[#allocation2 + $0x60] sm:$0xff] }
 0x26f   :  { %2507 = vrot.lane.b32.xlu0 %v1694_v49, %s6589_s26 }
 0x270   :  { %v8676_v46 = vpop.permute.xlu1 %2253 }
 0x271   :  { %12404 = vst [vmem:[#allocation47_spill] sm:$0xff] %v8676_v46  ;;  %v8678_v2 = vpop.permute.xlu0 %2259 }
 0x272   :  { %12405 = vst [vmem:[#allocation48_spill] sm:$0xff] %v8678_v2  ;;  %2505 = vrot.lane.b32.xlu1 %v1693_v42, %s6589_s26  ;;  %v1699_v42 = vld [vmem:[#allocation2 + $0x27a] sm:$0xff]  ;;  %v1528_v2 = vld [vmem:[#allocation2 + $0x48] sm:$0xff] }
 0x273   :  { %2511 = vrot.lane.b32.xlu0 %v1696_v38, %s6589_s26  ;;  %v1702_v38 = vld [vmem:[#allocation2 + $0x2a2] sm:$0xff] }
 0x274   :  { %v8682_v62 = vpop.permute.xlu1 %2257 }
 0x275   :  { %12406 = vst [vmem:[#allocation49_spill] sm:$0xff] %v8682_v62  ;;  %v8684_v52 = vpop.permute.xlu0 %2263 }
 0x276   :  { %12407 = vst [vmem:[#allocation50_spill] sm:$0xff] %v8684_v52  ;;  %2509 = vrot.lane.b32.xlu1 %v1695_v30, %s6589_s26  ;;  %v1704_v52 = vld [vmem:[#allocation2 + $0x2ba] sm:$0xff] }
 0x277   :  { %2515 = vrot.lane.b32.xlu0 %v1698_v20, %s6589_s26 }
 0x278   :  { %v8688_v17 = vpop.permute.xlu1 %2261 }
 0x279   :  { %12408 = vst [vmem:[#allocation51_spill] sm:$0xff] %v8688_v17  ;;  %v8690_v9 = vpop.permute.xlu0 %2267  ;;  %v1526_v17 = vld [vmem:[#allocation2 + $0x30] sm:$0xff] }
 0x27a   :  { %12409 = vst [vmem:[#allocation52_spill] sm:$0xff] %v8690_v9  ;;  %2513 = vrot.lane.b32.xlu1 %v1697_v34, %s6589_s26  ;;  %v1701_v9 = vld [vmem:[#allocation2 + $0x292] sm:$0xff] }
 0x27b   :  { %2519 = vrot.lane.b32.xlu0 %v1700_v13, %s6589_s26 }
 0x27c   :  { %v8694_v7 = vpop.permute.xlu1 %2265 }
 0x27d   :  { %12410 = vst [vmem:[#allocation53_spill] sm:$0xff] %v8694_v7  ;;  %v8696_v49 = vpop.permute.xlu0 %2271  ;;  %v1706_v7 = vld [vmem:[#allocation2 + $0x2d2] sm:$0xff] }
 0x27e   :  { %12411 = vst [vmem:[#allocation54_spill] sm:$0xff] %v8696_v49  ;;  %2517 = vrot.lane.b32.xlu1 %v1699_v42, %s6589_s26  ;;  %v1703_v49 = vld [vmem:[#allocation2 + $0x2aa] sm:$0xff] }
 0x27f   :  { %2523 = vrot.lane.b32.xlu0 %v1702_v38, %s6589_s26 }
 0x280   :  { %v8700_v30 = vpop.permute.xlu1 %2269 }
 0x281   :  { %12412 = vst [vmem:[#allocation55_spill] sm:$0xff] %v8700_v30  ;;  %v8702_v20 = vpop.permute.xlu0 %2275  ;;  %v1708_v30 = vld [vmem:[#allocation2 + $0x2ea] sm:$0xff] }
 0x282   :  { %12413 = vst [vmem:[#allocation56_spill] sm:$0xff] %v8702_v20  ;;  %2521 = vrot.lane.b32.xlu1 %v1701_v9, %s6589_s26  ;;  %v1705_v20 = vld [vmem:[#allocation2 + $0x2c2] sm:$0xff] }
 0x283   :  { %2527 = vrot.lane.b32.xlu0 %v1704_v52, %s6589_s26 }
 0x284   :  { %v8706_v34 = vpop.permute.xlu1 %2273 }
 0x285   :  { %12414 = vst [vmem:[#allocation57_spill] sm:$0xff] %v8706_v34  ;;  %v8708_v13 = vpop.permute.xlu0 %2279  ;;  %v1710_v34 = vld [vmem:[#allocation2 + $0x302] sm:$0xff] }
 0x286   :  { %12415 = vst [vmem:[#allocation58_spill] sm:$0xff] %v8708_v13  ;;  %2525 = vrot.lane.b32.xlu1 %v1703_v49, %s6589_s26  ;;  %v1707_v13 = vld [vmem:[#allocation2 + $0x2da] sm:$0xff] }
 0x287   :  { %2531 = vrot.lane.b32.xlu0 %v1706_v7, %s6589_s26 }
 0x288   :  { %v8712_v42 = vpop.permute.xlu1 %2277 }
 0x289   :  { %12416 = vst [vmem:[#allocation59_spill] sm:$0xff] %v8712_v42  ;;  %v8714_v38 = vpop.permute.xlu0 %2283  ;;  %v1712_v42 = vld [vmem:[#allocation2 + $0x31a] sm:$0xff] }
 0x28a   :  { %12417 = vst [vmem:[#allocation60_spill] sm:$0xff] %v8714_v38  ;;  %2529 = vrot.lane.b32.xlu1 %v1705_v20, %s6589_s26  ;;  %v1709_v38 = vld [vmem:[#allocation2 + $0x2f2] sm:$0xff] }
 0x28b   :  { %2535 = vrot.lane.b32.xlu0 %v1708_v30, %s6589_s26 }
 0x28c   :  { %v8718_v52 = vpop.permute.xlu1 %2281 }
 0x28d   :  { %12418 = vst [vmem:[#allocation61_spill] sm:$0xff] %v8718_v52  ;;  %v8720_v9 = vpop.permute.xlu0 %2287  ;;  %v1524_v52 = vld [vmem:[#allocation2 + $0x18] sm:$0xff] }
 0x28e   :  { %12419 = vst [vmem:[#allocation62_spill] sm:$0xff] %v8720_v9  ;;  %2533 = vrot.lane.b32.xlu1 %v1707_v13, %s6589_s26  ;;  %v1711_v9 = vld [vmem:[#allocation2 + $0x30a] sm:$0xff] }
 0x28f   :  { %2539 = vrot.lane.b32.xlu0 %v1710_v34, %s6589_s26 }
 0x290   :  { %v8724_v7 = vpop.permute.xlu1 %2285 }
 0x291   :  { %12420 = vst [vmem:[#allocation63_spill] sm:$0xff] %v8724_v7  ;;  %v8726_v49 = vpop.permute.xlu0 %2423  ;;  %v1713_v7 = vld [vmem:[#allocation2 + $0x322] sm:$0xff] }
 0x292   :  { %2537 = vrot.lane.b32.xlu1 %v1709_v38, %s6589_s26  ;;  %v1525_v38 = vld [vmem:[#allocation2 + $0x20] sm:$0xff] }
 0x293   :  { %2543 = vrot.lane.b32.xlu0 %v1712_v42, %s6589_s26 }
 0x294   :  { %v8730_v30 = vpop.permute.xlu1 %2289 }
 0x295   :  { %12421 = vst [vmem:[#allocation64_spill] sm:$0xff] %v8730_v30  ;;  %v8732_v20 = vpop.permute.xlu0 %2427 }
 0x296   :  { %12422 = vst [vmem:[#allocation65_spill] sm:$0xff] %v8732_v20  ;;  %2541 = vrot.lane.b32.xlu1 %v1711_v9, %s6589_s26  ;;  %v1527_v9 = vld [vmem:[#allocation2 + $0x38] sm:$0xff]  ;;  %v9348_v20 = vld [vmem:[#allocation2 + $0x1e2] sm:$0xff] }
 0x297   :  { %2675 = vrot.lane.b32.xlu0 %v1524_v52, %s6590_s3  ;;  %12582 = vst [vmem:[#allocation225_spill] sm:$0xff] %v9348_v20 }
 0x298   :  { %v8736_v34 = vpop.permute.xlu1 %2425 }
 0x299   :  { %v8738_v13 = vpop.permute.xlu0 %2431 }
 0x29a   :  { %12423 = vst [vmem:[#allocation66_spill] sm:$0xff] %v8738_v13  ;;  %2545 = vrot.lane.b32.xlu1 %v1713_v7, %s6589_s26  ;;  %v1529_v7 = vld [vmem:[#allocation2 + $0x50] sm:$0xff] }
 0x29b   :  { %2679 = vrot.lane.b32.xlu0 %v1526_v17, %s6590_s3  ;;  %v9289_v13 = vld [vmem:[#allocation2 + $0x112] sm:$0xff] }
 0x29c   :  { %v8742_v42 = vpop.permute.xlu1 %2429 }
 0x29d   :  { %12424 = vst [vmem:[#allocation67_spill] sm:$0xff] %v8742_v42  ;;  %v8744_v30 = vpop.permute.xlu0 %2435  ;;  %v9337_v42 = vld [vmem:[#allocation2 + $0x172] sm:$0xff] }
 0x29e   :  { %12425 = vst [vmem:[#allocation68_spill] sm:$0xff] %v8744_v30  ;;  %2677 = vrot.lane.b32.xlu1 %v1525_v38, %s6590_s3  ;;  %v1531_v38 = vld [vmem:[#allocation2 + $0x68] sm:$0xff]  ;;  %v9241_v30 = vld [vmem:[#allocation2 + $0xb2] sm:$0xff]  ;;  %12578 = vst [vmem:[#allocation221_spill] sm:$0xff] %v9337_v42 }
 0x29f   :  { %2683 = vrot.lane.b32.xlu0 %v1528_v2, %s6590_s3 }
 0x2a0   :  { %v8748_v52 = vpop.permute.xlu1 %2433 }
 0x2a1   :  { %12426 = vst [vmem:[#allocation69_spill] sm:$0xff] %v8748_v52  ;;  %v8750_v62 = vpop.permute.xlu0 %2439  ;;  %v9279_v52 = vld [vmem:[#allocation2 + $0x122] sm:$0xff] }
 0x2a2   :  { %12427 = vst [vmem:[#allocation70_spill] sm:$0xff] %v8750_v62  ;;  %2681 = vrot.lane.b32.xlu1 %v1527_v9, %s6590_s3  ;;  %v1533_v9 = vld [vmem:[#allocation2 + $0x80] sm:$0xff] }
 0x2a3   :  { %2687 = vrot.lane.b32.xlu0 %v1530_v23, %s6590_s3  ;;  %v9195_v62 = vld [vmem:[#allocation2 + $0x7a] sm:$0xff] }
 0x2a4   :  { %v8754_v17 = vpop.permute.xlu1 %2437 }
 0x2a5   :  { %12428 = vst [vmem:[#allocation71_spill] sm:$0xff] %v8754_v17  ;;  %v8756_v46 = vpop.permute.xlu0 %2443  ;;  %v9231_v17 = vld [vmem:[#allocation2 + $0xc2] sm:$0xff] }
 0x2a6   :  { %12429 = vst [vmem:[#allocation72_spill] sm:$0xff] %v8756_v46  ;;  %2685 = vrot.lane.b32.xlu1 %v1529_v7, %s6590_s3  ;;  %v1535_v7 = vld [vmem:[#allocation2 + $0x98] sm:$0xff] }
 0x2a7   :  { %2691 = vrot.lane.b32.xlu0 %v1532_v1, %s6590_s3  ;;  %v1841_v46 = vld [vmem:[#allocation2 + $0x339] sm:$0xff] }
 0x2a8   :  { %v8760_v2 = vpop.permute.xlu1 %2441 }
 0x2a9   :  { %12430 = vst [vmem:[#allocation73_spill] sm:$0xff] %v8760_v2  ;;  %v8762_v40 = vpop.permute.xlu0 %2447  ;;  %v9193_v2 = vld [vmem:[#allocation2 + $0x52] sm:$0xff] }
 0x2aa   :  { %12431 = vst [vmem:[#allocation74_spill] sm:$0xff] %v8762_v40  ;;  %2689 = vrot.lane.b32.xlu1 %v1531_v38, %s6590_s3  ;;  %v1537_v38 = vld [vmem:[#allocation2 + $0xb0] sm:$0xff] }
 0x2ab   :  { %2695 = vrot.lane.b32.xlu0 %v1534_v8, %s6590_s3  ;;  %v1796_v40 = vld [vmem:[#allocation2 + $0xf1] sm:$0xff] }
 0x2ac   :  { %v8766_v23 = vpop.permute.xlu1 %2445 }
 0x2ad   :  { %12432 = vst [vmem:[#allocation75_spill] sm:$0xff] %v8766_v23  ;;  %v8768_v31 = vpop.permute.xlu0 %2451  ;;  %v1842_v23 = vld [vmem:[#allocation2 + $0x1a] sm:$0xff] }
 0x2ae   :  { %12433 = vst [vmem:[#allocation76_spill] sm:$0xff] %v8768_v31  ;;  %2693 = vrot.lane.b32.xlu1 %v1533_v9, %s6590_s3  ;;  %v1539_v9 = vld [vmem:[#allocation2 + $0xc8] sm:$0xff]  ;;  %v8998_v31 = vld [vmem:[#allocation2 + $0x99] sm:$0xff] }
 0x2af   :  { %2699 = vrot.lane.b32.xlu0 %v1536_v35, %s6590_s3 }
 0x2b0   :  { %v8772_v1 = vpop.permute.xlu1 %2449 }
 0x2b1   :  { %12434 = vst [vmem:[#allocation77_spill] sm:$0xff] %v8772_v1  ;;  %v8774_v25 = vpop.permute.xlu0 %2455  ;;  %v9016_v1 = vld [vmem:[#allocation2 + $0xc9] sm:$0xff] }
 0x2b2   :  { %12435 = vst [vmem:[#allocation78_spill] sm:$0xff] %v8774_v25  ;;  %2697 = vrot.lane.b32.xlu1 %v1535_v7, %s6590_s3  ;;  %v1541_v7 = vld [vmem:[#allocation2 + $0xe0] sm:$0xff] }
 0x2b3   :  { %2703 = vrot.lane.b32.xlu0 %v1538_v11, %s6590_s3 }
 0x2b4   :  { %v8778_v8 = vpop.permute.xlu1 %2453 }
 0x2b5   :  { %12436 = vst [vmem:[#allocation79_spill] sm:$0xff] %v8778_v8  ;;  %v8780_v41 = vpop.permute.xlu0 %2459 }
 0x2b6   :  { %12437 = vst [vmem:[#allocation80_spill] sm:$0xff] %v8780_v41  ;;  %2701 = vrot.lane.b32.xlu1 %v1537_v38, %s6590_s3  ;;  %v1543_v38 = vld [vmem:[#allocation2 + $0xf8] sm:$0xff] }
 0x2b7   :  { %2707 = vrot.lane.b32.xlu0 %v1540_v12, %s6590_s3 }
 0x2b8   :  { %v8784_v35 = vpop.permute.xlu1 %2457 }
 0x2b9   :  { %12438 = vst [vmem:[#allocation81_spill] sm:$0xff] %v8784_v35  ;;  %v8786_v21 = vpop.permute.xlu0 %2463 }
 0x2ba   :  { %12439 = vst [vmem:[#allocation82_spill] sm:$0xff] %v8786_v21  ;;  %2705 = vrot.lane.b32.xlu1 %v1539_v9, %s6590_s3  ;;  %v1545_v9 = vld [vmem:[#allocation2 + $0x110] sm:$0xff] }
 0x2bb   :  { %2711 = vrot.lane.b32.xlu0 %v1542_v28, %s6590_s3 }
 0x2bc   :  { %v8790_v11 = vpop.permute.xlu1 %2461 }
 0x2bd   :  { %12440 = vst [vmem:[#allocation83_spill] sm:$0xff] %v8790_v11  ;;  %v8792_v44 = vpop.permute.xlu0 %2467 }
 0x2be   :  { %12441 = vst [vmem:[#allocation84_spill] sm:$0xff] %v8792_v44  ;;  %2709 = vrot.lane.b32.xlu1 %v1541_v7, %s6590_s3  ;;  %v1547_v7 = vld [vmem:[#allocation2 + $0x128] sm:$0xff]  ;;  %v8932_v44 = vld [vmem:[#allocation2 + $0x31] sm:$0xff] }
 0x2bf   :  { %2715 = vrot.lane.b32.xlu0 %v1544_v59, %s6590_s3 }
 0x2c0   :  { %v8796_v12 = vpop.permute.xlu1 %2465 }
 0x2c1   :  { %12442 = vst [vmem:[#allocation85_spill] sm:$0xff] %v8796_v12  ;;  %v8798_v39 = vpop.permute.xlu0 %2471  ;;  %v8952_v12 = vld [vmem:[#allocation2 + $0x61] sm:$0xff] }
 0x2c2   :  { %12443 = vst [vmem:[#allocation86_spill] sm:$0xff] %v8798_v39  ;;  %2713 = vrot.lane.b32.xlu1 %v1543_v38, %s6590_s3  ;;  %v1549_v38 = vld [vmem:[#allocation2 + $0x140] sm:$0xff] }
 0x2c3   :  { %2719 = vrot.lane.b32.xlu0 %v1546_v50, %s6590_s3 }
 0x2c4   :  { %v8802_v28 = vpop.permute.xlu1 %2469 }
 0x2c5   :  { %12444 = vst [vmem:[#allocation87_spill] sm:$0xff] %v8802_v28  ;;  %v8804_v15 = vpop.permute.xlu0 %2475  ;;  %v1777_v28 = vld [vmem:[#allocation2 + $0x338] sm:$0xff] }
 0x2c6   :  { %12445 = vst [vmem:[#allocation88_spill] sm:$0xff] %v8804_v15  ;;  %2717 = vrot.lane.b32.xlu1 %v1545_v9, %s6590_s3  ;;  %v1552_v15 = vld [vmem:[#allocation2 + $0x168] sm:$0xff]  ;;  %v1551_v9 = vld [vmem:[#allocation2 + $0x158] sm:$0xff] }
 0x2c7   :  { %2723 = vrot.lane.b32.xlu0 %v1548_v24, %s6590_s3 }
 0x2c8   :  { %v8808_v59 = vpop.permute.xlu1 %2473 }
 0x2c9   :  { %12446 = vst [vmem:[#allocation89_spill] sm:$0xff] %v8808_v59  ;;  %v8810_v36 = vpop.permute.xlu0 %2479 }
 0x2ca   :  { %12447 = vst [vmem:[#allocation90_spill] sm:$0xff] %v8810_v36  ;;  %2721 = vrot.lane.b32.xlu1 %v1547_v7, %s6590_s3  ;;  %v1744_v36 = vld [vmem:[#allocation2 + $0x180] sm:$0xff]  ;;  %v1553_v7 = vld [vmem:[#allocation2 + $0x170] sm:$0xff] }
 0x2cb   :  { %2727 = vrot.lane.b32.xlu0 %v1550_v3, %s6590_s3 }
 0x2cc   :  { %v8814_v50 = vpop.permute.xlu1 %2477 }
 0x2cd   :  { %12448 = vst [vmem:[#allocation91_spill] sm:$0xff] %v8814_v50  ;;  %v8816_v39 = vpop.permute.xlu0 %2487 }
 0x2ce   :  { %12449 = vst [vmem:[#allocation92_spill] sm:$0xff] %v8816_v39  ;;  %2725 = vrot.lane.b32.xlu1 %v1549_v38, %s6590_s3  ;;  %v1556_v39 = vld [vmem:[#allocation2 + $0x1c8] sm:$0xff] }
 0x2cf   :  { %2731 = vrot.lane.b32.xlu0 %v1552_v15, %s6590_s3 }
 0x2d0   :  { %v8820_v24 = vpop.permute.xlu1 %2481 }
 0x2d1   :  { %12450 = vst [vmem:[#allocation93_spill] sm:$0xff] %v8820_v24  ;;  %v8822_v59 = vpop.permute.xlu0 %2491  ;;  %v1558_v24 = vld [vmem:[#allocation2 + $0x1e0] sm:$0xff] }
 0x2d2   :  { %12451 = vst [vmem:[#allocation94_spill] sm:$0xff] %v8822_v59  ;;  %2729 = vrot.lane.b32.xlu1 %v1551_v9, %s6590_s3  ;;  %v1745_v59 = vld [vmem:[#allocation2 + $0x188] sm:$0xff]  ;;  %v1557_v9 = vld [vmem:[#allocation2 + $0x1d0] sm:$0xff] }
 0x2d3   :  { %2735 = vrot.lane.b32.xlu0 %v1744_v36, %s6590_s3 }
 0x2d4   :  { %v8826_v3 = vpop.permute.xlu1 %2489 }
 0x2d5   :  { %12452 = vst [vmem:[#allocation95_spill] sm:$0xff] %v8826_v3  ;;  %v8828_v50 = vpop.permute.xlu0 %2495 }
 0x2d6   :  { %12453 = vst [vmem:[#allocation96_spill] sm:$0xff] %v8828_v50  ;;  %2733 = vrot.lane.b32.xlu1 %v1553_v7, %s6590_s3  ;;  %v1560_v50 = vld [vmem:[#allocation2 + $0x1f8] sm:$0xff]  ;;  %v1559_v7 = vld [vmem:[#allocation2 + $0x1e8] sm:$0xff] }
 0x2d7   :  { %2739 = vrot.lane.b32.xlu0 %v1556_v39, %s6590_s3 }
 0x2d8   :  { %v8832_v15 = vpop.permute.xlu1 %2493 }
 0x2d9   :  { %12454 = vst [vmem:[#allocation97_spill] sm:$0xff] %v8832_v15  ;;  %v8834_v38 = vpop.permute.xlu0 %2499  ;;  %v1562_v15 = vld [vmem:[#allocation2 + $0x210] sm:$0xff] }
 0x2da   :  { %12455 = vst [vmem:[#allocation98_spill] sm:$0xff] %v8834_v38  ;;  %2737 = vrot.lane.b32.xlu1 %v1745_v59, %s6590_s3 }
 0x2db   :  { %2743 = vrot.lane.b32.xlu0 %v1558_v24, %s6590_s3  ;;  %v1561_v24 = vld [vmem:[#allocation2 + $0x200] sm:$0xff] }
 0x2dc   :  { %v8838_v36 = vpop.permute.xlu1 %2497 }
 0x2dd   :  { %12456 = vst [vmem:[#allocation99_spill] sm:$0xff] %v8838_v36  ;;  %v8840_v3 = vpop.permute.xlu0 %2503 }
 0x2de   :  { %12457 = vst [vmem:[#allocation100_spill] sm:$0xff] %v8840_v3  ;;  %2741 = vrot.lane.b32.xlu1 %v1557_v9, %s6590_s3  ;;  %v1564_v3 = vld [vmem:[#allocation2 + $0x228] sm:$0xff]  ;;  %v1563_v9 = vld [vmem:[#allocation2 + $0x218] sm:$0xff] }
 0x2df   :  { %2747 = vrot.lane.b32.xlu0 %v1560_v50, %s6590_s3 }
 0x2e0   :  { %v8844_v39 = vpop.permute.xlu1 %2501 }
 0x2e1   :  { %12458 = vst [vmem:[#allocation101_spill] sm:$0xff] %v8844_v39  ;;  %v8846_v38 = vpop.permute.xlu0 %2507 }
 0x2e2   :  { %12459 = vst [vmem:[#allocation102_spill] sm:$0xff] %v8846_v38  ;;  %2745 = vrot.lane.b32.xlu1 %v1559_v7, %s6590_s3  ;;  %v1566_v38 = vld [vmem:[#allocation2 + $0x240] sm:$0xff]  ;;  %v1565_v7 = vld [vmem:[#allocation2 + $0x230] sm:$0xff] }
 0x2e3   :  { %2751 = vrot.lane.b32.xlu0 %v1562_v15, %s6590_s3 }
 0x2e4   :  { %v8850_v59 = vpop.permute.xlu1 %2505 }
 0x2e5   :  { %12460 = vst [vmem:[#allocation103_spill] sm:$0xff] %v8850_v59  ;;  %v8852_v36 = vpop.permute.xlu0 %2511 }
 0x2e6   :  { %12461 = vst [vmem:[#allocation104_spill] sm:$0xff] %v8852_v36  ;;  %2749 = vrot.lane.b32.xlu1 %v1561_v24, %s6590_s3  ;;  %v1568_v36 = vld [vmem:[#allocation2 + $0x258] sm:$0xff]  ;;  %v1567_v24 = vld [vmem:[#allocation2 + $0x248] sm:$0xff] }
 0x2e7   :  { %2755 = vrot.lane.b32.xlu0 %v1564_v3, %s6590_s3 }
 0x2e8   :  { %v8856_v50 = vpop.permute.xlu1 %2509 }
 0x2e9   :  { %12462 = vst [vmem:[#allocation105_spill] sm:$0xff] %v8856_v50  ;;  %v8858_v39 = vpop.permute.xlu0 %2515 }
 0x2ea   :  { %12463 = vst [vmem:[#allocation106_spill] sm:$0xff] %v8858_v39  ;;  %2753 = vrot.lane.b32.xlu1 %v1563_v9, %s6590_s3  ;;  %v1570_v39 = vld [vmem:[#allocation2 + $0x270] sm:$0xff]  ;;  %v1569_v9 = vld [vmem:[#allocation2 + $0x260] sm:$0xff] }
 0x2eb   :  { %2759 = vrot.lane.b32.xlu0 %v1566_v38, %s6590_s3 }
 0x2ec   :  { %v8862_v15 = vpop.permute.xlu1 %2513 }
 0x2ed   :  { %12464 = vst [vmem:[#allocation107_spill] sm:$0xff] %v8862_v15  ;;  %v8864_v59 = vpop.permute.xlu0 %2519 }
 0x2ee   :  { %12465 = vst [vmem:[#allocation108_spill] sm:$0xff] %v8864_v59  ;;  %2757 = vrot.lane.b32.xlu1 %v1565_v7, %s6590_s3  ;;  %v1572_v59 = vld [vmem:[#allocation2 + $0x288] sm:$0xff]  ;;  %v1571_v7 = vld [vmem:[#allocation2 + $0x278] sm:$0xff] }
 0x2ef   :  { %2763 = vrot.lane.b32.xlu0 %v1568_v36, %s6590_s3 }
 0x2f0   :  { %v8868_v3 = vpop.permute.xlu1 %2517 }
 0x2f1   :  { %12466 = vst [vmem:[#allocation109_spill] sm:$0xff] %v8868_v3  ;;  %v8870_v50 = vpop.permute.xlu0 %2523 }
 0x2f2   :  { %12467 = vst [vmem:[#allocation110_spill] sm:$0xff] %v8870_v50  ;;  %2761 = vrot.lane.b32.xlu1 %v1567_v24, %s6590_s3  ;;  %v1574_v50 = vld [vmem:[#allocation2 + $0x2a0] sm:$0xff]  ;;  %v1573_v24 = vld [vmem:[#allocation2 + $0x290] sm:$0xff] }
 0x2f3   :  { %2767 = vrot.lane.b32.xlu0 %v1570_v39, %s6590_s3 }
 0x2f4   :  { %v8874_v38 = vpop.permute.xlu1 %2521 }
 0x2f5   :  { %12468 = vst [vmem:[#allocation111_spill] sm:$0xff] %v8874_v38  ;;  %v8876_v15 = vpop.permute.xlu0 %2527 }
 0x2f6   :  { %12469 = vst [vmem:[#allocation112_spill] sm:$0xff] %v8876_v15  ;;  %2765 = vrot.lane.b32.xlu1 %v1569_v9, %s6590_s3  ;;  %v1576_v15 = vld [vmem:[#allocation2 + $0x2b8] sm:$0xff]  ;;  %v1575_v9 = vld [vmem:[#allocation2 + $0x2a8] sm:$0xff] }
 0x2f7   :  { %2771 = vrot.lane.b32.xlu0 %v1572_v59, %s6590_s3 }
 0x2f8   :  { %v8880_v36 = vpop.permute.xlu1 %2525 }
 0x2f9   :  { %12470 = vst [vmem:[#allocation113_spill] sm:$0xff] %v8880_v36  ;;  %v8882_v3 = vpop.permute.xlu0 %2531 }
 0x2fa   :  { %12471 = vst [vmem:[#allocation114_spill] sm:$0xff] %v8882_v3  ;;  %2769 = vrot.lane.b32.xlu1 %v1571_v7, %s6590_s3  ;;  %v1578_v3 = vld [vmem:[#allocation2 + $0x2d0] sm:$0xff]  ;;  %v1577_v7 = vld [vmem:[#allocation2 + $0x2c0] sm:$0xff] }
 0x2fb   :  { %2775 = vrot.lane.b32.xlu0 %v1574_v50, %s6590_s3 }
 0x2fc   :  { %v8886_v39 = vpop.permute.xlu1 %2529 }
 0x2fd   :  { %12472 = vst [vmem:[#allocation115_spill] sm:$0xff] %v8886_v39  ;;  %v8888_v38 = vpop.permute.xlu0 %2535 }
 0x2fe   :  { %12473 = vst [vmem:[#allocation116_spill] sm:$0xff] %v8888_v38  ;;  %2773 = vrot.lane.b32.xlu1 %v1573_v24, %s6590_s3  ;;  %v1580_v38 = vld [vmem:[#allocation2 + $0x2e8] sm:$0xff]  ;;  %v1579_v24 = vld [vmem:[#allocation2 + $0x2d8] sm:$0xff] }
 0x2ff   :  { %2779 = vrot.lane.b32.xlu0 %v1576_v15, %s6590_s3 }
 0x300   :  { %v8892_v59 = vpop.permute.xlu1 %2533 }
 0x301   :  { %12474 = vst [vmem:[#allocation117_spill] sm:$0xff] %v8892_v59  ;;  %v8894_v36 = vpop.permute.xlu0 %2539 }
 0x302   :  { %12475 = vst [vmem:[#allocation118_spill] sm:$0xff] %v8894_v36  ;;  %2777 = vrot.lane.b32.xlu1 %v1575_v9, %s6590_s3  ;;  %v1582_v36 = vld [vmem:[#allocation2 + $0x300] sm:$0xff]  ;;  %v1581_v9 = vld [vmem:[#allocation2 + $0x2f0] sm:$0xff] }
 0x303   :  { %2783 = vrot.lane.b32.xlu0 %v1578_v3, %s6590_s3 }
 0x304   :  { %v8898_v50 = vpop.permute.xlu1 %2537 }
 0x305   :  { %12476 = vst [vmem:[#allocation119_spill] sm:$0xff] %v8898_v50  ;;  %v8900_v39 = vpop.permute.xlu0 %2543 }
 0x306   :  { %12477 = vst [vmem:[#allocation120_spill] sm:$0xff] %v8900_v39  ;;  %2781 = vrot.lane.b32.xlu1 %v1577_v7, %s6590_s3  ;;  %v1584_v39 = vld [vmem:[#allocation2 + $0x318] sm:$0xff]  ;;  %v1583_v7 = vld [vmem:[#allocation2 + $0x308] sm:$0xff] }
 0x307   :  { %2787 = vrot.lane.b32.xlu0 %v1580_v38, %s6590_s3 }
 0x308   :  { %v8904_v15 = vpop.permute.xlu1 %2541 }
 0x309   :  { %12478 = vst [vmem:[#allocation121_spill] sm:$0xff] %v8904_v15  ;;  %v8906_v59 = vpop.permute.xlu0 %2675 }
 0x30a   :  { %2785 = vrot.lane.b32.xlu1 %v1579_v24, %s6590_s3  ;;  %v1585_v24 = vld [vmem:[#allocation2 + $0x320] sm:$0xff] }
 0x30b   :  { %2791 = vrot.lane.b32.xlu0 %v1582_v36, %s6590_s3 }
 0x30c   :  { %v8910_v3 = vpop.permute.xlu1 %2545 }
 0x30d   :  { %12479 = vst [vmem:[#allocation122_spill] sm:$0xff] %v8910_v3  ;;  %v8912_v50 = vpop.permute.xlu0 %2679 }
 0x30e   :  { %2789 = vrot.lane.b32.xlu1 %v1581_v9, %s6590_s3 }
 0x30f   :  { %2795 = vrot.lane.b32.xlu0 %v1584_v39, %s6590_s3 }
 0x310   :  { %v8916_v38 = vpop.permute.xlu1 %2677 }
 0x311   :  { %v8918_v15 = vpop.permute.xlu0 %2683 }
 0x312   :  { %12480 = vst [vmem:[#allocation123_spill] sm:$0xff] %v8918_v15  ;;  %2793 = vrot.lane.b32.xlu1 %v1583_v7, %s6590_s3  ;;  %v9325_v15 = vld [vmem:[#allocation2 + $0x15a] sm:$0xff] }
 0x313   :  { %2799 = vrot.lane.b32.xlu0 %v1776_v27, %s6590_s3  ;;  %12574 = vst [vmem:[#allocation217_spill] sm:$0xff] %v9325_v15 }
 0x314   :  { %v8922_v36 = vpop.permute.xlu1 %2681 }
 0x315   :  { %v8924_v3 = vpop.permute.xlu0 %2687 }
 0x316   :  { %12481 = vst [vmem:[#allocation124_spill] sm:$0xff] %v8924_v3  ;;  %2797 = vrot.lane.b32.xlu1 %v1585_v24, %s6590_s3  ;;  %v1779_v24 = vld [vmem:[#allocation2 + $0x21] sm:$0xff] }
 0x317   :  { %2931 = vrot.lane.b32.xlu0 %v1778_v32, %s6591_s4  ;;  %v9277_v3 = vld [vmem:[#allocation2 + $0xfa] sm:$0xff] }
 0x318   :  { %v8928_v39 = vpop.permute.xlu1 %2685 }
 0x319   :  { %12482 = vst [vmem:[#allocation125_spill] sm:$0xff] %v8928_v39  ;;  %v8930_v9 = vpop.permute.xlu0 %2691  ;;  %v9315_v39 = vld [vmem:[#allocation2 + $0x16a] sm:$0xff] }
 0x31a   :  { %12483 = vst [vmem:[#allocation126_spill] sm:$0xff] %v8930_v9  ;;  %2801 = vrot.lane.b32.xlu1 %v1777_v28, %s6590_s3  ;;  %v8950_v28 = vld [vmem:[#allocation2 + $0x39] sm:$0xff]  ;;  %12571 = vst [vmem:[#allocation214_spill] sm:$0xff] %v9315_v39 }
 0x31b   :  { %2935 = vrot.lane.b32.xlu0 %v8932_v44, %s6591_s4  ;;  %v9229_v9 = vld [vmem:[#allocation2 + $0x9a] sm:$0xff] }
 0x31c   :  { %v8937_v27 = vpop.permute.xlu1 %2689 }
 0x31d   :  { %12484 = vst [vmem:[#allocation127_spill] sm:$0xff] %v8937_v27  ;;  %v8939_v7 = vpop.permute.xlu0 %2695  ;;  %v9267_v27 = vld [vmem:[#allocation2 + $0x10a] sm:$0xff] }
 0x31e   :  { %12485 = vst [vmem:[#allocation128_spill] sm:$0xff] %v8939_v7  ;;  %2933 = vrot.lane.b32.xlu1 %v1779_v24, %s6591_s4  ;;  %v9183_v7 = vld [vmem:[#allocation2 + $0x62] sm:$0xff] }
 0x31f   :  { %2939 = vrot.lane.b32.xlu0 %v8941_v18, %s6591_s4 }
 0x320   :  { %v8946_v32 = vpop.permute.xlu1 %2693 }
 0x321   :  { %12486 = vst [vmem:[#allocation129_spill] sm:$0xff] %v8946_v32  ;;  %v8948_v43 = vpop.permute.xlu0 %2699  ;;  %v9219_v32 = vld [vmem:[#allocation2 + $0xaa] sm:$0xff] }
 0x322   :  { %12487 = vst [vmem:[#allocation130_spill] sm:$0xff] %v8948_v43  ;;  %2937 = vrot.lane.b32.xlu1 %v8950_v28, %s6591_s4  ;;  %v1840_v43 = vld [vmem:[#allocation2 + $0x331] sm:$0xff] }
 0x323   :  { %2943 = vrot.lane.b32.xlu0 %v8952_v12, %s6591_s4 }
 0x324   :  { %v8958_v21 = vpop.permute.xlu1 %2697 }
 0x325   :  { %12488 = vst [vmem:[#allocation131_spill] sm:$0xff] %v8958_v21  ;;  %v8960_v24 = vpop.permute.xlu0 %2703 }
 0x326   :  { %12489 = vst [vmem:[#allocation132_spill] sm:$0xff] %v8960_v24  ;;  %2941 = vrot.lane.b32.xlu1 %v8962_v51, %s6591_s4  ;;  %v1794_v24 = vld [vmem:[#allocation2 + $0xd9] sm:$0xff] }
 0x327   :  { %2947 = vrot.lane.b32.xlu0 %v8964_v45, %s6591_s4 }
 0x328   :  { %v8970_v11 = vpop.permute.xlu1 %2701 }
 0x329   :  { %12490 = vst [vmem:[#allocation133_spill] sm:$0xff] %v8970_v11  ;;  %v8972_v41 = vpop.permute.xlu0 %2707  ;;  %v1802_v11 = vld [vmem:[#allocation2 + $0x139] sm:$0xff] }
 0x32a   :  { %12491 = vst [vmem:[#allocation134_spill] sm:$0xff] %v8972_v41  ;;  %2945 = vrot.lane.b32.xlu1 %v8974_v60, %s6591_s4 }
 0x32b   :  { %2951 = vrot.lane.b32.xlu0 %v8976_v48, %s6591_s4 }
 0x32c   :  { %v8982_v35 = vpop.permute.xlu1 %2705 }
 0x32d   :  { %12492 = vst [vmem:[#allocation135_spill] sm:$0xff] %v8982_v35  ;;  %v8984_v25 = vpop.permute.xlu0 %2711  ;;  %v9007_v35 = vld [vmem:[#allocation2 + $0xb1] sm:$0xff] }
 0x32e   :  { %12493 = vst [vmem:[#allocation136_spill] sm:$0xff] %v8984_v25  ;;  %2949 = vrot.lane.b32.xlu1 %v8986_v56, %s6591_s4 }
 0x32f   :  { %2955 = vrot.lane.b32.xlu0 %v8988_v57, %s6591_s4 }
 0x330   :  { %v8994_v41 = vpop.permute.xlu1 %2709 }
 0x331   :  { %12494 = vst [vmem:[#allocation137_spill] sm:$0xff] %v8994_v41  ;;  %v8996_v8 = vpop.permute.xlu0 %2715 }
 0x332   :  { %12495 = vst [vmem:[#allocation138_spill] sm:$0xff] %v8996_v8  ;;  %2953 = vrot.lane.b32.xlu1 %v8998_v31, %s6591_s4 }
 0x333   :  { %2959 = vrot.lane.b32.xlu0 %v1792_v53, %s6591_s4 }
 0x334   :  { %v9003_v25 = vpop.permute.xlu1 %2713 }
 0x335   :  { %12496 = vst [vmem:[#allocation139_spill] sm:$0xff] %v9003_v25  ;;  %v9005_v10 = vpop.permute.xlu0 %2719  ;;  %v1795_v25 = vld [vmem:[#allocation2 + $0xe1] sm:$0xff] }
 0x336   :  { %12497 = vst [vmem:[#allocation140_spill] sm:$0xff] %v9005_v10  ;;  %2957 = vrot.lane.b32.xlu1 %v9007_v35, %s6591_s4 }
 0x337   :  { %2963 = vrot.lane.b32.xlu0 %v1794_v24, %s6591_s4 }
 0x338   :  { %v9012_v8 = vpop.permute.xlu1 %2717 }
 0x339   :  { %12498 = vst [vmem:[#allocation141_spill] sm:$0xff] %v9012_v8  ;;  %v9014_v41 = vpop.permute.xlu0 %2723  ;;  %v1797_v8 = vld [vmem:[#allocation2 + $0xf9] sm:$0xff] }
 0x33a   :  { %12499 = vst [vmem:[#allocation142_spill] sm:$0xff] %v9014_v41  ;;  %2961 = vrot.lane.b32.xlu1 %v9016_v1, %s6591_s4 }
 0x33b   :  { %2967 = vrot.lane.b32.xlu0 %v1796_v40, %s6591_s4 }
 0x33c   :  { %v9021_v53 = vpop.permute.xlu1 %2721 }
 0x33d   :  { %12500 = vst [vmem:[#allocation143_spill] sm:$0xff] %v9021_v53  ;;  %v9023_v10 = vpop.permute.xlu0 %2727 }
 0x33e   :  { %12501 = vst [vmem:[#allocation144_spill] sm:$0xff] %v9023_v10  ;;  %2965 = vrot.lane.b32.xlu1 %v1795_v25, %s6591_s4  ;;  %v1799_v10 = vld [vmem:[#allocation2 + $0x111] sm:$0xff] }
 0x33f   :  { %2971 = vrot.lane.b32.xlu0 %v1798_v4, %s6591_s4 }
 0x340   :  { %v9027_v24 = vpop.permute.xlu1 %2725 }
 0x341   :  { %12502 = vst [vmem:[#allocation145_spill] sm:$0xff] %v9027_v24  ;;  %v9029_v41 = vpop.permute.xlu0 %2731  ;;  %v1804_v24 = vld [vmem:[#allocation2 + $0x151] sm:$0xff] }
 0x342   :  { %12503 = vst [vmem:[#allocation146_spill] sm:$0xff] %v9029_v41  ;;  %2969 = vrot.lane.b32.xlu1 %v1797_v8, %s6591_s4  ;;  %v1801_v41 = vld [vmem:[#allocation2 + $0x129] sm:$0xff] }
 0x343   :  { %2975 = vrot.lane.b32.xlu0 %v1800_v33, %s6591_s4 }
 0x344   :  { %v9033_v40 = vpop.permute.xlu1 %2729 }
 0x345   :  { %12504 = vst [vmem:[#allocation147_spill] sm:$0xff] %v9033_v40  ;;  %v9035_v53 = vpop.permute.xlu0 %2735  ;;  %v1806_v40 = vld [vmem:[#allocation2 + $0x169] sm:$0xff] }
 0x346   :  { %12505 = vst [vmem:[#allocation148_spill] sm:$0xff] %v9035_v53  ;;  %2973 = vrot.lane.b32.xlu1 %v1799_v10, %s6591_s4  ;;  %v1803_v53 = vld [vmem:[#allocation2 + $0x141] sm:$0xff] }
 0x347   :  { %2979 = vrot.lane.b32.xlu0 %v1802_v11, %s6591_s4 }
 0x348   :  { %v9039_v4 = vpop.permute.xlu1 %2733 }
 0x349   :  { %12506 = vst [vmem:[#allocation149_spill] sm:$0xff] %v9039_v4  ;;  %v9041_v25 = vpop.permute.xlu0 %2739  ;;  %v1808_v4 = vld [vmem:[#allocation2 + $0x181] sm:$0xff] }
 0x34a   :  { %12507 = vst [vmem:[#allocation150_spill] sm:$0xff] %v9041_v25  ;;  %2977 = vrot.lane.b32.xlu1 %v1801_v41, %s6591_s4  ;;  %v1805_v25 = vld [vmem:[#allocation2 + $0x159] sm:$0xff] }
 0x34b   :  { %2983 = vrot.lane.b32.xlu0 %v1804_v24, %s6591_s4 }
 0x34c   :  { %v9045_v33 = vpop.permute.xlu1 %2737 }
 0x34d   :  { %12508 = vst [vmem:[#allocation151_spill] sm:$0xff] %v9045_v33  ;;  %v9047_v8 = vpop.permute.xlu0 %2743  ;;  %v1810_v33 = vld [vmem:[#allocation2 + $0x1c9] sm:$0xff] }
 0x34e   :  { %12509 = vst [vmem:[#allocation152_spill] sm:$0xff] %v9047_v8  ;;  %2981 = vrot.lane.b32.xlu1 %v1803_v53, %s6591_s4  ;;  %v1807_v8 = vld [vmem:[#allocation2 + $0x171] sm:$0xff] }
 0x34f   :  { %2987 = vrot.lane.b32.xlu0 %v1806_v40, %s6591_s4 }
 0x350   :  { %v9051_v10 = vpop.permute.xlu1 %2741 }
 0x351   :  { %12510 = vst [vmem:[#allocation153_spill] sm:$0xff] %v9051_v10  ;;  %v9053_v11 = vpop.permute.xlu0 %2747  ;;  %v1812_v10 = vld [vmem:[#allocation2 + $0x1e1] sm:$0xff] }
 0x352   :  { %12511 = vst [vmem:[#allocation154_spill] sm:$0xff] %v9053_v11  ;;  %2985 = vrot.lane.b32.xlu1 %v1805_v25, %s6591_s4  ;;  %v1809_v11 = vld [vmem:[#allocation2 + $0x189] sm:$0xff] }
 0x353   :  { %2991 = vrot.lane.b32.xlu0 %v1808_v4, %s6591_s4 }
 0x354   :  { %v9057_v41 = vpop.permute.xlu1 %2745 }
 0x355   :  { %12512 = vst [vmem:[#allocation155_spill] sm:$0xff] %v9057_v41  ;;  %v9059_v24 = vpop.permute.xlu0 %2751  ;;  %v1814_v41 = vld [vmem:[#allocation2 + $0x1f9] sm:$0xff] }
 0x356   :  { %12513 = vst [vmem:[#allocation156_spill] sm:$0xff] %v9059_v24  ;;  %2989 = vrot.lane.b32.xlu1 %v1807_v8, %s6591_s4  ;;  %v1811_v24 = vld [vmem:[#allocation2 + $0x1d1] sm:$0xff] }
 0x357   :  { %2995 = vrot.lane.b32.xlu0 %v1810_v33, %s6591_s4 }
 0x358   :  { %v9063_v53 = vpop.permute.xlu1 %2749 }
 0x359   :  { %12514 = vst [vmem:[#allocation157_spill] sm:$0xff] %v9063_v53  ;;  %v9065_v40 = vpop.permute.xlu0 %2755  ;;  %v1816_v53 = vld [vmem:[#allocation2 + $0x211] sm:$0xff] }
 0x35a   :  { %12515 = vst [vmem:[#allocation158_spill] sm:$0xff] %v9065_v40  ;;  %2993 = vrot.lane.b32.xlu1 %v1809_v11, %s6591_s4  ;;  %v1813_v40 = vld [vmem:[#allocation2 + $0x1e9] sm:$0xff] }
 0x35b   :  { %2999 = vrot.lane.b32.xlu0 %v1812_v10, %s6591_s4 }
 0x35c   :  { %v9069_v4 = vpop.permute.xlu1 %2753 }
 0x35d   :  { %12516 = vst [vmem:[#allocation159_spill] sm:$0xff] %v9069_v4  ;;  %v9071_v25 = vpop.permute.xlu0 %2759  ;;  %v1818_v4 = vld [vmem:[#allocation2 + $0x229] sm:$0xff] }
 0x35e   :  { %12517 = vst [vmem:[#allocation160_spill] sm:$0xff] %v9071_v25  ;;  %2997 = vrot.lane.b32.xlu1 %v1811_v24, %s6591_s4  ;;  %v1815_v25 = vld [vmem:[#allocation2 + $0x201] sm:$0xff] }
 0x35f   :  { %3003 = vrot.lane.b32.xlu0 %v1814_v41, %s6591_s4 }
 0x360   :  { %v9075_v33 = vpop.permute.xlu1 %2757 }
 0x361   :  { %12518 = vst [vmem:[#allocation161_spill] sm:$0xff] %v9075_v33  ;;  %v9077_v8 = vpop.permute.xlu0 %2763  ;;  %v1820_v33 = vld [vmem:[#allocation2 + $0x241] sm:$0xff] }
 0x362   :  { %12519 = vst [vmem:[#allocation162_spill] sm:$0xff] %v9077_v8  ;;  %3001 = vrot.lane.b32.xlu1 %v1813_v40, %s6591_s4  ;;  %v1817_v8 = vld [vmem:[#allocation2 + $0x219] sm:$0xff] }
 0x363   :  { %3007 = vrot.lane.b32.xlu0 %v1816_v53, %s6591_s4 }
 0x364   :  { %v9081_v10 = vpop.permute.xlu1 %2761 }
 0x365   :  { %12520 = vst [vmem:[#allocation163_spill] sm:$0xff] %v9081_v10  ;;  %v9083_v11 = vpop.permute.xlu0 %2767  ;;  %v1822_v10 = vld [vmem:[#allocation2 + $0x259] sm:$0xff] }
 0x366   :  { %12521 = vst [vmem:[#allocation164_spill] sm:$0xff] %v9083_v11  ;;  %3005 = vrot.lane.b32.xlu1 %v1815_v25, %s6591_s4  ;;  %v1819_v11 = vld [vmem:[#allocation2 + $0x231] sm:$0xff] }
 0x367   :  { %3011 = vrot.lane.b32.xlu0 %v1818_v4, %s6591_s4 }
 0x368   :  { %v9087_v41 = vpop.permute.xlu1 %2765 }
 0x369   :  { %12522 = vst [vmem:[#allocation165_spill] sm:$0xff] %v9087_v41  ;;  %v9089_v24 = vpop.permute.xlu0 %2771  ;;  %v1824_v41 = vld [vmem:[#allocation2 + $0x271] sm:$0xff] }
 0x36a   :  { %12523 = vst [vmem:[#allocation166_spill] sm:$0xff] %v9089_v24  ;;  %3009 = vrot.lane.b32.xlu1 %v1817_v8, %s6591_s4  ;;  %v1821_v24 = vld [vmem:[#allocation2 + $0x249] sm:$0xff] }
 0x36b   :  { %3015 = vrot.lane.b32.xlu0 %v1820_v33, %s6591_s4 }
 0x36c   :  { %v9093_v53 = vpop.permute.xlu1 %2769 }
 0x36d   :  { %12524 = vst [vmem:[#allocation167_spill] sm:$0xff] %v9093_v53  ;;  %v9095_v40 = vpop.permute.xlu0 %2775  ;;  %v1826_v53 = vld [vmem:[#allocation2 + $0x289] sm:$0xff] }
 0x36e   :  { %12525 = vst [vmem:[#allocation168_spill] sm:$0xff] %v9095_v40  ;;  %3013 = vrot.lane.b32.xlu1 %v1819_v11, %s6591_s4  ;;  %v1823_v40 = vld [vmem:[#allocation2 + $0x261] sm:$0xff] }
 0x36f   :  { %3019 = vrot.lane.b32.xlu0 %v1822_v10, %s6591_s4 }
 0x370   :  { %v9099_v4 = vpop.permute.xlu1 %2773 }
 0x371   :  { %12526 = vst [vmem:[#allocation169_spill] sm:$0xff] %v9099_v4  ;;  %v9101_v25 = vpop.permute.xlu0 %2779  ;;  %v1828_v4 = vld [vmem:[#allocation2 + $0x2a1] sm:$0xff] }
 0x372   :  { %12527 = vst [vmem:[#allocation170_spill] sm:$0xff] %v9101_v25  ;;  %3017 = vrot.lane.b32.xlu1 %v1821_v24, %s6591_s4  ;;  %v1825_v25 = vld [vmem:[#allocation2 + $0x279] sm:$0xff] }
 0x373   :  { %3023 = vrot.lane.b32.xlu0 %v1824_v41, %s6591_s4 }
 0x374   :  { %v9105_v33 = vpop.permute.xlu1 %2777 }
 0x375   :  { %12528 = vst [vmem:[#allocation171_spill] sm:$0xff] %v9105_v33  ;;  %v9107_v8 = vpop.permute.xlu0 %2783  ;;  %v1830_v33 = vld [vmem:[#allocation2 + $0x2b9] sm:$0xff] }
 0x376   :  { %12529 = vst [vmem:[#allocation172_spill] sm:$0xff] %v9107_v8  ;;  %3021 = vrot.lane.b32.xlu1 %v1823_v40, %s6591_s4  ;;  %v1827_v8 = vld [vmem:[#allocation2 + $0x291] sm:$0xff] }
 0x377   :  { %3027 = vrot.lane.b32.xlu0 %v1826_v53, %s6591_s4 }
 0x378   :  { %v9111_v10 = vpop.permute.xlu1 %2781 }
 0x379   :  { %12530 = vst [vmem:[#allocation173_spill] sm:$0xff] %v9111_v10  ;;  %v9113_v11 = vpop.permute.xlu0 %2787  ;;  %v1832_v10 = vld [vmem:[#allocation2 + $0x2d1] sm:$0xff] }
 0x37a   :  { %12531 = vst [vmem:[#allocation174_spill] sm:$0xff] %v9113_v11  ;;  %3025 = vrot.lane.b32.xlu1 %v1825_v25, %s6591_s4  ;;  %v1829_v11 = vld [vmem:[#allocation2 + $0x2a9] sm:$0xff] }
 0x37b   :  { %3031 = vrot.lane.b32.xlu0 %v1828_v4, %s6591_s4 }
 0x37c   :  { %v9117_v41 = vpop.permute.xlu1 %2785 }
 0x37d   :  { %12532 = vst [vmem:[#allocation175_spill] sm:$0xff] %v9117_v41  ;;  %v9119_v24 = vpop.permute.xlu0 %2791  ;;  %v1834_v41 = vld [vmem:[#allocation2 + $0x2e9] sm:$0xff] }
 0x37e   :  { %12533 = vst [vmem:[#allocation176_spill] sm:$0xff] %v9119_v24  ;;  %3029 = vrot.lane.b32.xlu1 %v1827_v8, %s6591_s4  ;;  %v1831_v24 = vld [vmem:[#allocation2 + $0x2c1] sm:$0xff] }
 0x37f   :  { %3035 = vrot.lane.b32.xlu0 %v1830_v33, %s6591_s4 }
 0x380   :  { %v9123_v53 = vpop.permute.xlu1 %2789 }
 0x381   :  { %12534 = vst [vmem:[#allocation177_spill] sm:$0xff] %v9123_v53  ;;  %v9125_v40 = vpop.permute.xlu0 %2795  ;;  %v1836_v53 = vld [vmem:[#allocation2 + $0x301] sm:$0xff] }
 0x382   :  { %12535 = vst [vmem:[#allocation178_spill] sm:$0xff] %v9125_v40  ;;  %3033 = vrot.lane.b32.xlu1 %v1829_v11, %s6591_s4  ;;  %v1833_v40 = vld [vmem:[#allocation2 + $0x2d9] sm:$0xff] }
 0x383   :  { %3039 = vrot.lane.b32.xlu0 %v1832_v10, %s6591_s4 }
 0x384   :  { %v9129_v4 = vpop.permute.xlu1 %2793 }
 0x385   :  { %12536 = vst [vmem:[#allocation179_spill] sm:$0xff] %v9129_v4  ;;  %v9131_v25 = vpop.permute.xlu0 %2799  ;;  %v1838_v4 = vld [vmem:[#allocation2 + $0x319] sm:$0xff] }
 0x386   :  { %12537 = vst [vmem:[#allocation180_spill] sm:$0xff] %v9131_v25  ;;  %3037 = vrot.lane.b32.xlu1 %v1831_v24, %s6591_s4  ;;  %v1835_v25 = vld [vmem:[#allocation2 + $0x2f1] sm:$0xff] }
 0x387   :  { %3043 = vrot.lane.b32.xlu0 %v1834_v41, %s6591_s4 }
 0x388   :  { %v9135_v33 = vpop.permute.xlu1 %2797 }
 0x389   :  { %12538 = vst [vmem:[#allocation181_spill] sm:$0xff] %v9135_v33  ;;  %v9137_v8 = vpop.permute.xlu0 %2931  ;;  %v1837_v33 = vld [vmem:[#allocation2 + $0x309] sm:$0xff] }
 0x38a   :  { %3041 = vrot.lane.b32.xlu1 %v1833_v40, %s6591_s4 }
 0x38b   :  { %3047 = vrot.lane.b32.xlu0 %v1836_v53, %s6591_s4 }
 0x38c   :  { %v9141_v10 = vpop.permute.xlu1 %2801 }
 0x38d   :  { %12539 = vst [vmem:[#allocation182_spill] sm:$0xff] %v9141_v10  ;;  %v9143_v11 = vpop.permute.xlu0 %2935  ;;  %v1839_v10 = vld [vmem:[#allocation2 + $0x321] sm:$0xff] }
 0x38e   :  { %3045 = vrot.lane.b32.xlu1 %v1835_v25, %s6591_s4 }
 0x38f   :  { %3051 = vrot.lane.b32.xlu0 %v1838_v4, %s6591_s4 }
 0x390   :  { %v9147_v41 = vpop.permute.xlu1 %2933 }
 0x391   :  { %v9149_v24 = vpop.permute.xlu0 %2939 }
 0x392   :  { %12540 = vst [vmem:[#allocation183_spill] sm:$0xff] %v9149_v24  ;;  %3049 = vrot.lane.b32.xlu1 %v1837_v33, %s6591_s4  ;;  %v9313_v24 = vld [vmem:[#allocation2 + $0x142] sm:$0xff] }
 0x393   :  { %3055 = vrot.lane.b32.xlu0 %v1840_v43, %s6591_s4 }
 0x394   :  { %v9153_v53 = vpop.permute.xlu1 %2937 }
 0x395   :  { %v9155_v40 = vpop.permute.xlu0 %2943 }
 0x396   :  { %12541 = vst [vmem:[#allocation184_spill] sm:$0xff] %v9155_v40  ;;  %3053 = vrot.lane.b32.xlu1 %v1839_v10, %s6591_s4  ;;  %v1843_v10 = vld [vmem:[#allocation2 + $0x22] sm:$0xff] }
 0x397   :  { %3187 = vrot.lane.b32.xlu0 %v1842_v23, %s6592_s30  ;;  %v9265_v40 = vld [vmem:[#allocation2 + $0xe2] sm:$0xff] }
 0x398   :  { %v9159_v4 = vpop.permute.xlu1 %2941 }
 0x399   :  { %12542 = vst [vmem:[#allocation185_spill] sm:$0xff] %v9159_v4  ;;  %v9161_v25 = vpop.permute.xlu0 %2947  ;;  %v9303_v4 = vld [vmem:[#allocation2 + $0x152] sm:$0xff] }
 0x39a   :  { %12543 = vst [vmem:[#allocation186_spill] sm:$0xff] %v9161_v25  ;;  %3057 = vrot.lane.b32.xlu1 %v1841_v46, %s6591_s4  ;;  %v9181_v46 = vld [vmem:[#allocation2 + $0x3a] sm:$0xff]  ;;  %v9217_v25 = vld [vmem:[#allocation2 + $0x82] sm:$0xff]  ;;  %12568 = vst [vmem:[#allocation211_spill] sm:$0xff] %v9303_v4 }
 0x39b   :  { %3191 = vrot.lane.b32.xlu0 %v9163_v22, %s6592_s30 }
 0x39c   :  { %v9168_v43 = vpop.permute.xlu1 %2945 }
 0x39d   :  { %12544 = vst [vmem:[#allocation187_spill] sm:$0xff] %v9168_v43  ;;  %v9170_v33 = vpop.permute.xlu0 %2951  ;;  %v9255_v43 = vld [vmem:[#allocation2 + $0xf2] sm:$0xff] }
 0x39e   :  { %12545 = vst [vmem:[#allocation188_spill] sm:$0xff] %v9170_v33  ;;  %3189 = vrot.lane.b32.xlu1 %v1843_v10, %s6592_s30 }
 0x39f   :  { %3195 = vrot.lane.b32.xlu0 %v9172_v55, %s6592_s30 }
 0x3a0   :  { %v9177_v23 = vpop.permute.xlu1 %2949 }
 0x3a1   :  { %12546 = vst [vmem:[#allocation189_spill] sm:$0xff] %v9177_v23  ;;  %v9179_v21 = vpop.permute.xlu0 %2955  ;;  %v9207_v23 = vld [vmem:[#allocation2 + $0x92] sm:$0xff] }
 0x3a2   :  { %12547 = vst [vmem:[#allocation190_spill] sm:$0xff] %v9179_v21  ;;  %3193 = vrot.lane.b32.xlu1 %v9181_v46, %s6592_s30 }
 0x3a3   :  { %3199 = vrot.lane.b32.xlu0 %v9183_v7, %s6592_s30 }
 0x3a4   :  { %v9189_v33 = vpop.permute.xlu1 %2953 }
 0x3a5   :  { %12548 = vst [vmem:[#allocation191_spill] sm:$0xff] %v9189_v33  ;;  %v9191_v10 = vpop.permute.xlu0 %2959 }
 0x3a6   :  { %12549 = vst [vmem:[#allocation192_spill] sm:$0xff] %v9191_v10  ;;  %3197 = vrot.lane.b32.xlu1 %v9193_v2, %s6592_s30 }
 0x3a7   :  { %3203 = vrot.lane.b32.xlu0 %v9195_v62, %s6592_s30 }
 0x3a8   :  { %v9201_v21 = vpop.permute.xlu1 %2957 }
 0x3a9   :  { %12550 = vst [vmem:[#allocation193_spill] sm:$0xff] %v9201_v21  ;;  %v9203_v37 = vpop.permute.xlu0 %2963 }
 0x3aa   :  { %12551 = vst [vmem:[#allocation194_spill] sm:$0xff] %v9203_v37  ;;  %3201 = vrot.lane.b32.xlu1 %v9205_v19, %s6592_s30 }
 0x3ab   :  { %3207 = vrot.lane.b32.xlu0 %v9207_v23, %s6592_s30 }
 0x3ac   :  { %v9213_v10 = vpop.permute.xlu1 %2961 }
 0x3ad   :  { %12552 = vst [vmem:[#allocation195_spill] sm:$0xff] %v9213_v10  ;;  %v9215_v33 = vpop.permute.xlu0 %2967 }
 0x3ae   :  { %12553 = vst [vmem:[#allocation196_spill] sm:$0xff] %v9215_v33  ;;  %3205 = vrot.lane.b32.xlu1 %v9217_v25, %s6592_s30 }
 0x3af   :  { %3211 = vrot.lane.b32.xlu0 %v9219_v32, %s6592_s30 }
 0x3b0   :  { %v9225_v37 = vpop.permute.xlu1 %2965 }
 0x3b1   :  { %12554 = vst [vmem:[#allocation197_spill] sm:$0xff] %v9225_v37  ;;  %v9227_v21 = vpop.permute.xlu0 %2971 }
 0x3b2   :  { %12555 = vst [vmem:[#allocation198_spill] sm:$0xff] %v9227_v21  ;;  %3209 = vrot.lane.b32.xlu1 %v9229_v9, %s6592_s30 }
 0x3b3   :  { %3215 = vrot.lane.b32.xlu0 %v9231_v17, %s6592_s30 }
 0x3b4   :  { %v9237_v33 = vpop.permute.xlu1 %2969 }
 0x3b5   :  { %12556 = vst [vmem:[#allocation199_spill] sm:$0xff] %v9237_v33  ;;  %v9239_v10 = vpop.permute.xlu0 %2975 }
 0x3b6   :  { %12557 = vst [vmem:[#allocation200_spill] sm:$0xff] %v9239_v10  ;;  %3213 = vrot.lane.b32.xlu1 %v9241_v30, %s6592_s30 }
 0x3b7   :  { %3219 = vrot.lane.b32.xlu0 %v9243_v0, %s6592_s30 }
 0x3b8   :  { %v9249_v21 = vpop.permute.xlu1 %2973 }
 0x3b9   :  { %12558 = vst [vmem:[#allocation201_spill] sm:$0xff] %v9249_v21  ;;  %v9251_v37 = vpop.permute.xlu0 %2979 }
 0x3ba   :  { %12559 = vst [vmem:[#allocation202_spill] sm:$0xff] %v9251_v37  ;;  %3217 = vrot.lane.b32.xlu1 %v9253_v5, %s6592_s30 }
 0x3bb   :  { %3223 = vrot.lane.b32.xlu0 %v9255_v43, %s6592_s30 }
 0x3bc   :  { %v9261_v10 = vpop.permute.xlu1 %2977 }
 0x3bd   :  { %12560 = vst [vmem:[#allocation203_spill] sm:$0xff] %v9261_v10  ;;  %v9263_v33 = vpop.permute.xlu0 %2983 }
 0x3be   :  { %12561 = vst [vmem:[#allocation204_spill] sm:$0xff] %v9263_v33  ;;  %3221 = vrot.lane.b32.xlu1 %v9265_v40, %s6592_s30 }
 0x3bf   :  { %3227 = vrot.lane.b32.xlu0 %v9267_v27, %s6592_s30 }
 0x3c0   :  { %v9273_v37 = vpop.permute.xlu1 %2981 }
 0x3c1   :  { %12562 = vst [vmem:[#allocation205_spill] sm:$0xff] %v9273_v37  ;;  %v9275_v21 = vpop.permute.xlu0 %2987 }
 0x3c2   :  { %12563 = vst [vmem:[#allocation206_spill] sm:$0xff] %v9275_v21  ;;  %3225 = vrot.lane.b32.xlu1 %v9277_v3, %s6592_s30 }
 0x3c3   :  { %3231 = vrot.lane.b32.xlu0 %v9279_v52, %s6592_s30 }
 0x3c4   :  { %v9285_v33 = vpop.permute.xlu1 %2985 }
 0x3c5   :  { %12564 = vst [vmem:[#allocation207_spill] sm:$0xff] %v9285_v33  ;;  %v9287_v10 = vpop.permute.xlu0 %2991 }
 0x3c6   :  { %12565 = vst [vmem:[#allocation208_spill] sm:$0xff] %v9287_v10  ;;  %3229 = vrot.lane.b32.xlu1 %v9289_v13, %s6592_s30 }
 0x3c7   :  { %3235 = vrot.lane.b32.xlu0 %v9291_v29, %s6592_s30 }
 0x3c8   :  { %v9297_v21 = vpop.permute.xlu1 %2989 }
 0x3c9   :  { %12566 = vst [vmem:[#allocation209_spill] sm:$0xff] %v9297_v21  ;;  %v9299_v37 = vpop.permute.xlu0 %2995 }
 0x3ca   :  { %12567 = vst [vmem:[#allocation210_spill] sm:$0xff] %v9299_v37  ;;  %3233 = vrot.lane.b32.xlu1 %v9301_v47, %s6592_s30 }
 0x3cb   :  { %3239 = vrot.lane.b32.xlu0 %v9303_v4, %s6592_s30  ;;  %v9327_v4 = vld [vmem:[#allocation2 + $0x182] sm:$0xff] }
 0x3cc   :  { %v9309_v10 = vpop.permute.xlu1 %2993  ;;  %12575 = vst [vmem:[#allocation218_spill] sm:$0xff] %v9327_v4 }
 0x3cd   :  { %12569 = vst [vmem:[#allocation212_spill] sm:$0xff] %v9309_v10  ;;  %v9311_v33 = vpop.permute.xlu0 %2999 }
 0x3ce   :  { %12570 = vst [vmem:[#allocation213_spill] sm:$0xff] %v9311_v33  ;;  %3237 = vrot.lane.b32.xlu1 %v9313_v24, %s6592_s30 }
 0x3cf   :  { %3243 = vrot.lane.b32.xlu0 %v9315_v39, %s6592_s30  ;;  %v1874_v39 = vld [vmem:[#allocation2 + $0x1ca] sm:$0xff] }
 0x3d0   :  { %v9321_v37 = vpop.permute.xlu1 %2997 }
 0x3d1   :  { %12572 = vst [vmem:[#allocation215_spill] sm:$0xff] %v9321_v37  ;;  %v9323_v21 = vpop.permute.xlu0 %3003 }
 0x3d2   :  { %12573 = vst [vmem:[#allocation216_spill] sm:$0xff] %v9323_v21  ;;  %3241 = vrot.lane.b32.xlu1 %v9325_v15, %s6592_s30  ;;  %v9346_v15 = vld [vmem:[#allocation2 + $0x18a] sm:$0xff] }
 0x3d3   :  { %3247 = vrot.lane.b32.xlu0 %v9327_v4, %s6592_s30  ;;  %12581 = vst [vmem:[#allocation224_spill] sm:$0xff] %v9346_v15  ;;  %v4673_v4 = vld [vmem:[%s12215_s6 + $0x38] sm:$0xff] }
 0x3d4   :  { %v9333_v33 = vpop.permute.xlu1 %3001 }
 0x3d5   :  { %12576 = vst [vmem:[#allocation219_spill] sm:$0xff] %v9333_v33  ;;  %v9335_v10 = vpop.permute.xlu0 %3007 }
 0x3d6   :  { %12577 = vst [vmem:[#allocation220_spill] sm:$0xff] %v9335_v10  ;;  %3245 = vrot.lane.b32.xlu1 %v9337_v42, %s6592_s30  ;;  %v9388_v42 = vld [vmem:[#allocation2 + $0x202] sm:$0xff] }
 0x3d7   :  { %3251 = vrot.lane.b32.xlu0 %v1874_v39, %s6592_s30  ;;  %v4674_v39 = vld [vmem:[%s12215_s6 + $0x40] sm:$0xff]  ;;  %12590 = vst [vmem:[#allocation233_spill] sm:$0xff] %v9388_v42 }
 0x3d8   :  { %v9342_v21 = vpop.permute.xlu1 %3005  ;;  %6380 = vmatprep.subr.mxu0 %v4674_v39  ;;  %6494 = vmatprep.subr.mxu1 %v4674_v39 }
 0x3d9   :  { %12579 = vst [vmem:[#allocation222_spill] sm:$0xff] %v9342_v21  ;;  %v9344_v37 = vpop.permute.xlu0 %3011  ;;  %v1875_v21 = vld [vmem:[#allocation2 + $0x1d2] sm:$0xff]  ;;  %6381 = vmatpush3.msra.mxu0 %v4674_v39  ;;  %6503 = vmatpush3.msra.mxu1 %v4674_v39  ;;  %v4670_v39 = vld [vmem:[%s12215_s6 + $0x20] sm:$0xff] }
 0x3da   :  { %12580 = vst [vmem:[#allocation223_spill] sm:$0xff] %v9344_v37  ;;  %3249 = vrot.lane.b32.xlu1 %v9346_v15, %s6592_s30  ;;  %v1878_v37 = vld [vmem:[#allocation2 + $0x1fa] sm:$0xff]  ;;  %6382 = vmatprep.subr.mxu0 %v4673_v4  ;;  %v9373_v15 = vld [vmem:[#allocation2 + $0x1ea] sm:$0xff] }
 0x3db   :  { %3255 = vrot.lane.b32.xlu0 %v9348_v20, %s6592_s30  ;;  %6383 = vmatpush3.msra.mxu0 %v4673_v4  ;;  %12587 = vst [vmem:[#allocation230_spill] sm:$0xff] %v9373_v15 }
 0x3dc   :  { %v9354_v10 = vpop.permute.xlu1 %3009  ;;  %6495 = vmatprep.subr.mxu1 %v4673_v4 }
 0x3dd   :  { %12583 = vst [vmem:[#allocation226_spill] sm:$0xff] %v9354_v10  ;;  %v9359_v33 = vpop.permute.xlu0 %3015  ;;  %v4672_v10 = vld [vmem:[%s12215_s6 + $0x30] sm:$0xff]  ;;  %6504 = vmatpush3.msra.mxu1 %v4673_v4 }
 0x3de   :  { %12584 = vst [vmem:[#allocation227_spill] sm:$0xff] %v9359_v33  ;;  %3253 = vrot.lane.b32.xlu1 %v1875_v21, %s6592_s30  ;;  %6384 = vmatprep.subr.mxu0 %v4672_v10  ;;  %v4671_v21 = vld [vmem:[%s12215_s6 + $0x28] sm:$0xff]  ;;  %v4668_v4 = vld [vmem:[%s12215_s6 + $0x10] sm:$0xff] }
 0x3df   :  { %3259 = vrot.lane.b32.xlu0 %v1878_v37, %s6592_s30  ;;  %v1880_v37 = vld [vmem:[#allocation2 + $0x212] sm:$0xff]  ;;  %6385 = vmatpush3.msra.mxu0 %v4672_v10 }
 0x3e0   :  { %v9369_v20 = vpop.permute.xlu1 %3013  ;;  %6386 = vmatprep.subr.mxu0 %v4671_v21  ;;  %6496 = vmatprep.subr.mxu1 %v4672_v10 }
 0x3e1   :  { %12585 = vst [vmem:[#allocation228_spill] sm:$0xff] %v9369_v20  ;;  %v9371_v33 = vpop.permute.xlu0 %3019  ;;  %6387 = vmatpush3.msra.mxu0 %v4671_v21  ;;  %6505 = vmatpush3.msra.mxu1 %v4672_v10 }
 0x3e2   :  { %12586 = vst [vmem:[#allocation229_spill] sm:$0xff] %v9371_v33  ;;  %3257 = vrot.lane.b32.xlu1 %v9373_v15, %s6592_s30  ;;  %6388 = vmatprep.subr.mxu0 %v4670_v39  ;;  %v1909_v15 = vld [vmem:[#allocation2 + $0x48] sm:$0xff] }
 0x3e3   :  { %3263 = vrot.lane.b32.xlu0 %v1880_v37, %s6592_s30  ;;  %6389 = vmatpush3.msra.mxu0 %v4670_v39  ;;  %v4669_v37 = vld [vmem:[%s12215_s6 + $0x18] sm:$0xff] }
 0x3e4   :  { %v9384_v33 = vpop.permute.xlu1 %3017  ;;  %6390 = vmatprep.subr.mxu0 %v4669_v37  ;;  %6497 = vmatprep.subr.mxu1 %v4671_v21 }
 0x3e5   :  { %12588 = vst [vmem:[#allocation231_spill] sm:$0xff] %v9384_v33  ;;  %v9386_v20 = vpop.permute.xlu0 %3023  ;;  %6391 = vmatpush3.msra.mxu0 %v4669_v37  ;;  %6506 = vmatpush3.msra.mxu1 %v4671_v21 }
 0x3e6   :  { %12589 = vst [vmem:[#allocation232_spill] sm:$0xff] %v9386_v20  ;;  %3261 = vrot.lane.b32.xlu1 %v9388_v42, %s6592_s30  ;;  %v1907_v42 = vld [vmem:[#allocation2 + $0x30] sm:$0xff]  ;;  %6392 = vmatprep.subr.mxu0 %v4668_v4 }
 0x3e7   :  { %3445 = vrot.lane.b32.xlu0 %v1908_v61, %s6593_s19  ;;  %v4667_v61 = vld [vmem:[%s12215_s6 + $0x8] sm:$0xff]  ;;  %6498 = vmatprep.subr.mxu1 %v4670_v39 }
 0x3e8   :  { %v9399_v20 = vpop.permute.xlu1 %3021  ;;  %6393 = vmatpush3.msra.mxu0 %v4668_v4  ;;  %6507 = vmatpush3.msra.mxu1 %v4670_v39  ;;  %v1910_v39 = vld [vmem:[#allocation2 + $0x50] sm:$0xff] }
 0x3e9   :  { %12591 = vst [vmem:[#allocation234_spill] sm:$0xff] %v9399_v20  ;;  %v9401_v33 = vpop.permute.xlu0 %3027  ;;  %6394 = vmatprep.subr.mxu0 %v4667_v61  ;;  %6499 = vmatprep.subr.mxu1 %v4669_v37 }
 0x3ea   :  { %12592 = vst [vmem:[#allocation235_spill] sm:$0xff] %v9401_v33  ;;  %3443 = vrot.lane.b32.xlu1 %v1907_v42, %s6593_s19  ;;  %v4666_v42 = vld [vmem:[%s12215_s6] sm:$0xff]  ;;  %6395 = vmatpush3.msra.mxu0 %v4667_v61 }
 0x3eb   :  { %3447 = vrot.lane.b32.xlu0 %v1909_v15, %s6593_s19  ;;  %6508 = vmatpush3.msra.mxu1 %v4669_v37  ;;  %v1988_v33 = vld [vmem:[#allocation2 + $0xf9] sm:$0xff] }
 0x3ec   :  { %v9408_v10 = vpop.permute.xlu1 %3025  ;;  %6396 = vmatprep.subr.mxu0 %v4666_v42  ;;  %6500 = vmatprep.subr.mxu1 %v4668_v4 }
 0x3ed   :  { %12593 = vst [vmem:[#allocation236_spill] sm:$0xff] %v9408_v10  ;;  %v9410_v20 = vpop.permute.xlu0 %3031  ;;  %6397 = vmatpush3.msra.mxu0 %v4666_v42  ;;  %6509 = vmatpush3.msra.mxu1 %v4668_v4  ;;  %v1987_v10 = vld [vmem:[#allocation2 + $0xf1] sm:$0xff] }
 0x3ee   :  { %12594 = vst [vmem:[#allocation237_spill] sm:$0xff] %v9410_v20  ;;  %3699 = vrot.lane.b32.xlu1 %v8932_v44, %s6594_s24  ;;  %6501 = vmatprep.subr.mxu1 %v4667_v61  ;;  %v1924_v20 = vld [vmem:[#allocation2 + $0xf8] sm:$0xff] }
 0x3ef   :  { %3955 = vrot.lane.b32.xlu0 %v9163_v22, %s6595_s25  ;;  %6510 = vmatpush3.msra.mxu1 %v4667_v61  ;;  %v1912_v61 = vld [vmem:[#allocation2 + $0x68] sm:$0xff] }
 0x3f0   :  { %v9419_v15 = vpop.permute.xlu1 %3029  ;;  %6502 = vmatprep.subr.mxu1 %v4666_v42 }
 0x3f1   :  { %12595 = vst [vmem:[#allocation238_spill] sm:$0xff] %v9419_v15  ;;  %v9421_v21 = vpop.permute.xlu0 %3035  ;;  %6511 = vmatpush3.msra.mxu1 %v4666_v42  ;;  %v1923_v15 = vld [vmem:[#allocation2 + $0xf0] sm:$0xff] }
 0x3f2   :  { %12596 = vst [vmem:[#allocation239_spill] sm:$0xff] %v9421_v21  ;;  %3701 = vrot.lane.b32.xlu1 %v8950_v28, %s6594_s24  ;;  %v1986_v21 = vld [vmem:[#allocation2 + $0xe1] sm:$0xff] }
 0x3f3   :  { %3703 = vrot.lane.b32.xlu0 %v8941_v18, %s6594_s24 }
 0x3f4   :  { %v9427_v44 = vpop.permute.xlu1 %3033 }
 0x3f5   :  { %12597 = vst [vmem:[#allocation240_spill] sm:$0xff] %v9427_v44  ;;  %v9429_v22 = vpop.permute.xlu0 %3039  ;;  %v1985_v44 = vld [vmem:[#allocation2 + $0xd9] sm:$0xff] }
 0x3f6   :  { %12598 = vst [vmem:[#allocation241_spill] sm:$0xff] %v9429_v22  ;;  %3449 = vrot.lane.b32.xlu1 %v1910_v39, %s6593_s19  ;;  %v1911_v39 = vld [vmem:[#allocation2 + $0x60] sm:$0xff] }
 0x3f7   :  { %3705 = vrot.lane.b32.xlu0 %v8962_v51, %s6594_s24  ;;  %v1922_v22 = vld [vmem:[#allocation2 + $0xe0] sm:$0xff] }
 0x3f8   :  { %v9434_v37 = vpop.permute.xlu1 %3037 }
 0x3f9   :  { %12599 = vst [vmem:[#allocation242_spill] sm:$0xff] %v9434_v37  ;;  %v9436_v28 = vpop.permute.xlu0 %3043  ;;  %v1921_v37 = vld [vmem:[#allocation2 + $0xd8] sm:$0xff] }
 0x3fa   :  { %12600 = vst [vmem:[#allocation243_spill] sm:$0xff] %v9436_v28  ;;  %3957 = vrot.lane.b32.xlu1 %v9181_v46, %s6595_s25  ;;  %v1919_v28 = vld [vmem:[#allocation2 + $0xc0] sm:$0xff] }
 0x3fb   :  { %3961 = vrot.lane.b32.xlu0 %v9193_v2, %s6595_s25 }
 0x3fc   :  { %v9442_v18 = vpop.permute.xlu1 %3041 }
 0x3fd   :  { %12601 = vst [vmem:[#allocation244_spill] sm:$0xff] %v9442_v18  ;;  %v9444_v4 = vpop.permute.xlu0 %3047  ;;  %v1983_v18 = vld [vmem:[#allocation2 + $0xc1] sm:$0xff] }
 0x3fe   :  { %12602 = vst [vmem:[#allocation245_spill] sm:$0xff] %v9444_v4  ;;  %3959 = vrot.lane.b32.xlu1 %v9172_v55, %s6595_s25  ;;  %v1917_v4 = vld [vmem:[#allocation2 + $0xa8] sm:$0xff] }
 0x3ff   :  { %3453 = vrot.lane.b32.xlu0 %v1912_v61, %s6593_s19 }
 0x400   :  { %v9449_v51 = vpop.permute.xlu1 %3045 }
 0x401   :  { %12603 = vst [vmem:[#allocation246_spill] sm:$0xff] %v9449_v51  ;;  %v9451_v42 = vpop.permute.xlu0 %3051  ;;  %v1920_v51 = vld [vmem:[#allocation2 + $0xc8] sm:$0xff] }
 0x402   :  { %12604 = vst [vmem:[#allocation247_spill] sm:$0xff] %v9451_v42  ;;  %3451 = vrot.lane.b32.xlu1 %v1911_v39, %s6593_s19  ;;  %v1914_v42 = vld [vmem:[#allocation2 + $0x80] sm:$0xff] }
 0x403   :  { %3709 = vrot.lane.b32.xlu0 %v8974_v60, %s6594_s24 }
 0x404   :  { %v9456_v2 = vpop.permute.xlu1 %3049 }
 0x405   :  { %12605 = vst [vmem:[#allocation248_spill] sm:$0xff] %v9456_v2  ;;  %v9458_v46 = vpop.permute.xlu0 %3055  ;;  %v1918_v2 = vld [vmem:[#allocation2 + $0xb0] sm:$0xff] }
 0x406   :  { %12606 = vst [vmem:[#allocation249_spill] sm:$0xff] %v9458_v46  ;;  %3707 = vrot.lane.b32.xlu1 %v8952_v12, %s6594_s24  ;;  %v1913_v46 = vld [vmem:[#allocation2 + $0x78] sm:$0xff] }
 0x407   :  { %3965 = vrot.lane.b32.xlu0 %v9205_v19, %s6595_s25 }
 0x408   :  { %v9464_v55 = vpop.permute.xlu1 %3053 }
 0x409   :  { %12607 = vst [vmem:[#allocation250_spill] sm:$0xff] %v9464_v55  ;;  %v9466_v61 = vpop.permute.xlu0 %3187  ;;  %v1915_v55 = vld [vmem:[#allocation2 + $0x90] sm:$0xff] }
 0x40a   :  { %3963 = vrot.lane.b32.xlu1 %v9183_v7, %s6595_s25 }
 0x40b   :  { %3457 = vrot.lane.b32.xlu0 %v1914_v42, %s6593_s19 }
 0x40c   :  { %v9471_v60 = vpop.permute.xlu1 %3057 }
 0x40d   :  { %12608 = vst [vmem:[#allocation251_spill] sm:$0xff] %v9471_v60  ;;  %v9473_v39 = vpop.permute.xlu0 %3191  ;;  %v1916_v60 = vld [vmem:[#allocation2 + $0x98] sm:$0xff] }
 0x40e   :  { %3455 = vrot.lane.b32.xlu1 %v1913_v46, %s6593_s19 }
 0x40f   :  { %3713 = vrot.lane.b32.xlu0 %v8986_v56, %s6594_s24 }
 0x410   :  { %v9478_v19 = vpop.permute.xlu1 %3189 }
 0x411   :  { %v9480_v12 = vpop.permute.xlu0 %3195 }
 0x412   :  { %3711 = vrot.lane.b32.xlu1 %v8964_v45, %s6594_s24 }
 0x413   :  { %3969 = vrot.lane.b32.xlu0 %v9217_v25, %s6595_s25 }
 0x414   :  { %v9486_v7 = vpop.permute.xlu1 %3193 }
 0x415   :  { %v9488_v42 = vpop.permute.xlu0 %3199 }
 0x416   :  { %3967 = vrot.lane.b32.xlu1 %v9195_v62, %s6595_s25 }
 0x417   :  { %3461 = vrot.lane.b32.xlu0 %v1916_v60, %s6593_s19 }
 0x418   :  { %v9493_v56 = vpop.permute.xlu1 %3197 }
 0x419   :  { %v9495_v46 = vpop.permute.xlu0 %3203 }
 0x41a   :  { %3459 = vrot.lane.b32.xlu1 %v1915_v55, %s6593_s19 }
 0x41b   :  { %3717 = vrot.lane.b32.xlu0 %v8998_v31, %s6594_s24 }
 0x41c   :  { %v9500_v45 = vpop.permute.xlu1 %3201 }
 0x41d   :  { %v9502_v25 = vpop.permute.xlu0 %3207 }
 0x41e   :  { %3715 = vrot.lane.b32.xlu1 %v8976_v48, %s6594_s24 }
 0x41f   :  { %3973 = vrot.lane.b32.xlu0 %v9229_v9, %s6595_s25 }
 0x420   :  { %v9508_v62 = vpop.permute.xlu1 %3205 }
 0x421   :  { %v9510_v60 = vpop.permute.xlu0 %3211 }
 0x422   :  { %3971 = vrot.lane.b32.xlu1 %v9207_v23, %s6595_s25 }
 0x423   :  { %3465 = vrot.lane.b32.xlu0 %v1918_v2, %s6593_s19 }
 0x424   :  { %v9515_v31 = vpop.permute.xlu1 %3209 }
 0x425   :  { %v9517_v55 = vpop.permute.xlu0 %3215 }
 0x426   :  { %3463 = vrot.lane.b32.xlu1 %v1917_v4, %s6593_s19 }
 0x427   :  { %3721 = vrot.lane.b32.xlu0 %v9007_v35, %s6594_s24 }
 0x428   :  { %v9522_v48 = vpop.permute.xlu1 %3213 }
 0x429   :  { %v9524_v9 = vpop.permute.xlu0 %3219 }
 0x42a   :  { %3719 = vrot.lane.b32.xlu1 %v8988_v57, %s6594_s24 }
 0x42b   :  { %3977 = vrot.lane.b32.xlu0 %v9241_v30, %s6595_s25 }
 0x42c   :  { %v9530_v23 = vpop.permute.xlu1 %3217 }
 0x42d   :  { %v9532_v2 = vpop.permute.xlu0 %3223 }
 0x42e   :  { %3975 = vrot.lane.b32.xlu1 %v9219_v32, %s6595_s25 }
 0x42f   :  { %3469 = vrot.lane.b32.xlu0 %v1920_v51, %s6593_s19 }
 0x430   :  { %v9537_v35 = vpop.permute.xlu1 %3221 }
 0x431   :  { %v9539_v4 = vpop.permute.xlu0 %3227 }
 0x432   :  { %3467 = vrot.lane.b32.xlu1 %v1919_v28, %s6593_s19 }
 0x433   :  { %3725 = vrot.lane.b32.xlu0 %v9016_v1, %s6594_s24 }
 0x434   :  { %v9544_v57 = vpop.permute.xlu1 %3225 }
 0x435   :  { %v9546_v30 = vpop.permute.xlu0 %3231 }
 0x436   :  { %3723 = vrot.lane.b32.xlu1 %v1983_v18, %s6594_s24 }
 0x437   :  { %3981 = vrot.lane.b32.xlu0 %v9253_v5, %s6595_s25 }
 0x438   :  { %v9551_v32 = vpop.permute.xlu1 %3229 }
 0x439   :  { %v9553_v51 = vpop.permute.xlu0 %3235 }
 0x43a   :  { %3979 = vrot.lane.b32.xlu1 %v9231_v17, %s6595_s25 }
 0x43b   :  { %3473 = vrot.lane.b32.xlu0 %v1922_v22, %s6593_s19 }
 0x43c   :  { %v9558_v1 = vpop.permute.xlu1 %3233 }
 0x43d   :  { %v9560_v28 = vpop.permute.xlu0 %3239 }
 0x43e   :  { %3471 = vrot.lane.b32.xlu1 %v1921_v37, %s6593_s19 }
 0x43f   :  { %3729 = vrot.lane.b32.xlu0 %v1986_v21, %s6594_s24 }
 0x440   :  { %v9564_v5 = vpop.permute.xlu1 %3237 }
 0x441   :  { %v9566_v18 = vpop.permute.xlu0 %3243 }
 0x442   :  { %3727 = vrot.lane.b32.xlu1 %v1985_v44, %s6594_s24 }
 0x443   :  { %3985 = vrot.lane.b32.xlu0 %v9265_v40, %s6595_s25 }
 0x444   :  { %v9571_v17 = vpop.permute.xlu1 %3241 }
 0x445   :  { %v9573_v22 = vpop.permute.xlu0 %3247 }
 0x446   :  { %3983 = vrot.lane.b32.xlu1 %v9243_v0, %s6595_s25 }
 0x447   :  { %3477 = vrot.lane.b32.xlu0 %v1924_v20, %s6593_s19 }
 0x448   :  { %v9578_v21 = vpop.permute.xlu1 %3245 }
 0x449   :  { %v9580_v37 = vpop.permute.xlu0 %3251 }
 0x44a   :  { %12609 = vst [vmem:[#allocation252_spill] sm:$0xff] %v9580_v37  ;;  %3475 = vrot.lane.b32.xlu1 %v1923_v15, %s6593_s19  ;;  %v1926_v37 = vld [vmem:[#allocation2 + $0x110] sm:$0xff] }
 0x44b   :  { %3733 = vrot.lane.b32.xlu0 %v1988_v33, %s6594_s24 }
 0x44c   :  { %v9584_v40 = vpop.permute.xlu1 %3249 }
 0x44d   :  { %12610 = vst [vmem:[#allocation253_spill] sm:$0xff] %v9584_v40  ;;  %v9586_v44 = vpop.permute.xlu0 %3255  ;;  %v1522_v40 = vld [vmem:[#allocation2] sm:$0xff] }
 0x44e   :  { %12611 = vst [vmem:[#allocation254_spill] sm:$0xff] %v9586_v44  ;;  %3731 = vrot.lane.b32.xlu1 %v1987_v10, %s6594_s24  ;;  %v1925_v44 = vld [vmem:[#allocation2 + $0x108] sm:$0xff]  ;;  %v1990_v10 = vld [vmem:[#allocation2 + $0x111] sm:$0xff] }
 0x44f   :  { %3989 = vrot.lane.b32.xlu0 %v9277_v3, %s6595_s25 }
 0x450   :  { %v9591_v0 = vpop.permute.xlu1 %3253 }
 0x451   :  { %12612 = vst [vmem:[#allocation255_spill] sm:$0xff] %v9591_v0  ;;  %v9593_v20 = vpop.permute.xlu0 %3259  ;;  %v1989_v0 = vld [vmem:[#allocation2 + $0x109] sm:$0xff] }
 0x452   :  { %12613 = vst [vmem:[#allocation256_spill] sm:$0xff] %v9593_v20  ;;  %3987 = vrot.lane.b32.xlu1 %v9255_v43, %s6595_s25  ;;  %v4147_v20 = vsel %vm826_vm2, %v1522_v40, %v8520_v16  ;;  %v1928_v40 = vld [vmem:[#allocation2 + $0x128] sm:$0xff] }
 0x453   :  { %3481 = vrot.lane.b32.xlu0 %v1926_v37, %s6593_s19  ;;  %v4212_v37 = vsel %vm4211_vm5, %v4147_v20, %v8539_v63 }
 0x454   :  { %v9598_v33 = vpop.permute.xlu1 %3257 }
 0x455   :  { %v9600_v15 = vpop.permute.xlu0 %3263 }
 0x456   :  { %12614 = vst [vmem:[#allocation257_spill] sm:$0xff] %v9600_v15  ;;  %3479 = vrot.lane.b32.xlu1 %v1925_v44, %s6593_s19 }
 0x457   :  { %3737 = vrot.lane.b32.xlu0 %v1990_v10, %s6594_s24  ;;  %v4277_v10 = vsel %vm4276_vm6, %v4212_v37, %v8906_v59  ;;  %v1523_v59 = vld [vmem:[#allocation2 + $0x8] sm:$0xff]  ;;  %v1927_v37 = vld [vmem:[#allocation2 + $0x120] sm:$0xff] }
 0x458   :  { %v9604_v3 = vpop.permute.xlu1 %3261  ;;  %v4342_v16 = vsel %vm4341_vm7, %v4277_v10, %v9137_v8  ;;  %v1992_v10 = vld [vmem:[#allocation2 + $0x129] sm:$0xff] }
 0x459   :  { %v3446_v43 = vpop.permute.xlu0 %3445 }
 0x45a   :  { %3735 = vrot.lane.b32.xlu1 %v1989_v0, %s6594_s24 }
 0x45b   :  { %3993 = vrot.lane.b32.xlu0 %v9289_v13, %s6595_s25  ;;  %v4407_v13 = vsel %vm4406_vm8, %v4342_v16, %v9466_v61  ;;  %v4148_v61 = vsel %vm826_vm2, %v1523_v59, %v8526_v58 }
 0x45c   :  { %v3444_v44 = vpop.permute.xlu1 %3443 }
 0x45d   :  { %v3448_v15 = vpop.permute.xlu0 %3447  ;;  %v4472_v63 = vsel %vm4471_vm10, %v4407_v13, %v3444_v44  ;;  %v4213_v13 = vsel %vm4211_vm5, %v4148_v61, %v8536_v6 }
 0x45e   :  { %3991 = vrot.lane.b32.xlu1 %v9267_v27, %s6595_s25 }
 0x45f   :  { %3485 = vrot.lane.b32.xlu0 %v1928_v40, %s6593_s19  ;;  %v1991_v40 = vld [vmem:[#allocation2 + $0x121] sm:$0xff] }
 0x460   :  { %v3700_v0 = vpop.permute.xlu1 %3699 }
 0x461   :  { %v3956_v20 = vpop.permute.xlu0 %3955  ;;  %v4537_v8 = vsel %vm4536_vm9, %v4472_v63, %v3700_v0  ;;  %v4278_v63 = vsel %vm4276_vm6, %v4213_v13, %v8916_v38  ;;  %v1930_v38 = vld [vmem:[#allocation2 + $0x140] sm:$0xff] }
 0x462   :  { %3483 = vrot.lane.b32.xlu1 %v1927_v37, %s6593_s19  ;;  %v4602_v27 = vsel %vm4601_vm11, %v4537_v8, %v3956_v20  ;;  %v6526_v20 = vld [vmem:[#allocation2 + $0x20] sm:$0xff]  ;;  %v4343_v58 = vsel %vm4341_vm7, %v4278_v63, %v9147_v41  ;;  %v6527_v37 = vld [vmem:[#allocation2 + $0x18] sm:$0xff] }
 0x463   :  { %3741 = vrot.lane.b32.xlu0 %v1992_v10, %s6594_s24  ;;  %6398 = vmatprep.mubr.msk.f32.mxu0 %vm4682_vm12, %v4602_v27  ;;  %v4150_v8 = vsel %vm826_vm2, %v6526_v20, %v8556_v26  ;;  %v4149_v10 = vsel %vm826_vm2, %v6527_v37, %v8550_v54  ;;  %v1994_v63 = vld [vmem:[#allocation2 + $0x141] sm:$0xff]  ;;  %v1932_v37 = vld [vmem:[#allocation2 + $0x158] sm:$0xff] }
 0x464   :  { %v3702_v44 = vpop.permute.xlu1 %3701  ;;  %v4215_v6 = vsel %vm4211_vm5, %v4150_v8, %v8736_v34  ;;  %v4214_v26 = vsel %vm4211_vm5, %v4149_v10, %v8726_v49  ;;  %v1993_v8 = vld [vmem:[#allocation2 + $0x139] sm:$0xff] }
 0x465   :  { %v3704_v16 = vpop.permute.xlu0 %3703  ;;  %v4280_v41 = vsel %vm4276_vm6, %v4215_v6, %v8922_v36  ;;  %v4279_v54 = vsel %vm4276_vm6, %v4214_v26, %v8912_v50  ;;  %v6529_v10 = vld [vmem:[#allocation2 + $0x38] sm:$0xff]  ;;  %v12615_v6 = vld [vmem:[#allocation25_spill] sm:$0xff] }
 0x466   :  { %3739 = vrot.lane.b32.xlu1 %v1991_v40, %s6594_s24  ;;  %v4345_v34 = vsel %vm4341_vm7, %v4280_v41, %v9153_v53  ;;  %v1929_v40 = vld [vmem:[#allocation2 + $0x138] sm:$0xff] }
 0x467   :  { %3997 = vrot.lane.b32.xlu0 %v9301_v47, %s6595_s25  ;;  %v4408_v47 = vsel %vm4406_vm8, %v4343_v58, %v9478_v19  ;;  %v4410_v49 = vsel %vm4406_vm8, %v4345_v34, %v9486_v7  ;;  %v6528_v58 = vld [vmem:[#allocation2 + $0x30] sm:$0xff] }
 0x468   :  { %v3450_v0 = vpop.permute.xlu1 %3449  ;;  %v4473_v27 = vsel %vm4471_vm10, %v4408_v47, %v3446_v43  ;;  %v4152_v47 = vsel %vm826_vm2, %v6529_v10, %v12615_v6  ;;  %v12619_v34 = vld [vmem:[#allocation125_spill] sm:$0xff]  ;;  %v12624_v10 = vld [vmem:[#allocation211_spill] sm:$0xff] }
 0x469   :  { %v3706_v59 = vpop.permute.xlu0 %3705  ;;  %v4538_v19 = vsel %vm4536_vm9, %v4473_v27, %v3702_v44  ;;  %v4475_v50 = vsel %vm4471_vm10, %v4410_v49, %v3450_v0  ;;  %v12618_v27 = vld [vmem:[#allocation123_spill] sm:$0xff]  ;;  %v1931_v49 = vld [vmem:[#allocation2 + $0x150] sm:$0xff] }
 0x46a   :  { %3995 = vrot.lane.b32.xlu1 %v9279_v52, %s6595_s25  ;;  %v4344_v52 = vsel %vm4341_vm7, %v4279_v54, %v9143_v11  ;;  %v4540_v44 = vsel %vm4536_vm9, %v4475_v50, %v3706_v59  ;;  %v4151_v59 = vsel %vm826_vm2, %v6528_v58, %v8552_v14  ;;  %v6530_v58 = vld [vmem:[#allocation2 + $0x48] sm:$0xff]  ;;  %v6531_v6 = vld [vmem:[#allocation2 + $0x50] sm:$0xff] }
 0x46b   :  { %3489 = vrot.lane.b32.xlu0 %v1930_v38, %s6593_s19  ;;  %v4409_v13 = vsel %vm4406_vm8, %v4344_v52, %v9473_v39  ;;  %v12616_v38 = vld [vmem:[#allocation65_spill] sm:$0xff] }
 0x46c   :  { %v3958_v61 = vpop.permute.xlu1 %3957  ;;  %v4474_v53 = vsel %vm4471_vm10, %v4409_v13, %v3448_v15  ;;  %v4216_v26 = vsel %vm4211_vm5, %v4151_v59, %v12616_v38  ;;  %v1996_v13 = vld [vmem:[#allocation2 + $0x159] sm:$0xff] }
 0x46d   :  { %v3962_v36 = vpop.permute.xlu0 %3961  ;;  %v4603_v43 = vsel %vm4601_vm11, %v4538_v19, %v3958_v61  ;;  %v4539_v11 = vsel %vm4536_vm9, %v4474_v53, %v3704_v16  ;;  %v4281_v54 = vsel %vm4276_vm6, %v4216_v26, %v12618_v27  ;;  %v12623_v59 = vld [vmem:[#allocation22_spill] sm:$0xff] }
 0x46e   :  { %3487 = vrot.lane.b32.xlu1 %v1929_v40, %s6593_s19  ;;  %6399 = vmatmul.mubr.msk.f32.vlgmr.msra.gmra.mxu0 %vm4682_vm12, %v4603_v43  ;;  %v4605_v0 = vsel %vm4601_vm11, %v4540_v44, %v3962_v36  ;;  %v12621_v36 = vld [vmem:[#allocation185_spill] sm:$0xff]  ;;  %v12626_v26 = vld [vmem:[#allocation66_spill] sm:$0xff] }
 0x46f   :  { %3745 = vrot.lane.b32.xlu0 %v1994_v63, %s6594_s24 }
 0x470   :  { %v3960_v7 = vpop.permute.xlu1 %3959 }
 0x471   :  { %v3454_v20 = vpop.permute.xlu0 %3453  ;;  %v4604_v39 = vsel %vm4601_vm11, %v4539_v11, %v3960_v7 }
 0x472   :  { %3743 = vrot.lane.b32.xlu1 %v1993_v8, %s6594_s24  ;;  %6401 = vmatprep.mubr.msk.f32.mxu1 %vm4682_vm12, %v4604_v39  ;;  %v1995_v39 = vld [vmem:[#allocation2 + $0x151] sm:$0xff] }
 0x473   :  { %4001 = vrot.lane.b32.xlu0 %v9313_v24, %s6595_s25  ;;  %6402 = vmatmul.mubr.msk.f32.vlgmr.msra.gmra.mxu1 %vm4682_vm12, %v4605_v0  ;;  %v12617_v24 = vld [vmem:[#allocation67_spill] sm:$0xff] }
 0x474   :  { %v3452_v15 = vpop.permute.xlu1 %3451  ;;  %v4217_v41 = vsel %vm4211_vm5, %v4152_v47, %v12617_v24  ;;  %v12625_v47 = vld [vmem:[#allocation26_spill] sm:$0xff] }
 0x475   :  { %v3710_v16 = vpop.permute.xlu0 %3709  ;;  %v4282_v19 = vsel %vm4276_vm6, %v4217_v41, %v12619_v34  ;;  %v4154_v38 = vsel %vm826_vm2, %v6531_v6, %v12625_v47  ;;  %v12627_v41 = vld [vmem:[#allocation69_spill] sm:$0xff] }
 0x476   :  { %3999 = vrot.lane.b32.xlu1 %v9291_v29, %s6595_s25  ;;  %v12620_v29 = vld [vmem:[#allocation183_spill] sm:$0xff]  ;;  %v4347_v43 = vsel %vm4341_vm7, %v4282_v19, %v12621_v36  ;;  %v4219_v27 = vsel %vm4211_vm5, %v4154_v38, %v12627_v41  ;;  %v1933_v36 = vld [vmem:[#allocation2 + $0x168] sm:$0xff]  ;;  %v12635_v6 = vld [vmem:[#allocation5_spill] sm:$0xff] }
 0x477   :  { %3493 = vrot.lane.b32.xlu0 %v1932_v37, %s6593_s19  ;;  %v4346_v61 = vsel %vm4341_vm7, %v4281_v54, %v12620_v29  ;;  %v4412_v50 = vsel %vm4406_vm8, %v4347_v43, %v9493_v56  ;;  %v12622_v56 = vld [vmem:[#allocation217_spill] sm:$0xff]  ;;  %v12628_v54 = vld [vmem:[#allocation124_spill] sm:$0xff]  ;;  %v12629_v19 = vld [vmem:[#allocation127_spill] sm:$0xff] }
 0x478   :  { %v3708_v14 = vpop.permute.xlu1 %3707  ;;  %v4411_v40 = vsel %vm4406_vm8, %v4346_v61, %v9480_v12  ;;  %v4477_v53 = vsel %vm4471_vm10, %v4412_v50, %v3454_v20  ;;  %v1934_v37 = vld [vmem:[#allocation2 + $0x170] sm:$0xff]  ;;  %v4284_v29 = vsel %vm4276_vm6, %v4219_v27, %v12629_v19  ;;  %v12630_v61 = vld [vmem:[#allocation184_spill] sm:$0xff]  ;;  %v12631_v43 = vld [vmem:[#allocation187_spill] sm:$0xff] }
 0x479   :  { %v3966_v52 = vpop.permute.xlu0 %3965  ;;  %v4476_v63 = vsel %vm4471_vm10, %v4411_v40, %v3452_v15  ;;  %v4542_v44 = vsel %vm4536_vm9, %v4477_v53, %v3710_v16  ;;  %v4153_v16 = vsel %vm826_vm2, %v6530_v58, %v12623_v59  ;;  %v4349_v40 = vsel %vm4341_vm7, %v4284_v29, %v12631_v43  ;;  %v1998_v50 = vld [vmem:[#allocation2 + $0x171] sm:$0xff]  ;;  %v6532_v58 = vld [vmem:[#allocation2 + $0x60] sm:$0xff]  ;;  %v12633_v59 = vld [vmem:[#allocation24_spill] sm:$0xff] }
 0x47a   :  { %3491 = vrot.lane.b32.xlu1 %v1931_v49, %s6593_s19  ;;  %v4541_v11 = vsel %vm4536_vm9, %v4476_v63, %v3708_v14  ;;  %v4607_v0 = vsel %vm4601_vm11, %v4542_v44, %v3966_v52  ;;  %v4218_v24 = vsel %vm4211_vm5, %v4153_v16, %v12626_v26  ;;  %v4414_v63 = vsel %vm4406_vm8, %v4349_v40, %v9500_v45  ;;  %v12632_v45 = vld [vmem:[#allocation221_spill] sm:$0xff]  ;;  %v1936_v16 = vld [vmem:[#allocation2 + $0x188] sm:$0xff]  ;;  %v12638_v27 = vld [vmem:[#allocation126_spill] sm:$0xff] }
 0x47b   :  { %3749 = vrot.lane.b32.xlu0 %v1996_v13, %s6594_s24  ;;  %v4283_v14 = vsel %vm4276_vm6, %v4218_v24, %v12628_v54  ;;  %v12636_v38 = vld [vmem:[#allocation68_spill] sm:$0xff]  ;;  %v12637_v24 = vld [vmem:[#allocation71_spill] sm:$0xff]  ;;  %v12640_v29 = vld [vmem:[#allocation186_spill] sm:$0xff] }
 0x47c   :  { %v3964_v7 = vpop.permute.xlu1 %3963  ;;  %v4348_v52 = vsel %vm4341_vm7, %v4283_v14, %v12630_v61 }
 0x47d   :  { %v3458_v8 = vpop.permute.xlu0 %3457  ;;  %v4606_v12 = vsel %vm4601_vm11, %v4541_v11, %v3964_v7  ;;  %v4413_v13 = vsel %vm4406_vm8, %v4348_v52, %v9488_v42 }
 0x47e   :  { %3747 = vrot.lane.b32.xlu1 %v1995_v39, %s6594_s24  ;;  %6404 = vmatprep.mubr.msk.f32.mxu1 %vm4682_vm12, %v4606_v12  ;;  %v4479_v11 = vsel %vm4471_vm10, %v4414_v63, %v3458_v8 }
 0x47f   :  { %4005 = vrot.lane.b32.xlu0 %v12622_v56, %s6595_s25  ;;  %6405 = vmatmul.mubr.msk.f32.gmra.mxu1 %vm4682_vm12, %v4607_v0  ;;  %v1997_v0 = vld [vmem:[#allocation2 + $0x169] sm:$0xff] }
 0x480   :  { %v3456_v20 = vpop.permute.xlu1 %3455 }
 0x481   :  { %v3714_v15 = vpop.permute.xlu0 %3713  ;;  %v4478_v53 = vsel %vm4471_vm10, %v4413_v13, %v3456_v20  ;;  %v2000_v13 = vld [vmem:[#allocation2 + $0x189] sm:$0xff] }
 0x482   :  { %4003 = vrot.lane.b32.xlu1 %v12624_v10, %s6595_s25  ;;  %v4544_v12 = vsel %vm4536_vm9, %v4479_v11, %v3714_v15  ;;  %v4155_v15 = vsel %vm826_vm2, %v6532_v58, %v12633_v59  ;;  %v6533_v10 = vld [vmem:[#allocation2 + $0x68] sm:$0xff]  ;;  %v12644_v59 = vld [vmem:[#allocation218_spill] sm:$0xff] }
 0x483   :  { %3497 = vrot.lane.b32.xlu0 %v1934_v37, %s6593_s19  ;;  %v12634_v37 = vld [vmem:[#allocation214_spill] sm:$0xff]  ;;  %v4156_v47 = vsel %vm826_vm2, %v6533_v10, %v12635_v6  ;;  %v4220_v26 = vsel %vm4211_vm5, %v4155_v15, %v12636_v38  ;;  %v6535_v15 = vld [vmem:[#allocation2 + $0x80] sm:$0xff]  ;;  %v12647_v38 = vld [vmem:[#allocation73_spill] sm:$0xff] }
 0x484   :  { %v3712_v34 = vpop.permute.xlu1 %3711  ;;  %v4221_v41 = vsel %vm4211_vm5, %v4156_v47, %v12637_v24  ;;  %v4285_v54 = vsel %vm4276_vm6, %v4220_v26, %v12638_v27  ;;  %v12646_v10 = vld [vmem:[#allocation70_spill] sm:$0xff]  ;;  %v12648_v24 = vld [vmem:[#allocation128_spill] sm:$0xff] }
 0x485   :  { %v3970_v49 = vpop.permute.xlu0 %3969  ;;  %v4543_v7 = vsel %vm4536_vm9, %v4478_v53, %v3712_v34  ;;  %v12639_v34 = vld [vmem:[#allocation129_spill] sm:$0xff]  ;;  %v4350_v61 = vsel %vm4341_vm7, %v4285_v54, %v12640_v29  ;;  %v1937_v47 = vld [vmem:[#allocation2 + $0x198] sm:$0xff]  ;;  %v2002_v54 = vld [vmem:[#allocation2 + $0x1a1] sm:$0xff] }
 0x486   :  { %3495 = vrot.lane.b32.xlu1 %v1933_v36, %s6593_s19  ;;  %v4609_v56 = vsel %vm4601_vm11, %v4544_v12, %v3970_v49  ;;  %v4286_v19 = vsel %vm4276_vm6, %v4221_v41, %v12639_v34  ;;  %v1935_v49 = vld [vmem:[#allocation2 + $0x180] sm:$0xff]  ;;  %v12641_v36 = vld [vmem:[#allocation189_spill] sm:$0xff]  ;;  %v4415_v40 = vsel %vm4406_vm8, %v4350_v61, %v9495_v46 }
 0x487   :  { %3753 = vrot.lane.b32.xlu0 %v1998_v50, %s6594_s24  ;;  %v4351_v43 = vsel %vm4341_vm7, %v4286_v19, %v12641_v36  ;;  %v12650_v19 = vld [vmem:[#allocation188_spill] sm:$0xff] }
 0x488   :  { %v3968_v44 = vpop.permute.xlu1 %3967  ;;  %v4416_v50 = vsel %vm4406_vm8, %v4351_v43, %v9508_v62  ;;  %v12642_v62 = vld [vmem:[#allocation224_spill] sm:$0xff] }
 0x489   :  { %v3462_v39 = vpop.permute.xlu0 %3461  ;;  %v4608_v42 = vsel %vm4601_vm11, %v4543_v7, %v3968_v44 }
 0x48a   :  { %3751 = vrot.lane.b32.xlu1 %v1997_v0, %s6594_s24  ;;  %6407 = vmatprep.mubr.msk.f32.mxu1 %vm4682_vm12, %v4608_v42  ;;  %v4481_v53 = vsel %vm4471_vm10, %v4416_v50, %v3462_v39  ;;  %v1999_v42 = vld [vmem:[#allocation2 + $0x181] sm:$0xff] }
 0x48b   :  { %4009 = vrot.lane.b32.xlu0 %v12632_v45, %s6595_s25  ;;  %6408 = vmatmul.mubr.msk.f32.gmra.mxu1 %vm4682_vm12, %v4609_v56  ;;  %v1938_v56 = vld [vmem:[#allocation2 + $0x1a0] sm:$0xff] }
 0x48c   :  { %v3460_v8 = vpop.permute.xlu1 %3459 }
 0x48d   :  { %v3718_v20 = vpop.permute.xlu0 %3717  ;;  %v4480_v63 = vsel %vm4471_vm10, %v4415_v40, %v3460_v8  ;;  %v6534_v8 = vld [vmem:[#allocation2 + $0x78] sm:$0xff] }
 0x48e   :  { %4007 = vrot.lane.b32.xlu1 %v12634_v37, %s6595_s25  ;;  %v4546_v44 = vsel %vm4536_vm9, %v4481_v53, %v3718_v20  ;;  %v12643_v20 = vld [vmem:[#allocation3_spill] sm:$0xff] }
 0x48f   :  { %3501 = vrot.lane.b32.xlu0 %v1936_v16, %s6593_s19  ;;  %v4157_v58 = vsel %vm826_vm2, %v6534_v8, %v12643_v20  ;;  %v12645_v16 = vld [vmem:[#allocation7_spill] sm:$0xff]  ;;  %v12653_v8 = vld [vmem:[#allocation9_spill] sm:$0xff] }
 0x490   :  { %v3716_v14 = vpop.permute.xlu1 %3715  ;;  %v4158_v37 = vsel %vm826_vm2, %v6535_v15, %v12645_v16  ;;  %v4222_v6 = vsel %vm4211_vm5, %v4157_v58, %v12646_v10  ;;  %v12654_v58 = vld [vmem:[#allocation72_spill] sm:$0xff]  ;;  %v12655_v15 = vld [vmem:[#allocation75_spill] sm:$0xff] }
 0x491   :  { %v3974_v52 = vpop.permute.xlu0 %3973  ;;  %v4545_v11 = vsel %vm4536_vm9, %v4480_v63, %v3716_v14  ;;  %v4223_v26 = vsel %vm4211_vm5, %v4158_v37, %v12647_v38  ;;  %v4287_v41 = vsel %vm4276_vm6, %v4222_v6, %v12648_v24  ;;  %v12649_v14 = vld [vmem:[#allocation131_spill] sm:$0xff]  ;;  %v12656_v37 = vld [vmem:[#allocation130_spill] sm:$0xff] }
 0x492   :  { %3499 = vrot.lane.b32.xlu1 %v1935_v49, %s6593_s19  ;;  %v4611_v0 = vsel %vm4601_vm11, %v4546_v44, %v3974_v52  ;;  %v4288_v34 = vsel %vm4276_vm6, %v4223_v26, %v12649_v14  ;;  %v4352_v29 = vsel %vm4341_vm7, %v4287_v41, %v12650_v19  ;;  %v12651_v52 = vld [vmem:[#allocation191_spill] sm:$0xff]  ;;  %v12658_v26 = vld [vmem:[#allocation190_spill] sm:$0xff]  ;;  %v2004_v19 = vld [vmem:[#allocation2 + $0x1e9] sm:$0xff] }
 0x493   :  { %3757 = vrot.lane.b32.xlu0 %v2000_v13, %s6594_s24  ;;  %v4353_v49 = vsel %vm4341_vm7, %v4288_v34, %v12651_v52  ;;  %v4417_v36 = vsel %vm4406_vm8, %v4352_v29, %v9502_v25  ;;  %v2001_v13 = vld [vmem:[#allocation2 + $0x199] sm:$0xff] }
 0x494   :  { %v3972_v7 = vpop.permute.xlu1 %3971  ;;  %v4418_v43 = vsel %vm4406_vm8, %v4353_v49, %v9515_v31  ;;  %v2065_v31 = vld [vmem:[#allocation2 + $0x19a] sm:$0xff] }
 0x495   :  { %v3466_v12 = vpop.permute.xlu0 %3465  ;;  %v4610_v46 = vsel %vm4601_vm11, %v4545_v11, %v3972_v7  ;;  %v2066_v11 = vld [vmem:[#allocation2 + $0x1a2] sm:$0xff] }
 0x496   :  { %3755 = vrot.lane.b32.xlu1 %v1999_v42, %s6594_s24  ;;  %6410 = vmatprep.mubr.msk.f32.mxu1 %vm4682_vm12, %v4610_v46  ;;  %v4483_v50 = vsel %vm4471_vm10, %v4418_v43, %v3466_v12 }
 0x497   :  { %4013 = vrot.lane.b32.xlu0 %v12642_v62, %s6595_s25  ;;  %6411 = vmatmul.mubr.msk.f32.gmra.mxu1 %vm4682_vm12, %v4611_v0  ;;  %v6536_v0 = vld [vmem:[#allocation2 + $0x90] sm:$0xff]  ;;  %v12652_v62 = vld [vmem:[#allocation4_spill] sm:$0xff] }
 0x498   :  { %v3464_v39 = vpop.permute.xlu1 %3463 }
 0x499   :  { %v3722_v45 = vpop.permute.xlu0 %3721  ;;  %v4482_v40 = vsel %vm4471_vm10, %v4417_v36, %v3464_v39  ;;  %v4159_v39 = vsel %vm826_vm2, %v6536_v0, %v12652_v62  ;;  %v12664_v0 = vld [vmem:[#allocation74_spill] sm:$0xff] }
 0x49a   :  { %4011 = vrot.lane.b32.xlu1 %v12644_v59, %s6595_s25  ;;  %v4548_v7 = vsel %vm4536_vm9, %v4483_v50, %v3722_v45  ;;  %v6537_v45 = vld [vmem:[#allocation2 + $0x98] sm:$0xff]  ;;  %v4224_v59 = vsel %vm4211_vm5, %v4159_v39, %v12654_v58  ;;  %v12665_v39 = vld [vmem:[#allocation77_spill] sm:$0xff]  ;;  %v12667_v58 = vld [vmem:[#allocation135_spill] sm:$0xff] }
 0x49b   :  { %3505 = vrot.lane.b32.xlu0 %v1938_v56, %s6593_s19  ;;  %v1940_v56 = vld [vmem:[#allocation2 + $0x1e8] sm:$0xff]  ;;  %v4160_v20 = vsel %vm826_vm2, %v6537_v45, %v12653_v8  ;;  %v4289_v10 = vsel %vm4276_vm6, %v4224_v59, %v12656_v37 }
 0x49c   :  { %v3720_v27 = vpop.permute.xlu1 %3719  ;;  %v4225_v16 = vsel %vm4211_vm5, %v4160_v20, %v12655_v15  ;;  %v4354_v24 = vsel %vm4341_vm7, %v4289_v10, %v12658_v26  ;;  %v12666_v45 = vld [vmem:[#allocation132_spill] sm:$0xff]  ;;  %v1941_v10 = vld [vmem:[#allocation2 + $0x1f8] sm:$0xff] }
 0x49d   :  { %v3978_v61 = vpop.permute.xlu0 %3977  ;;  %v4547_v63 = vsel %vm4536_vm9, %v4482_v40, %v3720_v27  ;;  %v1939_v27 = vld [vmem:[#allocation2 + $0x1e0] sm:$0xff]  ;;  %v4419_v34 = vsel %vm4406_vm8, %v4354_v24, %v9510_v60  ;;  %v12668_v15 = vld [vmem:[#allocation192_spill] sm:$0xff] }
 0x49e   :  { %3503 = vrot.lane.b32.xlu1 %v1937_v47, %s6593_s19  ;;  %v4613_v46 = vsel %vm4601_vm11, %v4548_v7, %v3978_v61  ;;  %v12657_v47 = vld [vmem:[#allocation133_spill] sm:$0xff]  ;;  %v12661_v7 = vld [vmem:[#allocation6_spill] sm:$0xff]  ;;  %v2006_v26 = vld [vmem:[#allocation2 + $0x201] sm:$0xff] }
 0x49f   :  { %3761 = vrot.lane.b32.xlu0 %v2002_v54, %s6594_s24  ;;  %v4290_v38 = vsel %vm4276_vm6, %v4225_v16, %v12657_v47  ;;  %v12659_v54 = vld [vmem:[#allocation193_spill] sm:$0xff] }
 0x4a0   :  { %v3976_v53 = vpop.permute.xlu1 %3975  ;;  %v4355_v14 = vsel %vm4341_vm7, %v4290_v38, %v12659_v54 }
 0x4a1   :  { %v3470_v44 = vpop.permute.xlu0 %3469  ;;  %v4612_v25 = vsel %vm4601_vm11, %v4547_v63, %v3976_v53  ;;  %v4420_v29 = vsel %vm4406_vm8, %v4355_v14, %v9522_v48  ;;  %v12660_v48 = vld [vmem:[#allocation230_spill] sm:$0xff] }
 0x4a2   :  { %3759 = vrot.lane.b32.xlu1 %v2001_v13, %s6594_s24  ;;  %6413 = vmatprep.mubr.msk.f32.mxu1 %vm4682_vm12, %v4612_v25  ;;  %v4485_v52 = vsel %vm4471_vm10, %v4420_v29, %v3470_v44  ;;  %v2003_v13 = vld [vmem:[#allocation2 + $0x1e1] sm:$0xff]  ;;  %v2005_v29 = vld [vmem:[#allocation2 + $0x1f9] sm:$0xff] }
 0x4a3   :  { %4017 = vrot.lane.b32.xlu0 %v2066_v11, %s6595_s25  ;;  %6414 = vmatmul.mubr.msk.f32.gmra.mxu1 %vm4682_vm12, %v4613_v46  ;;  %v6538_v11 = vld [vmem:[#allocation2 + $0xa8] sm:$0xff]  ;;  %v1942_v25 = vld [vmem:[#allocation2 + $0x200] sm:$0xff]  ;;  %v12662_v46 = vld [vmem:[#allocation225_spill] sm:$0xff] }
 0x4a4   :  { %v3468_v12 = vpop.permute.xlu1 %3467  ;;  %v4161_v44 = vsel %vm826_vm2, %v6538_v11, %v12661_v7  ;;  %v12674_v7 = vld [vmem:[#allocation79_spill] sm:$0xff] }
 0x4a5   :  { %v3726_v42 = vpop.permute.xlu0 %3725  ;;  %v4484_v61 = vsel %vm4471_vm10, %v4419_v34, %v3468_v12  ;;  %v12663_v12 = vld [vmem:[#allocation11_spill] sm:$0xff]  ;;  %v4226_v62 = vsel %vm4211_vm5, %v4161_v44, %v12664_v0  ;;  %v12677_v0 = vld [vmem:[#allocation194_spill] sm:$0xff] }
 0x4a6   :  { %4015 = vrot.lane.b32.xlu1 %v2065_v31, %s6595_s25  ;;  %v4550_v43 = vsel %vm4536_vm9, %v4485_v52, %v3726_v42  ;;  %v6539_v31 = vld [vmem:[#allocation2 + $0xb0] sm:$0xff]  ;;  %v4291_v8 = vsel %vm4276_vm6, %v4226_v62, %v12666_v45 }
 0x4a7   :  { %3509 = vrot.lane.b32.xlu0 %v1940_v56, %s6593_s19  ;;  %v4162_v42 = vsel %vm826_vm2, %v6539_v31, %v12663_v12  ;;  %v4356_v16 = vsel %vm4341_vm7, %v4291_v8, %v12668_v15  ;;  %v12676_v12 = vld [vmem:[#allocation137_spill] sm:$0xff] }
 0x4a8   :  { %v3724_v6 = vpop.permute.xlu1 %3723  ;;  %v4227_v56 = vsel %vm4211_vm5, %v4162_v42, %v12665_v39  ;;  %v4421_v38 = vsel %vm4406_vm8, %v4356_v16, %v9517_v55  ;;  %v12678_v45 = vld [vmem:[#allocation197_spill] sm:$0xff] }
 0x4a9   :  { %v3982_v41 = vpop.permute.xlu0 %3981  ;;  %v4549_v49 = vsel %vm4536_vm9, %v4484_v61, %v3724_v6  ;;  %v4292_v59 = vsel %vm4276_vm6, %v4227_v56, %v12667_v58  ;;  %v12669_v6 = vld [vmem:[#allocation195_spill] sm:$0xff]  ;;  %v1943_v56 = vld [vmem:[#allocation2 + $0x210] sm:$0xff] }
 0x4aa   :  { %3507 = vrot.lane.b32.xlu1 %v1939_v27, %s6593_s19  ;;  %v4615_v50 = vsel %vm4601_vm11, %v4550_v43, %v3982_v41  ;;  %v4357_v47 = vsel %vm4341_vm7, %v4292_v59, %v12669_v6  ;;  %v6540_v43 = vld [vmem:[#allocation2 + $0xc0] sm:$0xff] }
 0x4ab   :  { %3765 = vrot.lane.b32.xlu0 %v2004_v19, %s6594_s24  ;;  %v4422_v24 = vsel %vm4406_vm8, %v4357_v47, %v9530_v23  ;;  %v12670_v23 = vld [vmem:[#allocation233_spill] sm:$0xff]  ;;  %v2008_v58 = vld [vmem:[#allocation2 + $0x219] sm:$0xff] }
 0x4ac   :  { %v3980_v36 = vpop.permute.xlu1 %3979 }
 0x4ad   :  { %v3474_v40 = vpop.permute.xlu0 %3473  ;;  %v4614_v60 = vsel %vm4601_vm11, %v4549_v49, %v3980_v36  ;;  %v2069_v36 = vld [vmem:[#allocation2 + $0x1fa] sm:$0xff] }
 0x4ae   :  { %3763 = vrot.lane.b32.xlu1 %v2003_v13, %s6594_s24  ;;  %6416 = vmatprep.mubr.msk.f32.mxu1 %vm4682_vm12, %v4614_v60  ;;  %v4487_v27 = vsel %vm4471_vm10, %v4422_v24, %v3474_v40  ;;  %v12671_v40 = vld [vmem:[#allocation8_spill] sm:$0xff]  ;;  %v1944_v13 = vld [vmem:[#allocation2 + $0x218] sm:$0xff] }
 0x4af   :  { %4021 = vrot.lane.b32.xlu0 %v12660_v48, %s6595_s25  ;;  %6417 = vmatmul.mubr.msk.f32.gmra.mxu1 %vm4682_vm12, %v4615_v50  ;;  %v4163_v60 = vsel %vm826_vm2, %v6540_v43, %v12671_v40  ;;  %v6541_v50 = vld [vmem:[#allocation2 + $0xc8] sm:$0xff]  ;;  %v12672_v48 = vld [vmem:[#allocation13_spill] sm:$0xff]  ;;  %v2072_v24 = vld [vmem:[#allocation2 + $0x21a] sm:$0xff] }
 0x4b0   :  { %v3472_v63 = vpop.permute.xlu1 %3471  ;;  %v12683_v43 = vld [vmem:[#allocation136_spill] sm:$0xff] }
 0x4b1   :  { %v3730_v53 = vpop.permute.xlu0 %3729  ;;  %v4486_v41 = vsel %vm4471_vm10, %v4421_v38, %v3472_v63  ;;  %v4164_v63 = vsel %vm826_vm2, %v6541_v50, %v12672_v48  ;;  %v2007_v38 = vld [vmem:[#allocation2 + $0x211] sm:$0xff]  ;;  %v12685_v48 = vld [vmem:[#allocation196_spill] sm:$0xff] }
 0x4b2   :  { %4019 = vrot.lane.b32.xlu1 %v12662_v46, %s6595_s25  ;;  %v4552_v34 = vsel %vm4536_vm9, %v4487_v27, %v3730_v53  ;;  %v12673_v53 = vld [vmem:[#allocation76_spill] sm:$0xff]  ;;  %v4229_v44 = vsel %vm4211_vm5, %v4164_v63, %v12674_v7  ;;  %v2071_v27 = vld [vmem:[#allocation2 + $0x212] sm:$0xff] }
 0x4b3   :  { %3513 = vrot.lane.b32.xlu0 %v1942_v25, %s6593_s19  ;;  %v4228_v11 = vsel %vm4211_vm5, %v4163_v60, %v12673_v53  ;;  %v12675_v25 = vld [vmem:[#allocation134_spill] sm:$0xff]  ;;  %v4294_v42 = vsel %vm4276_vm6, %v4229_v44, %v12676_v12 }
 0x4b4   :  { %v3728_v20 = vpop.permute.xlu1 %3727  ;;  %v4293_v46 = vsel %vm4276_vm6, %v4228_v11, %v12675_v25  ;;  %v4359_v8 = vsel %vm4341_vm7, %v4294_v42, %v12678_v45  ;;  %v12686_v11 = vld [vmem:[#allocation199_spill] sm:$0xff]  ;;  %v2009_v25 = vld [vmem:[#allocation2 + $0x229] sm:$0xff] }
 0x4b5   :  { %v3986_v37 = vpop.permute.xlu0 %3985  ;;  %v4551_v54 = vsel %vm4536_vm9, %v4486_v41, %v3728_v20  ;;  %v4358_v62 = vsel %vm4341_vm7, %v4293_v46, %v12677_v0  ;;  %v4424_v59 = vsel %vm4406_vm8, %v4359_v8, %v9537_v35  ;;  %v2073_v8 = vld [vmem:[#allocation2 + $0x22a] sm:$0xff] }
 0x4b6   :  { %3511 = vrot.lane.b32.xlu1 %v1941_v10, %s6593_s19  ;;  %v4617_v61 = vsel %vm4601_vm11, %v4552_v34, %v3986_v37  ;;  %v4423_v20 = vsel %vm4406_vm8, %v4358_v62, %v9524_v9 }
 0x4b7   :  { %3769 = vrot.lane.b32.xlu0 %v2006_v26, %s6594_s24 }
 0x4b8   :  { %v3984_v14 = vpop.permute.xlu1 %3983 }
 0x4b9   :  { %v3478_v19 = vpop.permute.xlu0 %3477  ;;  %v4616_v55 = vsel %vm4601_vm11, %v4551_v54, %v3984_v14  ;;  %v6542_v54 = vld [vmem:[#allocation2 + $0xd8] sm:$0xff] }
 0x4ba   :  { %3767 = vrot.lane.b32.xlu1 %v2005_v29, %s6594_s24  ;;  %6419 = vmatprep.mubr.msk.f32.mxu1 %vm4682_vm12, %v4616_v55  ;;  %v4489_v16 = vsel %vm4471_vm10, %v4424_v59, %v3478_v19  ;;  %v12679_v14 = vld [vmem:[#allocation10_spill] sm:$0xff]  ;;  %v1945_v19 = vld [vmem:[#allocation2 + $0x228] sm:$0xff]  ;;  %v6543_v55 = vld [vmem:[#allocation2 + $0xe0] sm:$0xff] }
 0x4bb   :  { %4025 = vrot.lane.b32.xlu0 %v12670_v23, %s6595_s25  ;;  %6420 = vmatmul.mubr.msk.f32.gmra.mxu1 %vm4682_vm12, %v4617_v61  ;;  %v4165_v34 = vsel %vm826_vm2, %v6542_v54, %v12679_v14  ;;  %v12680_v29 = vld [vmem:[#allocation15_spill] sm:$0xff]  ;;  %v12681_v23 = vld [vmem:[#allocation78_spill] sm:$0xff]  ;;  %v6544_v59 = vld [vmem:[#allocation2 + $0xf0] sm:$0xff] }
 0x4bc   :  { %v3476_v52 = vpop.permute.xlu1 %3475  ;;  %v4166_v61 = vsel %vm826_vm2, %v6543_v55, %v12680_v29  ;;  %v12692_v54 = vld [vmem:[#allocation141_spill] sm:$0xff] }
 0x4bd   :  { %v3734_v49 = vpop.permute.xlu0 %3733  ;;  %v4488_v15 = vsel %vm4471_vm10, %v4423_v20, %v3476_v52  ;;  %v4230_v52 = vsel %vm4211_vm5, %v4165_v34, %v12681_v23  ;;  %v12693_v34 = vld [vmem:[#allocation198_spill] sm:$0xff]  ;;  %v12694_v29 = vld [vmem:[#allocation201_spill] sm:$0xff] }
 0x4be   :  { %4023 = vrot.lane.b32.xlu1 %v2069_v36, %s6595_s25  ;;  %v4554_v6 = vsel %vm4536_vm9, %v4489_v16, %v3734_v49  ;;  %v12682_v49 = vld [vmem:[#allocation81_spill] sm:$0xff]  ;;  %v4295_v40 = vsel %vm4276_vm6, %v4230_v52, %v12683_v43  ;;  %v1947_v52 = vld [vmem:[#allocation2 + $0x240] sm:$0xff] }
 0x4bf   :  { %3517 = vrot.lane.b32.xlu0 %v1944_v13, %s6593_s19  ;;  %v4231_v36 = vsel %vm4211_vm5, %v4166_v61, %v12682_v49  ;;  %v12684_v13 = vld [vmem:[#allocation139_spill] sm:$0xff]  ;;  %v4360_v63 = vsel %vm4341_vm7, %v4295_v40, %v12685_v48 }
 0x4c0   :  { %v3732_v31 = vpop.permute.xlu1 %3731  ;;  %v4296_v50 = vsel %vm4276_vm6, %v4231_v36, %v12684_v13  ;;  %v4425_v44 = vsel %vm4406_vm8, %v4360_v63, %v9532_v2  ;;  %v2011_v63 = vld [vmem:[#allocation2 + $0x241] sm:$0xff] }
 0x4c1   :  { %v3990_v39 = vpop.permute.xlu0 %3989  ;;  %v4553_v37 = vsel %vm4536_vm9, %v4488_v15, %v3732_v31  ;;  %v4361_v7 = vsel %vm4341_vm7, %v4296_v50, %v12686_v11  ;;  %v12687_v15 = vld [vmem:[#allocation12_spill] sm:$0xff] }
 0x4c2   :  { %3515 = vrot.lane.b32.xlu1 %v1943_v56, %s6593_s19  ;;  %v4619_v26 = vsel %vm4601_vm11, %v4554_v6, %v3990_v39  ;;  %v4426_v46 = vsel %vm4406_vm8, %v4361_v7, %v9544_v57  ;;  %v1946_v56 = vld [vmem:[#allocation2 + $0x230] sm:$0xff]  ;;  %v4167_v16 = vsel %vm826_vm2, %v6544_v59, %v12687_v15  ;;  %v1948_v11 = vld [vmem:[#allocation2 + $0x248] sm:$0xff] }
 0x4c3   :  { %3773 = vrot.lane.b32.xlu0 %v2008_v58, %s6594_s24  ;;  %v2010_v58 = vld [vmem:[#allocation2 + $0x231] sm:$0xff]  ;;  %v6546_v7 = vld [vmem:[#allocation2 + $0x108] sm:$0xff] }
 0x4c4   :  { %v3988_v10 = vpop.permute.xlu1 %3987  ;;  %v12688_v6 = vld [vmem:[#allocation17_spill] sm:$0xff] }
 0x4c5   :  { %v3482_v47 = vpop.permute.xlu0 %3481  ;;  %v4618_v9 = vsel %vm4601_vm11, %v4553_v37, %v3988_v10  ;;  %v2074_v37 = vld [vmem:[#allocation2 + $0x232] sm:$0xff] }
 0x4c6   :  { %3771 = vrot.lane.b32.xlu1 %v2007_v38, %s6594_s24  ;;  %6422 = vmatprep.mubr.msk.f32.mxu1 %vm4682_vm12, %v4618_v9  ;;  %v4491_v12 = vsel %vm4471_vm10, %v4426_v46, %v3482_v47  ;;  %v6545_v10 = vld [vmem:[#allocation2 + $0xf8] sm:$0xff]  ;;  %v12689_v9 = vld [vmem:[#allocation80_spill] sm:$0xff] }
 0x4c7   :  { %4029 = vrot.lane.b32.xlu0 %v2072_v24, %s6595_s25  ;;  %6423 = vmatmul.mubr.msk.f32.gmra.mxu1 %vm4682_vm12, %v4619_v26  ;;  %v4168_v47 = vsel %vm826_vm2, %v6545_v10, %v12688_v6  ;;  %v4232_v38 = vsel %vm4211_vm5, %v4167_v16, %v12689_v9  ;;  %v12690_v26 = vld [vmem:[#allocation83_spill] sm:$0xff]  ;;  %v2012_v16 = vld [vmem:[#allocation2 + $0x249] sm:$0xff] }
 0x4c8   :  { %v3480_v35 = vpop.permute.xlu1 %3479  ;;  %v2075_v46 = vld [vmem:[#allocation2 + $0x242] sm:$0xff] }
 0x4c9   :  { %v3738_v41 = vpop.permute.xlu0 %3737  ;;  %v4490_v31 = vsel %vm4471_vm10, %v4425_v44, %v3480_v35  ;;  %v12691_v35 = vld [vmem:[#allocation138_spill] sm:$0xff] }
 0x4ca   :  { %4027 = vrot.lane.b32.xlu1 %v2071_v27, %s6595_s25  ;;  %v4556_v62 = vsel %vm4536_vm9, %v4491_v12, %v3738_v41  ;;  %v4297_v41 = vsel %vm4276_vm6, %v4232_v38, %v12691_v35  ;;  %v12695_v44 = vld [vmem:[#allocation14_spill] sm:$0xff]  ;;  %v12696_v12 = vld [vmem:[#allocation19_spill] sm:$0xff] }
 0x4cb   :  { %3519 = vrot.lane.b32.xlu0 %v1945_v19, %s6593_s19  ;;  %v4362_v19 = vsel %vm4341_vm7, %v4297_v41, %v12693_v34 }
 0x4cc   :  { %v3736_v60 = vpop.permute.xlu1 %3735  ;;  %v4427_v23 = vsel %vm4406_vm8, %v4362_v19, %v9539_v4  ;;  %v6548_v19 = vld [vmem:[#allocation2 + $0x120] sm:$0xff] }
 0x4cd   :  { %v3994_v53 = vpop.permute.xlu0 %3993  ;;  %v4555_v42 = vsel %vm4536_vm9, %v4490_v31, %v3736_v60  ;;  %v6547_v31 = vld [vmem:[#allocation2 + $0x110] sm:$0xff] }
 0x4ce   :  { %3265 = vrot.lane.b32.xlu1 %v2072_v24, %s6592_s30  ;;  %v4621_v45 = vsel %vm4601_vm11, %v4556_v62, %v3994_v53  ;;  %v4233_v24 = vsel %vm4211_vm5, %v4168_v47, %v12690_v26  ;;  %v2076_v47 = vld [vmem:[#allocation2 + $0x24a] sm:$0xff] }
 0x4cf   :  { %3775 = vrot.lane.b32.xlu0 %v2009_v25, %s6594_s24  ;;  %v4298_v14 = vsel %vm4276_vm6, %v4233_v24, %v12692_v54  ;;  %v4169_v25 = vsel %vm826_vm2, %v6546_v7, %v12695_v44  ;;  %v1950_v7 = vld [vmem:[#allocation2 + $0x260] sm:$0xff]  ;;  %v12710_v44 = vld [vmem:[#allocation205_spill] sm:$0xff] }
 0x4d0   :  { %v3992_v0 = vpop.permute.xlu1 %3991  ;;  %v4363_v61 = vsel %vm4341_vm7, %v4298_v14, %v12694_v29  ;;  %v1949_v14 = vld [vmem:[#allocation2 + $0x258] sm:$0xff] }
 0x4d1   :  { %v3486_v39 = vpop.permute.xlu0 %3485  ;;  %v4620_v2 = vsel %vm4601_vm11, %v4555_v42, %v3992_v0  ;;  %v4428_v49 = vsel %vm4406_vm8, %v4363_v61, %v9551_v32  ;;  %v4170_v42 = vsel %vm826_vm2, %v6547_v31, %v12696_v12  ;;  %v12697_v0 = vld [vmem:[#allocation82_spill] sm:$0xff] }
 0x4d2   :  { %3521 = vrot.lane.b32.xlu1 %v1946_v56, %s6593_s19  ;;  %6425 = vmatprep.mubr.msk.f32.mxu1 %vm4682_vm12, %v4620_v2  ;;  %v4493_v43 = vsel %vm4471_vm10, %v4428_v49, %v3486_v39  ;;  %v4234_v62 = vsel %vm4211_vm5, %v4169_v25, %v12697_v0  ;;  %v12698_v39 = vld [vmem:[#allocation85_spill] sm:$0xff]  ;;  %v12699_v56 = vld [vmem:[#allocation140_spill] sm:$0xff]  ;;  %v2013_v61 = vld [vmem:[#allocation2 + $0x259] sm:$0xff] }
 0x4d3   :  { %4031 = vrot.lane.b32.xlu0 %v2073_v8, %s6595_s25  ;;  %6426 = vmatmul.mubr.msk.f32.gmra.mxu1 %vm4682_vm12, %v4621_v45  ;;  %v4235_v2 = vsel %vm4211_vm5, %v4170_v42, %v12698_v39  ;;  %v4299_v45 = vsel %vm4276_vm6, %v4234_v62, %v12699_v56  ;;  %v2077_v31 = vld [vmem:[#allocation2 + $0x25a] sm:$0xff] }
 0x4d4   :  { %v3484_v57 = vpop.permute.xlu1 %3483 }
 0x4d5   :  { %v3742_v20 = vpop.permute.xlu0 %3741  ;;  %v4492_v36 = vsel %vm4471_vm10, %v4427_v23, %v3484_v57  ;;  %v12700_v57 = vld [vmem:[#allocation143_spill] sm:$0xff]  ;;  %v6549_v23 = vld [vmem:[#allocation2 + $0x128] sm:$0xff] }
 0x4d6   :  { %3777 = vrot.lane.b32.xlu1 %v2010_v58, %s6594_s24  ;;  %v4558_v13 = vsel %vm4536_vm9, %v4493_v43, %v3742_v20  ;;  %v4300_v20 = vsel %vm4276_vm6, %v4235_v2, %v12700_v57  ;;  %v12701_v58 = vld [vmem:[#allocation200_spill] sm:$0xff] }
 0x4d7   :  { %4033 = vrot.lane.b32.xlu0 %v2074_v37, %s6595_s25  ;;  %v4364_v59 = vsel %vm4341_vm7, %v4299_v45, %v12701_v58  ;;  %v2014_v45 = vld [vmem:[#allocation2 + $0x261] sm:$0xff]  ;;  %v6550_v58 = vld [vmem:[#allocation2 + $0x138] sm:$0xff] }
 0x4d8   :  { %v3740_v27 = vpop.permute.xlu1 %3739  ;;  %v4429_v6 = vsel %vm4406_vm8, %v4364_v59, %v9546_v30  ;;  %v2078_v57 = vld [vmem:[#allocation2 + $0x262] sm:$0xff] }
 0x4d9   :  { %v3998_v55 = vpop.permute.xlu0 %3997  ;;  %v4557_v40 = vsel %vm4536_vm9, %v4492_v36, %v3740_v27  ;;  %v12705_v36 = vld [vmem:[#allocation84_spill] sm:$0xff] }
 0x4da   :  { %3267 = vrot.lane.b32.xlu1 %v2073_v8, %s6592_s30  ;;  %v4623_v48 = vsel %vm4601_vm11, %v4558_v13, %v3998_v55  ;;  %v12703_v55 = vld [vmem:[#allocation16_spill] sm:$0xff]  ;;  %v12707_v13 = vld [vmem:[#allocation142_spill] sm:$0xff] }
 0x4db   :  { %3523 = vrot.lane.b32.xlu0 %v1947_v52, %s6593_s19  ;;  %v4171_v29 = vsel %vm826_vm2, %v6548_v19, %v12703_v55  ;;  %v12704_v52 = vld [vmem:[#allocation29_spill] sm:$0xff]  ;;  %v12711_v59 = vld [vmem:[#allocation28_spill] sm:$0xff] }
 0x4dc   :  { %v3996_v60 = vpop.permute.xlu1 %3995  ;;  %v4172_v49 = vsel %vm826_vm2, %v6549_v23, %v12704_v52  ;;  %v4236_v43 = vsel %vm4211_vm5, %v4171_v29, %v12705_v36  ;;  %v2015_v29 = vld [vmem:[#allocation2 + $0x271] sm:$0xff] }
 0x4dd   :  { %v3490_v50 = vpop.permute.xlu0 %3489  ;;  %v4622_v4 = vsel %vm4601_vm11, %v4557_v40, %v3996_v60  ;;  %v12706_v40 = vld [vmem:[#allocation87_spill] sm:$0xff] }
 0x4de   :  { %3269 = vrot.lane.b32.xlu1 %v2074_v37, %s6592_s30  ;;  %6428 = vmatprep.mubr.msk.f32.mxu1 %vm4682_vm12, %v4622_v4  ;;  %v12702_v37 = vld [vmem:[#allocation203_spill] sm:$0xff]  ;;  %v4237_v60 = vsel %vm4211_vm5, %v4172_v49, %v12706_v40 }
 0x4df   :  { %3779 = vrot.lane.b32.xlu0 %v2011_v63, %s6594_s24  ;;  %6429 = vmatmul.mubr.msk.f32.gmra.mxu1 %vm4682_vm12, %v4623_v48  ;;  %v4365_v10 = vsel %vm4341_vm7, %v4300_v20, %v12702_v37  ;;  %v12708_v48 = vld [vmem:[#allocation145_spill] sm:$0xff]  ;;  %v6551_v37 = vld [vmem:[#allocation2 + $0x140] sm:$0xff] }
 0x4e0   :  { %v3488_v32 = vpop.permute.xlu1 %3487  ;;  %v4430_v9 = vsel %vm4406_vm8, %v4365_v10, %v9558_v1  ;;  %v4302_v63 = vsel %vm4276_vm6, %v4237_v60, %v12708_v48  ;;  %v12712_v10 = vld [vmem:[#allocation31_spill] sm:$0xff]  ;;  %v1952_v60 = vld [vmem:[#allocation2 + $0x278] sm:$0xff] }
 0x4e1   :  { %v3746_v53 = vpop.permute.xlu0 %3745  ;;  %v4494_v38 = vsel %vm4471_vm10, %v4429_v6, %v3488_v32  ;;  %v4495_v26 = vsel %vm4471_vm10, %v4430_v9, %v3490_v50  ;;  %v4301_v50 = vsel %vm4276_vm6, %v4236_v43, %v12707_v13  ;;  %v12709_v32 = vld [vmem:[#allocation202_spill] sm:$0xff]  ;;  %v4367_v25 = vsel %vm4341_vm7, %v4302_v63, %v12710_v44  ;;  %v6552_v63 = vld [vmem:[#allocation2 + $0x150] sm:$0xff] }
 0x4e2   :  { %3525 = vrot.lane.b32.xlu1 %v1948_v11, %s6593_s19  ;;  %v4560_v41 = vsel %vm4536_vm9, %v4495_v26, %v3746_v53  ;;  %v4366_v53 = vsel %vm4341_vm7, %v4301_v50, %v12709_v32  ;;  %v4432_v12 = vsel %vm4406_vm8, %v4367_v25, %v9564_v5  ;;  %v4174_v6 = vsel %vm826_vm2, %v6551_v37, %v12712_v10  ;;  %v2079_v50 = vld [vmem:[#allocation2 + $0x272] sm:$0xff] }
 0x4e3   :  { %4035 = vrot.lane.b32.xlu0 %v2075_v46, %s6595_s25  ;;  %v2016_v48 = vld [vmem:[#allocation2 + $0x279] sm:$0xff]  ;;  %v12720_v44 = vld [vmem:[#allocation33_spill] sm:$0xff] }
 0x4e4   :  { %v3744_v8 = vpop.permute.xlu1 %3743  ;;  %v12719_v32 = vld [vmem:[#allocation30_spill] sm:$0xff] }
 0x4e5   :  { %v4002_v15 = vpop.permute.xlu0 %4001  ;;  %v4559_v24 = vsel %vm4536_vm9, %v4494_v38, %v3744_v8  ;;  %v12714_v38 = vld [vmem:[#allocation89_spill] sm:$0xff] }
 0x4e6   :  { %3781 = vrot.lane.b32.xlu1 %v2012_v16, %s6594_s24  ;;  %v4625_v54 = vsel %vm4601_vm11, %v4560_v41, %v4002_v15  ;;  %v4173_v15 = vsel %vm826_vm2, %v6550_v58, %v12711_v59  ;;  %v1951_v16 = vld [vmem:[#allocation2 + $0x270] sm:$0xff]  ;;  %v4239_v26 = vsel %vm4211_vm5, %v4174_v6, %v12714_v38  ;;  %v1953_v58 = vld [vmem:[#allocation2 + $0x288] sm:$0xff] }
 0x4e7   :  { %4037 = vrot.lane.b32.xlu0 %v2076_v47, %s6595_s25  ;;  %v2017_v38 = vld [vmem:[#allocation2 + $0x289] sm:$0xff] }
 0x4e8   :  { %v4000_v35 = vpop.permute.xlu1 %3999 }
 0x4e9   :  { %v3494_v27 = vpop.permute.xlu0 %3493  ;;  %v4624_v30 = vsel %vm4601_vm11, %v4559_v24, %v4000_v35  ;;  %v12715_v24 = vld [vmem:[#allocation144_spill] sm:$0xff] }
 0x4ea   :  { %3271 = vrot.lane.b32.xlu1 %v2075_v46, %s6592_s30  ;;  %6431 = vmatprep.mubr.msk.f32.mxu1 %vm4682_vm12, %v4624_v30  ;;  %v4431_v46 = vsel %vm4406_vm8, %v4366_v53, %v9553_v51  ;;  %v4497_v0 = vsel %vm4471_vm10, %v4432_v12, %v3494_v27  ;;  %v12716_v27 = vld [vmem:[#allocation147_spill] sm:$0xff]  ;;  %v4175_v53 = vsel %vm826_vm2, %v6552_v63, %v12719_v32 }
 0x4eb   :  { %3527 = vrot.lane.b32.xlu0 %v1949_v14, %s6593_s19  ;;  %6432 = vmatmul.mubr.msk.f32.gmra.mxu1 %vm4682_vm12, %v4625_v54  ;;  %v4304_v30 = vsel %vm4276_vm6, %v4239_v26, %v12716_v27  ;;  %v12717_v54 = vld [vmem:[#allocation204_spill] sm:$0xff]  ;;  %v12722_v12 = vld [vmem:[#allocation91_spill] sm:$0xff] }
 0x4ec   :  { %v3492_v1 = vpop.permute.xlu1 %3491 }
 0x4ed   :  { %v3750_v34 = vpop.permute.xlu0 %3749  ;;  %v4496_v42 = vsel %vm4471_vm10, %v4431_v46, %v3492_v1  ;;  %v12721_v46 = vld [vmem:[#allocation88_spill] sm:$0xff] }
 0x4ee   :  { %3273 = vrot.lane.b32.xlu1 %v2076_v47, %s6592_s30  ;;  %v4562_v2 = vsel %vm4536_vm9, %v4497_v0, %v3750_v34  ;;  %v12713_v47 = vld [vmem:[#allocation86_spill] sm:$0xff]  ;;  %v12718_v34 = vld [vmem:[#allocation207_spill] sm:$0xff] }
 0x4ef   :  { %3783 = vrot.lane.b32.xlu0 %v2013_v61, %s6594_s24  ;;  %v4238_v9 = vsel %vm4211_vm5, %v4173_v15, %v12713_v47  ;;  %v4369_v19 = vsel %vm4341_vm7, %v4304_v30, %v12718_v34  ;;  %v12723_v0 = vld [vmem:[#allocation146_spill] sm:$0xff]  ;;  %v2081_v30 = vld [vmem:[#allocation2 + $0x28a] sm:$0xff] }
 0x4f0   :  { %v3748_v4 = vpop.permute.xlu1 %3747  ;;  %v4303_v35 = vsel %vm4276_vm6, %v4238_v9, %v12715_v24  ;;  %v4434_v61 = vsel %vm4406_vm8, %v4369_v19, %v9571_v17  ;;  %v1954_v24 = vld [vmem:[#allocation2 + $0x290] sm:$0xff]  ;;  %v12729_v34 = vld [vmem:[#allocation90_spill] sm:$0xff] }
 0x4f1   :  { %v4006_v11 = vpop.permute.xlu0 %4005  ;;  %v4561_v62 = vsel %vm4536_vm9, %v4496_v42, %v3748_v4  ;;  %v4368_v14 = vsel %vm4341_vm7, %v4303_v35, %v12717_v54  ;;  %v6554_v35 = vld [vmem:[#allocation2 + $0x168] sm:$0xff]  ;;  %v6555_v54 = vld [vmem:[#allocation2 + $0x170] sm:$0xff] }
 0x4f2   :  { %3529 = vrot.lane.b32.xlu1 %v1950_v7, %s6593_s19  ;;  %v4627_v8 = vsel %vm4601_vm11, %v4562_v2, %v4006_v11  ;;  %v4433_v55 = vsel %vm4406_vm8, %v4368_v14, %v9560_v28  ;;  %v2080_v11 = vld [vmem:[#allocation2 + $0x27a] sm:$0xff]  ;;  %v12724_v2 = vld [vmem:[#allocation149_spill] sm:$0xff] }
 0x4f3   :  { %4039 = vrot.lane.b32.xlu0 %v2077_v31, %s6595_s25  ;;  %v6553_v7 = vld [vmem:[#allocation2 + $0x158] sm:$0xff]  ;;  %v12728_v14 = vld [vmem:[#allocation35_spill] sm:$0xff] }
 0x4f4   :  { %v4004_v39 = vpop.permute.xlu1 %4003  ;;  %v4176_v25 = vsel %vm826_vm2, %v6553_v7, %v12720_v44  ;;  %v1554_v44 = vld [vmem:[#allocation2 + $0x1b0] sm:$0xff] }
 0x4f5   :  { %v3498_v56 = vpop.permute.xlu0 %3497  ;;  %v4626_v51 = vsel %vm4601_vm11, %v4561_v62, %v4004_v39  ;;  %v4241_v42 = vsel %vm4211_vm5, %v4176_v25, %v12722_v12 }
 0x4f6   :  { %3785 = vrot.lane.b32.xlu1 %v2014_v45, %s6594_s24  ;;  %6434 = vmatprep.mubr.msk.f32.mxu1 %vm4682_vm12, %v4626_v51  ;;  %v4499_v52 = vsel %vm4471_vm10, %v4434_v61, %v3498_v56  ;;  %v4306_v56 = vsel %vm4276_vm6, %v4241_v42, %v12724_v2  ;;  %v12725_v51 = vld [vmem:[#allocation206_spill] sm:$0xff]  ;;  %v12731_v61 = vld [vmem:[#allocation148_spill] sm:$0xff]  ;;  %v1955_v42 = vld [vmem:[#allocation2 + $0x2a0] sm:$0xff] }
 0x4f7   :  { %4041 = vrot.lane.b32.xlu0 %v2078_v57, %s6595_s25  ;;  %6435 = vmatmul.mubr.msk.f32.gmra.mxu1 %vm4682_vm12, %v4627_v8  ;;  %v12737_v2 = vld [vmem:[#allocation18_spill] sm:$0xff] }
 0x4f8   :  { %v3496_v5 = vpop.permute.xlu1 %3495 }
 0x4f9   :  { %v3754_v20 = vpop.permute.xlu0 %3753  ;;  %v4498_v23 = vsel %vm4471_vm10, %v4433_v55, %v3496_v5  ;;  %v12730_v55 = vld [vmem:[#allocation93_spill] sm:$0xff] }
 0x4fa   :  { %3275 = vrot.lane.b32.xlu1 %v2077_v31, %s6592_s30  ;;  %v4564_v43 = vsel %vm4536_vm9, %v4499_v52, %v3754_v20  ;;  %v4240_v31 = vsel %vm4211_vm5, %v4175_v53, %v12721_v46 }
 0x4fb   :  { %3531 = vrot.lane.b32.xlu0 %v1951_v16, %s6593_s19  ;;  %v4305_v62 = vsel %vm4276_vm6, %v4240_v31, %v12723_v0  ;;  %v1555_v31 = vld [vmem:[#allocation2 + $0x1b8] sm:$0xff]  ;;  %v12736_v0 = vld [vmem:[#allocation21_spill] sm:$0xff] }
 0x4fc   :  { %v3752_v41 = vpop.permute.xlu1 %3751  ;;  %v4370_v45 = vsel %vm4341_vm7, %v4305_v62, %v12725_v51  ;;  %v4179_v62 = vsel %vm826_vm2, %v1554_v44, %v12736_v0  ;;  %v12752_v44 = vld [vmem:[#allocation213_spill] sm:$0xff]  ;;  %v2021_v0 = vld [vmem:[#allocation2 + $0x2b9] sm:$0xff] }
 0x4fd   :  { %v4010_v1 = vpop.permute.xlu0 %4009  ;;  %v4563_v49 = vsel %vm4536_vm9, %v4498_v23, %v3752_v41  ;;  %v4435_v20 = vsel %vm4406_vm8, %v4370_v45, %v9566_v18  ;;  %v12727_v41 = vld [vmem:[#allocation32_spill] sm:$0xff] }
 0x4fe   :  { %3277 = vrot.lane.b32.xlu1 %v2078_v57, %s6592_s30  ;;  %v4629_v13 = vsel %vm4601_vm11, %v4564_v43, %v4010_v1  ;;  %v12726_v57 = vld [vmem:[#allocation209_spill] sm:$0xff]  ;;  %v4177_v27 = vsel %vm826_vm2, %v6554_v35, %v12727_v41  ;;  %v4178_v1 = vsel %vm826_vm2, %v6555_v54, %v12728_v14  ;;  %v12733_v43 = vld [vmem:[#allocation208_spill] sm:$0xff]  ;;  %v12745_v35 = vld [vmem:[#allocation255_spill] sm:$0xff] }
 0x4ff   :  { %3787 = vrot.lane.b32.xlu0 %v2015_v29, %s6594_s24  ;;  %v4371_v5 = vsel %vm4341_vm7, %v4306_v56, %v12726_v57  ;;  %v4242_v19 = vsel %vm4211_vm5, %v4177_v27, %v12729_v34  ;;  %v4243_v29 = vsel %vm4211_vm5, %v4178_v1, %v12730_v55  ;;  %v4180_v56 = vsel %vm826_vm2, %v1555_v31, %v12737_v2  ;;  %v2019_v45 = vld [vmem:[#allocation2 + $0x2a1] sm:$0xff]  ;;  %v2020_v55 = vld [vmem:[#allocation2 + $0x2a9] sm:$0xff] }
 0x500   :  { %v4008_v36 = vpop.permute.xlu1 %4007  ;;  %v4436_v59 = vsel %vm4406_vm8, %v4371_v5, %v9578_v21  ;;  %v4307_v23 = vsel %vm4276_vm6, %v4242_v19, %v12731_v61  ;;  %v12739_v5 = vld [vmem:[#allocation23_spill] sm:$0xff]  ;;  %v2084_v61 = vld [vmem:[#allocation2 + $0x2aa] sm:$0xff] }
 0x501   :  { %v3502_v40 = vpop.permute.xlu0 %3501  ;;  %v4628_v28 = vsel %vm4601_vm11, %v4563_v49, %v4008_v36  ;;  %v12732_v49 = vld [vmem:[#allocation151_spill] sm:$0xff] }
 0x502   :  { %3533 = vrot.lane.b32.xlu1 %v1952_v60, %s6593_s19  ;;  %6437 = vmatprep.mubr.msk.f32.mxu1 %vm4682_vm12, %v4628_v28  ;;  %v4501_v16 = vsel %vm4471_vm10, %v4436_v59, %v3502_v40  ;;  %v4308_v36 = vsel %vm4276_vm6, %v4243_v29, %v12732_v49  ;;  %v4372_v40 = vsel %vm4341_vm7, %v4307_v23, %v12733_v43  ;;  %v2018_v60 = vld [vmem:[#allocation2 + $0x291] sm:$0xff]  ;;  %v6556_v49 = vld [vmem:[#allocation2 + $0x1c8] sm:$0xff] }
 0x503   :  { %4043 = vrot.lane.b32.xlu0 %v2079_v50, %s6595_s25  ;;  %6438 = vmatmul.mubr.msk.f32.gmra.mxu1 %vm4682_vm12, %v4629_v13  ;;  %v12734_v13 = vld [vmem:[#allocation212_spill] sm:$0xff] }
 0x504   :  { %v3500_v17 = vpop.permute.xlu1 %3499 }
 0x505   :  { %v3758_v4 = vpop.permute.xlu0 %3757  ;;  %v4500_v15 = vsel %vm4471_vm10, %v4435_v20, %v3500_v17  ;;  %v4437_v17 = vsel %vm4406_vm8, %v4372_v40, %v9573_v22  ;;  %v4245_v20 = vsel %vm4211_vm5, %v4180_v56, %v12739_v5  ;;  %v1957_v40 = vld [vmem:[#allocation2 + $0x2b8] sm:$0xff]  ;;  %v1958_v5 = vld [vmem:[#allocation2 + $0x2c0] sm:$0xff] }
 0x506   :  { %3789 = vrot.lane.b32.xlu1 %v2016_v48, %s6594_s24  ;;  %v4566_v6 = vsel %vm4536_vm9, %v4501_v16, %v3758_v4  ;;  %v2082_v4 = vld [vmem:[#allocation2 + $0x292] sm:$0xff] }
 0x507   :  { %4045 = vrot.lane.b32.xlu0 %v2080_v11, %s6595_s25  ;;  %v12735_v48 = vld [vmem:[#allocation253_spill] sm:$0xff] }
 0x508   :  { %v3756_v39 = vpop.permute.xlu1 %3755  ;;  %v12741_v16 = vld [vmem:[#allocation153_spill] sm:$0xff] }
 0x509   :  { %v4014_v8 = vpop.permute.xlu0 %4013  ;;  %v4565_v37 = vsel %vm4536_vm9, %v4500_v15, %v3756_v39 }
 0x50a   :  { %3279 = vrot.lane.b32.xlu1 %v2079_v50, %s6592_s30  ;;  %v4631_v9 = vsel %vm4601_vm11, %v4566_v6, %v4014_v8  ;;  %v4373_v50 = vsel %vm4341_vm7, %v4308_v36, %v12734_v13  ;;  %v12738_v8 = vld [vmem:[#allocation20_spill] sm:$0xff]  ;;  %v12746_v36 = vld [vmem:[#allocation34_spill] sm:$0xff] }
 0x50b   :  { %3535 = vrot.lane.b32.xlu0 %v1953_v58, %s6593_s19  ;;  %v4438_v63 = vsel %vm4406_vm8, %v4373_v50, %v12735_v48  ;;  %v4244_v57 = vsel %vm4211_vm5, %v4179_v62, %v12738_v8  ;;  %v12740_v58 = vld [vmem:[#allocation150_spill] sm:$0xff]  ;;  %v4181_v43 = vsel %vm826_vm2, %v6556_v49, %v12746_v36  ;;  %v12748_v50 = vld [vmem:[#allocation92_spill] sm:$0xff] }
 0x50c   :  { %v4012_v10 = vpop.permute.xlu1 %4011  ;;  %v4309_v59 = vsel %vm4276_vm6, %v4244_v57, %v12740_v58  ;;  %v2085_v58 = vld [vmem:[#allocation2 + $0x2ba] sm:$0xff] }
 0x50d   :  { %v3506_v47 = vpop.permute.xlu0 %3505  ;;  %v4630_v18 = vsel %vm4601_vm11, %v4565_v37, %v4012_v10  ;;  %v4310_v37 = vsel %vm4276_vm6, %v4245_v20, %v12741_v16  ;;  %v12742_v10 = vld [vmem:[#allocation210_spill] sm:$0xff]  ;;  %v6558_v16 = vld [vmem:[#allocation2 + $0x1e0] sm:$0xff] }
 0x50e   :  { %3281 = vrot.lane.b32.xlu1 %v2080_v11, %s6592_s30  ;;  %6440 = vmatprep.mubr.msk.f32.mxu1 %vm4682_vm12, %v4630_v18  ;;  %v4503_v53 = vsel %vm4471_vm10, %v4438_v63, %v3506_v47  ;;  %v4374_v6 = vsel %vm4341_vm7, %v4309_v59, %v12742_v10  ;;  %v1956_v18 = vld [vmem:[#allocation2 + $0x2a8] sm:$0xff] }
 0x50f   :  { %3791 = vrot.lane.b32.xlu0 %v2017_v38, %s6594_s24  ;;  %6441 = vmatmul.mubr.msk.f32.gmra.mxu1 %vm4682_vm12, %v4631_v9  ;;  %v12743_v9 = vld [vmem:[#allocation215_spill] sm:$0xff]  ;;  %v12750_v63 = vld [vmem:[#allocation152_spill] sm:$0xff] }
 0x510   :  { %v3504_v21 = vpop.permute.xlu1 %3503  ;;  %v4375_v38 = vsel %vm4341_vm7, %v4310_v37, %v12743_v9  ;;  %v12755_v37 = vld [vmem:[#allocation36_spill] sm:$0xff] }
 0x511   :  { %v3762_v26 = vpop.permute.xlu0 %3761  ;;  %v4502_v32 = vsel %vm4471_vm10, %v4437_v17, %v3504_v21  ;;  %v12744_v21 = vld [vmem:[#allocation252_spill] sm:$0xff]  ;;  %v4440_v41 = vsel %vm4406_vm8, %v4375_v38, %v12745_v35  ;;  %v4246_v17 = vsel %vm4211_vm5, %v4181_v43, %v12748_v50  ;;  %v4183_v10 = vsel %vm826_vm2, %v6558_v16, %v12755_v37  ;;  %v12757_v38 = vld [vmem:[#allocation94_spill] sm:$0xff] }
 0x512   :  { %3537 = vrot.lane.b32.xlu1 %v1954_v24, %s6593_s19  ;;  %v4568_v25 = vsel %vm4536_vm9, %v4503_v53, %v3762_v26  ;;  %v4439_v26 = vsel %vm4406_vm8, %v4374_v6, %v12744_v21  ;;  %v2083_v24 = vld [vmem:[#allocation2 + $0x2a2] sm:$0xff]  ;;  %v4248_v21 = vsel %vm4211_vm5, %v4183_v10, %v12757_v38  ;;  %v12759_v35 = vld [vmem:[#allocation154_spill] sm:$0xff] }
 0x513   :  { %4047 = vrot.lane.b32.xlu0 %v2081_v30, %s6595_s25  ;;  %v2086_v6 = vld [vmem:[#allocation2 + $0x2c2] sm:$0xff]  ;;  %v2088_v16 = vld [vmem:[#allocation2 + $0x2da] sm:$0xff] }
 0x514   :  { %v3760_v52 = vpop.permute.xlu1 %3759 }
 0x515   :  { %v4018_v28 = vpop.permute.xlu0 %4017  ;;  %v4567_v11 = vsel %vm4536_vm9, %v4502_v32, %v3760_v52  ;;  %v4311_v32 = vsel %vm4276_vm6, %v4246_v17, %v12750_v63  ;;  %v2023_v17 = vld [vmem:[#allocation2 + $0x2d1] sm:$0xff]  ;;  %v12765_v63 = vld [vmem:[#allocation96_spill] sm:$0xff] }
 0x516   :  { %3793 = vrot.lane.b32.xlu1 %v2018_v60, %s6594_s24  ;;  %v4633_v12 = vsel %vm4601_vm11, %v4568_v25, %v4018_v28  ;;  %v6557_v28 = vld [vmem:[#allocation2 + $0x1d0] sm:$0xff]  ;;  %v4376_v25 = vsel %vm4341_vm7, %v4311_v32, %v12752_v44 }
 0x517   :  { %4049 = vrot.lane.b32.xlu0 %v2082_v4, %s6595_s25  ;;  %v12747_v60 = vld [vmem:[#allocation37_spill] sm:$0xff] }
 0x518   :  { %v4016_v7 = vpop.permute.xlu1 %4015  ;;  %v4182_v13 = vsel %vm826_vm2, %v6557_v28, %v12747_v60 }
 0x519   :  { %v3510_v46 = vpop.permute.xlu0 %3509  ;;  %v4632_v22 = vsel %vm4601_vm11, %v4567_v11, %v4016_v7  ;;  %v12751_v11 = vld [vmem:[#allocation155_spill] sm:$0xff] }
 0x51a   :  { %3283 = vrot.lane.b32.xlu1 %v2081_v30, %s6592_s30  ;;  %6443 = vmatprep.mubr.msk.f32.mxu1 %vm4682_vm12, %v4632_v22  ;;  %v4505_v30 = vsel %vm4471_vm10, %v4440_v41, %v3510_v46  ;;  %v12753_v22 = vld [vmem:[#allocation219_spill] sm:$0xff]  ;;  %v4313_v41 = vsel %vm4276_vm6, %v4248_v21, %v12759_v35 }
 0x51b   :  { %3539 = vrot.lane.b32.xlu0 %v1955_v42, %s6593_s19  ;;  %6444 = vmatmul.mubr.msk.f32.gmra.mxu1 %vm4682_vm12, %v4633_v12  ;;  %v12754_v12 = vld [vmem:[#allocation254_spill] sm:$0xff] }
 0x51c   :  { %v3508_v39 = vpop.permute.xlu1 %3507  ;;  %v4441_v42 = vsel %vm4406_vm8, %v4376_v25, %v12754_v12  ;;  %v1960_v25 = vld [vmem:[#allocation2 + $0x2d8] sm:$0xff]  ;;  %v6561_v12 = vld [vmem:[#allocation2 + $0x200] sm:$0xff] }
 0x51d   :  { %v3766_v51 = vpop.permute.xlu0 %3765  ;;  %v4504_v27 = vsel %vm4471_vm10, %v4439_v26, %v3508_v39  ;;  %v12758_v26 = vld [vmem:[#allocation97_spill] sm:$0xff] }
 0x51e   :  { %3285 = vrot.lane.b32.xlu1 %v2082_v4, %s6592_s30  ;;  %v4570_v1 = vsel %vm4536_vm9, %v4505_v30, %v3766_v51  ;;  %v12749_v4 = vld [vmem:[#allocation95_spill] sm:$0xff]  ;;  %v12760_v30 = vld [vmem:[#allocation157_spill] sm:$0xff] }
 0x51f   :  { %3795 = vrot.lane.b32.xlu0 %v2019_v45, %s6594_s24  ;;  %v4247_v48 = vsel %vm4211_vm5, %v4182_v13, %v12749_v4  ;;  %v12764_v4 = vld [vmem:[#allocation38_spill] sm:$0xff] }
 0x520   :  { %v3764_v15 = vpop.permute.xlu1 %3763  ;;  %v4312_v7 = vsel %vm4276_vm6, %v4247_v48, %v12751_v11  ;;  %v12766_v11 = vld [vmem:[#allocation156_spill] sm:$0xff] }
 0x521   :  { %v4022_v47 = vpop.permute.xlu0 %4021  ;;  %v4569_v54 = vsel %vm4536_vm9, %v4504_v27, %v3764_v15  ;;  %v4377_v31 = vsel %vm4341_vm7, %v4312_v7, %v12753_v22  ;;  %v2022_v15 = vld [vmem:[#allocation2 + $0x2c1] sm:$0xff] }
 0x522   :  { %3541 = vrot.lane.b32.xlu1 %v1956_v18, %s6593_s19  ;;  %v4635_v29 = vsel %vm4601_vm11, %v4570_v1, %v4022_v47  ;;  %v4442_v62 = vsel %vm4406_vm8, %v4377_v31, %v9598_v33  ;;  %v6559_v47 = vld [vmem:[#allocation2 + $0x1e8] sm:$0xff]  ;;  %v12756_v18 = vld [vmem:[#allocation39_spill] sm:$0xff]  ;;  %v2087_v31 = vld [vmem:[#allocation2 + $0x2d2] sm:$0xff] }
 0x523   :  { %4051 = vrot.lane.b32.xlu0 %v2083_v24, %s6595_s25  ;;  %v4184_v9 = vsel %vm826_vm2, %v6559_v47, %v12756_v18 }
 0x524   :  { %v4020_v14 = vpop.permute.xlu1 %4019 }
 0x525   :  { %v3514_v34 = vpop.permute.xlu0 %3513  ;;  %v4634_v19 = vsel %vm4601_vm11, %v4569_v54, %v4020_v14  ;;  %v12761_v14 = vld [vmem:[#allocation216_spill] sm:$0xff] }
 0x526   :  { %3797 = vrot.lane.b32.xlu1 %v2020_v55, %s6594_s24  ;;  %6446 = vmatprep.mubr.msk.f32.mxu1 %vm4682_vm12, %v4634_v19  ;;  %v4507_v2 = vsel %vm4471_vm10, %v4442_v62, %v3514_v34  ;;  %v4378_v1 = vsel %vm4341_vm7, %v4313_v41, %v12761_v14  ;;  %v12762_v19 = vld [vmem:[#allocation222_spill] sm:$0xff]  ;;  %v12769_v62 = vld [vmem:[#allocation257_spill] sm:$0xff] }
 0x527   :  { %4053 = vrot.lane.b32.xlu0 %v2084_v61, %s6595_s25  ;;  %6447 = vmatmul.mubr.msk.f32.gmra.mxu1 %vm4682_vm12, %v4635_v29  ;;  %v12763_v29 = vld [vmem:[#allocation256_spill] sm:$0xff]  ;;  %v12775_v14 = vld [vmem:[#allocation158_spill] sm:$0xff] }
 0x528   :  { %v3512_v23 = vpop.permute.xlu1 %3511 }
 0x529   :  { %v3770_v52 = vpop.permute.xlu0 %3769  ;;  %v4506_v39 = vsel %vm4471_vm10, %v4441_v42, %v3512_v23  ;;  %v1959_v23 = vld [vmem:[#allocation2 + $0x2d0] sm:$0xff] }
 0x52a   :  { %3287 = vrot.lane.b32.xlu1 %v2083_v24, %s6592_s30  ;;  %v4572_v45 = vsel %vm4536_vm9, %v4507_v2, %v3770_v52  ;;  %v4249_v24 = vsel %vm4211_vm5, %v4184_v9, %v12758_v26  ;;  %v12768_v42 = vld [vmem:[#allocation41_spill] sm:$0xff]  ;;  %v12770_v2 = vld [vmem:[#allocation99_spill] sm:$0xff]  ;;  %v1961_v9 = vld [vmem:[#allocation2 + $0x2e8] sm:$0xff] }
 0x52b   :  { %3543 = vrot.lane.b32.xlu0 %v1957_v40, %s6593_s19  ;;  %v4314_v54 = vsel %vm4276_vm6, %v4249_v24, %v12760_v30  ;;  %v6562_v26 = vld [vmem:[#allocation2 + $0x210] sm:$0xff]  ;;  %v12773_v24 = vld [vmem:[#allocation40_spill] sm:$0xff] }
 0x52c   :  { %v3768_v53 = vpop.permute.xlu1 %3767  ;;  %v4379_v55 = vsel %vm4341_vm7, %v4314_v54, %v12762_v19  ;;  %v4187_v35 = vsel %vm826_vm2, %v6562_v26, %v12773_v24  ;;  %v2025_v54 = vld [vmem:[#allocation2 + $0x2e9] sm:$0xff] }
 0x52d   :  { %v4026_v46 = vpop.permute.xlu0 %4025  ;;  %v4571_v56 = vsel %vm4536_vm9, %v4506_v39, %v3768_v53  ;;  %v4444_v52 = vsel %vm4406_vm8, %v4379_v55, %v9604_v3  ;;  %v6560_v3 = vld [vmem:[#allocation2 + $0x1f8] sm:$0xff] }
 0x52e   :  { %3289 = vrot.lane.b32.xlu1 %v2084_v61, %s6592_s30  ;;  %v4637_v20 = vsel %vm4601_vm11, %v4572_v45, %v4026_v46  ;;  %v4443_v61 = vsel %vm4406_vm8, %v4378_v1, %v12763_v29  ;;  %v4185_v48 = vsel %vm826_vm2, %v6560_v3, %v12764_v4  ;;  %v12767_v46 = vld [vmem:[#allocation220_spill] sm:$0xff] }
 0x52f   :  { %3799 = vrot.lane.b32.xlu0 %v2021_v0, %s6594_s24  ;;  %v4250_v32 = vsel %vm4211_vm5, %v4185_v48, %v12765_v63  ;;  %v4186_v0 = vsel %vm826_vm2, %v6561_v12, %v12768_v42  ;;  %v2026_v48 = vld [vmem:[#allocation2 + $0x2f1] sm:$0xff]  ;;  %v12780_v63 = vld [vmem:[#allocation228_spill] sm:$0xff] }
 0x530   :  { %v4024_v51 = vpop.permute.xlu1 %4023  ;;  %v4315_v7 = vsel %vm4276_vm6, %v4250_v32, %v12766_v11  ;;  %v2090_v11 = vld [vmem:[#allocation2 + $0x2f2] sm:$0xff] }
 0x531   :  { %v3518_v8 = vpop.permute.xlu0 %3517  ;;  %v4636_v57 = vsel %vm4601_vm11, %v4571_v56, %v4024_v51  ;;  %v4380_v22 = vsel %vm4341_vm7, %v4315_v7, %v12767_v46  ;;  %v4251_v56 = vsel %vm4211_vm5, %v4186_v0, %v12770_v2  ;;  %v6564_v0 = vld [vmem:[#allocation2 + $0x228] sm:$0xff] }
 0x532   :  { %3545 = vrot.lane.b32.xlu1 %v1958_v5, %s6593_s19  ;;  %6449 = vmatprep.mubr.msk.f32.mxu1 %vm4682_vm12, %v4636_v57  ;;  %v4509_v36 = vsel %vm4471_vm10, %v4444_v52, %v3518_v8  ;;  %v4445_v39 = vsel %vm4406_vm8, %v4380_v22, %v12769_v62  ;;  %v12771_v8 = vld [vmem:[#allocation159_spill] sm:$0xff]  ;;  %v2089_v52 = vld [vmem:[#allocation2 + $0x2ea] sm:$0xff]  ;;  %v12781_v62 = vld [vmem:[#allocation42_spill] sm:$0xff] }
 0x533   :  { %4055 = vrot.lane.b32.xlu0 %v2085_v58, %s6595_s25  ;;  %6450 = vmatmul.mubr.msk.f32.gmra.mxu1 %vm4682_vm12, %v4637_v20  ;;  %v4316_v57 = vsel %vm4276_vm6, %v4251_v56, %v12771_v8  ;;  %v12782_v56 = vld [vmem:[#allocation100_spill] sm:$0xff] }
 0x534   :  { %v3516_v33 = vpop.permute.xlu1 %3515  ;;  %v12783_v8 = vld [vmem:[#allocation160_spill] sm:$0xff] }
 0x535   :  { %v3774_v59 = vpop.permute.xlu0 %3773  ;;  %v4508_v49 = vsel %vm4471_vm10, %v4443_v61, %v3516_v33  ;;  %v12772_v33 = vld [vmem:[#allocation226_spill] sm:$0xff] }
 0x536   :  { %3801 = vrot.lane.b32.xlu1 %v2022_v15, %s6594_s24  ;;  %v4574_v28 = vsel %vm4536_vm9, %v4509_v36, %v3774_v59  ;;  %v4381_v59 = vsel %vm4341_vm7, %v4316_v57, %v12772_v33  ;;  %v12777_v36 = vld [vmem:[#allocation43_spill] sm:$0xff] }
 0x537   :  { %4057 = vrot.lane.b32.xlu0 %v2086_v6, %s6595_s25 }
 0x538   :  { %v3772_v27 = vpop.permute.xlu1 %3771 }
 0x539   :  { %v4030_v34 = vpop.permute.xlu0 %4029  ;;  %v4573_v43 = vsel %vm4536_vm9, %v4508_v49, %v3772_v27  ;;  %v12774_v27 = vld [vmem:[#allocation98_spill] sm:$0xff] }
 0x53a   :  { %3291 = vrot.lane.b32.xlu1 %v2085_v58, %s6592_s30  ;;  %v4639_v50 = vsel %vm4601_vm11, %v4574_v28, %v4030_v34  ;;  %v2024_v58 = vld [vmem:[#allocation2 + $0x2d9] sm:$0xff]  ;;  %v4252_v30 = vsel %vm4211_vm5, %v4187_v35, %v12774_v27 }
 0x53b   :  { %3547 = vrot.lane.b32.xlu0 %v1959_v23, %s6593_s19  ;;  %v4317_v1 = vsel %vm4276_vm6, %v4252_v30, %v12775_v14  ;;  %v12776_v34 = vld [vmem:[#allocation223_spill] sm:$0xff]  ;;  %v1962_v23 = vld [vmem:[#allocation2 + $0x2f0] sm:$0xff]  ;;  %v6563_v49 = vld [vmem:[#allocation2 + $0x218] sm:$0xff] }
 0x53c   :  { %v4028_v40 = vpop.permute.xlu1 %4027  ;;  %v4382_v19 = vsel %vm4341_vm7, %v4317_v1, %v12776_v34  ;;  %v12788_v27 = vld [vmem:[#allocation231_spill] sm:$0xff]  ;;  %v2092_v14 = vld [vmem:[#allocation2 + $0x30a] sm:$0xff] }
 0x53d   :  { %v3520_v60 = vpop.permute.xlu0 %3519  ;;  %v4638_v13 = vsel %vm4601_vm11, %v4573_v43, %v4028_v40  ;;  %v4188_v43 = vsel %vm826_vm2, %v6563_v49, %v12777_v36  ;;  %v12778_v40 = vld [vmem:[#allocation101_spill] sm:$0xff]  ;;  %v6566_v49 = vld [vmem:[#allocation2 + $0x240] sm:$0xff]  ;;  %v12789_v36 = vld [vmem:[#allocation44_spill] sm:$0xff] }
 0x53e   :  { %3293 = vrot.lane.b32.xlu1 %v2086_v6, %s6592_s30  ;;  %6452 = vmatprep.mubr.msk.f32.mxu1 %vm4682_vm12, %v4638_v13  ;;  %v4510_v51 = vsel %vm4471_vm10, %v4445_v39, %v3520_v60  ;;  %v4253_v28 = vsel %vm4211_vm5, %v4188_v43, %v12778_v40  ;;  %v4189_v39 = vsel %vm826_vm2, %v6564_v0, %v12781_v62 }
 0x53f   :  { %3803 = vrot.lane.b32.xlu0 %v2023_v17, %s6594_s24  ;;  %6453 = vmatmul.mubr.msk.f32.gmra.mxu1 %vm4682_vm12, %v4639_v50  ;;  %v12779_v50 = vld [vmem:[#allocation161_spill] sm:$0xff]  ;;  %v4191_v43 = vsel %vm826_vm2, %v6566_v49, %v12789_v36 }
 0x540   :  { %v3266_v53 = vpop.permute.xlu1 %3265  ;;  %v4318_v17 = vsel %vm4276_vm6, %v4253_v28, %v12779_v50  ;;  %v12790_v28 = vld [vmem:[#allocation102_spill] sm:$0xff] }
 0x541   :  { %v3776_v44 = vpop.permute.xlu0 %3775  ;;  %v4446_v37 = vsel %vm4406_vm8, %v4381_v59, %v3266_v53  ;;  %v4383_v32 = vsel %vm4341_vm7, %v4318_v17, %v12780_v63  ;;  %v12791_v50 = vld [vmem:[#allocation162_spill] sm:$0xff] }
 0x542   :  { %3549 = vrot.lane.b32.xlu1 %v1960_v25, %s6593_s19  ;;  %v4575_v5 = vsel %vm4536_vm9, %v4510_v51, %v3776_v44  ;;  %v4254_v51 = vsel %vm4211_vm5, %v4189_v39, %v12782_v56  ;;  %v12796_v56 = vld [vmem:[#allocation234_spill] sm:$0xff] }
 0x543   :  { %4059 = vrot.lane.b32.xlu0 %v2087_v31, %s6595_s25  ;;  %v4319_v57 = vsel %vm4276_vm6, %v4254_v51, %v12783_v8  ;;  %v2094_v8 = vld [vmem:[#allocation2 + $0x322] sm:$0xff] }
 0x544   :  { %v3522_v45 = vpop.permute.xlu1 %3521 }
 0x545   :  { %v4032_v20 = vpop.permute.xlu0 %4031  ;;  %v4511_v10 = vsel %vm4471_vm10, %v4446_v37, %v3522_v45  ;;  %v2027_v45 = vld [vmem:[#allocation2 + $0x301] sm:$0xff]  ;;  %v6565_v37 = vld [vmem:[#allocation2 + $0x230] sm:$0xff] }
 0x546   :  { %v4640_v15 = vsel %vm4601_vm11, %v4575_v5, %v4032_v20  ;;  %3805 = vrot.lane.b32.xlu1 %v2024_v58, %s6594_s24  ;;  %v12784_v5 = vld [vmem:[#allocation227_spill] sm:$0xff] }
 0x547   :  { %4061 = vrot.lane.b32.xlu0 %v2088_v16, %s6595_s25  ;;  %6455 = vmatprep.mubr.msk.f32.mxu1 %vm4682_vm12, %v4640_v15  ;;  %v4384_v20 = vsel %vm4341_vm7, %v4319_v57, %v12784_v5  ;;  %v1964_v15 = vld [vmem:[#allocation2 + $0x308] sm:$0xff] }
 0x548   :  { %v3778_v6 = vpop.permute.xlu1 %3777 }
 0x549   :  { %v4034_v47 = vpop.permute.xlu0 %4033  ;;  %v4576_v18 = vsel %vm4536_vm9, %v4511_v10, %v3778_v6  ;;  %v12785_v10 = vld [vmem:[#allocation45_spill] sm:$0xff] }
 0x54a   :  { %3295 = vrot.lane.b32.xlu1 %v2087_v31, %s6592_s30  ;;  %v4641_v38 = vsel %vm4601_vm11, %v4576_v18, %v4034_v47  ;;  %v1963_v31 = vld [vmem:[#allocation2 + $0x300] sm:$0xff]  ;;  %v4190_v6 = vsel %vm826_vm2, %v6565_v37, %v12785_v10  ;;  %v6568_v37 = vld [vmem:[#allocation2 + $0x258] sm:$0xff] }
 0x54b   :  { %3551 = vrot.lane.b32.xlu0 %v1961_v9, %s6593_s19  ;;  %6456 = vmatmul.mubr.msk.f32.gmra.mxu1 %vm4682_vm12, %v4641_v38  ;;  %v12786_v47 = vld [vmem:[#allocation103_spill] sm:$0xff]  ;;  %v12797_v10 = vld [vmem:[#allocation46_spill] sm:$0xff] }
 0x54c   :  { %v3268_v21 = vpop.permute.xlu1 %3267  ;;  %v4255_v18 = vsel %vm4211_vm5, %v4190_v6, %v12786_v47  ;;  %v4193_v6 = vsel %vm826_vm2, %v6568_v37, %v12797_v10  ;;  %v12811_v37 = vld [vmem:[#allocation169_spill] sm:$0xff] }
 0x54d   :  { %v3524_v41 = vpop.permute.xlu0 %3523  ;;  %v4447_v29 = vsel %vm4406_vm8, %v4382_v19, %v3268_v21  ;;  %v12787_v21 = vld [vmem:[#allocation163_spill] sm:$0xff] }
 0x54e   :  { %3297 = vrot.lane.b32.xlu1 %v2088_v16, %s6592_s30  ;;  %v4512_v60 = vsel %vm4471_vm10, %v4447_v29, %v3524_v41  ;;  %v2091_v16 = vld [vmem:[#allocation2 + $0x302] sm:$0xff]  ;;  %v4320_v26 = vsel %vm4276_vm6, %v4255_v18, %v12787_v21 }
 0x54f   :  { %3807 = vrot.lane.b32.xlu0 %v2025_v54, %s6594_s24  ;;  %v2028_v41 = vld [vmem:[#allocation2 + $0x309] sm:$0xff]  ;;  %v4385_v30 = vsel %vm4341_vm7, %v4320_v26, %v12788_v27 }
 0x550   :  { %v3270_v55 = vpop.permute.xlu1 %3269  ;;  %v12798_v18 = vld [vmem:[#allocation104_spill] sm:$0xff] }
 0x551   :  { %v3780_v61 = vpop.permute.xlu0 %3779  ;;  %v4448_v7 = vsel %vm4406_vm8, %v4383_v32, %v3270_v55  ;;  %v12799_v21 = vld [vmem:[#allocation164_spill] sm:$0xff] }
 0x552   :  { %3553 = vrot.lane.b32.xlu1 %v1962_v23, %s6593_s19  ;;  %v4577_v3 = vsel %vm4536_vm9, %v4512_v60, %v3780_v61  ;;  %v1965_v61 = vld [vmem:[#allocation2 + $0x318] sm:$0xff]  ;;  %v4256_v60 = vsel %vm4211_vm5, %v4191_v43, %v12790_v28  ;;  %v12804_v28 = vld [vmem:[#allocation236_spill] sm:$0xff] }
 0x553   :  { %4063 = vrot.lane.b32.xlu0 %v2089_v52, %s6595_s25  ;;  %v4321_v17 = vsel %vm4276_vm6, %v4256_v60, %v12791_v50  ;;  %v2096_v50 = vld [vmem:[#allocation2 + $0x33a] sm:$0xff] }
 0x554   :  { %v3526_v13 = vpop.permute.xlu1 %3525 }
 0x555   :  { %v4036_v4 = vpop.permute.xlu0 %4035  ;;  %v4513_v44 = vsel %vm4471_vm10, %v4448_v7, %v3526_v13  ;;  %v2029_v13 = vld [vmem:[#allocation2 + $0x319] sm:$0xff]  ;;  %v6567_v7 = vld [vmem:[#allocation2 + $0x248] sm:$0xff] }
 0x556   :  { %v4642_v53 = vsel %vm4601_vm11, %v4577_v3, %v4036_v4  ;;  %3809 = vrot.lane.b32.xlu1 %v2026_v48, %s6594_s24  ;;  %v12792_v3 = vld [vmem:[#allocation229_spill] sm:$0xff] }
 0x557   :  { %4065 = vrot.lane.b32.xlu0 %v2090_v11, %s6595_s25  ;;  %6458 = vmatprep.mubr.msk.f32.mxu1 %vm4682_vm12, %v4642_v53  ;;  %v4386_v4 = vsel %vm4341_vm7, %v4321_v17, %v12792_v3  ;;  %v1966_v53 = vld [vmem:[#allocation2 + $0x320] sm:$0xff] }
 0x558   :  { %v3782_v25 = vpop.permute.xlu1 %3781 }
 0x559   :  { %v4038_v46 = vpop.permute.xlu0 %4037  ;;  %v4578_v22 = vsel %vm4536_vm9, %v4513_v44, %v3782_v25  ;;  %v12793_v44 = vld [vmem:[#allocation47_spill] sm:$0xff] }
 0x55a   :  { %3299 = vrot.lane.b32.xlu1 %v2089_v52, %s6592_s30  ;;  %v4643_v12 = vsel %vm4601_vm11, %v4578_v22, %v4038_v46  ;;  %v4192_v25 = vsel %vm826_vm2, %v6567_v7, %v12793_v44  ;;  %v12794_v46 = vld [vmem:[#allocation105_spill] sm:$0xff] }
 0x55b   :  { %3555 = vrot.lane.b32.xlu0 %v1963_v31, %s6593_s19  ;;  %6459 = vmatmul.mubr.msk.f32.gmra.mxu1 %vm4682_vm12, %v4643_v12  ;;  %v4257_v22 = vsel %vm4211_vm5, %v4192_v25, %v12794_v46  ;;  %v2033_v7 = vld [vmem:[#allocation2 + $0x349] sm:$0xff] }
 0x55c   :  { %v3272_v42 = vpop.permute.xlu1 %3271  ;;  %v6570_v44 = vld [vmem:[#allocation2 + $0x270] sm:$0xff]  ;;  %v12805_v25 = vld [vmem:[#allocation48_spill] sm:$0xff] }
 0x55d   :  { %v3528_v2 = vpop.permute.xlu0 %3527  ;;  %v4449_v33 = vsel %vm4406_vm8, %v4384_v20, %v3272_v42  ;;  %v12795_v42 = vld [vmem:[#allocation165_spill] sm:$0xff]  ;;  %v4195_v46 = vsel %vm826_vm2, %v6570_v44, %v12805_v25 }
 0x55e   :  { %3301 = vrot.lane.b32.xlu1 %v2090_v11, %s6592_s30  ;;  %v4514_v9 = vsel %vm4471_vm10, %v4449_v33, %v3528_v2  ;;  %v2093_v11 = vld [vmem:[#allocation2 + $0x31a] sm:$0xff]  ;;  %v4322_v0 = vsel %vm4276_vm6, %v4257_v22, %v12795_v42 }
 0x55f   :  { %3811 = vrot.lane.b32.xlu0 %v2027_v45, %s6594_s24  ;;  %v2030_v2 = vld [vmem:[#allocation2 + $0x321] sm:$0xff]  ;;  %v4387_v51 = vsel %vm4341_vm7, %v4322_v0, %v12796_v56  ;;  %v12807_v42 = vld [vmem:[#allocation166_spill] sm:$0xff] }
 0x560   :  { %v3274_v58 = vpop.permute.xlu1 %3273 }
 0x561   :  { %v3784_v59 = vpop.permute.xlu0 %3783  ;;  %v4450_v1 = vsel %vm4406_vm8, %v4385_v30, %v3274_v58 }
 0x562   :  { %3557 = vrot.lane.b32.xlu1 %v1964_v15, %s6593_s19  ;;  %v4579_v24 = vsel %vm4536_vm9, %v4514_v9, %v3784_v59  ;;  %v1967_v59 = vld [vmem:[#allocation2 + $0x330] sm:$0xff]  ;;  %v4258_v9 = vsel %vm4211_vm5, %v4193_v6, %v12798_v18  ;;  %v12812_v18 = vld [vmem:[#allocation238_spill] sm:$0xff] }
 0x563   :  { %4067 = vrot.lane.b32.xlu0 %v2091_v16, %s6595_s25  ;;  %v4323_v26 = vsel %vm4276_vm6, %v4258_v9, %v12799_v21 }
 0x564   :  { %v3530_v38 = vpop.permute.xlu1 %3529 }
 0x565   :  { %v4040_v35 = vpop.permute.xlu0 %4039  ;;  %v4515_v34 = vsel %vm4471_vm10, %v4450_v1, %v3530_v38  ;;  %v2031_v38 = vld [vmem:[#allocation2 + $0x331] sm:$0xff]  ;;  %v6569_v1 = vld [vmem:[#allocation2 + $0x260] sm:$0xff] }
 0x566   :  { %v4644_v54 = vsel %vm4601_vm11, %v4579_v24, %v4040_v35  ;;  %3813 = vrot.lane.b32.xlu1 %v2028_v41, %s6594_s24  ;;  %v12800_v24 = vld [vmem:[#allocation232_spill] sm:$0xff] }
 0x567   :  { %4069 = vrot.lane.b32.xlu0 %v2092_v14, %s6595_s25  ;;  %6461 = vmatprep.mubr.msk.f32.mxu1 %vm4682_vm12, %v4644_v54  ;;  %v4388_v35 = vsel %vm4341_vm7, %v4323_v26, %v12800_v24  ;;  %v1968_v54 = vld [vmem:[#allocation2 + $0x338] sm:$0xff] }
 0x568   :  { %v3786_v19 = vpop.permute.xlu1 %3785  ;;  %v2098_v26 = vld [vmem:[#allocation2 + $0x352] sm:$0xff] }
 0x569   :  { %v4042_v55 = vpop.permute.xlu0 %4041  ;;  %v4580_v29 = vsel %vm4536_vm9, %v4515_v34, %v3786_v19  ;;  %v12801_v34 = vld [vmem:[#allocation49_spill] sm:$0xff] }
 0x56a   :  { %3303 = vrot.lane.b32.xlu1 %v2091_v16, %s6592_s30  ;;  %v4645_v23 = vsel %vm4601_vm11, %v4580_v29, %v4042_v55  ;;  %v4194_v19 = vsel %vm826_vm2, %v6569_v1, %v12801_v34  ;;  %v12802_v55 = vld [vmem:[#allocation107_spill] sm:$0xff]  ;;  %v12813_v1 = vld [vmem:[#allocation50_spill] sm:$0xff] }
 0x56b   :  { %3559 = vrot.lane.b32.xlu0 %v1965_v61, %s6593_s19  ;;  %6462 = vmatmul.mubr.msk.f32.gmra.mxu1 %vm4682_vm12, %v4645_v23  ;;  %v4259_v29 = vsel %vm4211_vm5, %v4194_v19, %v12802_v55  ;;  %v12814_v55 = vld [vmem:[#allocation108_spill] sm:$0xff] }
 0x56c   :  { %v3276_v52 = vpop.permute.xlu1 %3275 }
 0x56d   :  { %v3532_v40 = vpop.permute.xlu0 %3531  ;;  %v4451_v63 = vsel %vm4406_vm8, %v4386_v4, %v3276_v52  ;;  %v12803_v52 = vld [vmem:[#allocation167_spill] sm:$0xff] }
 0x56e   :  { %3305 = vrot.lane.b32.xlu1 %v2092_v14, %s6592_s30  ;;  %v4516_v31 = vsel %vm4471_vm10, %v4451_v63, %v3532_v40  ;;  %v2095_v14 = vld [vmem:[#allocation2 + $0x332] sm:$0xff]  ;;  %v4324_v49 = vsel %vm4276_vm6, %v4259_v29, %v12803_v52 }
 0x56f   :  { %3815 = vrot.lane.b32.xlu0 %v2029_v13, %s6594_s24  ;;  %v2032_v40 = vld [vmem:[#allocation2 + $0x339] sm:$0xff]  ;;  %v4389_v60 = vsel %vm4341_vm7, %v4324_v49, %v12804_v28  ;;  %v12816_v52 = vld [vmem:[#allocation237_spill] sm:$0xff] }
 0x570   :  { %v3278_v48 = vpop.permute.xlu1 %3277  ;;  %v6573_v28 = vld [vmem:[#allocation2 + $0x290] sm:$0xff] }
 0x571   :  { %v3788_v32 = vpop.permute.xlu0 %3787  ;;  %v4452_v57 = vsel %vm4406_vm8, %v4387_v51, %v3278_v48  ;;  %v1969_v48 = vld [vmem:[#allocation2 + $0x348] sm:$0xff] }
 0x572   :  { %3561 = vrot.lane.b32.xlu1 %v1966_v53, %s6593_s19  ;;  %v4581_v62 = vsel %vm4536_vm9, %v4516_v31, %v3788_v32  ;;  %v12806_v31 = vld [vmem:[#allocation106_spill] sm:$0xff]  ;;  %v2097_v51 = vld [vmem:[#allocation2 + $0x34a] sm:$0xff] }
 0x573   :  { %4071 = vrot.lane.b32.xlu0 %v2093_v11, %s6595_s25 }
 0x574   :  { %v3534_v12 = vpop.permute.xlu1 %3533 }
 0x575   :  { %v4044_v39 = vpop.permute.xlu0 %4043  ;;  %v4517_v5 = vsel %vm4471_vm10, %v4452_v57, %v3534_v12  ;;  %v4260_v12 = vsel %vm4211_vm5, %v4195_v46, %v12806_v31  ;;  %v6571_v57 = vld [vmem:[#allocation2 + $0x278] sm:$0xff] }
 0x576   :  { %v4646_v45 = vsel %vm4601_vm11, %v4581_v62, %v4044_v39  ;;  %3817 = vrot.lane.b32.xlu1 %v2030_v2, %s6594_s24  ;;  %v4325_v0 = vsel %vm4276_vm6, %v4260_v12, %v12807_v42  ;;  %v1970_v62 = vld [vmem:[#allocation2 + $0x350] sm:$0xff]  ;;  %v12808_v39 = vld [vmem:[#allocation235_spill] sm:$0xff] }
 0x577   :  { %4073 = vrot.lane.b32.xlu0 %v2094_v8, %s6595_s25  ;;  %6464 = vmatprep.mubr.msk.f32.mxu1 %vm4682_vm12, %v4646_v45  ;;  %v4390_v2 = vsel %vm4341_vm7, %v4325_v0, %v12808_v39  ;;  %v12821_v39 = vld [vmem:[#allocation52_spill] sm:$0xff] }
 0x578   :  { %v3790_v20 = vpop.permute.xlu1 %3789 }
 0x579   :  { %v4046_v58 = vpop.permute.xlu0 %4045  ;;  %v4582_v33 = vsel %vm4536_vm9, %v4517_v5, %v3790_v20  ;;  %v12809_v5 = vld [vmem:[#allocation51_spill] sm:$0xff] }
 0x57a   :  { %3307 = vrot.lane.b32.xlu1 %v2093_v11, %s6592_s30  ;;  %v4647_v15 = vsel %vm4601_vm11, %v4582_v33, %v4046_v58  ;;  %v4196_v20 = vsel %vm826_vm2, %v6571_v57, %v12809_v5  ;;  %v2034_v58 = vld [vmem:[#allocation2 + $0x351] sm:$0xff]  ;;  %v12824_v5 = vld [vmem:[#allocation239_spill] sm:$0xff] }
 0x57b   :  { %3563 = vrot.lane.b32.xlu0 %v1967_v59, %s6593_s19  ;;  %6465 = vmatmul.mubr.msk.f32.gmra.mxu1 %vm4682_vm12, %v4647_v15  ;;  %v12810_v33 = vld [vmem:[#allocation109_spill] sm:$0xff] }
 0x57c   :  { %v3280_v16 = vpop.permute.xlu1 %3279  ;;  %v4261_v59 = vsel %vm4211_vm5, %v4196_v20, %v12810_v33 }
 0x57d   :  { %v3536_v47 = vpop.permute.xlu0 %3535  ;;  %v4453_v27 = vsel %vm4406_vm8, %v4388_v35, %v3280_v16  ;;  %v4326_v10 = vsel %vm4276_vm6, %v4261_v59, %v12811_v37 }
 0x57e   :  { %3309 = vrot.lane.b32.xlu1 %v2094_v8, %s6592_s30  ;;  %v4518_v61 = vsel %vm4471_vm10, %v4453_v27, %v3536_v47  ;;  %v4391_v9 = vsel %vm4341_vm7, %v4326_v10, %v12812_v18  ;;  %v12826_v10 = vld [vmem:[#allocation113_spill] sm:$0xff] }
 0x57f   :  { %3819 = vrot.lane.b32.xlu0 %v2031_v38, %s6594_s24 }
 0x580   :  { %v3282_v41 = vpop.permute.xlu1 %3281 }
 0x581   :  { %v3792_v30 = vpop.permute.xlu0 %3791  ;;  %v4454_v17 = vsel %vm4406_vm8, %v4389_v60, %v3282_v41  ;;  %v12817_v60 = vld [vmem:[#allocation53_spill] sm:$0xff] }
 0x582   :  { %3565 = vrot.lane.b32.xlu1 %v1968_v54, %s6593_s19  ;;  %v4583_v36 = vsel %vm4536_vm9, %v4518_v61, %v3792_v30  ;;  %v12815_v61 = vld [vmem:[#allocation168_spill] sm:$0xff] }
 0x583   :  { %4075 = vrot.lane.b32.xlu0 %v2095_v14, %s6595_s25 }
 0x584   :  { %v3538_v23 = vpop.permute.xlu1 %3537 }
 0x585   :  { %v4048_v43 = vpop.permute.xlu0 %4047  ;;  %v4519_v3 = vsel %vm4471_vm10, %v4454_v17, %v3538_v23 }
 0x586   :  { %v4648_v13 = vsel %vm4601_vm11, %v4583_v36, %v4048_v43  ;;  %3821 = vrot.lane.b32.xlu1 %v2032_v40, %s6594_s24 }
 0x587   :  { %4077 = vrot.lane.b32.xlu0 %v2096_v50, %s6595_s25  ;;  %6467 = vmatprep.mubr.msk.f32.mxu1 %vm4682_vm12, %v4648_v13  ;;  %v4198_v13 = vsel %vm826_vm2, %v6573_v28, %v12817_v60 }
 0x588   :  { %v3794_v4 = vpop.permute.xlu1 %3793 }
 0x589   :  { %v4050_v63 = vpop.permute.xlu0 %4049  ;;  %v4584_v32 = vsel %vm4536_vm9, %v4519_v3, %v3794_v4 }
 0x58a   :  { %3311 = vrot.lane.b32.xlu1 %v2095_v14, %s6592_s30  ;;  %v4649_v53 = vsel %vm4601_vm11, %v4584_v32, %v4050_v63  ;;  %v6572_v14 = vld [vmem:[#allocation2 + $0x288] sm:$0xff] }
 0x58b   :  { %3567 = vrot.lane.b32.xlu0 %v1969_v48, %s6593_s19  ;;  %6468 = vmatmul.mubr.msk.f32.gmra.mxu1 %vm4682_vm12, %v4649_v53  ;;  %v4197_v34 = vsel %vm826_vm2, %v6572_v14, %v12813_v1  ;;  %v12819_v48 = vld [vmem:[#allocation171_spill] sm:$0xff] }
 0x58c   :  { %v3284_v11 = vpop.permute.xlu1 %3283  ;;  %v4262_v29 = vsel %vm4211_vm5, %v4197_v34, %v12814_v55  ;;  %v6576_v55 = vld [vmem:[#allocation2 + $0x2b8] sm:$0xff] }
 0x58d   :  { %v3540_v22 = vpop.permute.xlu0 %3539  ;;  %v4455_v45 = vsel %vm4406_vm8, %v4390_v2, %v3284_v11  ;;  %v4327_v23 = vsel %vm4276_vm6, %v4262_v29, %v12815_v61  ;;  %v12820_v11 = vld [vmem:[#allocation240_spill] sm:$0xff]  ;;  %v12829_v29 = vld [vmem:[#allocation54_spill] sm:$0xff] }
 0x58e   :  { %3313 = vrot.lane.b32.xlu1 %v2096_v50, %s6592_s30  ;;  %v4520_v15 = vsel %vm4471_vm10, %v4455_v45, %v3540_v22  ;;  %v4392_v49 = vsel %vm4341_vm7, %v4327_v23, %v12816_v52  ;;  %v12818_v50 = vld [vmem:[#allocation111_spill] sm:$0xff]  ;;  %v4201_v61 = vsel %vm826_vm2, %v6576_v55, %v12829_v29  ;;  %v12830_v52 = vld [vmem:[#allocation112_spill] sm:$0xff] }
 0x58f   :  { %3823 = vrot.lane.b32.xlu0 %v2033_v7, %s6594_s24  ;;  %v4263_v17 = vsel %vm4211_vm5, %v4198_v13, %v12818_v50 }
 0x590   :  { %v3286_v56 = vpop.permute.xlu1 %3285  ;;  %v4328_v63 = vsel %vm4276_vm6, %v4263_v17, %v12819_v48  ;;  %v6577_v17 = vld [vmem:[#allocation2 + $0x2c0] sm:$0xff] }
 0x591   :  { %v3796_v8 = vpop.permute.xlu0 %3795  ;;  %v4456_v21 = vsel %vm4406_vm8, %v4391_v9, %v3286_v56  ;;  %v4393_v7 = vsel %vm4341_vm7, %v4328_v63, %v12820_v11  ;;  %v12827_v9 = vld [vmem:[#allocation173_spill] sm:$0xff]  ;;  %v12834_v48 = vld [vmem:[#allocation115_spill] sm:$0xff] }
 0x592   :  { %3569 = vrot.lane.b32.xlu1 %v1970_v62, %s6593_s19  ;;  %v4585_v6 = vsel %vm4536_vm9, %v4520_v15, %v3796_v8  ;;  %v6574_v62 = vld [vmem:[#allocation2 + $0x2a0] sm:$0xff]  ;;  %v12823_v8 = vld [vmem:[#allocation170_spill] sm:$0xff]  ;;  %v6575_v15 = vld [vmem:[#allocation2 + $0x2a8] sm:$0xff] }
 0x593   :  { %4079 = vrot.lane.b32.xlu0 %v2097_v51, %s6595_s25  ;;  %v4199_v2 = vsel %vm826_vm2, %v6574_v62, %v12821_v39  ;;  %v12822_v51 = vld [vmem:[#allocation110_spill] sm:$0xff]  ;;  %v12835_v11 = vld [vmem:[#allocation175_spill] sm:$0xff] }
 0x594   :  { %v3542_v16 = vpop.permute.xlu1 %3541  ;;  %v4264_v45 = vsel %vm4211_vm5, %v4199_v2, %v12822_v51  ;;  %v6578_v51 = vld [vmem:[#allocation2 + $0x2d0] sm:$0xff] }
 0x595   :  { %v4052_v47 = vpop.permute.xlu0 %4051  ;;  %v4521_v24 = vsel %vm4471_vm10, %v4456_v21, %v3542_v16  ;;  %v4329_v57 = vsel %vm4276_vm6, %v4264_v45, %v12823_v8  ;;  %v12825_v16 = vld [vmem:[#allocation55_spill] sm:$0xff]  ;;  %v12837_v45 = vld [vmem:[#allocation56_spill] sm:$0xff] }
 0x596   :  { %v4650_v38 = vsel %vm4601_vm11, %v4585_v6, %v4052_v47  ;;  %3825 = vrot.lane.b32.xlu1 %v2034_v58, %s6594_s24  ;;  %v4394_v20 = vsel %vm4341_vm7, %v4329_v57, %v12824_v5  ;;  %v4200_v37 = vsel %vm826_vm2, %v6575_v15, %v12825_v16  ;;  %v4203_v8 = vsel %vm826_vm2, %v6578_v51, %v12837_v45  ;;  %v12838_v5 = vld [vmem:[#allocation114_spill] sm:$0xff] }
 0x597   :  { %6470 = vmatprep.mubr.msk.f32.mxu1 %vm4682_vm12, %v4650_v38  ;;  %v4265_v6 = vsel %vm4211_vm5, %v4200_v37, %v12826_v10 }
 0x598   :  { %v3798_v35 = vpop.permute.xlu1 %3797  ;;  %v4330_v38 = vsel %vm4276_vm6, %v4265_v6, %v12827_v9  ;;  %v6579_v6 = vld [vmem:[#allocation2 + $0x2d8] sm:$0xff]  ;;  %v12842_v9 = vld [vmem:[#allocation117_spill] sm:$0xff] }
 0x599   :  { %v4054_v41 = vpop.permute.xlu0 %4053  ;;  %v4586_v27 = vsel %vm4536_vm9, %v4521_v24, %v3798_v35  ;;  %v12828_v24 = vld [vmem:[#allocation242_spill] sm:$0xff] }
 0x59a   :  { %4081 = vrot.lane.b32.xlu1 %v2098_v26, %s6595_s25  ;;  %v4651_v30 = vsel %vm4601_vm11, %v4586_v27, %v4054_v41  ;;  %v4395_v35 = vsel %vm4341_vm7, %v4330_v38, %v12828_v24  ;;  %v12843_v24 = vld [vmem:[#allocation177_spill] sm:$0xff] }
 0x59b   :  { %6471 = vmatmul.mubr.msk.f32.gmra.mxu1 %vm4682_vm12, %v4651_v30 }
 0x59c   :  { %v3288_v54 = vpop.permute.xlu1 %3287 }
 0x59d   :  { %v3544_v19 = vpop.permute.xlu0 %3543  ;;  %v4457_v43 = vsel %vm4406_vm8, %v4392_v49, %v3288_v54  ;;  %v4266_v49 = vsel %vm4211_vm5, %v4201_v61, %v12830_v52  ;;  %v6580_v52 = vld [vmem:[#allocation2 + $0x2e8] sm:$0xff] }
 0x59e   :  { %v4522_v3 = vsel %vm4471_vm10, %v4457_v43, %v3544_v19 }
 0x5a0   :  { %v3290_v36 = vpop.permute.xlu1 %3289 }
 0x5a1   :  { %v3800_v40 = vpop.permute.xlu0 %3799  ;;  %v4458_v25 = vsel %vm4406_vm8, %v4393_v7, %v3290_v36  ;;  %v12831_v36 = vld [vmem:[#allocation172_spill] sm:$0xff] }
 0x5a2   :  { %v4587_v32 = vsel %vm4536_vm9, %v4522_v3, %v3800_v40  ;;  %v4331_v43 = vsel %vm4276_vm6, %v4266_v49, %v12831_v36  ;;  %v12832_v40 = vld [vmem:[#allocation241_spill] sm:$0xff]  ;;  %v12845_v49 = vld [vmem:[#allocation58_spill] sm:$0xff] }
 0x5a3   :  { %v4396_v28 = vsel %vm4341_vm7, %v4331_v43, %v12832_v40  ;;  %v12833_v3 = vld [vmem:[#allocation57_spill] sm:$0xff]  ;;  %v4205_v36 = vsel %vm826_vm2, %v6580_v52, %v12845_v49  ;;  %v12846_v40 = vld [vmem:[#allocation116_spill] sm:$0xff] }
 0x5a4   :  { %v3546_v4 = vpop.permute.xlu1 %3545 }
 0x5a5   :  { %v4056_v53 = vpop.permute.xlu0 %4055  ;;  %v4523_v46 = vsel %vm4471_vm10, %v4458_v25, %v3546_v4  ;;  %v4202_v4 = vsel %vm826_vm2, %v6577_v17, %v12833_v3 }
 0x5a6   :  { %v4652_v44 = vsel %vm4601_vm11, %v4587_v32, %v4056_v53  ;;  %v4267_v63 = vsel %vm4211_vm5, %v4202_v4, %v12834_v48 }
 0x5a7   :  { %6473 = vmatprep.mubr.msk.f32.mxu1 %vm4682_vm12, %v4652_v44  ;;  %v4332_v7 = vsel %vm4276_vm6, %v4267_v63, %v12835_v11  ;;  %v6581_v63 = vld [vmem:[#allocation2 + $0x2f0] sm:$0xff]  ;;  %v12850_v11 = vld [vmem:[#allocation119_spill] sm:$0xff] }
 0x5a8   :  { %v3802_v22 = vpop.permute.xlu1 %3801 }
 0x5a9   :  { %v4058_v31 = vpop.permute.xlu0 %4057  ;;  %v4588_v12 = vsel %vm4536_vm9, %v4523_v46, %v3802_v22  ;;  %v12836_v46 = vld [vmem:[#allocation244_spill] sm:$0xff] }
 0x5aa   :  { %v4653_v42 = vsel %vm4601_vm11, %v4588_v12, %v4058_v31  ;;  %v4397_v22 = vsel %vm4341_vm7, %v4332_v7, %v12836_v46  ;;  %v12851_v46 = vld [vmem:[#allocation179_spill] sm:$0xff] }
 0x5ab   :  { %6474 = vmatmul.mubr.msk.f32.gmra.mxu1 %vm4682_vm12, %v4653_v42 }
 0x5ac   :  { %v3292_v0 = vpop.permute.xlu1 %3291 }
 0x5ad   :  { %v3548_v56 = vpop.permute.xlu0 %3547  ;;  %v4459_v33 = vsel %vm4406_vm8, %v4394_v20, %v3292_v0  ;;  %v4268_v20 = vsel %vm4211_vm5, %v4203_v8, %v12838_v5  ;;  %v6582_v5 = vld [vmem:[#allocation2 + $0x300] sm:$0xff] }
 0x5ae   :  { %v4524_v47 = vsel %vm4471_vm10, %v4459_v33, %v3548_v56 }
 0x5b0   :  { %v3294_v58 = vpop.permute.xlu1 %3293 }
 0x5b1   :  { %v3804_v59 = vpop.permute.xlu0 %3803  ;;  %v4460_v27 = vsel %vm4406_vm8, %v4395_v35, %v3294_v58  ;;  %v12839_v58 = vld [vmem:[#allocation174_spill] sm:$0xff] }
 0x5b2   :  { %v4589_v21 = vsel %vm4536_vm9, %v4524_v47, %v3804_v59  ;;  %v4333_v33 = vsel %vm4276_vm6, %v4268_v20, %v12839_v58  ;;  %v12840_v59 = vld [vmem:[#allocation243_spill] sm:$0xff]  ;;  %v12853_v20 = vld [vmem:[#allocation60_spill] sm:$0xff] }
 0x5b3   :  { %v4398_v15 = vsel %vm4341_vm7, %v4333_v33, %v12840_v59  ;;  %v12841_v47 = vld [vmem:[#allocation59_spill] sm:$0xff]  ;;  %v4207_v58 = vsel %vm826_vm2, %v6582_v5, %v12853_v20  ;;  %v12854_v59 = vld [vmem:[#allocation118_spill] sm:$0xff]  ;;  %v6400_v5 = vpop.f32.mrf.mxu0 }
 0x5b4   :  { %v3550_v18 = vpop.permute.xlu1 %3549 }
 0x5b5   :  { %v4060_v26 = vpop.permute.xlu0 %4059  ;;  %v4525_v30 = vsel %vm4471_vm10, %v4460_v27, %v3550_v18  ;;  %v4204_v18 = vsel %vm826_vm2, %v6579_v6, %v12841_v47 }
 0x5b6   :  { %v4654_v41 = vsel %vm4601_vm11, %v4589_v21, %v4060_v26  ;;  %v4269_v38 = vsel %vm4211_vm5, %v4204_v18, %v12842_v9 }
 0x5b7   :  { %6476 = vmatprep.mubr.msk.f32.mxu1 %vm4682_vm12, %v4654_v41  ;;  %v4334_v35 = vsel %vm4276_vm6, %v4269_v38, %v12843_v24  ;;  %v6583_v38 = vld [vmem:[#allocation2 + $0x308] sm:$0xff]  ;;  %v12858_v24 = vld [vmem:[#allocation121_spill] sm:$0xff] }
 0x5b8   :  { %v3806_v54 = vpop.permute.xlu1 %3805 }
 0x5b9   :  { %v4062_v14 = vpop.permute.xlu0 %4061  ;;  %v4590_v1 = vsel %vm4536_vm9, %v4525_v30, %v3806_v54  ;;  %v12844_v30 = vld [vmem:[#allocation246_spill] sm:$0xff] }
 0x5ba   :  { %v4655_v34 = vsel %vm4601_vm11, %v4590_v1, %v4062_v14  ;;  %v4399_v54 = vsel %vm4341_vm7, %v4334_v35, %v12844_v30  ;;  %v12859_v30 = vld [vmem:[#allocation181_spill] sm:$0xff] }
 0x5bb   :  { %6477 = vmatmul.mubr.msk.f32.gmra.mxu1 %vm4682_vm12, %v4655_v34 }
 0x5bc   :  { %v3296_v19 = vpop.permute.xlu1 %3295 }
 0x5bd   :  { %v3552_v23 = vpop.permute.xlu0 %3551  ;;  %v4461_v13 = vsel %vm4406_vm8, %v4396_v28, %v3296_v19  ;;  %v4270_v28 = vsel %vm4211_vm5, %v4205_v36, %v12846_v40  ;;  %v6584_v40 = vld [vmem:[#allocation2 + $0x318] sm:$0xff] }
 0x5be   :  { %v4526_v32 = vsel %vm4471_vm10, %v4461_v13, %v3552_v23 }
 0x5c0   :  { %v3298_v60 = vpop.permute.xlu1 %3297 }
 0x5c1   :  { %v3808_v50 = vpop.permute.xlu0 %3807  ;;  %v4462_v12 = vsel %vm4406_vm8, %v4397_v22, %v3298_v60  ;;  %v12847_v60 = vld [vmem:[#allocation176_spill] sm:$0xff] }
 0x5c2   :  { %v4591_v44 = vsel %vm4536_vm9, %v4526_v32, %v3808_v50  ;;  %v4335_v13 = vsel %vm4276_vm6, %v4270_v28, %v12847_v60  ;;  %v12848_v50 = vld [vmem:[#allocation245_spill] sm:$0xff]  ;;  %v12861_v28 = vld [vmem:[#allocation62_spill] sm:$0xff] }
 0x5c3   :  { %v4400_v17 = vsel %vm4341_vm7, %v4335_v13, %v12848_v50  ;;  %v12849_v32 = vld [vmem:[#allocation61_spill] sm:$0xff]  ;;  %v4209_v60 = vsel %vm826_vm2, %v6584_v40, %v12861_v28  ;;  %v12862_v50 = vld [vmem:[#allocation120_spill] sm:$0xff] }
 0x5c4   :  { %v3554_v53 = vpop.permute.xlu1 %3553 }
 0x5c5   :  { %v4064_v25 = vpop.permute.xlu0 %4063  ;;  %v4527_v42 = vsel %vm4471_vm10, %v4462_v12, %v3554_v53  ;;  %v4206_v53 = vsel %vm826_vm2, %v6581_v63, %v12849_v32 }
 0x5c6   :  { %v4656_v31 = vsel %vm4601_vm11, %v4591_v44, %v4064_v25  ;;  %v4271_v7 = vsel %vm4211_vm5, %v4206_v53, %v12850_v11 }
 0x5c7   :  { %6479 = vmatprep.mubr.msk.f32.mxu1 %vm4682_vm12, %v4656_v31  ;;  %v4336_v22 = vsel %vm4276_vm6, %v4271_v7, %v12851_v46 }
 0x5c8   :  { %v3810_v0 = vpop.permute.xlu1 %3809 }
 0x5c9   :  { %v4066_v62 = vpop.permute.xlu0 %4065  ;;  %v4592_v39 = vsel %vm4536_vm9, %v4527_v42, %v3810_v0  ;;  %v12852_v42 = vld [vmem:[#allocation248_spill] sm:$0xff] }
 0x5ca   :  { %v4657_v2 = vsel %vm4601_vm11, %v4592_v39, %v4066_v62  ;;  %v4401_v0 = vsel %vm4341_vm7, %v4336_v22, %v12852_v42  ;;  %v6585_v22 = vld [vmem:[#allocation2 + $0x320] sm:$0xff] }
 0x5cb   :  { %6480 = vmatmul.mubr.msk.f32.gmra.mxu1 %vm4682_vm12, %v4657_v2 }
 0x5cc   :  { %v3300_v56 = vpop.permute.xlu1 %3299 }
 0x5cd   :  { %v3556_v57 = vpop.permute.xlu0 %3555  ;;  %v4463_v37 = vsel %vm4406_vm8, %v4398_v15, %v3300_v56  ;;  %v4272_v15 = vsel %vm4211_vm5, %v4207_v58, %v12854_v59  ;;  %v6403_v59 = vpop.f32.mrf.mxu1 }
 0x5ce   :  { %v4528_v21 = vsel %vm4471_vm10, %v4463_v37, %v3556_v57 }
 0x5d0   :  { %v3302_v16 = vpop.permute.xlu1 %3301 }
 0x5d1   :  { %v3812_v10 = vpop.permute.xlu0 %3811  ;;  %v4464_v1 = vsel %vm4406_vm8, %v4399_v54, %v3302_v16  ;;  %v12855_v16 = vld [vmem:[#allocation178_spill] sm:$0xff] }
 0x5d2   :  { %v4593_v41 = vsel %vm4536_vm9, %v4528_v21, %v3812_v10  ;;  %v4337_v37 = vsel %vm4276_vm6, %v4272_v15, %v12855_v16  ;;  %v12856_v10 = vld [vmem:[#allocation247_spill] sm:$0xff]  ;;  %v4941_v15 = vpop.f32.mrf.mxu0 }
 0x5d3   :  { %v4402_v6 = vsel %vm4341_vm7, %v4337_v37, %v12856_v10  ;;  %v12857_v21 = vld [vmem:[#allocation63_spill] sm:$0xff]  ;;  %v4951_v37 = vpop.f32.mrf.mxu1 }
 0x5d4   :  { %v3558_v26 = vpop.permute.xlu1 %3557  ;;  %v10655_v16 = vld [vmem:[%s12216_s7] ss:$0 sm:$0xff] }
 0x5d5   :  { %v4068_v27 = vpop.permute.xlu0 %4067  ;;  %v4529_v34 = vsel %vm4471_vm10, %v4464_v1, %v3558_v26  ;;  %v4208_v26 = vsel %vm826_vm2, %v6583_v38, %v12857_v21  ;;  %v4942_v10 = vadd.f32 %v10655_v16, %v4941_v15  ;;  %v5261_v38 = vld [vmem:[%s12217_s10 + $0x8] sm:$0xff]  ;;  %v5262_v21 = vld [vmem:[%s12217_s10 + $0x10] sm:$0xff] }
 0x5d6   :  { %v4658_v14 = vsel %vm4601_vm11, %v4593_v41, %v4068_v27  ;;  %v4273_v35 = vsel %vm4211_vm5, %v4208_v26, %v12858_v24 }
 0x5d7   :  { %6482 = vmatprep.mubr.msk.f32.mxu1 %vm4682_vm12, %v4658_v14  ;;  %v4338_v54 = vsel %vm4276_vm6, %v4273_v35, %v12859_v30 }
 0x5d8   :  { %v3814_v19 = vpop.permute.xlu1 %3813 }
 0x5d9   :  { %v4070_v55 = vpop.permute.xlu0 %4069  ;;  %v4594_v29 = vsel %vm4536_vm9, %v4529_v34, %v3814_v19  ;;  %v12860_v34 = vld [vmem:[#allocation250_spill] sm:$0xff] }
 0x5da   :  { %v4659_v61 = vsel %vm4601_vm11, %v4594_v29, %v4070_v55  ;;  %v4403_v19 = vsel %vm4341_vm7, %v4338_v54, %v12860_v34  ;;  %v4957_v54 = vadd.f32 %v6403_v59, %v10655_v16  ;;  %v5264_v34 = vld [vmem:[%s12217_s10 + $0x20] sm:$0xff] }
 0x5db   :  { %6483 = vmatmul.mubr.msk.f32.gmra.mxu1 %vm4682_vm12, %v4659_v61 }
 0x5dc   :  { %v3304_v23 = vpop.permute.xlu1 %3303 }
 0x5dd   :  { %v3560_v43 = vpop.permute.xlu0 %3559  ;;  %v4465_v4 = vsel %vm4406_vm8, %v4400_v17, %v3304_v23  ;;  %v4274_v17 = vsel %vm4211_vm5, %v4209_v60, %v12862_v50 }
 0x5de   :  { %v4530_v44 = vsel %vm4471_vm10, %v4465_v4, %v3560_v43 }
 0x5e0   :  { %v3306_v3 = vpop.permute.xlu1 %3305 }
 0x5e1   :  { %v3816_v48 = vpop.permute.xlu0 %3815  ;;  %v4466_v39 = vsel %vm4406_vm8, %v4401_v0, %v3306_v3  ;;  %v12863_v3 = vld [vmem:[#allocation180_spill] sm:$0xff]  ;;  %v12866_v0 = vld [vmem:[#allocation122_spill] sm:$0xff] }
 0x5e2   :  { %v4595_v31 = vsel %vm4536_vm9, %v4530_v44, %v3816_v48  ;;  %v4339_v4 = vsel %vm4276_vm6, %v4274_v17, %v12863_v3  ;;  %v12864_v48 = vld [vmem:[#allocation249_spill] sm:$0xff] }
 0x5e3   :  { %v4404_v63 = vsel %vm4341_vm7, %v4339_v4, %v12864_v48  ;;  %v5265_v48 = vld [vmem:[%s12217_s10 + $0x28] sm:$0xff] }
 0x5e4   :  { %v3562_v25 = vpop.permute.xlu1 %3561 }
 0x5e5   :  { %v4072_v12 = vpop.permute.xlu0 %4071  ;;  %v4531_v2 = vsel %vm4471_vm10, %v4466_v39, %v3562_v25  ;;  %v12867_v39 = vld [vmem:[#allocation182_spill] sm:$0xff] }
 0x5e6   :  { %v4660_v62 = vsel %vm4601_vm11, %v4595_v31, %v4072_v12  ;;  %v12865_v31 = vld [vmem:[#allocation64_spill] sm:$0xff] }
 0x5e7   :  { %6485 = vmatprep.mubr.msk.f32.mxu1 %vm4682_vm12, %v4660_v62  ;;  %v4210_v12 = vsel %vm826_vm2, %v6585_v22, %v12865_v31 }
 0x5e8   :  { %v3818_v56 = vpop.permute.xlu1 %3817  ;;  %v4275_v62 = vsel %vm4211_vm5, %v4210_v12, %v12866_v0 }
 0x5e9   :  { %v4074_v51 = vpop.permute.xlu0 %4073  ;;  %v4596_v45 = vsel %vm4536_vm9, %v4531_v2, %v3818_v56  ;;  %v4340_v2 = vsel %vm4276_vm6, %v4275_v62, %v12867_v39 }
 0x5ea   :  { %v4661_v8 = vsel %vm4601_vm11, %v4596_v45, %v4074_v51  ;;  %v12868_v51 = vld [vmem:[#allocation251_spill] sm:$0xff] }
 0x5eb   :  { %6486 = vmatmul.mubr.msk.f32.gmra.mxu1 %vm4682_vm12, %v4661_v8  ;;  %v4405_v45 = vsel %vm4341_vm7, %v4340_v2, %v12868_v51  ;;  %v5267_v51 = vld [vmem:[%s12217_s10 + $0x38] sm:$0xff] }
 0x5ec   :  { %v3308_v57 = vpop.permute.xlu1 %3307 }
 0x5ed   :  { %v3564_v33 = vpop.permute.xlu0 %3563  ;;  %v4467_v18 = vsel %vm4406_vm8, %v4402_v6, %v3308_v57  ;;  %v5260_v6 = vld [vmem:[%s12217_s10] sm:$0xff] }
 0x5ee   :  { %v4532_v41 = vsel %vm4471_vm10, %v4467_v18, %v3564_v33  ;;  %v4947_v18 = vadd.f32 %v6400_v5, %v10655_v16  ;;  %v10669_v26 = vmul.f32 %v5260_v6, %v4942_v10 }
 0x5f0   :  { %v3310_v47 = vpop.permute.xlu1 %3309  ;;  %v10671_v35 = vmul.f32 %v5261_v38, %v4947_v18  ;;  %v5523_v30 = vmul.f32 %v10669_v26, %v10669_v26 }
 0x5f1   :  { %v3820_v9 = vpop.permute.xlu0 %3819  ;;  %v4468_v29 = vsel %vm4406_vm8, %v4403_v19, %v3310_v47  ;;  %v6406_v47 = vpop.f32.mrf.mxu1 }
 0x5f2   :  { %v4597_v14 = vsel %vm4536_vm9, %v4532_v41, %v3820_v9  ;;  %v4952_v9 = vadd.f32 %v10655_v16, %v4951_v37  ;;  %v5524_v19 = vmul.f32 %v10671_v35, %v10671_v35  ;;  %v4967_v50 = vadd.f32 %v6406_v47, %v10655_v16 }
 0x5f3   :  { %v4961_v24 = vpop.f32.mrf.mxu1 }
 0x5f4   :  { %v3566_v27 = vpop.permute.xlu1 %3565  ;;  %v10673_v41 = vmul.f32 %v5262_v21, %v4952_v9  ;;  %v5588_v60 = vsel %vm826_vm2, %v5524_v19, 0.0 }
 0x5f5   :  { %v4076_v1 = vpop.permute.xlu0 %4075  ;;  %v4533_v61 = vsel %vm4471_vm10, %v4468_v29, %v3566_v27  ;;  %v6409_v27 = vpop.f32.mrf.mxu1 }
 0x5f6   :  { %v4662_v55 = vsel %vm4601_vm11, %v4597_v14, %v4076_v1  ;;  %v4962_v14 = vadd.f32 %v10655_v16, %v4961_v24  ;;  %v5263_v1 = vld [vmem:[%s12217_s10 + $0x18] sm:$0xff]  ;;  %v5525_v29 = vmul.f32 %v10673_v41, %v10673_v41  ;;  %v4977_v62 = vadd.f32 %v6409_v27, %v10655_v16  ;;  %v5269_v24 = vld [vmem:[%s12217_s10 + $0x48] sm:$0xff]  ;;  %v5270_v27 = vld [vmem:[%s12217_s10 + $0x50] sm:$0xff] }
 0x5f7   :  { %6488 = vmatprep.mubr.msk.f32.mxu1 %vm4682_vm12, %v4662_v55  ;;  %v5390_v55 = vsel %vm826_vm2, %v10669_v26, 0.0 }
 0x5f8   :  { %v3822_v23 = vpop.permute.xlu1 %3821 }
 0x5f9   :  { %v4078_v52 = vpop.permute.xlu0 %4077  ;;  %v4598_v49 = vsel %vm4536_vm9, %v4533_v61, %v3822_v23  ;;  %v5391_v61 = vsel %vm826_vm2, %v10671_v35, 0.0  ;;  %v4971_v23 = vpop.f32.mrf.mxu1 }
 0x5fa   :  { %v4663_v36 = vsel %vm4601_vm11, %v4598_v49, %v4078_v52  ;;  %v5587_v52 = vsel %vm826_vm2, %v5523_v30, 0.0  ;;  %v10694_v49 = vmul.f32 %v5263_v1, %v4957_v54  ;;  %v5392_v40 = vadd.f32 %v5391_v61, %v5390_v55 }
 0x5fb   :  { %6489 = vmatmul.mubr.msk.f32.gmra.mxu1 %vm4682_vm12, %v4663_v36  ;;  %v5393_v36 = vsel %vm826_vm2, %v10673_v41, 0.0  ;;  %v6412_v28 = vpop.f32.mrf.mxu1  ;;  %v4972_v17 = vadd.f32 %v10655_v16, %v4971_v23  ;;  %v5589_v3 = vadd.f32 %v5588_v60, %v5587_v52 }
 0x5fc   :  { %v3312_v43 = vpop.permute.xlu1 %3311  ;;  %v5394_v4 = vadd.f32 %v5393_v36, %v5392_v40  ;;  %v4987_v18 = vadd.f32 %v6412_v28, %v10655_v16 }
 0x5fd   :  { %v3568_v13 = vpop.permute.xlu0 %3567  ;;  %v4469_v53 = vsel %vm4406_vm8, %v4404_v63, %v3312_v43  ;;  %v10698_v43 = vmul.f32 %v5264_v34, %v4962_v14  ;;  %v5266_v63 = vld [vmem:[%s12217_s10 + $0x30] sm:$0xff] }
 0x5fe   :  { %v4534_v7 = vsel %vm4471_vm10, %v4469_v53, %v3568_v13  ;;  %v5590_v13 = vsel %vm826_vm2, %v5525_v29, 0.0  ;;  %v10720_v22 = vmul.f32 %v5266_v63, %v4972_v17  ;;  %v10760_v19 = vmul.f32 %v5269_v24, %v4987_v18  ;;  %v5272_v17 = vld [vmem:[%s12217_s10 + $0x60] sm:$0xff]  ;;  %v5275_v24 = vld [vmem:[%s12217_s10 + $0x78] sm:$0xff] }
 0x5ff   :  { %v5527_v53 = vmul.f32 %v10698_v43, %v10698_v43 }
 0x600   :  { %v3314_v32 = vpop.permute.xlu1 %3313  ;;  %v5401_v59 = vsel %vm826_vm2, %v10720_v22, 0.0 }
 0x601   :  { %v3824_v11 = vpop.permute.xlu0 %3823  ;;  %v4470_v8 = vsel %vm4406_vm8, %v4405_v45, %v3314_v32  ;;  %v5526_v32 = vmul.f32 %v10694_v49, %v10694_v49  ;;  %v5594_v0 = vsel %vm826_vm2, %v5527_v53, 0.0  ;;  %v5268_v45 = vld [vmem:[%s12217_s10 + $0x40] sm:$0xff] }
 0x602   :  { %v4599_v25 = vsel %vm4536_vm9, %v4534_v7, %v3824_v11  ;;  %v5591_v11 = vadd.f32 %v5590_v13, %v5589_v3  ;;  %v4981_v7 = vpop.f32.mrf.mxu1  ;;  %v5532_v3 = vmul.f32 %v10760_v19, %v10760_v19 }
 0x603   :  { %v4982_v39 = vadd.f32 %v10655_v16, %v4981_v7 }
 0x604   :  { %v3570_v44 = vpop.permute.xlu1 %3569  ;;  %v6415_v12 = vpop.f32.mrf.mxu1 }
 0x605   :  { %v4080_v46 = vpop.permute.xlu0 %4079  ;;  %v4535_v57 = vsel %vm4471_vm10, %v4470_v8, %v3570_v44  ;;  %v5395_v44 = vsel %vm826_vm2, %v10694_v49, 0.0  ;;  %v10742_v15 = vmul.f32 %v5268_v45, %v4982_v39  ;;  %v4997_v40 = vadd.f32 %v6415_v12, %v10655_v16 }
 0x606   :  { %v4664_v42 = vsel %vm4601_vm11, %v4599_v25, %v4080_v46  ;;  %v10716_v25 = vmul.f32 %v5265_v48, %v4967_v50  ;;  %v5397_v46 = vsel %vm826_vm2, %v10698_v43, 0.0  ;;  %v5396_v31 = vadd.f32 %v5395_v44, %v5394_v4  ;;  %v5271_v50 = vld [vmem:[%s12217_s10 + $0x58] sm:$0xff] }
 0x607   :  { %6491 = vmatprep.mubr.msk.f32.mxu1 %vm4682_vm12, %v4664_v42  ;;  %v5592_v42 = vsel %vm826_vm2, %v5526_v32, 0.0  ;;  %v5531_v54 = vmul.f32 %v10742_v15, %v10742_v15  ;;  %v5405_v55 = vsel %vm826_vm2, %v10742_v15, 0.0  ;;  %v5407_v32 = vsel %vm826_vm2, %v10760_v19, 0.0 }
 0x608   :  { %v3826_v56 = vpop.permute.xlu1 %3825  ;;  %v5593_v2 = vadd.f32 %v5592_v42, %v5591_v11  ;;  %v5528_v8 = vmul.f32 %v10716_v25, %v10716_v25  ;;  %v10782_v53 = vmul.f32 %v5271_v50, %v4997_v40 }
 0x609   :  { %v4600_v20 = vsel %vm4536_vm9, %v4535_v57, %v3826_v56  ;;  %v5398_v56 = vadd.f32 %v5397_v46, %v5396_v31  ;;  %v5529_v57 = vmul.f32 %v10720_v22, %v10720_v22  ;;  %v5602_v36 = vsel %vm826_vm2, %v5531_v54, 0.0 }
 0x60a   :  { %v5595_v5 = vadd.f32 %v5594_v0, %v5593_v2  ;;  %v5596_v6 = vsel %vm826_vm2, %v5528_v8, 0.0  ;;  %v5604_v31 = vsel %vm826_vm2, %v5532_v3, 0.0  ;;  %v5273_v2 = vld [vmem:[%s12217_s10 + $0x68] sm:$0xff] }
 0x60b   :  { %v5598_v47 = vsel %vm826_vm2, %v5529_v57, 0.0  ;;  %v5277_v3 = vld [vmem:[%s12217_s10 + $0x88] sm:$0xff] }
 0x60c   :  { %v4082_v58 = vpop.permute.xlu1 %4081  ;;  %v5597_v21 = vadd.f32 %v5596_v6, %v5595_v5  ;;  %v5411_v5 = vsel %vm826_vm2, %v10782_v53, 0.0 }
 0x60d   :  { %v4665_v33 = vsel %vm4601_vm11, %v4600_v20, %v4082_v58  ;;  %v4991_v20 = vpop.f32.mrf.mxu1  ;;  %v5399_v58 = vsel %vm826_vm2, %v10716_v25, 0.0 }
 0x60e   :  { %6492 = vmatmul.mubr.msk.f32.gmra.mxu1 %vm4682_vm12, %v4665_v33  ;;  %v10738_v33 = vmul.f32 %v5267_v51, %v4977_v62  ;;  %v5400_v37 = vadd.f32 %v5399_v58, %v5398_v56  ;;  %v4992_v9 = vadd.f32 %v10655_v16, %v4991_v20  ;;  %v5599_v14 = vadd.f32 %v5598_v47, %v5597_v21  ;;  %v5274_v56 = vld [vmem:[%s12217_s10 + $0x70] sm:$0xff] }
 0x60f   :  { %v6418_v10 = vpop.f32.mrf.mxu1  ;;  %v5534_v51 = vmul.f32 %v10782_v53, %v10782_v53 }
 0x610   :  { %v5402_v38 = vadd.f32 %v5401_v59, %v5400_v37  ;;  %v5530_v30 = vmul.f32 %v10738_v33, %v10738_v33  ;;  %v5403_v34 = vsel %vm826_vm2, %v10738_v33, 0.0  ;;  %v10764_v29 = vmul.f32 %v5270_v27, %v4992_v9  ;;  %v5276_v27 = vld [vmem:[%s12217_s10 + $0x80] sm:$0xff] }
 0x611   :  { %v5001_v1 = vpop.f32.mrf.mxu1  ;;  %v5007_v42 = vadd.f32 %v6418_v10, %v10655_v16  ;;  %v5608_v6 = vsel %vm826_vm2, %v5534_v51, 0.0 }
 0x612   :  { %v5404_v61 = vadd.f32 %v5403_v34, %v5402_v38  ;;  %v5600_v52 = vsel %vm826_vm2, %v5530_v30, 0.0  ;;  %v5002_v28 = vadd.f32 %v10655_v16, %v5001_v1  ;;  %v5533_v4 = vmul.f32 %v10764_v29, %v10764_v29 }
 0x613   :  { %v6421_v23 = vpop.f32.mrf.mxu1  ;;  %v5601_v13 = vadd.f32 %v5600_v52, %v5599_v14  ;;  %v5409_v11 = vsel %vm826_vm2, %v10764_v29, 0.0  ;;  %v10804_v20 = vmul.f32 %v5273_v2, %v5007_v42 }
 0x614   :  { %v5406_v60 = vadd.f32 %v5405_v55, %v5404_v61  ;;  %v10786_v7 = vmul.f32 %v5272_v17, %v5002_v28  ;;  %v5606_v12 = vsel %vm826_vm2, %v5533_v4, 0.0  ;;  %v5017_v18 = vadd.f32 %v6421_v23, %v10655_v16  ;;  %v5278_v4 = vld [vmem:[%s12217_s10 + $0x90] sm:$0xff] }
 0x615   :  { %v5603_v48 = vadd.f32 %v5602_v36, %v5601_v13  ;;  %v5011_v63 = vpop.f32.mrf.mxu1  ;;  %v5536_v30 = vmul.f32 %v10804_v20, %v10804_v20  ;;  %v5415_v34 = vsel %vm826_vm2, %v10804_v20, 0.0 }
 0x616   :  { %v5408_v44 = vadd.f32 %v5407_v32, %v5406_v60  ;;  %v5012_v0 = vadd.f32 %v10655_v16, %v5011_v63  ;;  %v5535_v45 = vmul.f32 %v10786_v7, %v10786_v7  ;;  %v5413_v58 = vsel %vm826_vm2, %v10786_v7, 0.0 }
 0x617   :  { %v6424_v46 = vpop.f32.mrf.mxu1  ;;  %v5605_v39 = vadd.f32 %v5604_v31, %v5603_v48  ;;  %v10826_v55 = vmul.f32 %v5275_v24, %v5017_v18  ;;  %v5612_v40 = vsel %vm826_vm2, %v5536_v30, 0.0 }
 0x618   :  { %v5410_v62 = vadd.f32 %v5409_v11, %v5408_v44  ;;  %v10808_v59 = vmul.f32 %v5274_v56, %v5012_v0  ;;  %v5610_v47 = vsel %vm826_vm2, %v5535_v45, 0.0  ;;  %v5027_v60 = vadd.f32 %v6424_v46, %v10655_v16 }
 0x619   :  { %v5607_v8 = vadd.f32 %v5606_v12, %v5605_v39  ;;  %v5021_v57 = vpop.f32.mrf.mxu1  ;;  %v5538_v48 = vmul.f32 %v10826_v55, %v10826_v55  ;;  %v5419_v44 = vsel %vm826_vm2, %v10826_v55, 0.0 }
 0x61a   :  { %v5412_v37 = vadd.f32 %v5411_v5, %v5410_v62  ;;  %v5022_v9 = vadd.f32 %v10655_v16, %v5021_v57  ;;  %v5537_v54 = vmul.f32 %v10808_v59, %v10808_v59  ;;  %v5417_v61 = vsel %vm826_vm2, %v10808_v59, 0.0  ;;  %v5280_v57 = vld [vmem:[%s12217_s10 + $0xa0] sm:$0xff] }
 0x61b   :  { %v6427_v10 = vpop.f32.mrf.mxu1  ;;  %v5609_v21 = vadd.f32 %v5608_v6, %v5607_v8  ;;  %v10848_v46 = vmul.f32 %v5277_v3, %v5027_v60  ;;  %v5616_v62 = vsel %vm826_vm2, %v5538_v48, 0.0  ;;  %v5279_v8 = vld [vmem:[%s12217_s10 + $0x98] sm:$0xff] }
 0x61c   :  { %v5414_v38 = vadd.f32 %v5413_v58, %v5412_v37  ;;  %v10830_v23 = vmul.f32 %v5276_v27, %v5022_v9  ;;  %v5614_v28 = vsel %vm826_vm2, %v5537_v54, 0.0  ;;  %v5037_v2 = vadd.f32 %v6427_v10, %v10655_v16 }
 0x61d   :  { %v5611_v14 = vadd.f32 %v5610_v47, %v5609_v21  ;;  %v5031_v1 = vpop.f32.mrf.mxu1  ;;  %v5540_v5 = vmul.f32 %v10848_v46, %v10848_v46  ;;  %v5423_v6 = vsel %vm826_vm2, %v10848_v46, 0.0 }
 0x61e   :  { %v5416_v52 = vadd.f32 %v5415_v34, %v5414_v38  ;;  %v5032_v13 = vadd.f32 %v10655_v16, %v5031_v1  ;;  %v5539_v63 = vmul.f32 %v10830_v23, %v10830_v23  ;;  %v5421_v31 = vsel %vm826_vm2, %v10830_v23, 0.0  ;;  %v5281_v34 = vld [vmem:[%s12217_s10 + $0xa8] sm:$0xff] }
 0x61f   :  { %v6430_v36 = vpop.f32.mrf.mxu1  ;;  %v5613_v17 = vadd.f32 %v5612_v40, %v5611_v14  ;;  %v10870_v47 = vmul.f32 %v5279_v8, %v5037_v2  ;;  %v5620_v24 = vsel %vm826_vm2, %v5540_v5, 0.0 }
 0x620   :  { %v5418_v50 = vadd.f32 %v5417_v61, %v5416_v52  ;;  %v10852_v12 = vmul.f32 %v5278_v4, %v5032_v13  ;;  %v5618_v39 = vsel %vm826_vm2, %v5539_v63, 0.0  ;;  %v5047_v30 = vadd.f32 %v6430_v36, %v10655_v16  ;;  %v5282_v61 = vld [vmem:[%s12217_s10 + $0xb0] sm:$0xff] }
 0x621   :  { %v5615_v32 = vadd.f32 %v5614_v28, %v5613_v17  ;;  %v5041_v11 = vpop.f32.mrf.mxu1  ;;  %v5542_v52 = vmul.f32 %v10870_v47, %v10870_v47  ;;  %v5427_v60 = vsel %vm826_vm2, %v10870_v47, 0.0 }
 0x622   :  { %v5420_v42 = vadd.f32 %v5419_v44, %v5418_v50  ;;  %v5042_v56 = vadd.f32 %v10655_v16, %v5041_v11  ;;  %v5541_v58 = vmul.f32 %v10852_v12, %v10852_v12  ;;  %v5425_v18 = vsel %vm826_vm2, %v10852_v12, 0.0 }
 0x623   :  { %v6433_v0 = vpop.f32.mrf.mxu1  ;;  %v5617_v45 = vadd.f32 %v5616_v62, %v5615_v32  ;;  %v10892_v13 = vmul.f32 %v5281_v34, %v5047_v30  ;;  %v5624_v48 = vsel %vm826_vm2, %v5542_v52, 0.0  ;;  %v5284_v62 = vld [vmem:[%s12217_s10 + $0xc0] sm:$0xff]  ;;  %v5286_v30 = vld [vmem:[%s12217_s10 + $0xd0] sm:$0xff] }
 0x624   :  { %v5422_v51 = vadd.f32 %v5421_v31, %v5420_v42  ;;  %v10874_v9 = vmul.f32 %v5280_v57, %v5042_v56  ;;  %v5622_v27 = vsel %vm826_vm2, %v5541_v58, 0.0  ;;  %v5057_v32 = vadd.f32 %v6433_v0, %v10655_v16  ;;  %v5283_v42 = vld [vmem:[%s12217_s10 + $0xb8] sm:$0xff] }
 0x625   :  { %v5619_v37 = vadd.f32 %v5618_v39, %v5617_v45  ;;  %v5051_v10 = vpop.f32.mrf.mxu1  ;;  %v5544_v39 = vmul.f32 %v10892_v13, %v10892_v13 }
 0x626   :  { %v5424_v38 = vadd.f32 %v5423_v6, %v5422_v51  ;;  %v5052_v54 = vadd.f32 %v10655_v16, %v5051_v10  ;;  %v5543_v40 = vmul.f32 %v10874_v9, %v10874_v9  ;;  %v5429_v50 = vsel %vm826_vm2, %v10874_v9, 0.0 }
 0x627   :  { %v6436_v21 = vpop.f32.mrf.mxu1  ;;  %v5621_v1 = vadd.f32 %v5620_v24, %v5619_v37  ;;  %v5431_v51 = vsel %vm826_vm2, %v10892_v13, 0.0  ;;  %v10914_v45 = vmul.f32 %v5283_v42, %v5057_v32  ;;  %v5628_v37 = vsel %vm826_vm2, %v5544_v39, 0.0 }
 0x628   :  { %v5426_v14 = vadd.f32 %v5425_v18, %v5424_v38  ;;  %v10896_v17 = vmul.f32 %v5282_v61, %v5052_v54  ;;  %v5626_v63 = vsel %vm826_vm2, %v5543_v40, 0.0  ;;  %v5067_v6 = vadd.f32 %v6436_v21, %v10655_v16 }
 0x629   :  { %v5623_v28 = vadd.f32 %v5622_v27, %v5621_v1  ;;  %v5061_v36 = vpop.f32.mrf.mxu1  ;;  %v5285_v27 = vld [vmem:[%s12217_s10 + $0xc8] sm:$0xff]  ;;  %v5546_v54 = vmul.f32 %v10914_v45, %v10914_v45  ;;  %v5435_v34 = vsel %vm826_vm2, %v10914_v45, 0.0 }
 0x62a   :  { %v5428_v3 = vadd.f32 %v5427_v60, %v5426_v14  ;;  %v5062_v11 = vadd.f32 %v10655_v16, %v5061_v36  ;;  %v5545_v2 = vmul.f32 %v10896_v17, %v10896_v17  ;;  %v5433_v8 = vsel %vm826_vm2, %v10896_v17, 0.0 }
 0x62b   :  { %v6439_v4 = vpop.f32.mrf.mxu1  ;;  %v5625_v31 = vadd.f32 %v5624_v48, %v5623_v28  ;;  %v10936_v61 = vmul.f32 %v5285_v27, %v5067_v6  ;;  %v5632_v60 = vsel %vm826_vm2, %v5546_v54, 0.0  ;;  %v5290_v27 = vld [vmem:[%s12217_s10 + $0xf0] sm:$0xff] }
 0x62c   :  { %v5430_v44 = vadd.f32 %v5429_v50, %v5428_v3  ;;  %v10918_v57 = vmul.f32 %v5284_v62, %v5062_v11  ;;  %v5630_v10 = vsel %vm826_vm2, %v5545_v2, 0.0  ;;  %v5077_v3 = vadd.f32 %v6439_v4, %v10655_v16  ;;  %v5287_v11 = vld [vmem:[%s12217_s10 + $0xd8] sm:$0xff] }
 0x62d   :  { %v5627_v56 = vadd.f32 %v5626_v63, %v5625_v31  ;;  %v5071_v0 = vpop.f32.mrf.mxu1  ;;  %v5548_v31 = vmul.f32 %v10936_v61, %v10936_v61  ;;  %v5439_v39 = vsel %vm826_vm2, %v10936_v61, 0.0 }
 0x62e   :  { %v5432_v5 = vadd.f32 %v5431_v51, %v5430_v44  ;;  %v5072_v18 = vadd.f32 %v10655_v16, %v5071_v0  ;;  %v5547_v14 = vmul.f32 %v10918_v57, %v10918_v57  ;;  %v5437_v52 = vsel %vm826_vm2, %v10918_v57, 0.0  ;;  %v5288_v44 = vld [vmem:[%s12217_s10 + $0xe0] sm:$0xff] }
 0x62f   :  { %v6442_v58 = vpop.f32.mrf.mxu1  ;;  %v5629_v24 = vadd.f32 %v5628_v37, %v5627_v56  ;;  %v10958_v2 = vmul.f32 %v5287_v11, %v5077_v3 }
 0x630   :  { %v5434_v38 = vadd.f32 %v5433_v8, %v5432_v5  ;;  %v10940_v40 = vmul.f32 %v5286_v30, %v5072_v18  ;;  %v5634_v50 = vsel %vm826_vm2, %v5547_v14, 0.0  ;;  %v5636_v5 = vsel %vm826_vm2, %v5548_v31, 0.0  ;;  %v5292_v31 = vld [vmem:[%s12217_s10 + $0x100] sm:$0xff] }
 0x631   :  { %v5631_v1 = vadd.f32 %v5630_v10, %v5629_v24  ;;  %v5081_v21 = vpop.f32.mrf.mxu1  ;;  %v5087_v10 = vadd.f32 %v6442_v58, %v10655_v16  ;;  %v5289_v24 = vld [vmem:[%s12217_s10 + $0xe8] sm:$0xff]  ;;  %v5550_v30 = vmul.f32 %v10958_v2, %v10958_v2 }
 0x632   :  { %v5436_v28 = vadd.f32 %v5435_v34, %v5434_v38  ;;  %v5082_v48 = vadd.f32 %v10655_v16, %v5081_v21  ;;  %v5549_v42 = vmul.f32 %v10940_v40, %v10940_v40  ;;  %v5441_v56 = vsel %vm826_vm2, %v10940_v40, 0.0 }
 0x633   :  { %v6445_v36 = vpop.f32.mrf.mxu1  ;;  %v5633_v32 = vadd.f32 %v5632_v60, %v5631_v1  ;;  %v5443_v1 = vsel %vm826_vm2, %v10958_v2, 0.0  ;;  %v10980_v21 = vmul.f32 %v5289_v24, %v5087_v10 }
 0x634   :  { %v5438_v63 = vadd.f32 %v5437_v52, %v5436_v28  ;;  %v10962_v0 = vmul.f32 %v5288_v44, %v5082_v48  ;;  %v5638_v37 = vsel %vm826_vm2, %v5549_v42, 0.0  ;;  %v5097_v48 = vadd.f32 %v6445_v36, %v10655_v16  ;;  %v5291_v44 = vld [vmem:[%s12217_s10 + $0xf8] sm:$0xff] }
 0x635   :  { %v5635_v62 = vadd.f32 %v5634_v50, %v5633_v32  ;;  %v5091_v4 = vpop.f32.mrf.mxu1  ;;  %v5640_v50 = vsel %vm826_vm2, %v5550_v30, 0.0  ;;  %v5552_v42 = vmul.f32 %v10980_v21, %v10980_v21 }
 0x636   :  { %v5440_v51 = vadd.f32 %v5439_v39, %v5438_v63  ;;  %v5092_v6 = vadd.f32 %v10655_v16, %v5091_v4  ;;  %v5551_v54 = vmul.f32 %v10962_v0, %v10962_v0  ;;  %v5445_v34 = vsel %vm826_vm2, %v10962_v0, 0.0 }
 0x637   :  { %v6448_v8 = vpop.f32.mrf.mxu1  ;;  %v5637_v38 = vadd.f32 %v5636_v5, %v5635_v62  ;;  %v5447_v39 = vsel %vm826_vm2, %v10980_v21, 0.0 }
 0x638   :  { %v5442_v18 = vadd.f32 %v5441_v56, %v5440_v51  ;;  %v10984_v52 = vmul.f32 %v5290_v27, %v5092_v6  ;;  %v5642_v3 = vsel %vm826_vm2, %v5551_v54, 0.0  ;;  %v11002_v56 = vmul.f32 %v5291_v44, %v5097_v48  ;;  %v5293_v54 = vld [vmem:[%s12217_s10 + $0x108] sm:$0xff] }
 0x639   :  { %v5639_v14 = vadd.f32 %v5638_v37, %v5637_v38  ;;  %v5101_v58 = vpop.f32.mrf.mxu1  ;;  %v5644_v6 = vsel %vm826_vm2, %v5552_v42, 0.0  ;;  %v5107_v38 = vadd.f32 %v6448_v8, %v10655_v16 }
 0x63a   :  { %v5444_v28 = vadd.f32 %v5443_v1, %v5442_v18  ;;  %v5102_v63 = vadd.f32 %v10655_v16, %v5101_v58  ;;  %v5553_v62 = vmul.f32 %v10984_v52, %v10984_v52  ;;  %v5449_v51 = vsel %vm826_vm2, %v10984_v52, 0.0 }
 0x63b   :  { %v6451_v60 = vpop.f32.mrf.mxu1  ;;  %v5641_v11 = vadd.f32 %v5640_v50, %v5639_v14  ;;  %v5294_v14 = vld [vmem:[%s12217_s10 + $0x110] sm:$0xff]  ;;  %v5554_v58 = vmul.f32 %v11002_v56, %v11002_v56  ;;  %v11024_v50 = vmul.f32 %v5293_v54, %v5107_v38 }
 0x63c   :  { %v5446_v32 = vadd.f32 %v5445_v34, %v5444_v28  ;;  %v11006_v5 = vmul.f32 %v5292_v31, %v5102_v63  ;;  %v5646_v18 = vsel %vm826_vm2, %v5553_v62, 0.0  ;;  %v5451_v28 = vsel %vm826_vm2, %v11002_v56, 0.0 }
 0x63d   :  { %v5643_v4 = vadd.f32 %v5642_v3, %v5641_v11  ;;  %v5111_v36 = vpop.f32.mrf.mxu1  ;;  %v5648_v11 = vsel %vm826_vm2, %v5554_v58, 0.0  ;;  %v5117_v31 = vadd.f32 %v6451_v60, %v10655_v16 }
 0x63e   :  { %v5448_v37 = vadd.f32 %v5447_v39, %v5446_v32  ;;  %v5112_v24 = vadd.f32 %v10655_v16, %v5111_v36  ;;  %v5555_v1 = vmul.f32 %v11006_v5, %v11006_v5  ;;  %v5453_v3 = vsel %vm826_vm2, %v11006_v5, 0.0  ;;  %v5295_v36 = vld [vmem:[%s12217_s10 + $0x118] sm:$0xff]  ;;  %v5296_v39 = vld [vmem:[%s12217_s10 + $0x120] sm:$0xff] }
 0x63f   :  { %v6454_v10 = vpop.f32.mrf.mxu1  ;;  %v5645_v30 = vadd.f32 %v5644_v6, %v5643_v4  ;;  %v11046_v38 = vmul.f32 %v5295_v36, %v5117_v31 }
 0x640   :  { %v5450_v27 = vadd.f32 %v5449_v51, %v5448_v37  ;;  %v11028_v48 = vmul.f32 %v5294_v14, %v5112_v24  ;;  %v5650_v44 = vsel %vm826_vm2, %v5555_v1, 0.0  ;;  %v5556_v51 = vmul.f32 %v11024_v50, %v11024_v50 }
 0x641   :  { %v5647_v34 = vadd.f32 %v5646_v18, %v5645_v30  ;;  %v5121_v8 = vpop.f32.mrf.mxu1  ;;  %v5455_v18 = vsel %vm826_vm2, %v11024_v50, 0.0  ;;  %v5127_v1 = vadd.f32 %v6454_v10, %v10655_v16 }
 0x642   :  { %v5452_v63 = vadd.f32 %v5451_v28, %v5450_v27  ;;  %v5122_v42 = vadd.f32 %v10655_v16, %v5121_v8  ;;  %v5557_v37 = vmul.f32 %v11028_v48, %v11028_v48  ;;  %v5457_v24 = vsel %vm826_vm2, %v11028_v48, 0.0 }
 0x643   :  { %v6457_v32 = vpop.f32.mrf.mxu1  ;;  %v5649_v4 = vadd.f32 %v5648_v11, %v5647_v34  ;;  %v5652_v14 = vsel %vm826_vm2, %v5556_v51, 0.0  ;;  %v5558_v11 = vmul.f32 %v11046_v38, %v11046_v38 }
 0x644   :  { %v5454_v62 = vadd.f32 %v5453_v3, %v5452_v63  ;;  %v11050_v27 = vmul.f32 %v5296_v39, %v5122_v42  ;;  %v5654_v58 = vsel %vm826_vm2, %v5557_v37, 0.0  ;;  %v5297_v3 = vld [vmem:[%s12217_s10 + $0x128] sm:$0xff]  ;;  %v5298_v63 = vld [vmem:[%s12217_s10 + $0x130] sm:$0xff]  ;;  %v5459_v42 = vsel %vm826_vm2, %v11046_v38, 0.0 }
 0x645   :  { %v5651_v6 = vadd.f32 %v5650_v44, %v5649_v4  ;;  %v5131_v60 = vpop.f32.mrf.mxu1  ;;  %v5656_v37 = vsel %vm826_vm2, %v5558_v11, 0.0 }
 0x646   :  { %v5456_v30 = vadd.f32 %v5455_v18, %v5454_v62  ;;  %v5132_v34 = vadd.f32 %v10655_v16, %v5131_v60  ;;  %v5559_v44 = vmul.f32 %v11050_v27, %v11050_v27  ;;  %v11068_v62 = vmul.f32 %v5297_v3, %v5127_v1 }
 0x647   :  { %v6460_v54 = vpop.f32.mrf.mxu1  ;;  %v5653_v28 = vadd.f32 %v5652_v14, %v5651_v6  ;;  %v5461_v4 = vsel %vm826_vm2, %v11050_v27, 0.0  ;;  %v5137_v60 = vadd.f32 %v6457_v32, %v10655_v16  ;;  %v5299_v14 = vld [vmem:[%s12217_s10 + $0x138] sm:$0xff] }
 0x648   :  { %v5458_v8 = vadd.f32 %v5457_v24, %v5456_v30  ;;  %v11072_v36 = vmul.f32 %v5298_v63, %v5132_v34  ;;  %v5658_v6 = vsel %vm826_vm2, %v5559_v44, 0.0  ;;  %v5560_v1 = vmul.f32 %v11068_v62, %v11068_v62 }
 0x649   :  { %v5655_v31 = vadd.f32 %v5654_v58, %v5653_v28  ;;  %v5141_v10 = vpop.f32.mrf.mxu1  ;;  %v5300_v58 = vld [vmem:[%s12217_s10 + $0x140] sm:$0xff]  ;;  %v5463_v28 = vsel %vm826_vm2, %v11068_v62, 0.0  ;;  %v11090_v3 = vmul.f32 %v5299_v14, %v5137_v60  ;;  %v5301_v60 = vld [vmem:[%s12217_s10 + $0x148] sm:$0xff] }
 0x64a   :  { %12869 = vst [vmem:[#allocation25_spill] sm:$0xff] %v11072_v36  ;;  %v5460_v39 = vadd.f32 %v5459_v42, %v5458_v8  ;;  %v5142_v18 = vadd.f32 %v10655_v16, %v5141_v10  ;;  %v5561_v34 = vmul.f32 %v11072_v36, %v11072_v36  ;;  %v5465_v63 = vsel %vm826_vm2, %v11072_v36, 0.0 }
 0x64b   :  { %v6463_v51 = vpop.f32.mrf.mxu1  ;;  %v5657_v30 = vadd.f32 %v5656_v37, %v5655_v31  ;;  %12870 = vst [vmem:[#allocation65_spill] sm:$0xff] %v11090_v3  ;;  %v5660_v10 = vsel %vm826_vm2, %v5560_v1, 0.0 }
 0x64c   :  { %v5462_v24 = vadd.f32 %v5461_v4, %v5460_v39  ;;  %v11094_v11 = vmul.f32 %v5300_v58, %v5142_v18  ;;  %v5662_v42 = vsel %vm826_vm2, %v5561_v34, 0.0  ;;  %v5147_v4 = vadd.f32 %v6460_v54, %v10655_v16  ;;  %v5302_v18 = vld [vmem:[%s12217_s10 + $0x150] sm:$0xff] }
 0x64d   :  { %v5659_v8 = vadd.f32 %v5658_v6, %v5657_v30  ;;  %v5151_v32 = vpop.f32.mrf.mxu1  ;;  %v5467_v58 = vsel %vm826_vm2, %v11090_v3, 0.0 }
 0x64e   :  { %12871 = vst [vmem:[#allocation67_spill] sm:$0xff] %v11094_v11  ;;  %v5464_v44 = vadd.f32 %v5463_v28, %v5462_v24  ;;  %v5152_v39 = vadd.f32 %v10655_v16, %v5151_v32  ;;  %v5562_v24 = vmul.f32 %v11090_v3, %v11090_v3  ;;  %v5563_v30 = vmul.f32 %v11094_v11, %v11094_v11 }
 0x64f   :  { %v6466_v31 = vpop.f32.mrf.mxu1  ;;  %v5661_v6 = vadd.f32 %v5660_v10, %v5659_v8  ;;  %v11112_v1 = vmul.f32 %v5301_v60, %v5147_v4  ;;  %v5469_v34 = vsel %vm826_vm2, %v11094_v11, 0.0  ;;  %v5157_v10 = vadd.f32 %v6463_v51, %v10655_v16  ;;  %v5303_v4 = vld [vmem:[%s12217_s10 + $0x158] sm:$0xff] }
 0x650   :  { %v5466_v37 = vadd.f32 %v5465_v63, %v5464_v44  ;;  %v11116_v8 = vmul.f32 %v5302_v18, %v5152_v39  ;;  %v5664_v63 = vsel %vm826_vm2, %v5562_v24, 0.0  ;;  %v5666_v44 = vsel %vm826_vm2, %v5563_v30, 0.0  ;;  %v5304_v39 = vld [vmem:[%s12217_s10 + $0x160] sm:$0xff] }
 0x651   :  { %v5663_v14 = vadd.f32 %v5662_v42, %v5661_v6  ;;  %v5161_v54 = vpop.f32.mrf.mxu1  ;;  %12872 = vst [vmem:[#allocation123_spill] sm:$0xff] %v11112_v1  ;;  %v5471_v24 = vsel %vm826_vm2, %v11112_v1, 0.0  ;;  %v11134_v30 = vmul.f32 %v5303_v4, %v5157_v10  ;;  %v5167_v11 = vadd.f32 %v6466_v31, %v10655_v16  ;;  %v5305_v10 = vld [vmem:[%s12217_s10 + $0x168] sm:$0xff] }
 0x652   :  { %12873 = vst [vmem:[#allocation125_spill] sm:$0xff] %v11116_v8  ;;  %v5468_v32 = vadd.f32 %v5467_v58, %v5466_v37  ;;  %v5162_v42 = vadd.f32 %v10655_v16, %v5161_v54  ;;  %v5564_v37 = vmul.f32 %v11112_v1, %v11112_v1  ;;  %v5565_v60 = vmul.f32 %v11116_v8, %v11116_v8 }
 0x653   :  { %v6469_v28 = vpop.f32.mrf.mxu1  ;;  %v5665_v36 = vadd.f32 %v5664_v63, %v5663_v14  ;;  %12874 = vst [vmem:[#allocation183_spill] sm:$0xff] %v11134_v30  ;;  %v5473_v14 = vsel %vm826_vm2, %v11116_v8, 0.0 }
 0x654   :  { %v5470_v6 = vadd.f32 %v5469_v34, %v5468_v32  ;;  %v11138_v54 = vmul.f32 %v5304_v39, %v5162_v42  ;;  %v5668_v32 = vsel %vm826_vm2, %v5564_v37, 0.0  ;;  %v5670_v63 = vsel %vm826_vm2, %v5565_v60, 0.0  ;;  %v5306_v42 = vld [vmem:[%s12217_s10 + $0x170] sm:$0xff] }
 0x655   :  { %v5667_v18 = vadd.f32 %v5666_v44, %v5665_v36  ;;  %v5171_v51 = vpop.f32.mrf.mxu1  ;;  %v5475_v37 = vsel %vm826_vm2, %v11134_v30, 0.0  ;;  %v11156_v60 = vmul.f32 %v5305_v10, %v5167_v11  ;;  %v5177_v8 = vadd.f32 %v6469_v28, %v10655_v16  ;;  %v5307_v11 = vld [vmem:[%s12217_s10 + $0x178] sm:$0xff] }
 0x656   :  { %12875 = vst [vmem:[#allocation185_spill] sm:$0xff] %v11138_v54  ;;  %v5472_v58 = vadd.f32 %v5471_v24, %v5470_v6  ;;  %v5172_v36 = vadd.f32 %v10655_v16, %v5171_v51  ;;  %v5566_v6 = vmul.f32 %v11134_v30, %v11134_v30  ;;  %v5567_v4 = vmul.f32 %v11138_v54, %v11138_v54 }
 0x657   :  { %v5669_v3 = vadd.f32 %v5668_v32, %v5667_v18  ;;  %12876 = vst [vmem:[#allocation217_spill] sm:$0xff] %v11156_v60  ;;  %v5477_v18 = vsel %vm826_vm2, %v11138_v54, 0.0 }
 0x658   :  { %v5474_v44 = vadd.f32 %v5473_v14, %v5472_v58  ;;  %v11160_v51 = vmul.f32 %v5306_v42, %v5172_v36  ;;  %v5672_v58 = vsel %vm826_vm2, %v5566_v6, 0.0  ;;  %v5674_v32 = vsel %vm826_vm2, %v5567_v4, 0.0  ;;  %v5308_v36 = vld [vmem:[%s12217_s10 + $0x180] sm:$0xff] }
 0x659   :  { %v5671_v39 = vadd.f32 %v5670_v63, %v5669_v3  ;;  %v5479_v6 = vsel %vm826_vm2, %v11156_v60, 0.0  ;;  %v11178_v4 = vmul.f32 %v5307_v11, %v5177_v8  ;;  %v5309_v8 = vld [vmem:[%s12217_s10 + $0x188] sm:$0xff] }
 0x65a   :  { %12877 = vst [vmem:[#allocation22_spill] sm:$0xff] %v11160_v51  ;;  %v5476_v24 = vadd.f32 %v5475_v37, %v5474_v44  ;;  %v5568_v44 = vmul.f32 %v11156_v60, %v11156_v60  ;;  %v5569_v10 = vmul.f32 %v11160_v51, %v11160_v51 }
 0x65b   :  { %v6472_v34 = vpop.f32.mrf.mxu1  ;;  %v5673_v1 = vadd.f32 %v5672_v58, %v5671_v39  ;;  %12878 = vst [vmem:[#allocation211_spill] sm:$0xff] %v11178_v4  ;;  %v5481_v39 = vsel %vm826_vm2, %v11160_v51, 0.0 }
 0x65c   :  { %v5478_v63 = vadd.f32 %v5477_v18, %v5476_v24  ;;  %v5676_v24 = vsel %vm826_vm2, %v5568_v44, 0.0  ;;  %v5678_v58 = vsel %vm826_vm2, %v5569_v10, 0.0  ;;  %v5187_v54 = vadd.f32 %v6472_v34, %v10655_v16 }
 0x65d   :  { %v5181_v31 = vpop.f32.mrf.mxu1  ;;  %v5675_v42 = vadd.f32 %v5674_v32, %v5673_v1  ;;  %v5483_v44 = vsel %vm826_vm2, %v11178_v4, 0.0 }
 0x65e   :  { %v5182_v3 = vadd.f32 %v10655_v16, %v5181_v31  ;;  %v5480_v37 = vadd.f32 %v5479_v6, %v5478_v63  ;;  %v5570_v63 = vmul.f32 %v11178_v4, %v11178_v4  ;;  %v11200_v10 = vmul.f32 %v5309_v8, %v5187_v54  ;;  %v5311_v54 = vld [vmem:[%s12217_s10 + $0x198] sm:$0xff] }
 0x65f   :  { %v5677_v30 = vadd.f32 %v5676_v24, %v5675_v42 }
 0x660   :  { %v11182_v31 = vmul.f32 %v5308_v36, %v5182_v3  ;;  %v5482_v32 = vadd.f32 %v5481_v39, %v5480_v37  ;;  %v5310_v3 = vld [vmem:[%s12217_s10 + $0x190] sm:$0xff]  ;;  %12880 = vst [vmem:[#allocation66_spill] sm:$0xff] %v11200_v10  ;;  %v5680_v37 = vsel %vm826_vm2, %v5570_v63, 0.0  ;;  %v5487_v63 = vsel %vm826_vm2, %v11200_v10, 0.0 }
 0x661   :  { %v5679_v36 = vadd.f32 %v5678_v58, %v5677_v30 }
 0x662   :  { %12879 = vst [vmem:[#allocation26_spill] sm:$0xff] %v11182_v31  ;;  %v5571_v11 = vmul.f32 %v11182_v31, %v11182_v31  ;;  %v5485_v42 = vsel %vm826_vm2, %v11182_v31, 0.0  ;;  %v5484_v6 = vadd.f32 %v5483_v44, %v5482_v32  ;;  %v5572_v32 = vmul.f32 %v11200_v10, %v11200_v10 }
 0x663   :  { %v5681_v60 = vadd.f32 %v5680_v37, %v5679_v36 }
 0x664   :  { %v5682_v24 = vsel %vm826_vm2, %v5571_v11, 0.0  ;;  %v5486_v58 = vadd.f32 %v5485_v42, %v5484_v6  ;;  %v5684_v6 = vsel %vm826_vm2, %v5572_v32, 0.0 }
 0x666   :  { %v5488_v44 = vadd.f32 %v5487_v63, %v5486_v58 }
 0x66b   :  { %v6475_v14 = vpop.f32.mrf.mxu1 }
 0x66c   :  { %v5197_v51 = vadd.f32 %v6475_v14, %v10655_v16 }
 0x66d   :  { %v5191_v28 = vpop.f32.mrf.mxu1 }
 0x66e   :  { %v5192_v1 = vadd.f32 %v10655_v16, %v5191_v28  ;;  %v11222_v11 = vmul.f32 %v5311_v54, %v5197_v51  ;;  %v5313_v51 = vld [vmem:[%s12217_s10 + $0x1a8] sm:$0xff] }
 0x670   :  { %v11204_v28 = vmul.f32 %v5310_v3, %v5192_v1  ;;  %v5312_v1 = vld [vmem:[%s12217_s10 + $0x1a0] sm:$0xff]  ;;  %v5683_v3 = vadd.f32 %v5682_v24, %v5681_v60  ;;  %12882 = vst [vmem:[#allocation124_spill] sm:$0xff] %v11222_v11  ;;  %v5574_v58 = vmul.f32 %v11222_v11, %v11222_v11  ;;  %v5491_v32 = vsel %vm826_vm2, %v11222_v11, 0.0 }
 0x672   :  { %12881 = vst [vmem:[#allocation69_spill] sm:$0xff] %v11204_v28  ;;  %v5573_v8 = vmul.f32 %v11204_v28, %v11204_v28  ;;  %v5489_v36 = vsel %vm826_vm2, %v11204_v28, 0.0  ;;  %v5685_v4 = vadd.f32 %v5684_v6, %v5683_v3 }
 0x673   :  { %v5490_v24 = vadd.f32 %v5489_v36, %v5488_v44  ;;  %v5688_v44 = vsel %vm826_vm2, %v5574_v58, 0.0 }
 0x674   :  { %v5686_v37 = vsel %vm826_vm2, %v5573_v8, 0.0 }
 0x675   :  { %v5492_v63 = vadd.f32 %v5491_v32, %v5490_v24 }
 0x67b   :  { %v6478_v18 = vpop.f32.mrf.mxu1 }
 0x67c   :  { %v5207_v31 = vadd.f32 %v6478_v18, %v10655_v16 }
 0x67d   :  { %v5201_v34 = vpop.f32.mrf.mxu1 }
 0x67e   :  { %v5202_v30 = vadd.f32 %v10655_v16, %v5201_v34  ;;  %v11244_v8 = vmul.f32 %v5313_v51, %v5207_v31  ;;  %v5315_v31 = vld [vmem:[%s12217_s10 + $0x1b8] sm:$0xff] }
 0x680   :  { %v11226_v34 = vmul.f32 %v5312_v1, %v5202_v30  ;;  %v5314_v30 = vld [vmem:[%s12217_s10 + $0x1b0] sm:$0xff]  ;;  %v5687_v1 = vadd.f32 %v5686_v37, %v5685_v4  ;;  %v5576_v24 = vmul.f32 %v11244_v8, %v11244_v8  ;;  %v5495_v58 = vsel %vm826_vm2, %v11244_v8, 0.0 }
 0x682   :  { %12883 = vst [vmem:[#allocation127_spill] sm:$0xff] %v11226_v34  ;;  %v5575_v54 = vmul.f32 %v11226_v34, %v11226_v34  ;;  %v5493_v3 = vsel %vm826_vm2, %v11226_v34, 0.0  ;;  %v5689_v10 = vadd.f32 %v5688_v44, %v5687_v1 }
 0x683   :  { %v5494_v37 = vadd.f32 %v5493_v3, %v5492_v63  ;;  %v5692_v63 = vsel %vm826_vm2, %v5576_v24, 0.0 }
 0x684   :  { %v5690_v6 = vsel %vm826_vm2, %v5575_v54, 0.0 }
 0x685   :  { %v5496_v32 = vadd.f32 %v5495_v58, %v5494_v37 }
 0x68b   :  { %v6481_v39 = vpop.f32.mrf.mxu1 }
 0x68c   :  { %v5217_v28 = vadd.f32 %v6481_v39, %v10655_v16 }
 0x68d   :  { %v5211_v14 = vpop.f32.mrf.mxu1 }
 0x68e   :  { %v5212_v60 = vadd.f32 %v10655_v16, %v5211_v14  ;;  %v11266_v54 = vmul.f32 %v5315_v31, %v5217_v28  ;;  %v5317_v28 = vld [vmem:[%s12217_s10 + $0x1c8] sm:$0xff] }
 0x690   :  { %v11248_v14 = vmul.f32 %v5314_v30, %v5212_v60  ;;  %v5316_v60 = vld [vmem:[%s12217_s10 + $0x1c0] sm:$0xff]  ;;  %v5691_v30 = vadd.f32 %v5690_v6, %v5689_v10  ;;  %12884 = vst [vmem:[#allocation184_spill] sm:$0xff] %v11266_v54  ;;  %v5578_v37 = vmul.f32 %v11266_v54, %v11266_v54 }
 0x692   :  { %v5577_v51 = vmul.f32 %v11248_v14, %v11248_v14  ;;  %v5497_v1 = vsel %vm826_vm2, %v11248_v14, 0.0  ;;  %v5693_v11 = vadd.f32 %v5692_v63, %v5691_v30  ;;  %v5696_v58 = vsel %vm826_vm2, %v5578_v37, 0.0 }
 0x693   :  { %v5498_v6 = vadd.f32 %v5497_v1, %v5496_v32 }
 0x694   :  { %v5694_v44 = vsel %vm826_vm2, %v5577_v51, 0.0 }
 0x69b   :  { %v6484_v42 = vpop.f32.mrf.mxu1 }
 0x69c   :  { %v5227_v34 = vadd.f32 %v6484_v42, %v10655_v16 }
 0x69d   :  { %v5221_v18 = vpop.f32.mrf.mxu1 }
 0x69e   :  { %v5222_v4 = vadd.f32 %v10655_v16, %v5221_v18  ;;  %v11288_v24 = vmul.f32 %v5317_v28, %v5227_v34  ;;  %v5319_v34 = vld [vmem:[%s12217_s10 + $0x1d8] sm:$0xff] }
 0x6a0   :  { %v11270_v18 = vmul.f32 %v5316_v60, %v5222_v4  ;;  %v5318_v4 = vld [vmem:[%s12217_s10 + $0x1d0] sm:$0xff]  ;;  %v5695_v60 = vadd.f32 %v5694_v44, %v5693_v11  ;;  %12886 = vst [vmem:[#allocation221_spill] sm:$0xff] %v11288_v24  ;;  %v6586_v11 = vld [vmem:[%s12216_s7] ss:$0 sm:$0xff] }
 0x6a2   :  { %12885 = vst [vmem:[#allocation187_spill] sm:$0xff] %v11270_v18  ;;  %v5579_v31 = vmul.f32 %v11270_v18, %v11270_v18  ;;  %v5501_v51 = vsel %vm826_vm2, %v11270_v18, 0.0 }
 0x6a4   :  { %v5698_v1 = vsel %vm826_vm2, %v5579_v31, 0.0 }
 0x6ab   :  { %v6487_v36 = vpop.f32.mrf.mxu1 }
 0x6ac   :  { %v5237_v32 = vadd.f32 %v6586_v11, %v6487_v36  ;;  %v5503_v36 = vsel %vm826_vm2, %v11288_v24, 0.0 }
 0x6ad   :  { %v5231_v39 = vpop.f32.mrf.mxu1 }
 0x6ae   :  { %v5232_v10 = vadd.f32 %v10655_v16, %v5231_v39  ;;  %v5499_v16 = vsel %vm826_vm2, %v11266_v54, 0.0  ;;  %v5697_v54 = vadd.f32 %v5696_v58, %v5695_v60  ;;  %v11311_v37 = vmul.f32 %v5319_v34, %v5237_v32 }
 0x6af   :  { %v5500_v39 = vadd.f32 %v5499_v16, %v5498_v6  ;;  %v5580_v6 = vmul.f32 %v11288_v24, %v11288_v24 }
 0x6b0   :  { %v11292_v30 = vmul.f32 %v5318_v4, %v5232_v10  ;;  %v5320_v10 = vld [vmem:[%s12217_s10 + $0x1e0] sm:$0xff]  ;;  %v5699_v4 = vadd.f32 %v5698_v1, %v5697_v54  ;;  %12888 = vst [vmem:[#allocation214_spill] sm:$0xff] %v11311_v37  ;;  %v5321_v54 = vld [vmem:[%s12217_s10 + $0x1e8] sm:$0xff]  ;;  %v5582_v1 = vmul.f32 %v11311_v37, %v11311_v37 }
 0x6b1   :  { %v5502_v44 = vadd.f32 %v5501_v51, %v5500_v39  ;;  %v5700_v16 = vsel %vm826_vm2, %v5580_v6, 0.0 }
 0x6b2   :  { %12887 = vst [vmem:[#allocation24_spill] sm:$0xff] %v11292_v30  ;;  %v5581_v28 = vmul.f32 %v11292_v30, %v11292_v30  ;;  %v5505_v31 = vsel %vm826_vm2, %v11292_v30, 0.0  ;;  %v5701_v18 = vadd.f32 %v5700_v16, %v5699_v4  ;;  %v5704_v4 = vsel %vm826_vm2, %v5582_v1, 0.0 }
 0x6b4   :  { %v5702_v51 = vsel %vm826_vm2, %v5581_v28, 0.0  ;;  %v5323_v28 = vld [vmem:[%s12217_s10 + $0x1f8] sm:$0xff] }
 0x6bb   :  { %v6490_v3 = vpop.f32.mrf.mxu1 }
 0x6bc   :  { %v5247_v39 = vadd.f32 %v6586_v11, %v6490_v3 }
 0x6bd   :  { %v5241_v42 = vpop.f32.mrf.mxu1 }
 0x6be   :  { %v5242_v63 = vadd.f32 %v6586_v11, %v5241_v42  ;;  %v5504_v42 = vadd.f32 %v5503_v36, %v5502_v44  ;;  %v5507_v44 = vsel %vm826_vm2, %v11311_v37, 0.0  ;;  %v11328_v34 = vmul.f32 %v5321_v54, %v5247_v39 }
 0x6c0   :  { %v11315_v60 = vmul.f32 %v5320_v10, %v5242_v63  ;;  %v5506_v58 = vadd.f32 %v5505_v31, %v5504_v42  ;;  %v5703_v63 = vadd.f32 %v5702_v51, %v5701_v18  ;;  %12890 = vst [vmem:[#allocation68_spill] sm:$0xff] %v11328_v34  ;;  %v5322_v51 = vld [vmem:[%s12217_s10 + $0x1f0] sm:$0xff]  ;;  %v5584_v39 = vmul.f32 %v11328_v34, %v11328_v34 }
 0x6c1   :  { %v5511_v1 = vsel %vm826_vm2, %v11328_v34, 0.0 }
 0x6c2   :  { %12889 = vst [vmem:[#allocation5_spill] sm:$0xff] %v11315_v60  ;;  %v5583_v32 = vmul.f32 %v11315_v60, %v11315_v60  ;;  %v5509_v3 = vsel %vm826_vm2, %v11315_v60, 0.0  ;;  %v5508_v10 = vadd.f32 %v5507_v44, %v5506_v58  ;;  %v5705_v42 = vadd.f32 %v5704_v4, %v5703_v63 }
 0x6c3   :  { %v5708_v63 = vsel %vm826_vm2, %v5584_v39, 0.0 }
 0x6c4   :  { %v5706_v36 = vsel %vm826_vm2, %v5583_v32, 0.0  ;;  %v5510_v18 = vadd.f32 %v5509_v3, %v5508_v10 }
 0x6c5   :  { %v5707_v44 = vadd.f32 %v5706_v36, %v5705_v42 }
 0x6c6   :  { %v5512_v32 = vadd.f32 %v5511_v1, %v5510_v18 }
 0x6ce   :  { %v6493_v6 = vpop.f32.mrf.mxu1 }
 0x6cf   :  { %v5257_v31 = vadd.f32 %v6586_v11, %v6493_v6 }
 0x6d0   :  { %v5251_v16 = vpop.f32.mrf.mxu1 }
 0x6d1   :  { %v11342_v58 = vmul.f32 %v5323_v28, %v5257_v31  ;;  %v5252_v54 = vadd.f32 %v6586_v11, %v5251_v16  ;;  %v5709_v11 = vadd.f32 %v5708_v63, %v5707_v44 }
 0x6d3   :  { %12891 = vst [vmem:[#allocation71_spill] sm:$0xff] %v11342_v58  ;;  %v11346_v60 = vmul.f32 %v5322_v51, %v5252_v54  ;;  %v5586_v3 = vmul.f32 %v11342_v58, %v11342_v58  ;;  %v5515_v4 = vsel %vm826_vm2, %v11342_v58, 0.0 }
 0x6d5   :  { %12892 = vst [vmem:[#allocation126_spill] sm:$0xff] %v11346_v60  ;;  %v5513_v10 = vsel %vm826_vm2, %v11346_v60, 0.0  ;;  %v5585_v6 = vmul.f32 %v11346_v60, %v11346_v60  ;;  %v5712_v42 = vsel %vm826_vm2, %v5586_v3, 0.0  ;;  %v5388_v3 = vld [vmem:[%s12218_s8] sm:$0x1] }
 0x6d6   :  { %v5514_v28 = vadd.f32 %v5513_v10, %v5512_v32 }
 0x6d7   :  { %v5710_v36 = vsel %vm826_vm2, %v5585_v6, 0.0 }
 0x6d8   :  { %v5516_v31 = vadd.f32 %v5515_v4, %v5514_v28  ;;  %v5711_v18 = vadd.f32 %v5710_v36, %v5709_v11 }
 0x6da   :  { %v5517_v16 = vrot.slane %v5516_v31, 4  ;;  %v5713_v51 = vadd.f32 %v5712_v42, %v5711_v18 }
 0x6dc   :  { %v5518_v39 = vadd.f32 %v5517_v16, %v5516_v31  ;;  %v5714_v54 = vrot.slane %v5713_v51, 4  ;;  %v11365_v31 = vld [vmem:[%s12219_s9] sm:$0x1] }
 0x6de   :  { %v5519_v1 = vrot.slane %v5518_v39, 2  ;;  %v5715_v34 = vadd.f32 %v5714_v54, %v5713_v51  ;;  %v12894_v51 = vld [vmem:[#allocation25_spill] sm:$0xff]  ;;  %v12896_v54 = vld [vmem:[#allocation67_spill] sm:$0xff] }
 0x6e0   :  { %v5520_v37 = vadd.f32 %v5519_v1, %v5518_v39  ;;  %v5716_v30 = vrot.slane %v5715_v34, 2  ;;  %v12895_v39 = vld [vmem:[#allocation65_spill] sm:$0xff]  ;;  %v12897_v1 = vld [vmem:[#allocation123_spill] sm:$0xff] }
 0x6e2   :  { %v5521_v60 = vrot.slane %v5520_v37, 1  ;;  %v5717_v32 = vadd.f32 %v5716_v30, %v5715_v34 }
 0x6e4   :  { %v5522_v44 = vadd.f32 %v5521_v60, %v5520_v37  ;;  %v5718_v63 = vrot.slane %v5717_v32, 1  ;;  %v12893_v37 = vld [vmem:[#allocation27_spill] sm:$0xff] }
 0x6e6   :  { %v5719_v10 = vadd.f32 %v5718_v63, %v5717_v32  ;;  %v5720_v58 = vmul.f32 0.001953125, %v5522_v44  ;;  %v12898_v32 = vld [vmem:[#allocation125_spill] sm:$0xff]  ;;  %v12899_v44 = vld [vmem:[#allocation183_spill] sm:$0xff] }
 0x6e8   :  { %v5721_v24 = vmul.f32 0.001953125, %v5719_v10  ;;  %v5722_v6 = vmul.f32 %v5720_v58, %v5720_v58  ;;  %v12900_v10 = vld [vmem:[#allocation185_spill] sm:$0xff] }
 0x6ea   :  { %v5723_v28 = vsub.f32 %v5721_v24, %v5722_v6 }
 0x6ec   :  { %v5724_v11 = vadd.f32 1e-05, %v5723_v28  ;;  %v12901_v28 = vld [vmem:[#allocation217_spill] sm:$0xff] }
 0x6ee   :  { %6523 = vrsqrt.f32 %v5724_v11 }
 0x6fb   :  { %v6524_v4 = vpop.eup %6523 }
 0x6fc   :  { %v5726_v36 = vmul.f32 %v6524_v4, %v5388_v3  ;;  %v12902_v3 = vld [vmem:[#allocation22_spill] sm:$0xff] }
 0x6fe   :  { %v11367_v30 = vmul.f32 %v5726_v36, %v5720_v58  ;;  %v11370_v60 = vrot.slane %v5726_v36, %v12893_v37  ;;  %v12903_v36 = vld [vmem:[#allocation211_spill] sm:$0xff] }
 0x700   :  { %v5728_v24 = vsub.f32 %v11365_v31, %v11367_v30  ;;  %v11376_v34 = vmul.f32 %v11370_v60, %v10669_v26  ;;  %v11380_v18 = vmul.f32 %v11370_v60, %v10671_v35  ;;  %v11384_v42 = vmul.f32 %v11370_v60, %v10673_v41  ;;  %v12904_v30 = vld [vmem:[#allocation26_spill] sm:$0xff] }
 0x701   :  { %v11388_v58 = vmul.f32 %v11370_v60, %v10694_v49  ;;  %v11392_v16 = vmul.f32 %v11370_v60, %v10698_v43  ;;  %v11396_v26 = vmul.f32 %v11370_v60, %v10716_v25  ;;  %v11400_v35 = vmul.f32 %v11370_v60, %v10720_v22 }
 0x702   :  { %v11404_v41 = vmul.f32 %v11370_v60, %v10738_v33  ;;  %v11408_v49 = vmul.f32 %v11370_v60, %v10742_v15  ;;  %v11412_v43 = vmul.f32 %v11370_v60, %v10760_v19  ;;  %v11416_v25 = vmul.f32 %v11370_v60, %v10764_v29 }
 0x703   :  { %v11420_v22 = vmul.f32 %v11370_v60, %v10782_v53  ;;  %v11424_v33 = vmul.f32 %v11370_v60, %v10786_v7  ;;  %v11428_v15 = vmul.f32 %v11370_v60, %v10804_v20  ;;  %v11432_v19 = vmul.f32 %v11370_v60, %v10808_v59 }
 0x704   :  { %v11436_v29 = vmul.f32 %v11370_v60, %v10826_v55  ;;  %v11440_v53 = vmul.f32 %v11370_v60, %v10830_v23  ;;  %v11444_v7 = vmul.f32 %v11370_v60, %v10848_v46  ;;  %v11448_v20 = vmul.f32 %v11370_v60, %v10852_v12 }
 0x705   :  { %v11452_v59 = vmul.f32 %v11370_v60, %v10870_v47  ;;  %v11456_v55 = vmul.f32 %v11370_v60, %v10874_v9  ;;  %v11460_v23 = vmul.f32 %v11370_v60, %v10892_v13  ;;  %v11464_v46 = vmul.f32 %v11370_v60, %v10896_v17 }
 0x706   :  { %v11468_v12 = vmul.f32 %v11370_v60, %v10914_v45  ;;  %v11472_v47 = vmul.f32 %v11370_v60, %v10918_v57  ;;  %v11476_v9 = vmul.f32 %v11370_v60, %v10936_v61  ;;  %v11480_v13 = vmul.f32 %v11370_v60, %v10940_v40 }
 0x707   :  { %v11484_v17 = vmul.f32 %v11370_v60, %v10958_v2  ;;  %v11488_v45 = vmul.f32 %v11370_v60, %v10962_v0  ;;  %v11492_v57 = vmul.f32 %v11370_v60, %v10980_v21  ;;  %v11496_v61 = vmul.f32 %v11370_v60, %v10984_v52 }
 0x708   :  { %v11500_v40 = vmul.f32 %v11370_v60, %v11002_v56  ;;  %v11504_v2 = vmul.f32 %v11370_v60, %v11006_v5  ;;  %v11508_v0 = vmul.f32 %v11370_v60, %v11024_v50  ;;  %v11512_v21 = vmul.f32 %v11370_v60, %v11028_v48 }
 0x709   :  { %v11516_v52 = vmul.f32 %v11370_v60, %v11046_v38  ;;  %v11520_v56 = vmul.f32 %v11370_v60, %v11050_v27  ;;  %v11524_v5 = vmul.f32 %v11370_v60, %v11068_v62  ;;  %v11528_v50 = vmul.f32 %v11370_v60, %v12894_v51 }
 0x70a   :  { %v11532_v48 = vmul.f32 %v11370_v60, %v12895_v39  ;;  %v11536_v38 = vmul.f32 %v11370_v60, %v12896_v54  ;;  %v11540_v27 = vmul.f32 %v11370_v60, %v12897_v1  ;;  %v11544_v62 = vmul.f32 %v11370_v60, %v12898_v32  ;;  %v12905_v39 = vld [vmem:[#allocation66_spill] sm:$0xff]  ;;  %v12906_v1 = vld [vmem:[#allocation69_spill] sm:$0xff] }
 0x70b   :  { %v11548_v63 = vmul.f32 %v11370_v60, %v12899_v44  ;;  %v11552_v6 = vmul.f32 %v11370_v60, %v12900_v10  ;;  %v11556_v11 = vmul.f32 %v11370_v60, %v12901_v28  ;;  %v11560_v4 = vmul.f32 %v11370_v60, %v12902_v3  ;;  %v12908_v44 = vld [vmem:[#allocation124_spill] sm:$0xff]  ;;  %v12910_v28 = vld [vmem:[#allocation127_spill] sm:$0xff] }
 0x70c   :  { %v11564_v31 = vmul.f32 %v11370_v60, %v12903_v36  ;;  %v11568_v51 = vmul.f32 %v11370_v60, %v12904_v30  ;;  %v11572_v54 = vmul.f32 %v11370_v60, %v12905_v39  ;;  %v11576_v32 = vmul.f32 %v11370_v60, %v12906_v1  ;;  %v12914_v39 = vld [vmem:[#allocation184_spill] sm:$0xff] }
 0x70d   :  { %v11580_v10 = vmul.f32 %v11370_v60, %v12908_v44  ;;  %v11584_v3 = vmul.f32 %v11370_v60, %v12910_v28  ;;  %v11588_v36 = vmul.f32 %v11370_v60, %v11244_v8  ;;  %v11592_v30 = vmul.f32 %v11370_v60, %v11248_v14 }
 0x70e   :  { %12907 = vst [vmem:[#allocation129_spill] sm:$0xff] %v11576_v32  ;;  %v11596_v1 = vmul.f32 %v11370_v60, %v12914_v39  ;;  %v12916_v32 = vld [vmem:[#allocation187_spill] sm:$0xff]  ;;  %v12923_v39 = vld [vmem:[#allocation5_spill] sm:$0xff] }
 0x70f   :  { %12909 = vst [vmem:[#allocation186_spill] sm:$0xff] %v11580_v10  ;;  %12911 = vst [vmem:[#allocation189_spill] sm:$0xff] %v11584_v3  ;;  %v11600_v44 = vmul.f32 %v11370_v60, %v12916_v32  ;;  %v12918_v10 = vld [vmem:[#allocation221_spill] sm:$0xff]  ;;  %v12920_v3 = vld [vmem:[#allocation24_spill] sm:$0xff] }
 0x710   :  { %12912 = vst [vmem:[#allocation224_spill] sm:$0xff] %v11588_v36  ;;  %12913 = vst [vmem:[#allocation3_spill] sm:$0xff] %v11592_v30  ;;  %v11604_v28 = vmul.f32 %v11370_v60, %v12918_v10  ;;  %v11608_v8 = vmul.f32 %v11370_v60, %v12920_v3  ;;  %v12922_v36 = vld [vmem:[#allocation214_spill] sm:$0xff]  ;;  %v11615_v30 = vrot.slane %v5728_v24, %v12893_v37  ;;  %v12924_v32 = vld [vmem:[#allocation68_spill] sm:$0xff] }
 0x711   :  { %12915 = vst [vmem:[#allocation218_spill] sm:$0xff] %v11596_v1  ;;  %12917 = vst [vmem:[#allocation7_spill] sm:$0xff] %v11600_v44  ;;  %v11612_v14 = vmul.f32 %v11370_v60, %v12922_v36  ;;  %v11619_v1 = vmul.f32 %v11370_v60, %v12923_v39  ;;  %v11623_v44 = vmul.f32 %v11370_v60, %v12924_v32  ;;  %v12925_v10 = vld [vmem:[#allocation126_spill] sm:$0xff]  ;;  %v12926_v3 = vld [vmem:[#allocation71_spill] sm:$0xff] }
 0x712   :  { %12919 = vst [vmem:[#allocation70_spill] sm:$0xff] %v11604_v28  ;;  %12921 = vst [vmem:[#allocation73_spill] sm:$0xff] %v11608_v8  ;;  %v11627_v28 = vmul.f32 %v11370_v60, %v12925_v10  ;;  %v11631_v8 = vmul.f32 %v11370_v60, %v12926_v3  ;;  %v11635_v37 = vadd.f32 %v11615_v30, %v11376_v34 }
 0x713   :  { %v11639_v24 = vadd.f32 %v11615_v30, %v11380_v18  ;;  %v11643_v36 = vadd.f32 %v11615_v30, %v11384_v42  ;;  %v11647_v39 = vadd.f32 %v11615_v30, %v11388_v58  ;;  %v11651_v60 = vadd.f32 %v11615_v30, %v11392_v16 }
 0x714   :  { %v11655_v34 = vadd.f32 %v11615_v30, %v11396_v26  ;;  %v11659_v18 = vadd.f32 %v11615_v30, %v11400_v35  ;;  %v11663_v42 = vadd.f32 %v11615_v30, %v11404_v41  ;;  %v11667_v58 = vadd.f32 %v11615_v30, %v11408_v49 }
 0x715   :  { %v11671_v16 = vadd.f32 %v11615_v30, %v11412_v43  ;;  %v11675_v26 = vadd.f32 %v11615_v30, %v11416_v25  ;;  %v11679_v35 = vadd.f32 %v11615_v30, %v11420_v22  ;;  %v11683_v41 = vadd.f32 %v11615_v30, %v11424_v33  ;;  %v12930_v32 = vld [vmem:[#allocation129_spill] sm:$0xff] }
 0x716   :  { %v11687_v49 = vadd.f32 %v11615_v30, %v11428_v15  ;;  %v11691_v43 = vadd.f32 %v11615_v30, %v11432_v19  ;;  %v11695_v25 = vadd.f32 %v11615_v30, %v11436_v29  ;;  %v11699_v22 = vadd.f32 %v11615_v30, %v11440_v53  ;;  %v12932_v10 = vld [vmem:[#allocation186_spill] sm:$0xff]  ;;  %v12934_v3 = vld [vmem:[#allocation189_spill] sm:$0xff] }
 0x717   :  { %v11703_v33 = vadd.f32 %v11615_v30, %v11444_v7  ;;  %v11707_v15 = vadd.f32 %v11615_v30, %v11448_v20  ;;  %v11711_v19 = vadd.f32 %v11615_v30, %v11452_v59  ;;  %v11715_v29 = vadd.f32 %v11615_v30, %v11456_v55 }
 0x718   :  { %v11719_v53 = vadd.f32 %v11615_v30, %v11460_v23  ;;  %v11723_v7 = vadd.f32 %v11615_v30, %v11464_v46  ;;  %v11727_v20 = vadd.f32 %v11615_v30, %v11468_v12  ;;  %v11731_v59 = vadd.f32 %v11615_v30, %v11472_v47 }
 0x719   :  { %v11735_v55 = vadd.f32 %v11615_v30, %v11476_v9  ;;  %v11739_v23 = vadd.f32 %v11615_v30, %v11480_v13  ;;  %v11743_v46 = vadd.f32 %v11615_v30, %v11484_v17  ;;  %v11747_v12 = vadd.f32 %v11615_v30, %v11488_v45 }
 0x71a   :  { %v11751_v47 = vadd.f32 %v11615_v30, %v11492_v57  ;;  %v11755_v9 = vadd.f32 %v11615_v30, %v11496_v61  ;;  %v11759_v13 = vadd.f32 %v11615_v30, %v11500_v40  ;;  %v11763_v17 = vadd.f32 %v11615_v30, %v11504_v2 }
 0x71b   :  { %v11767_v45 = vadd.f32 %v11615_v30, %v11508_v0  ;;  %v11771_v57 = vadd.f32 %v11615_v30, %v11512_v21  ;;  %v11775_v61 = vadd.f32 %v11615_v30, %v11516_v52  ;;  %v11779_v40 = vadd.f32 %v11615_v30, %v11520_v56 }
 0x71c   :  { %v11783_v2 = vadd.f32 %v11615_v30, %v11524_v5  ;;  %v11787_v0 = vadd.f32 %v11615_v30, %v11528_v50  ;;  %v11791_v21 = vadd.f32 %v11615_v30, %v11532_v48  ;;  %v11795_v52 = vadd.f32 %v11615_v30, %v11536_v38 }
 0x71d   :  { %v11799_v56 = vadd.f32 %v11615_v30, %v11540_v27  ;;  %v11803_v5 = vadd.f32 %v11615_v30, %v11544_v62  ;;  %v11807_v50 = vadd.f32 %v11615_v30, %v11548_v63  ;;  %v11811_v48 = vadd.f32 %v11615_v30, %v11552_v6 }
 0x71e   :  { %v11815_v38 = vadd.f32 %v11615_v30, %v11556_v11  ;;  %v11819_v27 = vadd.f32 %v11615_v30, %v11560_v4  ;;  %v11823_v62 = vadd.f32 %v11615_v30, %v11564_v31  ;;  %v11827_v63 = vadd.f32 %v11615_v30, %v11568_v51 }
 0x71f   :  { %v11831_v6 = vadd.f32 %v11615_v30, %v11572_v54  ;;  %v11835_v11 = vadd.f32 %v11615_v30, %v12930_v32  ;;  %v11839_v4 = vadd.f32 %v11615_v30, %v12932_v10  ;;  %v11843_v31 = vadd.f32 %v11615_v30, %v12934_v3 }
 0x720   :  { %12927 = vst [vmem:[#allocation128_spill] sm:$0xff] %v11823_v62  ;;  %12928 = vst [vmem:[#allocation131_spill] sm:$0xff] %v11827_v63  ;;  %v12936_v62 = vld [vmem:[#allocation224_spill] sm:$0xff]  ;;  %v12937_v63 = vld [vmem:[#allocation3_spill] sm:$0xff] }
 0x721   :  { %12929 = vst [vmem:[#allocation188_spill] sm:$0xff] %v11831_v6  ;;  %12931 = vst [vmem:[#allocation191_spill] sm:$0xff] %v11835_v11  ;;  %v11847_v51 = vadd.f32 %v11615_v30, %v12936_v62  ;;  %v11851_v54 = vadd.f32 %v11615_v30, %v12937_v63  ;;  %v12938_v6 = vld [vmem:[#allocation218_spill] sm:$0xff]  ;;  %v12939_v11 = vld [vmem:[#allocation7_spill] sm:$0xff]  ;;  %v11871_v63 = vadd.f32 %v11615_v30, %v11612_v14  ;;  %v5870_v14 = vmax.f32 %v11639_v24, 0.0 }
 0x722   :  { %12933 = vst [vmem:[#allocation4_spill] sm:$0xff] %v11839_v4  ;;  %12935 = vst [vmem:[#allocation9_spill] sm:$0xff] %v11843_v31  ;;  %v11855_v32 = vadd.f32 %v11615_v30, %v12938_v6  ;;  %v11859_v10 = vadd.f32 %v11615_v30, %v12939_v11  ;;  %v12940_v4 = vld [vmem:[#allocation70_spill] sm:$0xff]  ;;  %v12941_v31 = vld [vmem:[#allocation73_spill] sm:$0xff]  ;;  %v11875_v6 = vadd.f32 %v11615_v30, %v11619_v1  ;;  %v5872_v1 = vmax.f32 %v11647_v39, 0.0 }
 0x723   :  { %v11863_v3 = vadd.f32 %v11615_v30, %v12940_v4  ;;  %v11867_v62 = vadd.f32 %v11615_v30, %v12941_v31  ;;  %12943 = vst [vmem:[#allocation75_spill] sm:$0xff] %v11871_v63  ;;  %v11879_v11 = vadd.f32 %v11615_v30, %v11623_v44  ;;  %v11883_v4 = vadd.f32 %v11615_v30, %v11627_v28 }
 0x724   :  { %12944 = vst [vmem:[#allocation130_spill] sm:$0xff] %v11875_v6  ;;  %v11887_v31 = vadd.f32 %v11615_v30, %v11631_v8  ;;  %v5871_v63 = vmax.f32 %v11643_v36, 0.0  ;;  %v5873_v6 = vmax.f32 %v11651_v60, 0.0  ;;  %v5874_v44 = vmax.f32 %v11655_v34, 0.0  ;;  %5934 = vst.msk [vmem:[%s12220_s11 + $0x8] sm:$0xff] %vm826_vm2, %v5870_v14 }
 0x725   :  { %12942 = vst [vmem:[#allocation72_spill] sm:$0xff] %v11867_v62  ;;  %12945 = vst [vmem:[#allocation133_spill] sm:$0xff] %v11879_v11  ;;  %v5869_v62 = vmax.f32 %v11635_v37, 0.0  ;;  %v5875_v11 = vmax.f32 %v11659_v18, 0.0  ;;  %v5876_v28 = vmax.f32 %v11663_v42, 0.0  ;;  %v5878_v30 = vmax.f32 %v11671_v16, 0.0 }
 0x726   :  { %12946 = vst [vmem:[#allocation190_spill] sm:$0xff] %v11883_v4  ;;  %v5877_v4 = vmax.f32 %v11667_v58, 0.0  ;;  %v5879_v8 = vmax.f32 %v11675_v26, 0.0  ;;  %v5880_v37 = vmax.f32 %v11679_v35, 0.0  ;;  %5935 = vst.msk [vmem:[%s12220_s11 + $0x10] sm:$0xff] %vm826_vm2, %v5871_v63  ;;  %v5881_v24 = vmax.f32 %v11683_v41, 0.0 }
 0x727   :  { %5933 = vst.msk [vmem:[%s12220_s11] sm:$0xff] %vm826_vm2, %v5869_v62  ;;  %5936 = vst.msk [vmem:[%s12220_s11 + $0x18] sm:$0xff] %vm826_vm2, %v5872_v1  ;;  %v5882_v36 = vmax.f32 %v11687_v49, 0.0  ;;  %v5883_v39 = vmax.f32 %v11691_v43, 0.0  ;;  %v5884_v60 = vmax.f32 %v11695_v25, 0.0  ;;  %v5885_v34 = vmax.f32 %v11699_v22, 0.0 }
 0x728   :  { %5937 = vst.msk [vmem:[%s12220_s11 + $0x20] sm:$0xff] %vm826_vm2, %v5873_v6  ;;  %5938 = vst.msk [vmem:[%s12220_s11 + $0x28] sm:$0xff] %vm826_vm2, %v5874_v44  ;;  %v5886_v18 = vmax.f32 %v11703_v33, 0.0  ;;  %v5887_v42 = vmax.f32 %v11707_v15, 0.0  ;;  %v5888_v58 = vmax.f32 %v11711_v19, 0.0  ;;  %v5889_v16 = vmax.f32 %v11715_v29, 0.0 }
 0x729   :  { %5939 = vst.msk [vmem:[%s12220_s11 + $0x30] sm:$0xff] %vm826_vm2, %v5875_v11  ;;  %5940 = vst.msk [vmem:[%s12220_s11 + $0x38] sm:$0xff] %vm826_vm2, %v5876_v28  ;;  %v5890_v26 = vmax.f32 %v11719_v53, 0.0  ;;  %v5891_v35 = vmax.f32 %v11723_v7, 0.0  ;;  %v5892_v41 = vmax.f32 %v11727_v20, 0.0  ;;  %v5893_v49 = vmax.f32 %v11731_v59, 0.0 }
 0x72a   :  { %5941 = vst.msk [vmem:[%s12220_s11 + $0x40] sm:$0xff] %vm826_vm2, %v5877_v4  ;;  %5942 = vst.msk [vmem:[%s12220_s11 + $0x48] sm:$0xff] %vm826_vm2, %v5878_v30  ;;  %v5894_v43 = vmax.f32 %v11735_v55, 0.0  ;;  %v5895_v25 = vmax.f32 %v11739_v23, 0.0  ;;  %v5896_v22 = vmax.f32 %v11743_v46, 0.0  ;;  %v5897_v33 = vmax.f32 %v11747_v12, 0.0 }
 0x72b   :  { %5943 = vst.msk [vmem:[%s12220_s11 + $0x50] sm:$0xff] %vm826_vm2, %v5879_v8  ;;  %5944 = vst.msk [vmem:[%s12220_s11 + $0x58] sm:$0xff] %vm826_vm2, %v5880_v37  ;;  %v5898_v15 = vmax.f32 %v11751_v47, 0.0  ;;  %v5899_v19 = vmax.f32 %v11755_v9, 0.0  ;;  %v5900_v29 = vmax.f32 %v11759_v13, 0.0  ;;  %v5901_v53 = vmax.f32 %v11763_v17, 0.0 }
 0x72c   :  { %5945 = vst.msk [vmem:[%s12220_s11 + $0x60] sm:$0xff] %vm826_vm2, %v5881_v24  ;;  %5946 = vst.msk [vmem:[%s12220_s11 + $0x68] sm:$0xff] %vm826_vm2, %v5882_v36  ;;  %v5902_v7 = vmax.f32 %v11767_v45, 0.0  ;;  %v5903_v20 = vmax.f32 %v11771_v57, 0.0  ;;  %v5904_v59 = vmax.f32 %v11775_v61, 0.0  ;;  %v5905_v55 = vmax.f32 %v11779_v40, 0.0 }
 0x72d   :  { %5947 = vst.msk [vmem:[%s12220_s11 + $0x70] sm:$0xff] %vm826_vm2, %v5883_v39  ;;  %5948 = vst.msk [vmem:[%s12220_s11 + $0x78] sm:$0xff] %vm826_vm2, %v5884_v60  ;;  %v5906_v23 = vmax.f32 %v11783_v2, 0.0  ;;  %v5907_v46 = vmax.f32 %v11787_v0, 0.0  ;;  %v5908_v12 = vmax.f32 %v11791_v21, 0.0  ;;  %v5909_v47 = vmax.f32 %v11795_v52, 0.0 }
 0x72e   :  { %5949 = vst.msk [vmem:[%s12220_s11 + $0x80] sm:$0xff] %vm826_vm2, %v5885_v34  ;;  %5950 = vst.msk [vmem:[%s12220_s11 + $0x88] sm:$0xff] %vm826_vm2, %v5886_v18  ;;  %v5910_v9 = vmax.f32 %v11799_v56, 0.0  ;;  %v5911_v13 = vmax.f32 %v11803_v5, 0.0  ;;  %v5912_v17 = vmax.f32 %v11807_v50, 0.0  ;;  %v5913_v45 = vmax.f32 %v11811_v48, 0.0 }
 0x72f   :  { %5951 = vst.msk [vmem:[%s12220_s11 + $0x90] sm:$0xff] %vm826_vm2, %v5887_v42  ;;  %5952 = vst.msk [vmem:[%s12220_s11 + $0x98] sm:$0xff] %vm826_vm2, %v5888_v58  ;;  %v5914_v57 = vmax.f32 %v11815_v38, 0.0  ;;  %v5915_v61 = vmax.f32 %v11819_v27, 0.0  ;;  %v12947_v40 = vld [vmem:[#allocation128_spill] sm:$0xff]  ;;  %v12948_v0 = vld [vmem:[#allocation131_spill] sm:$0xff] }
 0x730   :  { %5953 = vst.msk [vmem:[%s12220_s11 + $0xa0] sm:$0xff] %vm826_vm2, %v5889_v16  ;;  %5954 = vst.msk [vmem:[%s12220_s11 + $0xa8] sm:$0xff] %vm826_vm2, %v5890_v26  ;;  %v5916_v2 = vmax.f32 %v12947_v40, 0.0  ;;  %v5917_v21 = vmax.f32 %v12948_v0, 0.0  ;;  %v12949_v52 = vld [vmem:[#allocation188_spill] sm:$0xff]  ;;  %v12950_v5 = vld [vmem:[#allocation191_spill] sm:$0xff] }
 0x731   :  { %5955 = vst.msk [vmem:[%s12220_s11 + $0xb0] sm:$0xff] %vm826_vm2, %v5891_v35  ;;  %5956 = vst.msk [vmem:[%s12220_s11 + $0xb8] sm:$0xff] %vm826_vm2, %v5892_v41  ;;  %v5918_v56 = vmax.f32 %v12949_v52, 0.0  ;;  %v5919_v50 = vmax.f32 %v12950_v5, 0.0  ;;  %v12951_v48 = vld [vmem:[#allocation4_spill] sm:$0xff]  ;;  %v12952_v27 = vld [vmem:[#allocation9_spill] sm:$0xff] }
 0x732   :  { %5957 = vst.msk [vmem:[%s12220_s11 + $0xc0] sm:$0xff] %vm826_vm2, %v5893_v49  ;;  %5958 = vst.msk [vmem:[%s12220_s11 + $0xc8] sm:$0xff] %vm826_vm2, %v5894_v43  ;;  %v5920_v38 = vmax.f32 %v12951_v48, 0.0  ;;  %v5921_v62 = vmax.f32 %v12952_v27, 0.0  ;;  %v5922_v63 = vmax.f32 %v11847_v51, 0.0  ;;  %v5923_v6 = vmax.f32 %v11851_v54, 0.0 }
 0x733   :  { %5959 = vst.msk [vmem:[%s12220_s11 + $0xd0] sm:$0xff] %vm826_vm2, %v5895_v25  ;;  %5960 = vst.msk [vmem:[%s12220_s11 + $0xd8] sm:$0xff] %vm826_vm2, %v5896_v22  ;;  %v5924_v11 = vmax.f32 %v11855_v32, 0.0  ;;  %v5925_v51 = vmax.f32 %v11859_v10, 0.0  ;;  %v5926_v54 = vmax.f32 %v11863_v3, 0.0  ;;  %v12953_v32 = vld [vmem:[#allocation72_spill] sm:$0xff] }
 0x734   :  { %5961 = vst.msk [vmem:[%s12220_s11 + $0xe0] sm:$0xff] %vm826_vm2, %v5897_v33  ;;  %5962 = vst.msk [vmem:[%s12220_s11 + $0xe8] sm:$0xff] %vm826_vm2, %v5898_v15  ;;  %v5927_v4 = vmax.f32 %v12953_v32, 0.0  ;;  %v12954_v14 = vld [vmem:[#allocation75_spill] sm:$0xff]  ;;  %v12955_v10 = vld [vmem:[#allocation130_spill] sm:$0xff]  ;;  %v5932_v37 = vmax.f32 %v11887_v31, 0.0 }
 0x735   :  { %5963 = vst.msk [vmem:[%s12220_s11 + $0xf0] sm:$0xff] %vm826_vm2, %v5899_v19  ;;  %5964 = vst.msk [vmem:[%s12220_s11 + $0xf8] sm:$0xff] %vm826_vm2, %v5900_v29  ;;  %v5928_v1 = vmax.f32 %v12954_v14, 0.0  ;;  %v5929_v3 = vmax.f32 %v12955_v10, 0.0  ;;  %v12956_v44 = vld [vmem:[#allocation133_spill] sm:$0xff]  ;;  %v12957_v30 = vld [vmem:[#allocation190_spill] sm:$0xff] }
 0x736   :  { %5965 = vst.msk [vmem:[%s12220_s11 + $0x100] sm:$0xff] %vm826_vm2, %v5901_v53  ;;  %5966 = vst.msk [vmem:[%s12220_s11 + $0x108] sm:$0xff] %vm826_vm2, %v5902_v7  ;;  %v5930_v28 = vmax.f32 %v12956_v44, 0.0  ;;  %v5931_v8 = vmax.f32 %v12957_v30, 0.0 }
 0x737   :  { %5967 = vst.msk [vmem:[%s12220_s11 + $0x110] sm:$0xff] %vm826_vm2, %v5903_v20  ;;  %5968 = vst.msk [vmem:[%s12220_s11 + $0x118] sm:$0xff] %vm826_vm2, %v5904_v59 }
 0x738   :  { %5969 = vst.msk [vmem:[%s12220_s11 + $0x120] sm:$0xff] %vm826_vm2, %v5905_v55  ;;  %5970 = vst.msk [vmem:[%s12220_s11 + $0x128] sm:$0xff] %vm826_vm2, %v5906_v23 }
 0x739   :  { %5971 = vst.msk [vmem:[%s12220_s11 + $0x130] sm:$0xff] %vm826_vm2, %v5907_v46  ;;  %5972 = vst.msk [vmem:[%s12220_s11 + $0x138] sm:$0xff] %vm826_vm2, %v5908_v12 }
 0x73a   :  { %5973 = vst.msk [vmem:[%s12220_s11 + $0x140] sm:$0xff] %vm826_vm2, %v5909_v47  ;;  %5974 = vst.msk [vmem:[%s12220_s11 + $0x148] sm:$0xff] %vm826_vm2, %v5910_v9 }
 0x73b   :  { %5975 = vst.msk [vmem:[%s12220_s11 + $0x150] sm:$0xff] %vm826_vm2, %v5911_v13  ;;  %5976 = vst.msk [vmem:[%s12220_s11 + $0x158] sm:$0xff] %vm826_vm2, %v5912_v17 }
 0x73c   :  { %5977 = vst.msk [vmem:[%s12220_s11 + $0x160] sm:$0xff] %vm826_vm2, %v5913_v45  ;;  %5978 = vst.msk [vmem:[%s12220_s11 + $0x168] sm:$0xff] %vm826_vm2, %v5914_v57 }
 0x73d   :  { %5979 = vst.msk [vmem:[%s12220_s11 + $0x170] sm:$0xff] %vm826_vm2, %v5915_v61  ;;  %5980 = vst.msk [vmem:[%s12220_s11 + $0x178] sm:$0xff] %vm826_vm2, %v5916_v2 }
 0x73e   :  { %5981 = vst.msk [vmem:[%s12220_s11 + $0x180] sm:$0xff] %vm826_vm2, %v5917_v21  ;;  %5982 = vst.msk [vmem:[%s12220_s11 + $0x188] sm:$0xff] %vm826_vm2, %v5918_v56 }
 0x73f   :  { %5983 = vst.msk [vmem:[%s12220_s11 + $0x190] sm:$0xff] %vm826_vm2, %v5919_v50  ;;  %5984 = vst.msk [vmem:[%s12220_s11 + $0x198] sm:$0xff] %vm826_vm2, %v5920_v38 }
 0x740   :  { %5985 = vst.msk [vmem:[%s12220_s11 + $0x1a0] sm:$0xff] %vm826_vm2, %v5921_v62  ;;  %5986 = vst.msk [vmem:[%s12220_s11 + $0x1a8] sm:$0xff] %vm826_vm2, %v5922_v63 }
 0x741   :  { %5987 = vst.msk [vmem:[%s12220_s11 + $0x1b0] sm:$0xff] %vm826_vm2, %v5923_v6  ;;  %5988 = vst.msk [vmem:[%s12220_s11 + $0x1b8] sm:$0xff] %vm826_vm2, %v5924_v11 }
 0x742   :  { %5989 = vst.msk [vmem:[%s12220_s11 + $0x1c0] sm:$0xff] %vm826_vm2, %v5925_v51  ;;  %5990 = vst.msk [vmem:[%s12220_s11 + $0x1c8] sm:$0xff] %vm826_vm2, %v5926_v54 }
 0x743   :  { %5991 = vst.msk [vmem:[%s12220_s11 + $0x1d0] sm:$0xff] %vm826_vm2, %v5927_v4  ;;  %5992 = vst.msk [vmem:[%s12220_s11 + $0x1d8] sm:$0xff] %vm826_vm2, %v5928_v1 }
 0x744   :  { %5993 = vst.msk [vmem:[%s12220_s11 + $0x1e0] sm:$0xff] %vm826_vm2, %v5929_v3  ;;  %5994 = vst.msk [vmem:[%s12220_s11 + $0x1e8] sm:$0xff] %vm826_vm2, %v5930_v28 }
 0x745   :  { %5995 = vst.msk [vmem:[%s12220_s11 + $0x1f0] sm:$0xff] %vm826_vm2, %v5931_v8  ;;  %5996 = vst.msk [vmem:[%s12220_s11 + $0x1f8] sm:$0xff] %vm826_vm2, %v5932_v37 }

</bundles_post_ra>
